<compile_context>
chip_gen: v5e
topology: v5e:2x2
jax: 0.10.0
libtpu: 0.0.40
codegen_flags: <defaults>
</compile_context>

<pallas_src>
import functools
import math

import jax
import jax.numpy as jnp
from jax.experimental import pallas as pl
from jax.experimental.pallas import tpu as pltpu


# ------------------------------ small helpers ------------------------------

def _round_up(x, m):
    return ((x + m - 1) // m) * m


# --------------------- fused (LN?) + matmul (+res) kernel -------------------

def _make_linear_kernel(has_ln, has_res, activation, eps):
    def body(x, g, be, w, b, res):
        if has_ln:
            mu = jnp.mean(x, axis=-1, keepdims=True)
            var = jnp.mean((x - mu) ** 2, axis=-1, keepdims=True)
            x = (x - mu) * jax.lax.rsqrt(var + eps) * g + be
        acc = jnp.dot(x.astype(jnp.bfloat16), w,
                      preferred_element_type=jnp.float32) + b
        if activation == "relu":
            acc = jnp.maximum(acc, 0.0)
        if has_res:
            acc = acc + res
        return acc

    if has_ln and has_res:
        def kernel(x_ref, g_ref, be_ref, w_ref, b_ref, r_ref, o_ref):
            o_ref[...] = body(x_ref[...], g_ref[...], be_ref[...],
                              w_ref[...], b_ref[...], r_ref[...]).astype(o_ref.dtype)
    elif has_ln:
        def kernel(x_ref, g_ref, be_ref, w_ref, b_ref, o_ref):
            o_ref[...] = body(x_ref[...], g_ref[...], be_ref[...],
                              w_ref[...], b_ref[...], None).astype(o_ref.dtype)
    elif has_res:
        def kernel(x_ref, w_ref, b_ref, r_ref, o_ref):
            o_ref[...] = body(x_ref[...], None, None,
                              w_ref[...], b_ref[...], r_ref[...]).astype(o_ref.dtype)
    else:
        def kernel(x_ref, w_ref, b_ref, o_ref):
            o_ref[...] = body(x_ref[...], None, None,
                              w_ref[...], b_ref[...], None).astype(o_ref.dtype)
    return kernel


def fused_linear(x, w, b, *, ln=None, activation=None, residual=None,
                 eps=1e-5, block_m=256):
    """y = act(LN(x) @ w + b) (+ residual), row-tiled over the flattened rows."""
    lead = x.shape[:-1]
    K = x.shape[-1]
    N = w.shape[-1]
    x2 = x.reshape(-1, K)
    M = x2.shape[0]
    bm = min(block_m, _round_up(M, 8))
    Mp = _round_up(M, bm)
    pad = Mp - M
    if pad:
        x2 = jnp.pad(x2, ((0, pad), (0, 0)))

    inputs = [x2]
    in_specs = [pl.BlockSpec((bm, K), lambda i: (i, 0))]
    if ln is not None:
        g, beta = ln
        inputs += [g.reshape(1, K), beta.reshape(1, K)]
        in_specs += [pl.BlockSpec((1, K), lambda i: (0, 0)),
                     pl.BlockSpec((1, K), lambda i: (0, 0))]
    inputs += [w.astype(jnp.bfloat16), b.reshape(1, N)]
    in_specs += [pl.BlockSpec((K, N), lambda i: (0, 0)),
                 pl.BlockSpec((1, N), lambda i: (0, 0))]
    if residual is not None:
        r2 = residual.reshape(-1, N)
        if pad:
            r2 = jnp.pad(r2, ((0, pad), (0, 0)))
        inputs.append(r2)
        in_specs.append(pl.BlockSpec((bm, N), lambda i: (i, 0)))

    out = pl.pallas_call(
        _make_linear_kernel(ln is not None, residual is not None, activation, eps),
        grid=(Mp // bm,),
        in_specs=in_specs,
        out_specs=pl.BlockSpec((bm, N), lambda i: (i, 0)),
        out_shape=jax.ShapeDtypeStruct((Mp, N), jnp.float32),
        compiler_params=pltpu.CompilerParams(
            dimension_semantics=("parallel",)),
    )(*inputs)
    if pad:
        out = out[:M]
    return out.reshape(*lead, N)


# --------------------- fused LN -> FFN (+residual) kernel --------------------

def _make_ln_mlp_kernel(eps, residual):
    def kernel(x_ref, g_ref, be_ref, w1_ref, b1_ref, w2_ref, b2_ref, o_ref):
        x = x_ref[...]
        mu = jnp.mean(x, axis=-1, keepdims=True)
        var = jnp.mean((x - mu) ** 2, axis=-1, keepdims=True)
        xn = (x - mu) * jax.lax.rsqrt(var + eps) * g_ref[...] + be_ref[...]
        h = jnp.dot(xn.astype(jnp.bfloat16), w1_ref[...],
                    preferred_element_type=jnp.float32) + b1_ref[...]
        h = jnp.maximum(h, 0.0)
        y = jnp.dot(h.astype(jnp.bfloat16), w2_ref[...],
                    preferred_element_type=jnp.float32) + b2_ref[...]
        if residual:
            y = y + x
        o_ref[...] = y.astype(o_ref.dtype)
    return kernel


def ln_mlp(x, g, beta, w1, b1, w2, b2, *, residual, eps=1e-5, block_m=256):
    """y = (x +) W2(relu(W1(LN(x)))) — LN, both matmuls and residual fused."""
    lead = x.shape[:-1]
    D = x.shape[-1]
    H1 = w1.shape[-1]
    Dout = w2.shape[-1]
    x2 = x.reshape(-1, D)
    M = x2.shape[0]
    bm = min(block_m, _round_up(M, 8))
    Mp = _round_up(M, bm)
    pad = Mp - M
    if pad:
        x2 = jnp.pad(x2, ((0, pad), (0, 0)))
    out = pl.pallas_call(
        _make_ln_mlp_kernel(eps, residual),
        grid=(Mp // bm,),
        in_specs=[pl.BlockSpec((bm, D), lambda i: (i, 0)),
                  pl.BlockSpec((1, D), lambda i: (0, 0)),
                  pl.BlockSpec((1, D), lambda i: (0, 0)),
                  pl.BlockSpec((D, H1), lambda i: (0, 0)),
                  pl.BlockSpec((1, H1), lambda i: (0, 0)),
                  pl.BlockSpec((H1, Dout), lambda i: (0, 0)),
                  pl.BlockSpec((1, Dout), lambda i: (0, 0))],
        out_specs=pl.BlockSpec((bm, Dout), lambda i: (i, 0)),
        out_shape=jax.ShapeDtypeStruct((Mp, Dout), jnp.float32),
        compiler_params=pltpu.CompilerParams(
            dimension_semantics=("parallel",)),
    )(x2, g.reshape(1, D), beta.reshape(1, D),
      w1.astype(jnp.bfloat16), b1.reshape(1, H1),
      w2.astype(jnp.bfloat16), b2.reshape(1, Dout))
    if pad:
        out = out[:M]
    return out.reshape(*lead, Dout)


# ------------------------- flash-style attention ----------------------------

def _make_flash_kernel(has_bias, scale, n_heads):
    def step(q_ref, k_ref, v_ref, b_ref, o_ref, m_sc, l_sc, acc_sc):
        kv = pl.program_id(1)

        @pl.when(kv == 0)
        def _():
            m_sc[...] = jnp.full_like(m_sc, -jnp.inf)
            l_sc[...] = jnp.zeros_like(l_sc)
            acc_sc[...] = jnp.zeros_like(acc_sc)

        q = q_ref[0]                      # (R, L, Dh)  bf16
        k = k_ref[0]                      # (R, TK, Dh) bf16
        v = v_ref[0]                      # (R, TK, Dh) bf16
        s = jnp.einsum("rqd,rkd->rqk", q, k,
                       preferred_element_type=jnp.float32) * scale
        if has_bias:
            R, L, TK = s.shape
            s = (s.reshape(R // n_heads, n_heads, L, TK)
                 + b_ref[...]).reshape(R, L, TK)     # bias (1,H,L,TK) broadcast
        m_prev = m_sc[...]
        m_new = jnp.maximum(m_prev, jnp.max(s, axis=-1, keepdims=True))
        alpha = jnp.exp(m_prev - m_new)
        p = jnp.exp(s - m_new)
        l_sc[...] = alpha * l_sc[...] + jnp.sum(p, axis=-1, keepdims=True)
        acc_sc[...] = alpha * acc_sc[...] + jnp.einsum(
            "rqk,rkd->rqd", p.astype(v.dtype), v,
            preferred_element_type=jnp.float32)
        m_sc[...] = m_new

        @pl.when(kv == pl.num_programs(1) - 1)
        def _():
            o_ref[0] = (acc_sc[...] *
                        pl.reciprocal(l_sc[...], approx=True)).astype(o_ref.dtype)

    if has_bias:
        def kernel(q_ref, k_ref, v_ref, b_ref, o_ref, m_sc, l_sc, acc_sc):
            step(q_ref, k_ref, v_ref, b_ref, o_ref, m_sc, l_sc, acc_sc)
    else:
        def kernel(q_ref, k_ref, v_ref, o_ref, m_sc, l_sc, acc_sc):
            step(q_ref, k_ref, v_ref, None, o_ref, m_sc, l_sc, acc_sc)
    return kernel


def flash_attention(q, k, v, bias=None, *, n_heads, block_k=128):
    """softmax(q k^T / sqrt(Dh) [+ bias]) v with key-tiled online softmax.

    q, k, v : (G, R, L, Dh) — G grid groups (batch), R = rows*heads per step.
    bias    : (G, H, L, L) or None (no zero tensor is ever materialized).
    """
    G, R, L, Dh = q.shape
    # TODO(synk): mask ragged key tiles if L is not a multiple of block_k.
    TK = block_k if L % block_k == 0 else L
    nk = L // TK
    scale = 1.0 / math.sqrt(Dh)

    qb = q.astype(jnp.bfloat16)
    kb = k.astype(jnp.bfloat16)
    vb = v.astype(jnp.bfloat16)

    in_specs = [pl.BlockSpec((1, R, L, Dh), lambda g, kv: (g, 0, 0, 0)),
                pl.BlockSpec((1, R, TK, Dh), lambda g, kv: (g, 0, kv, 0)),
                pl.BlockSpec((1, R, TK, Dh), lambda g, kv: (g, 0, kv, 0))]
    args = [qb, kb, vb]
    if bias is not None:
        in_specs.append(
            pl.BlockSpec((1, n_heads, L, TK), lambda g, kv: (g, 0, 0, kv)))
        args.append(bias)

    return pl.pallas_call(
        _make_flash_kernel(bias is not None, scale, n_heads),
        grid=(G, nk),
        in_specs=in_specs,
        out_specs=pl.BlockSpec((1, R, L, Dh), lambda g, kv: (g, 0, 0, 0)),
        out_shape=jax.ShapeDtypeStruct((G, R, L, Dh), jnp.float32),
        scratch_shapes=[pltpu.VMEM((R, L, 1), jnp.float32),
                        pltpu.VMEM((R, L, 1), jnp.float32),
                        pltpu.VMEM((R, L, Dh), jnp.float32)],
        compiler_params=pltpu.CompilerParams(
            dimension_semantics=("parallel", "arbitrary")),
    )(*args)


# ------------------------------- model blocks -------------------------------

def input_embed(seq, p, cfg):
    # TODO(synk): input_pair_dim and the token vocab (14) from the reference
    # __init__ are unused because forward() only receives `seq`.
    B, L, _ = seq.shape
    Dm, Dp = cfg["msa_dim"], cfg["pair_dim"]
    # one fused matmul for the msa / left / right projections (seq read once)
    w_all = jnp.concatenate([p["w_msa"], p["w_left"], p["w_right"]], axis=1)
    b_all = jnp.concatenate([p["b_msa"], p["b_left"], p["b_right"]], axis=0)
    proj = fused_linear(seq, w_all, b_all)                      # (B, L, Dm+2Dp)
    msa_proj = proj[..., :Dm]
    left = proj[..., Dm:Dm + Dp]
    right = proj[..., Dm + Dp:]

    msa = msa_proj[:, None, :, :] + p["row_embed"][None, :, None, :]  # (B,S,L,Dm)
    pair = left[:, :, None, :] + right[:, None, :, :]                 # (B,L,L,Dp)
    rel = jnp.clip(jnp.arange(L)[:, None] - jnp.arange(L)[None, :], -32, 32) + 32
    pair = pair + p["relpos"][rel][None, :, :, :]
    return msa, pair


def encoder_msa_with_pair_bias(msa, pair, p, n_heads):
    B, S, L, D = msa.shape
    Dp = pair.shape[-1]
    Dh = D // n_heads
    x = msa.reshape(B * S * L, D)

    # LN1 + stacked QKV projection in one kernel
    qkv = fused_linear(x, p["w_qkv"], p["b_qkv"], ln=(p["ln1_g"], p["ln1_b"]))
    qkv = qkv.reshape(B, S, L, 3, n_heads, Dh).transpose(3, 0, 1, 4, 2, 5)
    qkv = qkv.reshape(3, B, S * n_heads, L, Dh)
    q, k, v = qkv[0], qkv[1], qkv[2]

    # pair LN + bias projection fused into one kernel
    # TODO(synk): the (B,L,L,H)->(B,H,L,L) transpose could also be fused into
    # the attention kernel to avoid one HBM round trip of the bias tensor.
    bias = fused_linear(pair.reshape(B * L * L, Dp), p["w_bias"], p["b_bias"],
                        ln=(p["lnp_g"], p["lnp_b"]))
    bias = jnp.transpose(bias.reshape(B, L, L, n_heads), (0, 3, 1, 2))

    o = flash_attention(q, k, v, bias=bias, n_heads=n_heads)    # (B, S*H, L, Dh)
    o = o.reshape(B, S, n_heads, L, Dh).transpose(0, 1, 3, 2, 4).reshape(-1, D)

    # output projection with fused residual add
    msa = fused_linear(o, p["wo"], p["bo"], residual=x).reshape(B, S, L, D)

    # LN2 + FFN + residual in one kernel
    msa = ln_mlp(msa.reshape(-1, D), p["ln2_g"], p["ln2_b"],
                 p["w_ff1"], p["b_ff1"], p["w_ff2"], p["b_ff2"],
                 residual=True).reshape(B, S, L, D)
    return msa, pair


def encoder_single_seq(seq, pair, p, n_heads):
    B, L, D = seq.shape
    Dh = D // n_heads
    x = seq.reshape(B * L, D)

    qkv = fused_linear(x, p["w_qkv"], p["b_qkv"], ln=(p["ln1_g"], p["ln1_b"]))
    qkv = qkv.reshape(B, L, 3, n_heads, Dh).transpose(2, 0, 3, 1, 4)
    q, k, v = qkv[0], qkv[1], qkv[2]                             # (B, H, L, Dh)

    # no-bias attention path ("WithoutPairBias") — no zero tensor is built
    o = flash_attention(q, k, v, bias=None, n_heads=n_heads)     # (B, H, L, Dh)
    o = o.transpose(0, 2, 1, 3).reshape(B * L, D)

    seq = fused_linear(o, p["wo"], p["bo"], residual=x)
    seq = ln_mlp(seq, p["ln2_g"], p["ln2_b"],
                 p["w_ff1"], p["b_ff1"], p["w_ff2"], p["b_ff2"],
                 residual=True).reshape(B, L, D)
    return seq, pair


def backbone_head(seq, p):
    B, L, D = seq.shape
    out = ln_mlp(seq.reshape(B * L, D), p["ln_g"], p["ln_b"],
                 p["w1"], p["b1"], p["w2"], p["b2"], residual=False)
    return out.reshape(B, L, -1)


def constraint_head(pair, p, cfg):
    # TODO(synk): bin counts (40 distance bins, 25 angle bins) are assumed;
    # head.ConstraintHead source was not provided.
    B, L, _, Dp = pair.shape
    db, ab = cfg["dist_bins"], cfg["angle_bins"]
    sym = pair + jnp.transpose(pair, (0, 2, 1, 3))

    # five heads fused into one lane-dense matmul (concat weights, pad to 256)
    w_cat = jnp.concatenate(
        [p["w_c4"], p["w_p"], p["w_n"], p["w_om"], p["w_la"]], axis=1)
    b_cat = jnp.concatenate(
        [p["b_c4"], p["b_p"], p["b_n"], p["b_om"], p["b_la"]], axis=0)
    total = 3 * db + 2 * ab
    n_pad = _round_up(total, 128) - total
    if n_pad:
        w_cat = jnp.pad(w_cat, ((0, 0), (0, n_pad)))
        b_cat = jnp.pad(b_cat, ((0, n_pad),))

    out = fused_linear(sym.reshape(B * L * L, Dp), w_cat, b_cat,
                       ln=(p["ln_g"], p["ln_b"]))
    out = out.reshape(B, L, L, total + n_pad)
    dist_C4 = out[..., 0:db]
    dist_P = out[..., db:2 * db]
    dist_N = out[..., 2 * db:3 * db]
    Omega = out[..., 3 * db:3 * db + ab]
    Lambda = out[..., 3 * db + ab:3 * db + 2 * ab]
    return dist_C4, dist_P, dist_N, Omega, Lambda


def msa_transformer_forward(seq, params, cfg):
    msa, pair = input_embed(seq, params["input_embed"], cfg)
    # checkpoint_sequential only changes memory behavior; forward == sequential
    for lp in params["transformer_1"]:
        msa, pair = encoder_msa_with_pair_bias(msa, pair, lp, cfg["n_heads"])
    single = msa[:, 0, :, :]
    for lp in params["transformer_2"]:
        single, pair = encoder_single_seq(single, pair, lp, cfg["n_heads"])
    seq_pred = backbone_head(single, params["seq_predict"])
    dist_C4, dist_P, dist_N, Omega, Lambda = constraint_head(
        pair, params["constraint_head"], cfg)
    return [seq_pred, dist_C4, dist_P, dist_N, Omega, Lambda]


# ------------------------- deterministic parameters -------------------------

def _dense(key, din, dout, scale=0.1):
    kw, kb = jax.random.split(key)
    return (jax.random.normal(kw, (din, dout), jnp.float32) * scale,
            jax.random.normal(kb, (dout,), jnp.float32) * scale)


def _ln(dim):
    return jnp.ones((dim,), jnp.float32), jnp.zeros((dim,), jnp.float32)


def init_params(key, cfg):
    dm, dp, dh, nh = cfg["msa_dim"], cfg["pair_dim"], cfg["hidden_dim"], cfg["n_heads"]
    ds = cfg["input_seq_dim"]
    keys = iter(jax.random.split(key, 256))

    def enc_layer(with_pair_bias):
        p = {}
        p["ln1_g"], p["ln1_b"] = _ln(dm)
        p["w_qkv"], p["b_qkv"] = _dense(next(keys), dm, 3 * dm)   # stacked Q|K|V
        p["wo"], p["bo"] = _dense(next(keys), dm, dm)
        p["ln2_g"], p["ln2_b"] = _ln(dm)
        p["w_ff1"], p["b_ff1"] = _dense(next(keys), dm, dh)
        p["w_ff2"], p["b_ff2"] = _dense(next(keys), dh, dm)
        if with_pair_bias:
            p["lnp_g"], p["lnp_b"] = _ln(dp)
            p["w_bias"], p["b_bias"] = _dense(next(keys), dp, nh)
        return p

    ie = {}
    ie["w_msa"], ie["b_msa"] = _dense(next(keys), ds, dm)
    ie["row_embed"] = jax.random.normal(next(keys), (cfg["n_seqs"], dm),
                                        jnp.float32) * 0.1
    ie["w_left"], ie["b_left"] = _dense(next(keys), ds, dp)
    ie["w_right"], ie["b_right"] = _dense(next(keys), ds, dp)
    ie["relpos"] = jax.random.normal(next(keys), (65, dp), jnp.float32) * 0.1

    bh = {}
    bh["ln_g"], bh["ln_b"] = _ln(dm)
    bh["w1"], bh["b1"] = _dense(next(keys), dm, dm)
    bh["w2"], bh["b2"] = _dense(next(keys), dm, cfg["backbone_out"])

    ch = {}
    ch["ln_g"], ch["ln_b"] = _ln(dp)
    ch["w_c4"], ch["b_c4"] = _dense(next(keys), dp, cfg["dist_bins"])
    ch["w_p"], ch["b_p"] = _dense(next(keys), dp, cfg["dist_bins"])
    ch["w_n"], ch["b_n"] = _dense(next(keys), dp, cfg["dist_bins"])
    ch["w_om"], ch["b_om"] = _dense(next(keys), dp, cfg["angle_bins"])
    ch["w_la"], ch["b_la"] = _dense(next(keys), dp, cfg["angle_bins"])

    return {
        "input_embed": ie,
        "transformer_1": [enc_layer(True) for _ in range(cfg["n_layers_1"])],
        "transformer_2": [enc_layer(False) for _ in range(cfg["n_layers_2"])],
        "seq_predict": bh,
        "constraint_head": ch,
    }


# --------------------------------- main -------------------------------------

if __name__ == "__main__":
    CFG = dict(
        input_seq_dim=6,     # input_seq_dim
        pair_dim=16,         # output_pair_dim
        n_seqs=4,            # output_msa_dim_1
        msa_dim=32,          # output_msa_dim_2
        n_heads=4,
        hidden_dim=64,
        n_layers_1=2,
        n_layers_2=2,
        backbone_out=6,
        dist_bins=40,
        angle_bins=25,
    )

    B, L = 2, 8
    seq = jax.random.normal(jax.random.PRNGKey(0), (B, L, CFG["input_seq_dim"]),
                            jnp.float32)
    params = init_params(jax.random.PRNGKey(42), CFG)

    fwd = jax.jit(lambda s, p: msa_transformer_forward(s, p, CFG))
    outs = fwd(seq, params)
    outs = jax.block_until_ready(outs)

    expected_shapes = [
        (B, L, CFG["backbone_out"]),
        (B, L, L, CFG["dist_bins"]),
        (B, L, L, CFG["dist_bins"]),
        (B, L, L, CFG["dist_bins"]),
        (B, L, L, CFG["angle_bins"]),
        (B, L, L, CFG["angle_bins"]),
    ]
    assert [tuple(o.shape) for o in outs] == expected_shapes
    assert all(bool(jnp.all(jnp.isfinite(o))) for o in outs)
    print("KERNEL_OK")
</pallas_src>

<mosaic_0001>
module attributes {stable_mosaic.version = 11 : i64} {
  func.func @kernel(%arg0: i32, %arg1: memref<64x32xf32, #tpu.memory_space<vmem>>, %arg2: memref<1x32xf32, #tpu.memory_space<vmem>>, %arg3: memref<1x32xf32, #tpu.memory_space<vmem>>, %arg4: memref<32x96xbf16, #tpu.memory_space<vmem>>, %arg5: memref<1x96xf32, #tpu.memory_space<vmem>>, %arg6: memref<64x96xf32, #tpu.memory_space<vmem>>) attributes {dimension_semantics = [#tpu.dimension_semantics<parallel>], iteration_bounds = array<i64: 1>, scalar_prefetch = 0 : i64, scratch_operands = 0 : i64, tpu.core_type = #tpu.core_type<tc>, window_params = [{transform_indices = @transform_0, window_bounds = array<i64: 64, 32>}, {pipeline_mode = #tpu.pipeline_mode<synchronous>, transform_indices = @transform_1, window_bounds = array<i64: 1, 32>}, {pipeline_mode = #tpu.pipeline_mode<synchronous>, transform_indices = @transform_2, window_bounds = array<i64: 1, 32>}, {pipeline_mode = #tpu.pipeline_mode<synchronous>, transform_indices = @transform_3, window_bounds = array<i64: 32, 96>}, {pipeline_mode = #tpu.pipeline_mode<synchronous>, transform_indices = @transform_4, window_bounds = array<i64: 1, 96>}, {transform_indices = @transform_5, window_bounds = array<i64: 64, 96>}]} {
    %c0 = arith.constant 0 : index
    %c0_0 = arith.constant 0 : index
    %0 = vector.load %arg1[%c0, %c0_0] : memref<64x32xf32, #tpu.memory_space<vmem>>, vector<64x32xf32>
    %c0_1 = arith.constant 0 : index
    %c0_2 = arith.constant 0 : index
    %1 = vector.load %arg2[%c0_1, %c0_2] : memref<1x32xf32, #tpu.memory_space<vmem>>, vector<1x32xf32>
    %c0_3 = arith.constant 0 : index
    %c0_4 = arith.constant 0 : index
    %2 = vector.load %arg3[%c0_3, %c0_4] : memref<1x32xf32, #tpu.memory_space<vmem>>, vector<1x32xf32>
    %c0_5 = arith.constant 0 : index
    %c0_6 = arith.constant 0 : index
    %3 = vector.load %arg4[%c0_5, %c0_6] : memref<32x96xbf16, #tpu.memory_space<vmem>>, vector<32x96xbf16>
    %c0_7 = arith.constant 0 : index
    %c0_8 = arith.constant 0 : index
    %4 = vector.load %arg5[%c0_7, %c0_8] : memref<1x96xf32, #tpu.memory_space<vmem>>, vector<1x96xf32>
    %cst = arith.constant dense<0.000000e+00> : vector<64xf32>
    %5 = vector.multi_reduction <add>, %0, %cst [1] : vector<64x32xf32> to vector<64xf32>
    %6 = vector.shape_cast %5 : vector<64xf32> to vector<64x1xf32>
    %cst_9 = arith.constant 3.200000e+01 : f32
    %7 = vector.broadcast %cst_9 : f32 to vector<64x1xf32>
    %8 = arith.divf %6, %7 : vector<64x1xf32>
    %9 = vector.broadcast %8 : vector<64x1xf32> to vector<64x32xf32>
    %10 = arith.subf %0, %9 : vector<64x32xf32>
    %11 = arith.mulf %10, %10 : vector<64x32xf32>
    %cst_10 = arith.constant dense<0.000000e+00> : vector<64xf32>
    %12 = vector.multi_reduction <add>, %11, %cst_10 [1] : vector<64x32xf32> to vector<64xf32>
    %13 = vector.shape_cast %12 : vector<64xf32> to vector<64x1xf32>
    %cst_11 = arith.constant 3.200000e+01 : f32
    %14 = vector.broadcast %cst_11 : f32 to vector<64x1xf32>
    %15 = arith.divf %13, %14 : vector<64x1xf32>
    %16 = vector.broadcast %8 : vector<64x1xf32> to vector<64x32xf32>
    %17 = arith.subf %0, %16 : vector<64x32xf32>
    %cst_12 = arith.constant 9.99999974E-6 : f32
    %18 = vector.broadcast %cst_12 : f32 to vector<64x1xf32>
    %19 = arith.addf %15, %18 : vector<64x1xf32>
    %20 = math.rsqrt %19 : vector<64x1xf32>
    %21 = vector.broadcast %20 : vector<64x1xf32> to vector<64x32xf32>
    %22 = arith.mulf %17, %21 : vector<64x32xf32>
    %23 = vector.broadcast %1 : vector<1x32xf32> to vector<64x32xf32>
    %24 = arith.mulf %22, %23 : vector<64x32xf32>
    %25 = vector.broadcast %2 : vector<1x32xf32> to vector<64x32xf32>
    %26 = arith.addf %24, %25 : vector<64x32xf32>
    %27 = arith.truncf %26 : vector<64x32xf32> to vector<64x32xbf16>
    %cst_13 = arith.constant dense<0.000000e+00> : vector<64x96xf32>
    %28 = tpu.matmul %27, %3, %cst_13 {dimension_numbers = #tpu.dot_dimension_numbers<[1], [0], [0], [1], [0, 0, 1, 1], [], []>} : vector<64x32xbf16>, vector<32x96xbf16>, vector<64x96xf32> -> vector<64x96xf32>
    %29 = vector.broadcast %4 : vector<1x96xf32> to vector<64x96xf32>
    %30 = arith.addf %28, %29 : vector<64x96xf32>
    %c0_14 = arith.constant 0 : index
    %c0_15 = arith.constant 0 : index
    %31 = vector.load %arg6[%c0_14, %c0_15] : memref<64x96xf32, #tpu.memory_space<vmem>>, vector<64x96xf32>
    tpu.vector_store %arg6[%c0_14, %c0_15], %30 {strides = array<i32>} : memref<64x96xf32, #tpu.memory_space<vmem>>, vector<64x96xf32>,
    return
  }
  func.func @transform_0(%arg0: i32) -> (i32, i32) {
    %c0_i32 = arith.constant 0 : i32
    %c0_i32_0 = arith.constant 0 : i32
    return %arg0, %c0_i32 : i32, i32
  }
  func.func @transform_1(%arg0: i32) -> (i32, i32) {
    %c0_i32 = arith.constant 0 : i32
    %c0_i32_0 = arith.constant 0 : i32
    %c0_i32_1 = arith.constant 0 : i32
    return %c0_i32, %c0_i32_0 : i32, i32
  }
  func.func @transform_2(%arg0: i32) -> (i32, i32) {
    %c0_i32 = arith.constant 0 : i32
    %c0_i32_0 = arith.constant 0 : i32
    %c0_i32_1 = arith.constant 0 : i32
    return %c0_i32, %c0_i32_0 : i32, i32
  }
  func.func @transform_3(%arg0: i32) -> (i32, i32) {
    %c0_i32 = arith.constant 0 : i32
    %c0_i32_0 = arith.constant 0 : i32
    %c0_i32_1 = arith.constant 0 : i32
    return %c0_i32, %c0_i32_0 : i32, i32
  }
  func.func @transform_4(%arg0: i32) -> (i32, i32) {
    %c0_i32 = arith.constant 0 : i32
    %c0_i32_0 = arith.constant 0 : i32
    %c0_i32_1 = arith.constant 0 : i32
    return %c0_i32, %c0_i32_0 : i32, i32
  }
  func.func @transform_5(%arg0: i32) -> (i32, i32) {
    %c0_i32 = arith.constant 0 : i32
    %c0_i32_0 = arith.constant 0 : i32
    return %arg0, %c0_i32 : i32, i32
  }
}

module attributes {stable_mosaic.version = 11 : i64} {
  func.func @kernel(%arg0: i32, %arg1: memref<16x6xf32, #tpu.memory_space<vmem>>, %arg2: memref<6x64xbf16, #tpu.memory_space<vmem>>, %arg3: memref<1x64xf32, #tpu.memory_space<vmem>>, %arg4: memref<16x64xf32, #tpu.memory_space<vmem>>) attributes {dimension_semantics = [#tpu.dimension_semantics<parallel>], iteration_bounds = array<i64: 1>, scalar_prefetch = 0 : i64, scratch_operands = 0 : i64, tpu.core_type = #tpu.core_type<tc>, window_params = [{transform_indices = @transform_0, window_bounds = array<i64: 16, 6>}, {pipeline_mode = #tpu.pipeline_mode<synchronous>, transform_indices = @transform_1, window_bounds = array<i64: 6, 64>}, {pipeline_mode = #tpu.pipeline_mode<synchronous>, transform_indices = @transform_2, window_bounds = array<i64: 1, 64>}, {transform_indices = @transform_3, window_bounds = array<i64: 16, 64>}]} {
    %c0 = arith.constant 0 : index
    %c0_0 = arith.constant 0 : index
    %0 = vector.load %arg1[%c0, %c0_0] : memref<16x6xf32, #tpu.memory_space<vmem>>, vector<16x6xf32>
    %c0_1 = arith.constant 0 : index
    %c0_2 = arith.constant 0 : index
    %1 = vector.load %arg2[%c0_1, %c0_2] : memref<6x64xbf16, #tpu.memory_space<vmem>>, vector<6x64xbf16>
    %c0_3 = arith.constant 0 : index
    %c0_4 = arith.constant 0 : index
    %2 = vector.load %arg3[%c0_3, %c0_4] : memref<1x64xf32, #tpu.memory_space<vmem>>, vector<1x64xf32>
    %3 = arith.truncf %0 : vector<16x6xf32> to vector<16x6xbf16>
    %cst = arith.constant dense<0.000000e+00> : vector<16x64xf32>
    %4 = tpu.matmul %3, %1, %cst {dimension_numbers = #tpu.dot_dimension_numbers<[1], [0], [0], [1], [0, 0, 1, 1], [], []>} : vector<16x6xbf16>, vector<6x64xbf16>, vector<16x64xf32> -> vector<16x64xf32>
    %5 = vector.broadcast %2 : vector<1x64xf32> to vector<16x64xf32>
    %6 = arith.addf %4, %5 : vector<16x64xf32>
    %c0_5 = arith.constant 0 : index
    %c0_6 = arith.constant 0 : index
    %7 = vector.load %arg4[%c0_5, %c0_6] : memref<16x64xf32, #tpu.memory_space<vmem>>, vector<16x64xf32>
    tpu.vector_store %arg4[%c0_5, %c0_6], %6 {strides = array<i32>} : memref<16x64xf32, #tpu.memory_space<vmem>>, vector<16x64xf32>,
    return
  }
  func.func @transform_0(%arg0: i32) -> (i32, i32) {
    %c0_i32 = arith.constant 0 : i32
    %c0_i32_0 = arith.constant 0 : i32
    return %arg0, %c0_i32 : i32, i32
  }
  func.func @transform_1(%arg0: i32) -> (i32, i32) {
    %c0_i32 = arith.constant 0 : i32
    %c0_i32_0 = arith.constant 0 : i32
    %c0_i32_1 = arith.constant 0 : i32
    return %c0_i32, %c0_i32_0 : i32, i32
  }
  func.func @transform_2(%arg0: i32) -> (i32, i32) {
    %c0_i32 = arith.constant 0 : i32
    %c0_i32_0 = arith.constant 0 : i32
    %c0_i32_1 = arith.constant 0 : i32
    return %c0_i32, %c0_i32_0 : i32, i32
  }
  func.func @transform_3(%arg0: i32) -> (i32, i32) {
    %c0_i32 = arith.constant 0 : i32
    %c0_i32_0 = arith.constant 0 : i32
    return %arg0, %c0_i32 : i32, i32
  }
}

module attributes {stable_mosaic.version = 11 : i64} {
  func.func @kernel(%arg0: i32, %arg1: memref<128x16xf32, #tpu.memory_space<vmem>>, %arg2: memref<1x16xf32, #tpu.memory_space<vmem>>, %arg3: memref<1x16xf32, #tpu.memory_space<vmem>>, %arg4: memref<16x4xbf16, #tpu.memory_space<vmem>>, %arg5: memref<1x4xf32, #tpu.memory_space<vmem>>, %arg6: memref<128x4xf32, #tpu.memory_space<vmem>>) attributes {dimension_semantics = [#tpu.dimension_semantics<parallel>], iteration_bounds = array<i64: 1>, scalar_prefetch = 0 : i64, scratch_operands = 0 : i64, tpu.core_type = #tpu.core_type<tc>, window_params = [{transform_indices = @transform_0, window_bounds = array<i64: 128, 16>}, {pipeline_mode = #tpu.pipeline_mode<synchronous>, transform_indices = @transform_1, window_bounds = array<i64: 1, 16>}, {pipeline_mode = #tpu.pipeline_mode<synchronous>, transform_indices = @transform_2, window_bounds = array<i64: 1, 16>}, {pipeline_mode = #tpu.pipeline_mode<synchronous>, transform_indices = @transform_3, window_bounds = array<i64: 16, 4>}, {pipeline_mode = #tpu.pipeline_mode<synchronous>, transform_indices = @transform_4, window_bounds = array<i64: 1, 4>}, {transform_indices = @transform_5, window_bounds = array<i64: 128, 4>}]} {
    %c0 = arith.constant 0 : index
    %c0_0 = arith.constant 0 : index
    %0 = vector.load %arg1[%c0, %c0_0] : memref<128x16xf32, #tpu.memory_space<vmem>>, vector<128x16xf32>
    %c0_1 = arith.constant 0 : index
    %c0_2 = arith.constant 0 : index
    %1 = vector.load %arg2[%c0_1, %c0_2] : memref<1x16xf32, #tpu.memory_space<vmem>>, vector<1x16xf32>
    %c0_3 = arith.constant 0 : index
    %c0_4 = arith.constant 0 : index
    %2 = vector.load %arg3[%c0_3, %c0_4] : memref<1x16xf32, #tpu.memory_space<vmem>>, vector<1x16xf32>
    %c0_5 = arith.constant 0 : index
    %c0_6 = arith.constant 0 : index
    %3 = vector.load %arg4[%c0_5, %c0_6] : memref<16x4xbf16, #tpu.memory_space<vmem>>, vector<16x4xbf16>
    %c0_7 = arith.constant 0 : index
    %c0_8 = arith.constant 0 : index
    %4 = vector.load %arg5[%c0_7, %c0_8] : memref<1x4xf32, #tpu.memory_space<vmem>>, vector<1x4xf32>
    %cst = arith.constant dense<0.000000e+00> : vector<128xf32>
    %5 = vector.multi_reduction <add>, %0, %cst [1] : vector<128x16xf32> to vector<128xf32>
    %6 = vector.shape_cast %5 : vector<128xf32> to vector<128x1xf32>
    %cst_9 = arith.constant 1.600000e+01 : f32
    %7 = vector.broadcast %cst_9 : f32 to vector<128x1xf32>
    %8 = arith.divf %6, %7 : vector<128x1xf32>
    %9 = vector.broadcast %8 : vector<128x1xf32> to vector<128x16xf32>
    %10 = arith.subf %0, %9 : vector<128x16xf32>
    %11 = arith.mulf %10, %10 : vector<128x16xf32>
    %cst_10 = arith.constant dense<0.000000e+00> : vector<128xf32>
    %12 = vector.multi_reduction <add>, %11, %cst_10 [1] : vector<128x16xf32> to vector<128xf32>
    %13 = vector.shape_cast %12 : vector<128xf32> to vector<128x1xf32>
    %cst_11 = arith.constant 1.600000e+01 : f32
    %14 = vector.broadcast %cst_11 : f32 to vector<128x1xf32>
    %15 = arith.divf %13, %14 : vector<128x1xf32>
    %16 = vector.broadcast %8 : vector<128x1xf32> to vector<128x16xf32>
    %17 = arith.subf %0, %16 : vector<128x16xf32>
    %cst_12 = arith.constant 9.99999974E-6 : f32
    %18 = vector.broadcast %cst_12 : f32 to vector<128x1xf32>
    %19 = arith.addf %15, %18 : vector<128x1xf32>
    %20 = math.rsqrt %19 : vector<128x1xf32>
    %21 = vector.broadcast %20 : vector<128x1xf32> to vector<128x16xf32>
    %22 = arith.mulf %17, %21 : vector<128x16xf32>
    %23 = vector.broadcast %1 : vector<1x16xf32> to vector<128x16xf32>
    %24 = arith.mulf %22, %23 : vector<128x16xf32>
    %25 = vector.broadcast %2 : vector<1x16xf32> to vector<128x16xf32>
    %26 = arith.addf %24, %25 : vector<128x16xf32>
    %27 = arith.truncf %26 : vector<128x16xf32> to vector<128x16xbf16>
    %cst_13 = arith.constant dense<0.000000e+00> : vector<128x4xf32>
    %28 = tpu.matmul %27, %3, %cst_13 {dimension_numbers = #tpu.dot_dimension_numbers<[1], [0], [0], [1], [0, 0, 1, 1], [], []>} : vector<128x16xbf16>, vector<16x4xbf16>, vector<128x4xf32> -> vector<128x4xf32>
    %29 = vector.broadcast %4 : vector<1x4xf32> to vector<128x4xf32>
    %30 = arith.addf %28, %29 : vector<128x4xf32>
    %c0_14 = arith.constant 0 : index
    %c0_15 = arith.constant 0 : index
    %31 = vector.load %arg6[%c0_14, %c0_15] : memref<128x4xf32, #tpu.memory_space<vmem>>, vector<128x4xf32>
    tpu.vector_store %arg6[%c0_14, %c0_15], %30 {strides = array<i32>} : memref<128x4xf32, #tpu.memory_space<vmem>>, vector<128x4xf32>,
    return
  }
  func.func @transform_0(%arg0: i32) -> (i32, i32) {
    %c0_i32 = arith.constant 0 : i32
    %c0_i32_0 = arith.constant 0 : i32
    return %arg0, %c0_i32 : i32, i32
  }
  func.func @transform_1(%arg0: i32) -> (i32, i32) {
    %c0_i32 = arith.constant 0 : i32
    %c0_i32_0 = arith.constant 0 : i32
    %c0_i32_1 = arith.constant 0 : i32
    return %c0_i32, %c0_i32_0 : i32, i32
  }
  func.func @transform_2(%arg0: i32) -> (i32, i32) {
    %c0_i32 = arith.constant 0 : i32
    %c0_i32_0 = arith.constant 0 : i32
    %c0_i32_1 = arith.constant 0 : i32
    return %c0_i32, %c0_i32_0 : i32, i32
  }
  func.func @transform_3(%arg0: i32) -> (i32, i32) {
    %c0_i32 = arith.constant 0 : i32
    %c0_i32_0 = arith.constant 0 : i32
    %c0_i32_1 = arith.constant 0 : i32
    return %c0_i32, %c0_i32_0 : i32, i32
  }
  func.func @transform_4(%arg0: i32) -> (i32, i32) {
    %c0_i32 = arith.constant 0 : i32
    %c0_i32_0 = arith.constant 0 : i32
    %c0_i32_1 = arith.constant 0 : i32
    return %c0_i32, %c0_i32_0 : i32, i32
  }
  func.func @transform_5(%arg0: i32) -> (i32, i32) {
    %c0_i32 = arith.constant 0 : i32
    %c0_i32_0 = arith.constant 0 : i32
    return %arg0, %c0_i32 : i32, i32
  }
}

module attributes {stable_mosaic.version = 11 : i64} {
  func.func @kernel(%arg0: i32, %arg1: i32, %arg2: memref<1x16x8x8xbf16, #tpu.memory_space<vmem>>, %arg3: memref<1x16x8x8xbf16, #tpu.memory_space<vmem>>, %arg4: memref<1x16x8x8xbf16, #tpu.memory_space<vmem>>, %arg5: memref<1x4x8x8xf32, #tpu.memory_space<vmem>>, %arg6: memref<1x16x8x8xf32, #tpu.memory_space<vmem>>, %arg7: memref<16x8x1xf32, #tpu.memory_space<vmem>>, %arg8: memref<16x8x1xf32, #tpu.memory_space<vmem>>, %arg9: memref<16x8x8xf32, #tpu.memory_space<vmem>>) attributes {dimension_semantics = [#tpu.dimension_semantics<parallel>, #tpu.dimension_semantics<arbitrary>], iteration_bounds = array<i64: 2, 1>, scalar_prefetch = 0 : i64, scratch_operands = 3 : i64, tpu.core_type = #tpu.core_type<tc>, window_params = [{transform_indices = @transform_0, window_bounds = array<i64: 1, 16, 8, 8>}, {transform_indices = @transform_1, window_bounds = array<i64: 1, 16, 8, 8>}, {transform_indices = @transform_2, window_bounds = array<i64: 1, 16, 8, 8>}, {transform_indices = @transform_3, window_bounds = array<i64: 1, 4, 8, 8>}, {transform_indices = @transform_4, window_bounds = array<i64: 1, 16, 8, 8>}]} {
    %c0_i32 = arith.constant 0 : i32
    %0 = arith.cmpi eq, %arg1, %c0_i32 : i32
    %1 = arith.extui %0 : i1 to i32
    %c0_i32_0 = arith.constant 0 : i32
    %2 = arith.cmpi ne, %1, %c0_i32_0 : i32
    scf.if %2 {
      %cst_40 = arith.constant 0xFF800000 : f32
      %43 = vector.broadcast %cst_40 : f32 to vector<16x8x1xf32>
      %c0_41 = arith.constant 0 : index
      %c0_42 = arith.constant 0 : index
      %c0_43 = arith.constant 0 : index
      %44 = vector.load %arg7[%c0_41, %c0_42, %c0_43] : memref<16x8x1xf32, #tpu.memory_space<vmem>>, vector<16x8x1xf32>
      tpu.vector_store %arg7[%c0_41, %c0_42, %c0_43], %43 {strides = array<i32>} : memref<16x8x1xf32, #tpu.memory_space<vmem>>, vector<16x8x1xf32>,
      %cst_44 = arith.constant 0.000000e+00 : f32
      %45 = vector.broadcast %cst_44 : f32 to vector<16x8x1xf32>
      %c0_45 = arith.constant 0 : index
      %c0_46 = arith.constant 0 : index
      %c0_47 = arith.constant 0 : index
      %46 = vector.load %arg8[%c0_45, %c0_46, %c0_47] : memref<16x8x1xf32, #tpu.memory_space<vmem>>, vector<16x8x1xf32>
      tpu.vector_store %arg8[%c0_45, %c0_46, %c0_47], %45 {strides = array<i32>} : memref<16x8x1xf32, #tpu.memory_space<vmem>>, vector<16x8x1xf32>,
      %cst_48 = arith.constant 0.000000e+00 : f32
      %47 = vector.broadcast %cst_48 : f32 to vector<16x8x8xf32>
      %c0_49 = arith.constant 0 : index
      %c0_50 = arith.constant 0 : index
      %c0_51 = arith.constant 0 : index
      %48 = vector.load %arg9[%c0_49, %c0_50, %c0_51] : memref<16x8x8xf32, #tpu.memory_space<vmem>>, vector<16x8x8xf32>
      tpu.vector_store %arg9[%c0_49, %c0_50, %c0_51], %47 {strides = array<i32>} : memref<16x8x8xf32, #tpu.memory_space<vmem>>, vector<16x8x8xf32>,
    } else {
    }
    %c0 = arith.constant 0 : index
    %c0_1 = arith.constant 0 : index
    %c0_2 = arith.constant 0 : index
    %c0_3 = arith.constant 0 : index
    %3 = vector.load %arg2[%c0, %c0_1, %c0_2, %c0_3] : memref<1x16x8x8xbf16, #tpu.memory_space<vmem>>, vector<1x16x8x8xbf16>
    %4 = vector.shape_cast %3 : vector<1x16x8x8xbf16> to vector<16x8x8xbf16>
    %c0_4 = arith.constant 0 : index
    %c0_5 = arith.constant 0 : index
    %c0_6 = arith.constant 0 : index
    %c0_7 = arith.constant 0 : index
    %5 = vector.load %arg3[%c0_4, %c0_5, %c0_6, %c0_7] : memref<1x16x8x8xbf16, #tpu.memory_space<vmem>>, vector<1x16x8x8xbf16>
    %6 = vector.shape_cast %5 : vector<1x16x8x8xbf16> to vector<16x8x8xbf16>
    %c0_8 = arith.constant 0 : index
    %c0_9 = arith.constant 0 : index
    %c0_10 = arith.constant 0 : index
    %c0_11 = arith.constant 0 : index
    %7 = vector.load %arg4[%c0_8, %c0_9, %c0_10, %c0_11] : memref<1x16x8x8xbf16, #tpu.memory_space<vmem>>, vector<1x16x8x8xbf16>
    %8 = vector.shape_cast %7 : vector<1x16x8x8xbf16> to vector<16x8x8xbf16>
    "tpu.trace_start"() <{level = 10 : i32, message = "rqd,rkd->rqk"}> : () -> ()
    %cst = arith.constant dense<0.000000e+00> : vector<16x8x8xf32>
    %9 = tpu.matmul %4, %6, %cst {dimension_numbers = #tpu.dot_dimension_numbers<[2], [2], [1], [1], [0, 0, 0, 1, 1, 1], [0], [0]>} : vector<16x8x8xbf16>, vector<16x8x8xbf16>, vector<16x8x8xf32> -> vector<16x8x8xf32>
    "tpu.trace_stop"() : () -> ()
    %cst_12 = arith.constant 0.353553385 : f32
    %10 = vector.broadcast %cst_12 : f32 to vector<16x8x8xf32>
    %11 = arith.mulf %9, %10 : vector<16x8x8xf32>
    %12 = vector.shape_cast %11 : vector<16x8x8xf32> to vector<4x4x8x8xf32>
    %c0_13 = arith.constant 0 : index
    %c0_14 = arith.constant 0 : index
    %c0_15 = arith.constant 0 : index
    %c0_16 = arith.constant 0 : index
    %13 = vector.load %arg5[%c0_13, %c0_14, %c0_15, %c0_16] : memref<1x4x8x8xf32, #tpu.memory_space<vmem>>, vector<1x4x8x8xf32>
    %14 = vector.broadcast %13 : vector<1x4x8x8xf32> to vector<4x4x8x8xf32>
    %15 = arith.addf %12, %14 : vector<4x4x8x8xf32>
    %16 = vector.shape_cast %15 : vector<4x4x8x8xf32> to vector<16x8x8xf32>
    %c0_17 = arith.constant 0 : index
    %c0_18 = arith.constant 0 : index
    %c0_19 = arith.constant 0 : index
    %17 = vector.load %arg7[%c0_17, %c0_18, %c0_19] : memref<16x8x1xf32, #tpu.memory_space<vmem>>, vector<16x8x1xf32>
    %cst_20 = arith.constant dense<0xFF800000> : vector<16x8xf32>
    %18 = vector.multi_reduction <maximumf>, %16, %cst_20 [2] : vector<16x8x8xf32> to vector<16x8xf32>
    %19 = vector.shape_cast %18 : vector<16x8xf32> to vector<16x8x1xf32>
    %20 = arith.maximumf %17, %19 : vector<16x8x1xf32>
    %21 = arith.subf %17, %20 : vector<16x8x1xf32>
    %22 = math.exp %21 : vector<16x8x1xf32>
    %23 = vector.broadcast %20 : vector<16x8x1xf32> to vector<16x8x8xf32>
    %24 = arith.subf %16, %23 : vector<16x8x8xf32>
    %25 = math.exp %24 : vector<16x8x8xf32>
    %c0_21 = arith.constant 0 : index
    %c0_22 = arith.constant 0 : index
    %c0_23 = arith.constant 0 : index
    %26 = vector.load %arg8[%c0_21, %c0_22, %c0_23] : memref<16x8x1xf32, #tpu.memory_space<vmem>>, vector<16x8x1xf32>
    %27 = arith.mulf %22, %26 : vector<16x8x1xf32>
    %cst_24 = arith.constant dense<0.000000e+00> : vector<16x8xf32>
    %28 = vector.multi_reduction <add>, %25, %cst_24 [2] : vector<16x8x8xf32> to vector<16x8xf32>
    %29 = vector.shape_cast %28 : vector<16x8xf32> to vector<16x8x1xf32>
    %30 = arith.addf %27, %29 : vector<16x8x1xf32>
    %c0_25 = arith.constant 0 : index
    %c0_26 = arith.constant 0 : index
    %c0_27 = arith.constant 0 : index
    %31 = vector.load %arg8[%c0_25, %c0_26, %c0_27] : memref<16x8x1xf32, #tpu.memory_space<vmem>>, vector<16x8x1xf32>
    tpu.vector_store %arg8[%c0_25, %c0_26, %c0_27], %30 {strides = array<i32>} : memref<16x8x1xf32, #tpu.memory_space<vmem>>, vector<16x8x1xf32>,
    %c0_28 = arith.constant 0 : index
    %c0_29 = arith.constant 0 : index
    %c0_30 = arith.constant 0 : index
    %32 = vector.load %arg9[%c0_28, %c0_29, %c0_30] : memref<16x8x8xf32, #tpu.memory_space<vmem>>, vector<16x8x8xf32>
    %33 = vector.broadcast %22 : vector<16x8x1xf32> to vector<16x8x8xf32>
    %34 = arith.mulf %33, %32 : vector<16x8x8xf32>
    %35 = arith.truncf %25 : vector<16x8x8xf32> to vector<16x8x8xbf16>
    "tpu.trace_start"() <{level = 10 : i32, message = "rqk,rkd->rqd"}> : () -> ()
    %cst_31 = arith.constant dense<0.000000e+00> : vector<16x8x8xf32>
    %36 = tpu.matmul %35, %8, %cst_31 {dimension_numbers = #tpu.dot_dimension_numbers<[2], [1], [1], [2], [0, 0, 0, 1, 1, 2], [0], [0]>} : vector<16x8x8xbf16>, vector<16x8x8xbf16>, vector<16x8x8xf32> -> vector<16x8x8xf32>
    "tpu.trace_stop"() : () -> ()
    %37 = arith.addf %34, %36 : vector<16x8x8xf32>
    %c0_32 = arith.constant 0 : index
    %c0_33 = arith.constant 0 : index
    %c0_34 = arith.constant 0 : index
    %38 = vector.load %arg9[%c0_32, %c0_33, %c0_34] : memref<16x8x8xf32, #tpu.memory_space<vmem>>, vector<16x8x8xf32>
    tpu.vector_store %arg9[%c0_32, %c0_33, %c0_34], %37 {strides = array<i32>} : memref<16x8x8xf32, #tpu.memory_space<vmem>>, vector<16x8x8xf32>,
    %c0_35 = arith.constant 0 : index
    %c0_36 = arith.constant 0 : index
    %c0_37 = arith.constant 0 : index
    %39 = vector.load %arg7[%c0_35, %c0_36, %c0_37] : memref<16x8x1xf32, #tpu.memory_space<vmem>>, vector<16x8x1xf32>
    tpu.vector_store %arg7[%c0_35, %c0_36, %c0_37], %20 {strides = array<i32>} : memref<16x8x1xf32, #tpu.memory_space<vmem>>, vector<16x8x1xf32>,
    %c0_i32_38 = arith.constant 0 : i32
    %40 = arith.cmpi eq, %arg1, %c0_i32_38 : i32
    %41 = arith.extui %40 : i1 to i32
    %c0_i32_39 = arith.constant 0 : i32
    %42 = arith.cmpi ne, %41, %c0_i32_39 : i32
    scf.if %42 {
      %c0_40 = arith.constant 0 : index
      %c0_41 = arith.constant 0 : index
      %c0_42 = arith.constant 0 : index
      %43 = vector.load %arg9[%c0_40, %c0_41, %c0_42] : memref<16x8x8xf32, #tpu.memory_space<vmem>>, vector<16x8x8xf32>
      %c0_43 = arith.constant 0 : index
      %c0_44 = arith.constant 0 : index
      %c0_45 = arith.constant 0 : index
      %44 = vector.load %arg8[%c0_43, %c0_44, %c0_45] : memref<16x8x1xf32, #tpu.memory_space<vmem>>, vector<16x8x1xf32>
      %45 = tpu.reciprocal %44 {approx = true} : vector<16x8x1xf32> -> vector<16x8x1xf32>
      %46 = vector.broadcast %45 : vector<16x8x1xf32> to vector<16x8x8xf32>
      %47 = arith.mulf %43, %46 : vector<16x8x8xf32>
      %c0_46 = arith.constant 0 : index
      %c0_47 = arith.constant 0 : index
      %c0_48 = arith.constant 0 : index
      %c0_49 = arith.constant 0 : index
      %48 = vector.load %arg6[%c0_46, %c0_47, %c0_48, %c0_49] : memref<1x16x8x8xf32, #tpu.memory_space<vmem>>, vector<1x16x8x8xf32>
      %49 = vector.shape_cast %48 : vector<1x16x8x8xf32> to vector<16x8x8xf32>
      %50 = vector.shape_cast %47 : vector<16x8x8xf32> to vector<1x16x8x8xf32>
      tpu.vector_store %arg6[%c0_46, %c0_47, %c0_48, %c0_49], %50 {strides = array<i32>} : memref<1x16x8x8xf32, #tpu.memory_space<vmem>>, vector<1x16x8x8xf32>,
    } else {
    }
    return
  }
  func.func @transform_0(%arg0: i32, %arg1: i32) -> (i32, i32, i32, i32) {
    %c0_i32 = arith.constant 0 : i32
    %c0_i32_0 = arith.constant 0 : i32
    %c0_i32_1 = arith.constant 0 : i32
    %c0_i32_2 = arith.constant 0 : i32
    return %arg0, %c0_i32, %c0_i32_0, %c0_i32_1 : i32, i32, i32, i32
  }
  func.func @transform_1(%arg0: i32, %arg1: i32) -> (i32, i32, i32, i32) {
    %c0_i32 = arith.constant 0 : i32
    %c0_i32_0 = arith.constant 0 : i32
    %c0_i32_1 = arith.constant 0 : i32
    return %arg0, %c0_i32, %arg1, %c0_i32_0 : i32, i32, i32, i32
  }
  func.func @transform_2(%arg0: i32, %arg1: i32) -> (i32, i32, i32, i32) {
    %c0_i32 = arith.constant 0 : i32
    %c0_i32_0 = arith.constant 0 : i32
    %c0_i32_1 = arith.constant 0 : i32
    return %arg0, %c0_i32, %arg1, %c0_i32_0 : i32, i32, i32, i32
  }
  func.func @transform_3(%arg0: i32, %arg1: i32) -> (i32, i32, i32, i32) {
    %c0_i32 = arith.constant 0 : i32
    %c0_i32_0 = arith.constant 0 : i32
    %c0_i32_1 = arith.constant 0 : i32
    return %arg0, %c0_i32, %c0_i32_0, %arg1 : i32, i32, i32, i32
  }
  func.func @transform_4(%arg0: i32, %arg1: i32) -> (i32, i32, i32, i32) {
    %c0_i32 = arith.constant 0 : i32
    %c0_i32_0 = arith.constant 0 : i32
    %c0_i32_1 = arith.constant 0 : i32
    %c0_i32_2 = arith.constant 0 : i32
    return %arg0, %c0_i32, %c0_i32_0, %c0_i32_1 : i32, i32, i32, i32
  }
}

module attributes {stable_mosaic.version = 11 : i64} {
  func.func @kernel(%arg0: i32, %arg1: memref<64x32xf32, #tpu.memory_space<vmem>>, %arg2: memref<32x32xbf16, #tpu.memory_space<vmem>>, %arg3: memref<1x32xf32, #tpu.memory_space<vmem>>, %arg4: memref<64x32xf32, #tpu.memory_space<vmem>>, %arg5: memref<64x32xf32, #tpu.memory_space<vmem>>) attributes {dimension_semantics = [#tpu.dimension_semantics<parallel>], iteration_bounds = array<i64: 1>, scalar_prefetch = 0 : i64, scratch_operands = 0 : i64, tpu.core_type = #tpu.core_type<tc>, window_params = [{transform_indices = @transform_0, window_bounds = array<i64: 64, 32>}, {pipeline_mode = #tpu.pipeline_mode<synchronous>, transform_indices = @transform_1, window_bounds = array<i64: 32, 32>}, {pipeline_mode = #tpu.pipeline_mode<synchronous>, transform_indices = @transform_2, window_bounds = array<i64: 1, 32>}, {transform_indices = @transform_3, window_bounds = array<i64: 64, 32>}, {transform_indices = @transform_4, window_bounds = array<i64: 64, 32>}]} {
    %c0 = arith.constant 0 : index
    %c0_0 = arith.constant 0 : index
    %0 = vector.load %arg1[%c0, %c0_0] : memref<64x32xf32, #tpu.memory_space<vmem>>, vector<64x32xf32>
    %c0_1 = arith.constant 0 : index
    %c0_2 = arith.constant 0 : index
    %1 = vector.load %arg2[%c0_1, %c0_2] : memref<32x32xbf16, #tpu.memory_space<vmem>>, vector<32x32xbf16>
    %c0_3 = arith.constant 0 : index
    %c0_4 = arith.constant 0 : index
    %2 = vector.load %arg3[%c0_3, %c0_4] : memref<1x32xf32, #tpu.memory_space<vmem>>, vector<1x32xf32>
    %c0_5 = arith.constant 0 : index
    %c0_6 = arith.constant 0 : index
    %3 = vector.load %arg4[%c0_5, %c0_6] : memref<64x32xf32, #tpu.memory_space<vmem>>, vector<64x32xf32>
    %4 = arith.truncf %0 : vector<64x32xf32> to vector<64x32xbf16>
    %cst = arith.constant dense<0.000000e+00> : vector<64x32xf32>
    %5 = tpu.matmul %4, %1, %cst {dimension_numbers = #tpu.dot_dimension_numbers<[1], [0], [0], [1], [0, 0, 1, 1], [], []>} : vector<64x32xbf16>, vector<32x32xbf16>, vector<64x32xf32> -> vector<64x32xf32>
    %6 = vector.broadcast %2 : vector<1x32xf32> to vector<64x32xf32>
    %7 = arith.addf %5, %6 : vector<64x32xf32>
    %8 = arith.addf %7, %3 : vector<64x32xf32>
    %c0_7 = arith.constant 0 : index
    %c0_8 = arith.constant 0 : index
    %9 = vector.load %arg5[%c0_7, %c0_8] : memref<64x32xf32, #tpu.memory_space<vmem>>, vector<64x32xf32>
    tpu.vector_store %arg5[%c0_7, %c0_8], %8 {strides = array<i32>} : memref<64x32xf32, #tpu.memory_space<vmem>>, vector<64x32xf32>,
    return
  }
  func.func @transform_0(%arg0: i32) -> (i32, i32) {
    %c0_i32 = arith.constant 0 : i32
    %c0_i32_0 = arith.constant 0 : i32
    return %arg0, %c0_i32 : i32, i32
  }
  func.func @transform_1(%arg0: i32) -> (i32, i32) {
    %c0_i32 = arith.constant 0 : i32
    %c0_i32_0 = arith.constant 0 : i32
    %c0_i32_1 = arith.constant 0 : i32
    return %c0_i32, %c0_i32_0 : i32, i32
  }
  func.func @transform_2(%arg0: i32) -> (i32, i32) {
    %c0_i32 = arith.constant 0 : i32
    %c0_i32_0 = arith.constant 0 : i32
    %c0_i32_1 = arith.constant 0 : i32
    return %c0_i32, %c0_i32_0 : i32, i32
  }
  func.func @transform_3(%arg0: i32) -> (i32, i32) {
    %c0_i32 = arith.constant 0 : i32
    %c0_i32_0 = arith.constant 0 : i32
    return %arg0, %c0_i32 : i32, i32
  }
  func.func @transform_4(%arg0: i32) -> (i32, i32) {
    %c0_i32 = arith.constant 0 : i32
    %c0_i32_0 = arith.constant 0 : i32
    return %arg0, %c0_i32 : i32, i32
  }
}

module attributes {stable_mosaic.version = 11 : i64} {
  func.func @kernel(%arg0: i32, %arg1: memref<64x32xf32, #tpu.memory_space<vmem>>, %arg2: memref<1x32xf32, #tpu.memory_space<vmem>>, %arg3: memref<1x32xf32, #tpu.memory_space<vmem>>, %arg4: memref<32x64xbf16, #tpu.memory_space<vmem>>, %arg5: memref<1x64xf32, #tpu.memory_space<vmem>>, %arg6: memref<64x32xbf16, #tpu.memory_space<vmem>>, %arg7: memref<1x32xf32, #tpu.memory_space<vmem>>, %arg8: memref<64x32xf32, #tpu.memory_space<vmem>>) attributes {dimension_semantics = [#tpu.dimension_semantics<parallel>], iteration_bounds = array<i64: 1>, scalar_prefetch = 0 : i64, scratch_operands = 0 : i64, tpu.core_type = #tpu.core_type<tc>, window_params = [{transform_indices = @transform_0, window_bounds = array<i64: 64, 32>}, {pipeline_mode = #tpu.pipeline_mode<synchronous>, transform_indices = @transform_1, window_bounds = array<i64: 1, 32>}, {pipeline_mode = #tpu.pipeline_mode<synchronous>, transform_indices = @transform_2, window_bounds = array<i64: 1, 32>}, {pipeline_mode = #tpu.pipeline_mode<synchronous>, transform_indices = @transform_3, window_bounds = array<i64: 32, 64>}, {pipeline_mode = #tpu.pipeline_mode<synchronous>, transform_indices = @transform_4, window_bounds = array<i64: 1, 64>}, {pipeline_mode = #tpu.pipeline_mode<synchronous>, transform_indices = @transform_5, window_bounds = array<i64: 64, 32>}, {pipeline_mode = #tpu.pipeline_mode<synchronous>, transform_indices = @transform_6, window_bounds = array<i64: 1, 32>}, {transform_indices = @transform_7, window_bounds = array<i64: 64, 32>}]} {
    %c0 = arith.constant 0 : index
    %c0_0 = arith.constant 0 : index
    %0 = vector.load %arg1[%c0, %c0_0] : memref<64x32xf32, #tpu.memory_space<vmem>>, vector<64x32xf32>
    %cst = arith.constant dense<0.000000e+00> : vector<64xf32>
    %1 = vector.multi_reduction <add>, %0, %cst [1] : vector<64x32xf32> to vector<64xf32>
    %2 = vector.shape_cast %1 : vector<64xf32> to vector<64x1xf32>
    %cst_1 = arith.constant 3.200000e+01 : f32
    %3 = vector.broadcast %cst_1 : f32 to vector<64x1xf32>
    %4 = arith.divf %2, %3 : vector<64x1xf32>
    %5 = vector.broadcast %4 : vector<64x1xf32> to vector<64x32xf32>
    %6 = arith.subf %0, %5 : vector<64x32xf32>
    %7 = arith.mulf %6, %6 : vector<64x32xf32>
    %cst_2 = arith.constant dense<0.000000e+00> : vector<64xf32>
    %8 = vector.multi_reduction <add>, %7, %cst_2 [1] : vector<64x32xf32> to vector<64xf32>
    %9 = vector.shape_cast %8 : vector<64xf32> to vector<64x1xf32>
    %cst_3 = arith.constant 3.200000e+01 : f32
    %10 = vector.broadcast %cst_3 : f32 to vector<64x1xf32>
    %11 = arith.divf %9, %10 : vector<64x1xf32>
    %12 = vector.broadcast %4 : vector<64x1xf32> to vector<64x32xf32>
    %13 = arith.subf %0, %12 : vector<64x32xf32>
    %cst_4 = arith.constant 9.99999974E-6 : f32
    %14 = vector.broadcast %cst_4 : f32 to vector<64x1xf32>
    %15 = arith.addf %11, %14 : vector<64x1xf32>
    %16 = math.rsqrt %15 : vector<64x1xf32>
    %17 = vector.broadcast %16 : vector<64x1xf32> to vector<64x32xf32>
    %18 = arith.mulf %13, %17 : vector<64x32xf32>
    %c0_5 = arith.constant 0 : index
    %c0_6 = arith.constant 0 : index
    %19 = vector.load %arg2[%c0_5, %c0_6] : memref<1x32xf32, #tpu.memory_space<vmem>>, vector<1x32xf32>
    %20 = vector.broadcast %19 : vector<1x32xf32> to vector<64x32xf32>
    %21 = arith.mulf %18, %20 : vector<64x32xf32>
    %c0_7 = arith.constant 0 : index
    %c0_8 = arith.constant 0 : index
    %22 = vector.load %arg3[%c0_7, %c0_8] : memref<1x32xf32, #tpu.memory_space<vmem>>, vector<1x32xf32>
    %23 = vector.broadcast %22 : vector<1x32xf32> to vector<64x32xf32>
    %24 = arith.addf %21, %23 : vector<64x32xf32>
    %25 = arith.truncf %24 : vector<64x32xf32> to vector<64x32xbf16>
    %c0_9 = arith.constant 0 : index
    %c0_10 = arith.constant 0 : index
    %26 = vector.load %arg4[%c0_9, %c0_10] : memref<32x64xbf16, #tpu.memory_space<vmem>>, vector<32x64xbf16>
    %cst_11 = arith.constant dense<0.000000e+00> : vector<64x64xf32>
    %27 = tpu.matmul %25, %26, %cst_11 {dimension_numbers = #tpu.dot_dimension_numbers<[1], [0], [0], [1], [0, 0, 1, 1], [], []>} : vector<64x32xbf16>, vector<32x64xbf16>, vector<64x64xf32> -> vector<64x64xf32>
    %c0_12 = arith.constant 0 : index
    %c0_13 = arith.constant 0 : index
    %28 = vector.load %arg5[%c0_12, %c0_13] : memref<1x64xf32, #tpu.memory_space<vmem>>, vector<1x64xf32>
    %29 = vector.broadcast %28 : vector<1x64xf32> to vector<64x64xf32>
    %30 = arith.addf %27, %29 : vector<64x64xf32>
    %cst_14 = arith.constant 0.000000e+00 : f32
    %31 = vector.broadcast %cst_14 : f32 to vector<64x64xf32>
    %32 = arith.maximumf %30, %31 : vector<64x64xf32>
    %33 = arith.truncf %32 : vector<64x64xf32> to vector<64x64xbf16>
    %c0_15 = arith.constant 0 : index
    %c0_16 = arith.constant 0 : index
    %34 = vector.load %arg6[%c0_15, %c0_16] : memref<64x32xbf16, #tpu.memory_space<vmem>>, vector<64x32xbf16>
    %cst_17 = arith.constant dense<0.000000e+00> : vector<64x32xf32>
    %35 = tpu.matmul %33, %34, %cst_17 {dimension_numbers = #tpu.dot_dimension_numbers<[1], [0], [0], [1], [0, 0, 1, 1], [], []>} : vector<64x64xbf16>, vector<64x32xbf16>, vector<64x32xf32> -> vector<64x32xf32>
    %c0_18 = arith.constant 0 : index
    %c0_19 = arith.constant 0 : index
    %36 = vector.load %arg7[%c0_18, %c0_19] : memref<1x32xf32, #tpu.memory_space<vmem>>, vector<1x32xf32>
    %37 = vector.broadcast %36 : vector<1x32xf32> to vector<64x32xf32>
    %38 = arith.addf %35, %37 : vector<64x32xf32>
    %39 = arith.addf %38, %0 : vector<64x32xf32>
    %c0_20 = arith.constant 0 : index
    %c0_21 = arith.constant 0 : index
    %40 = vector.load %arg8[%c0_20, %c0_21] : memref<64x32xf32, #tpu.memory_space<vmem>>, vector<64x32xf32>
    tpu.vector_store %arg8[%c0_20, %c0_21], %39 {strides = array<i32>} : memref<64x32xf32, #tpu.memory_space<vmem>>, vector<64x32xf32>,
    return
  }
  func.func @transform_0(%arg0: i32) -> (i32, i32) {
    %c0_i32 = arith.constant 0 : i32
    %c0_i32_0 = arith.constant 0 : i32
    return %arg0, %c0_i32 : i32, i32
  }
  func.func @transform_1(%arg0: i32) -> (i32, i32) {
    %c0_i32 = arith.constant 0 : i32
    %c0_i32_0 = arith.constant 0 : i32
    %c0_i32_1 = arith.constant 0 : i32
    return %c0_i32, %c0_i32_0 : i32, i32
  }
  func.func @transform_2(%arg0: i32) -> (i32, i32) {
    %c0_i32 = arith.constant 0 : i32
    %c0_i32_0 = arith.constant 0 : i32
    %c0_i32_1 = arith.constant 0 : i32
    return %c0_i32, %c0_i32_0 : i32, i32
  }
  func.func @transform_3(%arg0: i32) -> (i32, i32) {
    %c0_i32 = arith.constant 0 : i32
    %c0_i32_0 = arith.constant 0 : i32
    %c0_i32_1 = arith.constant 0 : i32
    return %c0_i32, %c0_i32_0 : i32, i32
  }
  func.func @transform_4(%arg0: i32) -> (i32, i32) {
    %c0_i32 = arith.constant 0 : i32
    %c0_i32_0 = arith.constant 0 : i32
    %c0_i32_1 = arith.constant 0 : i32
    return %c0_i32, %c0_i32_0 : i32, i32
  }
  func.func @transform_5(%arg0: i32) -> (i32, i32) {
    %c0_i32 = arith.constant 0 : i32
    %c0_i32_0 = arith.constant 0 : i32
    %c0_i32_1 = arith.constant 0 : i32
    return %c0_i32, %c0_i32_0 : i32, i32
  }
  func.func @transform_6(%arg0: i32) -> (i32, i32) {
    %c0_i32 = arith.constant 0 : i32
    %c0_i32_0 = arith.constant 0 : i32
    %c0_i32_1 = arith.constant 0 : i32
    return %c0_i32, %c0_i32_0 : i32, i32
  }
  func.func @transform_7(%arg0: i32) -> (i32, i32) {
    %c0_i32 = arith.constant 0 : i32
    %c0_i32_0 = arith.constant 0 : i32
    return %arg0, %c0_i32 : i32, i32
  }
}

module attributes {stable_mosaic.version = 11 : i64} {
  func.func @kernel(%arg0: i32, %arg1: memref<16x32xf32, #tpu.memory_space<vmem>>, %arg2: memref<1x32xf32, #tpu.memory_space<vmem>>, %arg3: memref<1x32xf32, #tpu.memory_space<vmem>>, %arg4: memref<32x96xbf16, #tpu.memory_space<vmem>>, %arg5: memref<1x96xf32, #tpu.memory_space<vmem>>, %arg6: memref<16x96xf32, #tpu.memory_space<vmem>>) attributes {dimension_semantics = [#tpu.dimension_semantics<parallel>], iteration_bounds = array<i64: 1>, scalar_prefetch = 0 : i64, scratch_operands = 0 : i64, tpu.core_type = #tpu.core_type<tc>, window_params = [{transform_indices = @transform_0, window_bounds = array<i64: 16, 32>}, {pipeline_mode = #tpu.pipeline_mode<synchronous>, transform_indices = @transform_1, window_bounds = array<i64: 1, 32>}, {pipeline_mode = #tpu.pipeline_mode<synchronous>, transform_indices = @transform_2, window_bounds = array<i64: 1, 32>}, {pipeline_mode = #tpu.pipeline_mode<synchronous>, transform_indices = @transform_3, window_bounds = array<i64: 32, 96>}, {pipeline_mode = #tpu.pipeline_mode<synchronous>, transform_indices = @transform_4, window_bounds = array<i64: 1, 96>}, {transform_indices = @transform_5, window_bounds = array<i64: 16, 96>}]} {
    %c0 = arith.constant 0 : index
    %c0_0 = arith.constant 0 : index
    %0 = vector.load %arg1[%c0, %c0_0] : memref<16x32xf32, #tpu.memory_space<vmem>>, vector<16x32xf32>
    %c0_1 = arith.constant 0 : index
    %c0_2 = arith.constant 0 : index
    %1 = vector.load %arg2[%c0_1, %c0_2] : memref<1x32xf32, #tpu.memory_space<vmem>>, vector<1x32xf32>
    %c0_3 = arith.constant 0 : index
    %c0_4 = arith.constant 0 : index
    %2 = vector.load %arg3[%c0_3, %c0_4] : memref<1x32xf32, #tpu.memory_space<vmem>>, vector<1x32xf32>
    %c0_5 = arith.constant 0 : index
    %c0_6 = arith.constant 0 : index
    %3 = vector.load %arg4[%c0_5, %c0_6] : memref<32x96xbf16, #tpu.memory_space<vmem>>, vector<32x96xbf16>
    %c0_7 = arith.constant 0 : index
    %c0_8 = arith.constant 0 : index
    %4 = vector.load %arg5[%c0_7, %c0_8] : memref<1x96xf32, #tpu.memory_space<vmem>>, vector<1x96xf32>
    %cst = arith.constant dense<0.000000e+00> : vector<16xf32>
    %5 = vector.multi_reduction <add>, %0, %cst [1] : vector<16x32xf32> to vector<16xf32>
    %6 = vector.shape_cast %5 : vector<16xf32> to vector<16x1xf32>
    %cst_9 = arith.constant 3.200000e+01 : f32
    %7 = vector.broadcast %cst_9 : f32 to vector<16x1xf32>
    %8 = arith.divf %6, %7 : vector<16x1xf32>
    %9 = vector.broadcast %8 : vector<16x1xf32> to vector<16x32xf32>
    %10 = arith.subf %0, %9 : vector<16x32xf32>
    %11 = arith.mulf %10, %10 : vector<16x32xf32>
    %cst_10 = arith.constant dense<0.000000e+00> : vector<16xf32>
    %12 = vector.multi_reduction <add>, %11, %cst_10 [1] : vector<16x32xf32> to vector<16xf32>
    %13 = vector.shape_cast %12 : vector<16xf32> to vector<16x1xf32>
    %cst_11 = arith.constant 3.200000e+01 : f32
    %14 = vector.broadcast %cst_11 : f32 to vector<16x1xf32>
    %15 = arith.divf %13, %14 : vector<16x1xf32>
    %16 = vector.broadcast %8 : vector<16x1xf32> to vector<16x32xf32>
    %17 = arith.subf %0, %16 : vector<16x32xf32>
    %cst_12 = arith.constant 9.99999974E-6 : f32
    %18 = vector.broadcast %cst_12 : f32 to vector<16x1xf32>
    %19 = arith.addf %15, %18 : vector<16x1xf32>
    %20 = math.rsqrt %19 : vector<16x1xf32>
    %21 = vector.broadcast %20 : vector<16x1xf32> to vector<16x32xf32>
    %22 = arith.mulf %17, %21 : vector<16x32xf32>
    %23 = vector.broadcast %1 : vector<1x32xf32> to vector<16x32xf32>
    %24 = arith.mulf %22, %23 : vector<16x32xf32>
    %25 = vector.broadcast %2 : vector<1x32xf32> to vector<16x32xf32>
    %26 = arith.addf %24, %25 : vector<16x32xf32>
    %27 = arith.truncf %26 : vector<16x32xf32> to vector<16x32xbf16>
    %cst_13 = arith.constant dense<0.000000e+00> : vector<16x96xf32>
    %28 = tpu.matmul %27, %3, %cst_13 {dimension_numbers = #tpu.dot_dimension_numbers<[1], [0], [0], [1], [0, 0, 1, 1], [], []>} : vector<16x32xbf16>, vector<32x96xbf16>, vector<16x96xf32> -> vector<16x96xf32>
    %29 = vector.broadcast %4 : vector<1x96xf32> to vector<16x96xf32>
    %30 = arith.addf %28, %29 : vector<16x96xf32>
    %c0_14 = arith.constant 0 : index
    %c0_15 = arith.constant 0 : index
    %31 = vector.load %arg6[%c0_14, %c0_15] : memref<16x96xf32, #tpu.memory_space<vmem>>, vector<16x96xf32>
    tpu.vector_store %arg6[%c0_14, %c0_15], %30 {strides = array<i32>} : memref<16x96xf32, #tpu.memory_space<vmem>>, vector<16x96xf32>,
    return
  }
  func.func @transform_0(%arg0: i32) -> (i32, i32) {
    %c0_i32 = arith.constant 0 : i32
    %c0_i32_0 = arith.constant 0 : i32
    return %arg0, %c0_i32 : i32, i32
  }
  func.func @transform_1(%arg0: i32) -> (i32, i32) {
    %c0_i32 = arith.constant 0 : i32
    %c0_i32_0 = arith.constant 0 : i32
    %c0_i32_1 = arith.constant 0 : i32
    return %c0_i32, %c0_i32_0 : i32, i32
  }
  func.func @transform_2(%arg0: i32) -> (i32, i32) {
    %c0_i32 = arith.constant 0 : i32
    %c0_i32_0 = arith.constant 0 : i32
    %c0_i32_1 = arith.constant 0 : i32
    return %c0_i32, %c0_i32_0 : i32, i32
  }
  func.func @transform_3(%arg0: i32) -> (i32, i32) {
    %c0_i32 = arith.constant 0 : i32
    %c0_i32_0 = arith.constant 0 : i32
    %c0_i32_1 = arith.constant 0 : i32
    return %c0_i32, %c0_i32_0 : i32, i32
  }
  func.func @transform_4(%arg0: i32) -> (i32, i32) {
    %c0_i32 = arith.constant 0 : i32
    %c0_i32_0 = arith.constant 0 : i32
    %c0_i32_1 = arith.constant 0 : i32
    return %c0_i32, %c0_i32_0 : i32, i32
  }
  func.func @transform_5(%arg0: i32) -> (i32, i32) {
    %c0_i32 = arith.constant 0 : i32
    %c0_i32_0 = arith.constant 0 : i32
    return %arg0, %c0_i32 : i32, i32
  }
}

module attributes {stable_mosaic.version = 11 : i64} {
  func.func @kernel(%arg0: i32, %arg1: i32, %arg2: memref<1x4x8x8xbf16, #tpu.memory_space<vmem>>, %arg3: memref<1x4x8x8xbf16, #tpu.memory_space<vmem>>, %arg4: memref<1x4x8x8xbf16, #tpu.memory_space<vmem>>, %arg5: memref<1x4x8x8xf32, #tpu.memory_space<vmem>>, %arg6: memref<4x8x1xf32, #tpu.memory_space<vmem>>, %arg7: memref<4x8x1xf32, #tpu.memory_space<vmem>>, %arg8: memref<4x8x8xf32, #tpu.memory_space<vmem>>) attributes {dimension_semantics = [#tpu.dimension_semantics<parallel>, #tpu.dimension_semantics<arbitrary>], iteration_bounds = array<i64: 2, 1>, scalar_prefetch = 0 : i64, scratch_operands = 3 : i64, tpu.core_type = #tpu.core_type<tc>, window_params = [{transform_indices = @transform_0, window_bounds = array<i64: 1, 4, 8, 8>}, {transform_indices = @transform_1, window_bounds = array<i64: 1, 4, 8, 8>}, {transform_indices = @transform_2, window_bounds = array<i64: 1, 4, 8, 8>}, {transform_indices = @transform_3, window_bounds = array<i64: 1, 4, 8, 8>}]} {
    %c0_i32 = arith.constant 0 : i32
    %0 = arith.cmpi eq, %arg1, %c0_i32 : i32
    %1 = arith.extui %0 : i1 to i32
    %c0_i32_0 = arith.constant 0 : i32
    %2 = arith.cmpi ne, %1, %c0_i32_0 : i32
    scf.if %2 {
      %cst_36 = arith.constant 0xFF800000 : f32
      %38 = vector.broadcast %cst_36 : f32 to vector<4x8x1xf32>
      %c0_37 = arith.constant 0 : index
      %c0_38 = arith.constant 0 : index
      %c0_39 = arith.constant 0 : index
      %39 = vector.load %arg6[%c0_37, %c0_38, %c0_39] : memref<4x8x1xf32, #tpu.memory_space<vmem>>, vector<4x8x1xf32>
      tpu.vector_store %arg6[%c0_37, %c0_38, %c0_39], %38 {strides = array<i32>} : memref<4x8x1xf32, #tpu.memory_space<vmem>>, vector<4x8x1xf32>,
      %cst_40 = arith.constant 0.000000e+00 : f32
      %40 = vector.broadcast %cst_40 : f32 to vector<4x8x1xf32>
      %c0_41 = arith.constant 0 : index
      %c0_42 = arith.constant 0 : index
      %c0_43 = arith.constant 0 : index
      %41 = vector.load %arg7[%c0_41, %c0_42, %c0_43] : memref<4x8x1xf32, #tpu.memory_space<vmem>>, vector<4x8x1xf32>
      tpu.vector_store %arg7[%c0_41, %c0_42, %c0_43], %40 {strides = array<i32>} : memref<4x8x1xf32, #tpu.memory_space<vmem>>, vector<4x8x1xf32>,
      %cst_44 = arith.constant 0.000000e+00 : f32
      %42 = vector.broadcast %cst_44 : f32 to vector<4x8x8xf32>
      %c0_45 = arith.constant 0 : index
      %c0_46 = arith.constant 0 : index
      %c0_47 = arith.constant 0 : index
      %43 = vector.load %arg8[%c0_45, %c0_46, %c0_47] : memref<4x8x8xf32, #tpu.memory_space<vmem>>, vector<4x8x8xf32>
      tpu.vector_store %arg8[%c0_45, %c0_46, %c0_47], %42 {strides = array<i32>} : memref<4x8x8xf32, #tpu.memory_space<vmem>>, vector<4x8x8xf32>,
    } else {
    }
    %c0 = arith.constant 0 : index
    %c0_1 = arith.constant 0 : index
    %c0_2 = arith.constant 0 : index
    %c0_3 = arith.constant 0 : index
    %3 = vector.load %arg2[%c0, %c0_1, %c0_2, %c0_3] : memref<1x4x8x8xbf16, #tpu.memory_space<vmem>>, vector<1x4x8x8xbf16>
    %4 = vector.shape_cast %3 : vector<1x4x8x8xbf16> to vector<4x8x8xbf16>
    %c0_4 = arith.constant 0 : index
    %c0_5 = arith.constant 0 : index
    %c0_6 = arith.constant 0 : index
    %c0_7 = arith.constant 0 : index
    %5 = vector.load %arg3[%c0_4, %c0_5, %c0_6, %c0_7] : memref<1x4x8x8xbf16, #tpu.memory_space<vmem>>, vector<1x4x8x8xbf16>
    %6 = vector.shape_cast %5 : vector<1x4x8x8xbf16> to vector<4x8x8xbf16>
    %c0_8 = arith.constant 0 : index
    %c0_9 = arith.constant 0 : index
    %c0_10 = arith.constant 0 : index
    %c0_11 = arith.constant 0 : index
    %7 = vector.load %arg4[%c0_8, %c0_9, %c0_10, %c0_11] : memref<1x4x8x8xbf16, #tpu.memory_space<vmem>>, vector<1x4x8x8xbf16>
    %8 = vector.shape_cast %7 : vector<1x4x8x8xbf16> to vector<4x8x8xbf16>
    "tpu.trace_start"() <{level = 10 : i32, message = "rqd,rkd->rqk"}> : () -> ()
    %cst = arith.constant dense<0.000000e+00> : vector<4x8x8xf32>
    %9 = tpu.matmul %4, %6, %cst {dimension_numbers = #tpu.dot_dimension_numbers<[2], [2], [1], [1], [0, 0, 0, 1, 1, 1], [0], [0]>} : vector<4x8x8xbf16>, vector<4x8x8xbf16>, vector<4x8x8xf32> -> vector<4x8x8xf32>
    "tpu.trace_stop"() : () -> ()
    %cst_12 = arith.constant 0.353553385 : f32
    %10 = vector.broadcast %cst_12 : f32 to vector<4x8x8xf32>
    %11 = arith.mulf %9, %10 : vector<4x8x8xf32>
    %c0_13 = arith.constant 0 : index
    %c0_14 = arith.constant 0 : index
    %c0_15 = arith.constant 0 : index
    %12 = vector.load %arg6[%c0_13, %c0_14, %c0_15] : memref<4x8x1xf32, #tpu.memory_space<vmem>>, vector<4x8x1xf32>
    %cst_16 = arith.constant dense<0xFF800000> : vector<4x8xf32>
    %13 = vector.multi_reduction <maximumf>, %11, %cst_16 [2] : vector<4x8x8xf32> to vector<4x8xf32>
    %14 = vector.shape_cast %13 : vector<4x8xf32> to vector<4x8x1xf32>
    %15 = arith.maximumf %12, %14 : vector<4x8x1xf32>
    %16 = arith.subf %12, %15 : vector<4x8x1xf32>
    %17 = math.exp %16 : vector<4x8x1xf32>
    %18 = vector.broadcast %15 : vector<4x8x1xf32> to vector<4x8x8xf32>
    %19 = arith.subf %11, %18 : vector<4x8x8xf32>
    %20 = math.exp %19 : vector<4x8x8xf32>
    %c0_17 = arith.constant 0 : index
    %c0_18 = arith.constant 0 : index
    %c0_19 = arith.constant 0 : index
    %21 = vector.load %arg7[%c0_17, %c0_18, %c0_19] : memref<4x8x1xf32, #tpu.memory_space<vmem>>, vector<4x8x1xf32>
    %22 = arith.mulf %17, %21 : vector<4x8x1xf32>
    %cst_20 = arith.constant dense<0.000000e+00> : vector<4x8xf32>
    %23 = vector.multi_reduction <add>, %20, %cst_20 [2] : vector<4x8x8xf32> to vector<4x8xf32>
    %24 = vector.shape_cast %23 : vector<4x8xf32> to vector<4x8x1xf32>
    %25 = arith.addf %22, %24 : vector<4x8x1xf32>
    %c0_21 = arith.constant 0 : index
    %c0_22 = arith.constant 0 : index
    %c0_23 = arith.constant 0 : index
    %26 = vector.load %arg7[%c0_21, %c0_22, %c0_23] : memref<4x8x1xf32, #tpu.memory_space<vmem>>, vector<4x8x1xf32>
    tpu.vector_store %arg7[%c0_21, %c0_22, %c0_23], %25 {strides = array<i32>} : memref<4x8x1xf32, #tpu.memory_space<vmem>>, vector<4x8x1xf32>,
    %c0_24 = arith.constant 0 : index
    %c0_25 = arith.constant 0 : index
    %c0_26 = arith.constant 0 : index
    %27 = vector.load %arg8[%c0_24, %c0_25, %c0_26] : memref<4x8x8xf32, #tpu.memory_space<vmem>>, vector<4x8x8xf32>
    %28 = vector.broadcast %17 : vector<4x8x1xf32> to vector<4x8x8xf32>
    %29 = arith.mulf %28, %27 : vector<4x8x8xf32>
    %30 = arith.truncf %20 : vector<4x8x8xf32> to vector<4x8x8xbf16>
    "tpu.trace_start"() <{level = 10 : i32, message = "rqk,rkd->rqd"}> : () -> ()
    %cst_27 = arith.constant dense<0.000000e+00> : vector<4x8x8xf32>
    %31 = tpu.matmul %30, %8, %cst_27 {dimension_numbers = #tpu.dot_dimension_numbers<[2], [1], [1], [2], [0, 0, 0, 1, 1, 2], [0], [0]>} : vector<4x8x8xbf16>, vector<4x8x8xbf16>, vector<4x8x8xf32> -> vector<4x8x8xf32>
    "tpu.trace_stop"() : () -> ()
    %32 = arith.addf %29, %31 : vector<4x8x8xf32>
    %c0_28 = arith.constant 0 : index
    %c0_29 = arith.constant 0 : index
    %c0_30 = arith.constant 0 : index
    %33 = vector.load %arg8[%c0_28, %c0_29, %c0_30] : memref<4x8x8xf32, #tpu.memory_space<vmem>>, vector<4x8x8xf32>
    tpu.vector_store %arg8[%c0_28, %c0_29, %c0_30], %32 {strides = array<i32>} : memref<4x8x8xf32, #tpu.memory_space<vmem>>, vector<4x8x8xf32>,
    %c0_31 = arith.constant 0 : index
    %c0_32 = arith.constant 0 : index
    %c0_33 = arith.constant 0 : index
    %34 = vector.load %arg6[%c0_31, %c0_32, %c0_33] : memref<4x8x1xf32, #tpu.memory_space<vmem>>, vector<4x8x1xf32>
    tpu.vector_store %arg6[%c0_31, %c0_32, %c0_33], %15 {strides = array<i32>} : memref<4x8x1xf32, #tpu.memory_space<vmem>>, vector<4x8x1xf32>,
    %c0_i32_34 = arith.constant 0 : i32
    %35 = arith.cmpi eq, %arg1, %c0_i32_34 : i32
    %36 = arith.extui %35 : i1 to i32
    %c0_i32_35 = arith.constant 0 : i32
    %37 = arith.cmpi ne, %36, %c0_i32_35 : i32
    scf.if %37 {
      %c0_36 = arith.constant 0 : index
      %c0_37 = arith.constant 0 : index
      %c0_38 = arith.constant 0 : index
      %38 = vector.load %arg8[%c0_36, %c0_37, %c0_38] : memref<4x8x8xf32, #tpu.memory_space<vmem>>, vector<4x8x8xf32>
      %c0_39 = arith.constant 0 : index
      %c0_40 = arith.constant 0 : index
      %c0_41 = arith.constant 0 : index
      %39 = vector.load %arg7[%c0_39, %c0_40, %c0_41] : memref<4x8x1xf32, #tpu.memory_space<vmem>>, vector<4x8x1xf32>
      %40 = tpu.reciprocal %39 {approx = true} : vector<4x8x1xf32> -> vector<4x8x1xf32>
      %41 = vector.broadcast %40 : vector<4x8x1xf32> to vector<4x8x8xf32>
      %42 = arith.mulf %38, %41 : vector<4x8x8xf32>
      %c0_42 = arith.constant 0 : index
      %c0_43 = arith.constant 0 : index
      %c0_44 = arith.constant 0 : index
      %c0_45 = arith.constant 0 : index
      %43 = vector.load %arg5[%c0_42, %c0_43, %c0_44, %c0_45] : memref<1x4x8x8xf32, #tpu.memory_space<vmem>>, vector<1x4x8x8xf32>
      %44 = vector.shape_cast %43 : vector<1x4x8x8xf32> to vector<4x8x8xf32>
      %45 = vector.shape_cast %42 : vector<4x8x8xf32> to vector<1x4x8x8xf32>
      tpu.vector_store %arg5[%c0_42, %c0_43, %c0_44, %c0_45], %45 {strides = array<i32>} : memref<1x4x8x8xf32, #tpu.memory_space<vmem>>, vector<1x4x8x8xf32>,
    } else {
    }
    return
  }
  func.func @transform_0(%arg0: i32, %arg1: i32) -> (i32, i32, i32, i32) {
    %c0_i32 = arith.constant 0 : i32
    %c0_i32_0 = arith.constant 0 : i32
    %c0_i32_1 = arith.constant 0 : i32
    %c0_i32_2 = arith.constant 0 : i32
    return %arg0, %c0_i32, %c0_i32_0, %c0_i32_1 : i32, i32, i32, i32
  }
  func.func @transform_1(%arg0: i32, %arg1: i32) -> (i32, i32, i32, i32) {
    %c0_i32 = arith.constant 0 : i32
    %c0_i32_0 = arith.constant 0 : i32
    %c0_i32_1 = arith.constant 0 : i32
    return %arg0, %c0_i32, %arg1, %c0_i32_0 : i32, i32, i32, i32
  }
  func.func @transform_2(%arg0: i32, %arg1: i32) -> (i32, i32, i32, i32) {
    %c0_i32 = arith.constant 0 : i32
    %c0_i32_0 = arith.constant 0 : i32
    %c0_i32_1 = arith.constant 0 : i32
    return %arg0, %c0_i32, %arg1, %c0_i32_0 : i32, i32, i32, i32
  }
  func.func @transform_3(%arg0: i32, %arg1: i32) -> (i32, i32, i32, i32) {
    %c0_i32 = arith.constant 0 : i32
    %c0_i32_0 = arith.constant 0 : i32
    %c0_i32_1 = arith.constant 0 : i32
    %c0_i32_2 = arith.constant 0 : i32
    return %arg0, %c0_i32, %c0_i32_0, %c0_i32_1 : i32, i32, i32, i32
  }
}

module attributes {stable_mosaic.version = 11 : i64} {
  func.func @kernel(%arg0: i32, %arg1: memref<16x32xf32, #tpu.memory_space<vmem>>, %arg2: memref<32x32xbf16, #tpu.memory_space<vmem>>, %arg3: memref<1x32xf32, #tpu.memory_space<vmem>>, %arg4: memref<16x32xf32, #tpu.memory_space<vmem>>, %arg5: memref<16x32xf32, #tpu.memory_space<vmem>>) attributes {dimension_semantics = [#tpu.dimension_semantics<parallel>], iteration_bounds = array<i64: 1>, scalar_prefetch = 0 : i64, scratch_operands = 0 : i64, tpu.core_type = #tpu.core_type<tc>, window_params = [{transform_indices = @transform_0, window_bounds = array<i64: 16, 32>}, {pipeline_mode = #tpu.pipeline_mode<synchronous>, transform_indices = @transform_1, window_bounds = array<i64: 32, 32>}, {pipeline_mode = #tpu.pipeline_mode<synchronous>, transform_indices = @transform_2, window_bounds = array<i64: 1, 32>}, {transform_indices = @transform_3, window_bounds = array<i64: 16, 32>}, {transform_indices = @transform_4, window_bounds = array<i64: 16, 32>}]} {
    %c0 = arith.constant 0 : index
    %c0_0 = arith.constant 0 : index
    %0 = vector.load %arg1[%c0, %c0_0] : memref<16x32xf32, #tpu.memory_space<vmem>>, vector<16x32xf32>
    %c0_1 = arith.constant 0 : index
    %c0_2 = arith.constant 0 : index
    %1 = vector.load %arg2[%c0_1, %c0_2] : memref<32x32xbf16, #tpu.memory_space<vmem>>, vector<32x32xbf16>
    %c0_3 = arith.constant 0 : index
    %c0_4 = arith.constant 0 : index
    %2 = vector.load %arg3[%c0_3, %c0_4] : memref<1x32xf32, #tpu.memory_space<vmem>>, vector<1x32xf32>
    %c0_5 = arith.constant 0 : index
    %c0_6 = arith.constant 0 : index
    %3 = vector.load %arg4[%c0_5, %c0_6] : memref<16x32xf32, #tpu.memory_space<vmem>>, vector<16x32xf32>
    %4 = arith.truncf %0 : vector<16x32xf32> to vector<16x32xbf16>
    %cst = arith.constant dense<0.000000e+00> : vector<16x32xf32>
    %5 = tpu.matmul %4, %1, %cst {dimension_numbers = #tpu.dot_dimension_numbers<[1], [0], [0], [1], [0, 0, 1, 1], [], []>} : vector<16x32xbf16>, vector<32x32xbf16>, vector<16x32xf32> -> vector<16x32xf32>
    %6 = vector.broadcast %2 : vector<1x32xf32> to vector<16x32xf32>
    %7 = arith.addf %5, %6 : vector<16x32xf32>
    %8 = arith.addf %7, %3 : vector<16x32xf32>
    %c0_7 = arith.constant 0 : index
    %c0_8 = arith.constant 0 : index
    %9 = vector.load %arg5[%c0_7, %c0_8] : memref<16x32xf32, #tpu.memory_space<vmem>>, vector<16x32xf32>
    tpu.vector_store %arg5[%c0_7, %c0_8], %8 {strides = array<i32>} : memref<16x32xf32, #tpu.memory_space<vmem>>, vector<16x32xf32>,
    return
  }
  func.func @transform_0(%arg0: i32) -> (i32, i32) {
    %c0_i32 = arith.constant 0 : i32
    %c0_i32_0 = arith.constant 0 : i32
    return %arg0, %c0_i32 : i32, i32
  }
  func.func @transform_1(%arg0: i32) -> (i32, i32) {
    %c0_i32 = arith.constant 0 : i32
    %c0_i32_0 = arith.constant 0 : i32
    %c0_i32_1 = arith.constant 0 : i32
    return %c0_i32, %c0_i32_0 : i32, i32
  }
  func.func @transform_2(%arg0: i32) -> (i32, i32) {
    %c0_i32 = arith.constant 0 : i32
    %c0_i32_0 = arith.constant 0 : i32
    %c0_i32_1 = arith.constant 0 : i32
    return %c0_i32, %c0_i32_0 : i32, i32
  }
  func.func @transform_3(%arg0: i32) -> (i32, i32) {
    %c0_i32 = arith.constant 0 : i32
    %c0_i32_0 = arith.constant 0 : i32
    return %arg0, %c0_i32 : i32, i32
  }
  func.func @transform_4(%arg0: i32) -> (i32, i32) {
    %c0_i32 = arith.constant 0 : i32
    %c0_i32_0 = arith.constant 0 : i32
    return %arg0, %c0_i32 : i32, i32
  }
}

module attributes {stable_mosaic.version = 11 : i64} {
  func.func @kernel(%arg0: i32, %arg1: memref<16x32xf32, #tpu.memory_space<vmem>>, %arg2: memref<1x32xf32, #tpu.memory_space<vmem>>, %arg3: memref<1x32xf32, #tpu.memory_space<vmem>>, %arg4: memref<32x64xbf16, #tpu.memory_space<vmem>>, %arg5: memref<1x64xf32, #tpu.memory_space<vmem>>, %arg6: memref<64x32xbf16, #tpu.memory_space<vmem>>, %arg7: memref<1x32xf32, #tpu.memory_space<vmem>>, %arg8: memref<16x32xf32, #tpu.memory_space<vmem>>) attributes {dimension_semantics = [#tpu.dimension_semantics<parallel>], iteration_bounds = array<i64: 1>, scalar_prefetch = 0 : i64, scratch_operands = 0 : i64, tpu.core_type = #tpu.core_type<tc>, window_params = [{transform_indices = @transform_0, window_bounds = array<i64: 16, 32>}, {pipeline_mode = #tpu.pipeline_mode<synchronous>, transform_indices = @transform_1, window_bounds = array<i64: 1, 32>}, {pipeline_mode = #tpu.pipeline_mode<synchronous>, transform_indices = @transform_2, window_bounds = array<i64: 1, 32>}, {pipeline_mode = #tpu.pipeline_mode<synchronous>, transform_indices = @transform_3, window_bounds = array<i64: 32, 64>}, {pipeline_mode = #tpu.pipeline_mode<synchronous>, transform_indices = @transform_4, window_bounds = array<i64: 1, 64>}, {pipeline_mode = #tpu.pipeline_mode<synchronous>, transform_indices = @transform_5, window_bounds = array<i64: 64, 32>}, {pipeline_mode = #tpu.pipeline_mode<synchronous>, transform_indices = @transform_6, window_bounds = array<i64: 1, 32>}, {transform_indices = @transform_7, window_bounds = array<i64: 16, 32>}]} {
    %c0 = arith.constant 0 : index
    %c0_0 = arith.constant 0 : index
    %0 = vector.load %arg1[%c0, %c0_0] : memref<16x32xf32, #tpu.memory_space<vmem>>, vector<16x32xf32>
    %cst = arith.constant dense<0.000000e+00> : vector<16xf32>
    %1 = vector.multi_reduction <add>, %0, %cst [1] : vector<16x32xf32> to vector<16xf32>
    %2 = vector.shape_cast %1 : vector<16xf32> to vector<16x1xf32>
    %cst_1 = arith.constant 3.200000e+01 : f32
    %3 = vector.broadcast %cst_1 : f32 to vector<16x1xf32>
    %4 = arith.divf %2, %3 : vector<16x1xf32>
    %5 = vector.broadcast %4 : vector<16x1xf32> to vector<16x32xf32>
    %6 = arith.subf %0, %5 : vector<16x32xf32>
    %7 = arith.mulf %6, %6 : vector<16x32xf32>
    %cst_2 = arith.constant dense<0.000000e+00> : vector<16xf32>
    %8 = vector.multi_reduction <add>, %7, %cst_2 [1] : vector<16x32xf32> to vector<16xf32>
    %9 = vector.shape_cast %8 : vector<16xf32> to vector<16x1xf32>
    %cst_3 = arith.constant 3.200000e+01 : f32
    %10 = vector.broadcast %cst_3 : f32 to vector<16x1xf32>
    %11 = arith.divf %9, %10 : vector<16x1xf32>
    %12 = vector.broadcast %4 : vector<16x1xf32> to vector<16x32xf32>
    %13 = arith.subf %0, %12 : vector<16x32xf32>
    %cst_4 = arith.constant 9.99999974E-6 : f32
    %14 = vector.broadcast %cst_4 : f32 to vector<16x1xf32>
    %15 = arith.addf %11, %14 : vector<16x1xf32>
    %16 = math.rsqrt %15 : vector<16x1xf32>
    %17 = vector.broadcast %16 : vector<16x1xf32> to vector<16x32xf32>
    %18 = arith.mulf %13, %17 : vector<16x32xf32>
    %c0_5 = arith.constant 0 : index
    %c0_6 = arith.constant 0 : index
    %19 = vector.load %arg2[%c0_5, %c0_6] : memref<1x32xf32, #tpu.memory_space<vmem>>, vector<1x32xf32>
    %20 = vector.broadcast %19 : vector<1x32xf32> to vector<16x32xf32>
    %21 = arith.mulf %18, %20 : vector<16x32xf32>
    %c0_7 = arith.constant 0 : index
    %c0_8 = arith.constant 0 : index
    %22 = vector.load %arg3[%c0_7, %c0_8] : memref<1x32xf32, #tpu.memory_space<vmem>>, vector<1x32xf32>
    %23 = vector.broadcast %22 : vector<1x32xf32> to vector<16x32xf32>
    %24 = arith.addf %21, %23 : vector<16x32xf32>
    %25 = arith.truncf %24 : vector<16x32xf32> to vector<16x32xbf16>
    %c0_9 = arith.constant 0 : index
    %c0_10 = arith.constant 0 : index
    %26 = vector.load %arg4[%c0_9, %c0_10] : memref<32x64xbf16, #tpu.memory_space<vmem>>, vector<32x64xbf16>
    %cst_11 = arith.constant dense<0.000000e+00> : vector<16x64xf32>
    %27 = tpu.matmul %25, %26, %cst_11 {dimension_numbers = #tpu.dot_dimension_numbers<[1], [0], [0], [1], [0, 0, 1, 1], [], []>} : vector<16x32xbf16>, vector<32x64xbf16>, vector<16x64xf32> -> vector<16x64xf32>
    %c0_12 = arith.constant 0 : index
    %c0_13 = arith.constant 0 : index
    %28 = vector.load %arg5[%c0_12, %c0_13] : memref<1x64xf32, #tpu.memory_space<vmem>>, vector<1x64xf32>
    %29 = vector.broadcast %28 : vector<1x64xf32> to vector<16x64xf32>
    %30 = arith.addf %27, %29 : vector<16x64xf32>
    %cst_14 = arith.constant 0.000000e+00 : f32
    %31 = vector.broadcast %cst_14 : f32 to vector<16x64xf32>
    %32 = arith.maximumf %30, %31 : vector<16x64xf32>
    %33 = arith.truncf %32 : vector<16x64xf32> to vector<16x64xbf16>
    %c0_15 = arith.constant 0 : index
    %c0_16 = arith.constant 0 : index
    %34 = vector.load %arg6[%c0_15, %c0_16] : memref<64x32xbf16, #tpu.memory_space<vmem>>, vector<64x32xbf16>
    %cst_17 = arith.constant dense<0.000000e+00> : vector<16x32xf32>
    %35 = tpu.matmul %33, %34, %cst_17 {dimension_numbers = #tpu.dot_dimension_numbers<[1], [0], [0], [1], [0, 0, 1, 1], [], []>} : vector<16x64xbf16>, vector<64x32xbf16>, vector<16x32xf32> -> vector<16x32xf32>
    %c0_18 = arith.constant 0 : index
    %c0_19 = arith.constant 0 : index
    %36 = vector.load %arg7[%c0_18, %c0_19] : memref<1x32xf32, #tpu.memory_space<vmem>>, vector<1x32xf32>
    %37 = vector.broadcast %36 : vector<1x32xf32> to vector<16x32xf32>
    %38 = arith.addf %35, %37 : vector<16x32xf32>
    %39 = arith.addf %38, %0 : vector<16x32xf32>
    %c0_20 = arith.constant 0 : index
    %c0_21 = arith.constant 0 : index
    %40 = vector.load %arg8[%c0_20, %c0_21] : memref<16x32xf32, #tpu.memory_space<vmem>>, vector<16x32xf32>
    tpu.vector_store %arg8[%c0_20, %c0_21], %39 {strides = array<i32>} : memref<16x32xf32, #tpu.memory_space<vmem>>, vector<16x32xf32>,
    return
  }
  func.func @transform_0(%arg0: i32) -> (i32, i32) {
    %c0_i32 = arith.constant 0 : i32
    %c0_i32_0 = arith.constant 0 : i32
    return %arg0, %c0_i32 : i32, i32
  }
  func.func @transform_1(%arg0: i32) -> (i32, i32) {
    %c0_i32 = arith.constant 0 : i32
    %c0_i32_0 = arith.constant 0 : i32
    %c0_i32_1 = arith.constant 0 : i32
    return %c0_i32, %c0_i32_0 : i32, i32
  }
  func.func @transform_2(%arg0: i32) -> (i32, i32) {
    %c0_i32 = arith.constant 0 : i32
    %c0_i32_0 = arith.constant 0 : i32
    %c0_i32_1 = arith.constant 0 : i32
    return %c0_i32, %c0_i32_0 : i32, i32
  }
  func.func @transform_3(%arg0: i32) -> (i32, i32) {
    %c0_i32 = arith.constant 0 : i32
    %c0_i32_0 = arith.constant 0 : i32
    %c0_i32_1 = arith.constant 0 : i32
    return %c0_i32, %c0_i32_0 : i32, i32
  }
  func.func @transform_4(%arg0: i32) -> (i32, i32) {
    %c0_i32 = arith.constant 0 : i32
    %c0_i32_0 = arith.constant 0 : i32
    %c0_i32_1 = arith.constant 0 : i32
    return %c0_i32, %c0_i32_0 : i32, i32
  }
  func.func @transform_5(%arg0: i32) -> (i32, i32) {
    %c0_i32 = arith.constant 0 : i32
    %c0_i32_0 = arith.constant 0 : i32
    %c0_i32_1 = arith.constant 0 : i32
    return %c0_i32, %c0_i32_0 : i32, i32
  }
  func.func @transform_6(%arg0: i32) -> (i32, i32) {
    %c0_i32 = arith.constant 0 : i32
    %c0_i32_0 = arith.constant 0 : i32
    %c0_i32_1 = arith.constant 0 : i32
    return %c0_i32, %c0_i32_0 : i32, i32
  }
  func.func @transform_7(%arg0: i32) -> (i32, i32) {
    %c0_i32 = arith.constant 0 : i32
    %c0_i32_0 = arith.constant 0 : i32
    return %arg0, %c0_i32 : i32, i32
  }
}

module attributes {stable_mosaic.version = 11 : i64} {
  func.func @kernel(%arg0: i32, %arg1: memref<16x32xf32, #tpu.memory_space<vmem>>, %arg2: memref<1x32xf32, #tpu.memory_space<vmem>>, %arg3: memref<1x32xf32, #tpu.memory_space<vmem>>, %arg4: memref<32x32xbf16, #tpu.memory_space<vmem>>, %arg5: memref<1x32xf32, #tpu.memory_space<vmem>>, %arg6: memref<32x6xbf16, #tpu.memory_space<vmem>>, %arg7: memref<1x6xf32, #tpu.memory_space<vmem>>, %arg8: memref<16x6xf32, #tpu.memory_space<vmem>>) attributes {dimension_semantics = [#tpu.dimension_semantics<parallel>], iteration_bounds = array<i64: 1>, scalar_prefetch = 0 : i64, scratch_operands = 0 : i64, tpu.core_type = #tpu.core_type<tc>, window_params = [{transform_indices = @transform_0, window_bounds = array<i64: 16, 32>}, {pipeline_mode = #tpu.pipeline_mode<synchronous>, transform_indices = @transform_1, window_bounds = array<i64: 1, 32>}, {pipeline_mode = #tpu.pipeline_mode<synchronous>, transform_indices = @transform_2, window_bounds = array<i64: 1, 32>}, {pipeline_mode = #tpu.pipeline_mode<synchronous>, transform_indices = @transform_3, window_bounds = array<i64: 32, 32>}, {pipeline_mode = #tpu.pipeline_mode<synchronous>, transform_indices = @transform_4, window_bounds = array<i64: 1, 32>}, {pipeline_mode = #tpu.pipeline_mode<synchronous>, transform_indices = @transform_5, window_bounds = array<i64: 32, 6>}, {pipeline_mode = #tpu.pipeline_mode<synchronous>, transform_indices = @transform_6, window_bounds = array<i64: 1, 6>}, {transform_indices = @transform_7, window_bounds = array<i64: 16, 6>}]} {
    %c0 = arith.constant 0 : index
    %c0_0 = arith.constant 0 : index
    %0 = vector.load %arg1[%c0, %c0_0] : memref<16x32xf32, #tpu.memory_space<vmem>>, vector<16x32xf32>
    %cst = arith.constant dense<0.000000e+00> : vector<16xf32>
    %1 = vector.multi_reduction <add>, %0, %cst [1] : vector<16x32xf32> to vector<16xf32>
    %2 = vector.shape_cast %1 : vector<16xf32> to vector<16x1xf32>
    %cst_1 = arith.constant 3.200000e+01 : f32
    %3 = vector.broadcast %cst_1 : f32 to vector<16x1xf32>
    %4 = arith.divf %2, %3 : vector<16x1xf32>
    %5 = vector.broadcast %4 : vector<16x1xf32> to vector<16x32xf32>
    %6 = arith.subf %0, %5 : vector<16x32xf32>
    %7 = arith.mulf %6, %6 : vector<16x32xf32>
    %cst_2 = arith.constant dense<0.000000e+00> : vector<16xf32>
    %8 = vector.multi_reduction <add>, %7, %cst_2 [1] : vector<16x32xf32> to vector<16xf32>
    %9 = vector.shape_cast %8 : vector<16xf32> to vector<16x1xf32>
    %cst_3 = arith.constant 3.200000e+01 : f32
    %10 = vector.broadcast %cst_3 : f32 to vector<16x1xf32>
    %11 = arith.divf %9, %10 : vector<16x1xf32>
    %12 = vector.broadcast %4 : vector<16x1xf32> to vector<16x32xf32>
    %13 = arith.subf %0, %12 : vector<16x32xf32>
    %cst_4 = arith.constant 9.99999974E-6 : f32
    %14 = vector.broadcast %cst_4 : f32 to vector<16x1xf32>
    %15 = arith.addf %11, %14 : vector<16x1xf32>
    %16 = math.rsqrt %15 : vector<16x1xf32>
    %17 = vector.broadcast %16 : vector<16x1xf32> to vector<16x32xf32>
    %18 = arith.mulf %13, %17 : vector<16x32xf32>
    %c0_5 = arith.constant 0 : index
    %c0_6 = arith.constant 0 : index
    %19 = vector.load %arg2[%c0_5, %c0_6] : memref<1x32xf32, #tpu.memory_space<vmem>>, vector<1x32xf32>
    %20 = vector.broadcast %19 : vector<1x32xf32> to vector<16x32xf32>
    %21 = arith.mulf %18, %20 : vector<16x32xf32>
    %c0_7 = arith.constant 0 : index
    %c0_8 = arith.constant 0 : index
    %22 = vector.load %arg3[%c0_7, %c0_8] : memref<1x32xf32, #tpu.memory_space<vmem>>, vector<1x32xf32>
    %23 = vector.broadcast %22 : vector<1x32xf32> to vector<16x32xf32>
    %24 = arith.addf %21, %23 : vector<16x32xf32>
    %25 = arith.truncf %24 : vector<16x32xf32> to vector<16x32xbf16>
    %c0_9 = arith.constant 0 : index
    %c0_10 = arith.constant 0 : index
    %26 = vector.load %arg4[%c0_9, %c0_10] : memref<32x32xbf16, #tpu.memory_space<vmem>>, vector<32x32xbf16>
    %cst_11 = arith.constant dense<0.000000e+00> : vector<16x32xf32>
    %27 = tpu.matmul %25, %26, %cst_11 {dimension_numbers = #tpu.dot_dimension_numbers<[1], [0], [0], [1], [0, 0, 1, 1], [], []>} : vector<16x32xbf16>, vector<32x32xbf16>, vector<16x32xf32> -> vector<16x32xf32>
    %c0_12 = arith.constant 0 : index
    %c0_13 = arith.constant 0 : index
    %28 = vector.load %arg5[%c0_12, %c0_13] : memref<1x32xf32, #tpu.memory_space<vmem>>, vector<1x32xf32>
    %29 = vector.broadcast %28 : vector<1x32xf32> to vector<16x32xf32>
    %30 = arith.addf %27, %29 : vector<16x32xf32>
    %cst_14 = arith.constant 0.000000e+00 : f32
    %31 = vector.broadcast %cst_14 : f32 to vector<16x32xf32>
    %32 = arith.maximumf %30, %31 : vector<16x32xf32>
    %33 = arith.truncf %32 : vector<16x32xf32> to vector<16x32xbf16>
    %c0_15 = arith.constant 0 : index
    %c0_16 = arith.constant 0 : index
    %34 = vector.load %arg6[%c0_15, %c0_16] : memref<32x6xbf16, #tpu.memory_space<vmem>>, vector<32x6xbf16>
    %cst_17 = arith.constant dense<0.000000e+00> : vector<16x6xf32>
    %35 = tpu.matmul %33, %34, %cst_17 {dimension_numbers = #tpu.dot_dimension_numbers<[1], [0], [0], [1], [0, 0, 1, 1], [], []>} : vector<16x32xbf16>, vector<32x6xbf16>, vector<16x6xf32> -> vector<16x6xf32>
    %c0_18 = arith.constant 0 : index
    %c0_19 = arith.constant 0 : index
    %36 = vector.load %arg7[%c0_18, %c0_19] : memref<1x6xf32, #tpu.memory_space<vmem>>, vector<1x6xf32>
    %37 = vector.broadcast %36 : vector<1x6xf32> to vector<16x6xf32>
    %38 = arith.addf %35, %37 : vector<16x6xf32>
    %c0_20 = arith.constant 0 : index
    %c0_21 = arith.constant 0 : index
    %39 = vector.load %arg8[%c0_20, %c0_21] : memref<16x6xf32, #tpu.memory_space<vmem>>, vector<16x6xf32>
    tpu.vector_store %arg8[%c0_20, %c0_21], %38 {strides = array<i32>} : memref<16x6xf32, #tpu.memory_space<vmem>>, vector<16x6xf32>,
    return
  }
  func.func @transform_0(%arg0: i32) -> (i32, i32) {
    %c0_i32 = arith.constant 0 : i32
    %c0_i32_0 = arith.constant 0 : i32
    return %arg0, %c0_i32 : i32, i32
  }
  func.func @transform_1(%arg0: i32) -> (i32, i32) {
    %c0_i32 = arith.constant 0 : i32
    %c0_i32_0 = arith.constant 0 : i32
    %c0_i32_1 = arith.constant 0 : i32
    return %c0_i32, %c0_i32_0 : i32, i32
  }
  func.func @transform_2(%arg0: i32) -> (i32, i32) {
    %c0_i32 = arith.constant 0 : i32
    %c0_i32_0 = arith.constant 0 : i32
    %c0_i32_1 = arith.constant 0 : i32
    return %c0_i32, %c0_i32_0 : i32, i32
  }
  func.func @transform_3(%arg0: i32) -> (i32, i32) {
    %c0_i32 = arith.constant 0 : i32
    %c0_i32_0 = arith.constant 0 : i32
    %c0_i32_1 = arith.constant 0 : i32
    return %c0_i32, %c0_i32_0 : i32, i32
  }
  func.func @transform_4(%arg0: i32) -> (i32, i32) {
    %c0_i32 = arith.constant 0 : i32
    %c0_i32_0 = arith.constant 0 : i32
    %c0_i32_1 = arith.constant 0 : i32
    return %c0_i32, %c0_i32_0 : i32, i32
  }
  func.func @transform_5(%arg0: i32) -> (i32, i32) {
    %c0_i32 = arith.constant 0 : i32
    %c0_i32_0 = arith.constant 0 : i32
    %c0_i32_1 = arith.constant 0 : i32
    return %c0_i32, %c0_i32_0 : i32, i32
  }
  func.func @transform_6(%arg0: i32) -> (i32, i32) {
    %c0_i32 = arith.constant 0 : i32
    %c0_i32_0 = arith.constant 0 : i32
    %c0_i32_1 = arith.constant 0 : i32
    return %c0_i32, %c0_i32_0 : i32, i32
  }
  func.func @transform_7(%arg0: i32) -> (i32, i32) {
    %c0_i32 = arith.constant 0 : i32
    %c0_i32_0 = arith.constant 0 : i32
    return %arg0, %c0_i32 : i32, i32
  }
}

module attributes {stable_mosaic.version = 11 : i64} {
  func.func @kernel(%arg0: i32, %arg1: memref<128x16xf32, #tpu.memory_space<vmem>>, %arg2: memref<1x16xf32, #tpu.memory_space<vmem>>, %arg3: memref<1x16xf32, #tpu.memory_space<vmem>>, %arg4: memref<16x256xbf16, #tpu.memory_space<vmem>>, %arg5: memref<1x256xf32, #tpu.memory_space<vmem>>, %arg6: memref<128x256xf32, #tpu.memory_space<vmem>>) attributes {dimension_semantics = [#tpu.dimension_semantics<parallel>], iteration_bounds = array<i64: 1>, scalar_prefetch = 0 : i64, scratch_operands = 0 : i64, tpu.core_type = #tpu.core_type<tc>, window_params = [{transform_indices = @transform_0, window_bounds = array<i64: 128, 16>}, {pipeline_mode = #tpu.pipeline_mode<synchronous>, transform_indices = @transform_1, window_bounds = array<i64: 1, 16>}, {pipeline_mode = #tpu.pipeline_mode<synchronous>, transform_indices = @transform_2, window_bounds = array<i64: 1, 16>}, {pipeline_mode = #tpu.pipeline_mode<synchronous>, transform_indices = @transform_3, window_bounds = array<i64: 16, 256>}, {pipeline_mode = #tpu.pipeline_mode<synchronous>, transform_indices = @transform_4, window_bounds = array<i64: 1, 256>}, {transform_indices = @transform_5, window_bounds = array<i64: 128, 256>}]} {
    %c0 = arith.constant 0 : index
    %c0_0 = arith.constant 0 : index
    %0 = vector.load %arg1[%c0, %c0_0] : memref<128x16xf32, #tpu.memory_space<vmem>>, vector<128x16xf32>
    %c0_1 = arith.constant 0 : index
    %c0_2 = arith.constant 0 : index
    %1 = vector.load %arg2[%c0_1, %c0_2] : memref<1x16xf32, #tpu.memory_space<vmem>>, vector<1x16xf32>
    %c0_3 = arith.constant 0 : index
    %c0_4 = arith.constant 0 : index
    %2 = vector.load %arg3[%c0_3, %c0_4] : memref<1x16xf32, #tpu.memory_space<vmem>>, vector<1x16xf32>
    %c0_5 = arith.constant 0 : index
    %c0_6 = arith.constant 0 : index
    %3 = vector.load %arg4[%c0_5, %c0_6] : memref<16x256xbf16, #tpu.memory_space<vmem>>, vector<16x256xbf16>
    %c0_7 = arith.constant 0 : index
    %c0_8 = arith.constant 0 : index
    %4 = vector.load %arg5[%c0_7, %c0_8] : memref<1x256xf32, #tpu.memory_space<vmem>>, vector<1x256xf32>
    %cst = arith.constant dense<0.000000e+00> : vector<128xf32>
    %5 = vector.multi_reduction <add>, %0, %cst [1] : vector<128x16xf32> to vector<128xf32>
    %6 = vector.shape_cast %5 : vector<128xf32> to vector<128x1xf32>
    %cst_9 = arith.constant 1.600000e+01 : f32
    %7 = vector.broadcast %cst_9 : f32 to vector<128x1xf32>
    %8 = arith.divf %6, %7 : vector<128x1xf32>
    %9 = vector.broadcast %8 : vector<128x1xf32> to vector<128x16xf32>
    %10 = arith.subf %0, %9 : vector<128x16xf32>
    %11 = arith.mulf %10, %10 : vector<128x16xf32>
    %cst_10 = arith.constant dense<0.000000e+00> : vector<128xf32>
    %12 = vector.multi_reduction <add>, %11, %cst_10 [1] : vector<128x16xf32> to vector<128xf32>
    %13 = vector.shape_cast %12 : vector<128xf32> to vector<128x1xf32>
    %cst_11 = arith.constant 1.600000e+01 : f32
    %14 = vector.broadcast %cst_11 : f32 to vector<128x1xf32>
    %15 = arith.divf %13, %14 : vector<128x1xf32>
    %16 = vector.broadcast %8 : vector<128x1xf32> to vector<128x16xf32>
    %17 = arith.subf %0, %16 : vector<128x16xf32>
    %cst_12 = arith.constant 9.99999974E-6 : f32
    %18 = vector.broadcast %cst_12 : f32 to vector<128x1xf32>
    %19 = arith.addf %15, %18 : vector<128x1xf32>
    %20 = math.rsqrt %19 : vector<128x1xf32>
    %21 = vector.broadcast %20 : vector<128x1xf32> to vector<128x16xf32>
    %22 = arith.mulf %17, %21 : vector<128x16xf32>
    %23 = vector.broadcast %1 : vector<1x16xf32> to vector<128x16xf32>
    %24 = arith.mulf %22, %23 : vector<128x16xf32>
    %25 = vector.broadcast %2 : vector<1x16xf32> to vector<128x16xf32>
    %26 = arith.addf %24, %25 : vector<128x16xf32>
    %27 = arith.truncf %26 : vector<128x16xf32> to vector<128x16xbf16>
    %cst_13 = arith.constant dense<0.000000e+00> : vector<128x256xf32>
    %28 = tpu.matmul %27, %3, %cst_13 {dimension_numbers = #tpu.dot_dimension_numbers<[1], [0], [0], [1], [0, 0, 1, 1], [], []>} : vector<128x16xbf16>, vector<16x256xbf16>, vector<128x256xf32> -> vector<128x256xf32>
    %29 = vector.broadcast %4 : vector<1x256xf32> to vector<128x256xf32>
    %30 = arith.addf %28, %29 : vector<128x256xf32>
    %c0_14 = arith.constant 0 : index
    %c0_15 = arith.constant 0 : index
    %31 = vector.load %arg6[%c0_14, %c0_15] : memref<128x256xf32, #tpu.memory_space<vmem>>, vector<128x256xf32>
    tpu.vector_store %arg6[%c0_14, %c0_15], %30 {strides = array<i32>} : memref<128x256xf32, #tpu.memory_space<vmem>>, vector<128x256xf32>,
    return
  }
  func.func @transform_0(%arg0: i32) -> (i32, i32) {
    %c0_i32 = arith.constant 0 : i32
    %c0_i32_0 = arith.constant 0 : i32
    return %arg0, %c0_i32 : i32, i32
  }
  func.func @transform_1(%arg0: i32) -> (i32, i32) {
    %c0_i32 = arith.constant 0 : i32
    %c0_i32_0 = arith.constant 0 : i32
    %c0_i32_1 = arith.constant 0 : i32
    return %c0_i32, %c0_i32_0 : i32, i32
  }
  func.func @transform_2(%arg0: i32) -> (i32, i32) {
    %c0_i32 = arith.constant 0 : i32
    %c0_i32_0 = arith.constant 0 : i32
    %c0_i32_1 = arith.constant 0 : i32
    return %c0_i32, %c0_i32_0 : i32, i32
  }
  func.func @transform_3(%arg0: i32) -> (i32, i32) {
    %c0_i32 = arith.constant 0 : i32
    %c0_i32_0 = arith.constant 0 : i32
    %c0_i32_1 = arith.constant 0 : i32
    return %c0_i32, %c0_i32_0 : i32, i32
  }
  func.func @transform_4(%arg0: i32) -> (i32, i32) {
    %c0_i32 = arith.constant 0 : i32
    %c0_i32_0 = arith.constant 0 : i32
    %c0_i32_1 = arith.constant 0 : i32
    return %c0_i32, %c0_i32_0 : i32, i32
  }
  func.func @transform_5(%arg0: i32) -> (i32, i32) {
    %c0_i32 = arith.constant 0 : i32
    %c0_i32_0 = arith.constant 0 : i32
    return %arg0, %c0_i32 : i32, i32
  }
}

</mosaic_0001>

<bundles_post_ra>
// kernel: _lambda_.21
= control target key start
LH: loop header
LB: loop body
LE: loop exit
PB: predicated region body
PF: predicated region fallthrough
CT: control target
= control target key end

     0   :  { %vm27_vm0 = vcmask 1042432   ;;  %vm23_vm1 = vcmask 48128   ;;  %vm45_vm2 = vcmask 523264   ;;  %s92_s1 = inlined_call_operand.vmem [shape: bf16[6,64], index: 1, kind: input, shape index: {}]   ;;  %s93_s0 = inlined_call_operand.vmem [shape: f32[16,6], index: 0, kind: input, shape index: {}]   ;;  %s94_s2 = inlined_call_operand.vmem [shape: f32[1,64], index: 2, kind: input, shape index: {}]   ;;  %s95_s3 = inlined_call_operand.vmem [shape: f32[16,64], index: 3, kind: output, shape index: {}]  }
   0x1   :  { %v17_v0 = vld [vmem:[%s92_s1] sm:$0x7]  ;;  %v16_v2 = vld [vmem:[%s93_s0 + $0x8] sm:$0xff] }
   0x2   :  { %v15_v1 = vld [vmem:[%s93_s0] sm:$0xff]  ;;  %v29_v3 = vsel %vm27_vm0, %v17_v0, 0 }
   0x3   :  { %v19_v4 = vpack.c.bf16 %v16_v2, %v15_v1  ;;  %38 = vmatpush.bf16.msra.mxu0 %v29_v3  ;;  %v53_v5 = vld [vmem:[%s94_s2] ss:$0 sm:$0xff] }
   0x6   :  { %52 = vmatmul.msk.bf16.vlgmr.msra.gmra.mxu0 %vm23_vm1, %v19_v4 }
  0x83   :  { %v40_v6 = vpop.f32.mrf.mxu0 }
  0x84   :  { %v41_v7 = vadd.f32 %v53_v5, %v40_v6 }
  0x86   :  { %46 = vst.msk [vmem:[%s95_s3] sm:$0xff] %vm45_vm2, %v41_v7 }
  0x8b   :  { %v42_v8 = vpop.f32.mrf.mxu0 }
  0x8c   :  { %v43_v9 = vadd.f32 %v53_v5, %v42_v8 }
  0x8e   :  { %47 = vst.msk [vmem:[%s95_s3 + $0x8] sm:$0xff] %vm45_vm2, %v43_v9 }

// kernel: _lambda_.22
= control target key start
LH: loop header
LB: loop body
LE: loop exit
PB: predicated region body
PF: predicated region fallthrough
CT: control target
= control target key end

     0   :  { %vm36_vm0 = vcmask 261120   ;;  %v357_v16 = vmov 32.0   ;;  %s597_s0 = inlined_call_operand.vmem [shape: f32[64,32], index: 0, kind: input, shape index: {}]   ;;  %s598_s1 = inlined_call_operand.vmem [shape: f32[1,32], index: 1, kind: input, shape index: {}]   ;;  %s599_s2 = inlined_call_operand.vmem [shape: f32[1,32], index: 2, kind: input, shape index: {}]   ;;  %s600_s4 = inlined_call_operand.vmem [shape: f32[1,96], index: 4, kind: input, shape index: {}]   ;;  %s601_s3 = inlined_call_operand.vmem [shape: bf16[32,96], index: 3, kind: input, shape index: {}]   ;;  %s602_s5 = inlined_call_operand.vmem [shape: f32[64,96], index: 5, kind: output, shape index: {}]  }
   0x1   :  { %v27_v0 = vld [vmem:[%s597_s0 + $0x30] sm:$0xff]  ;;  %v25_v1 = vld [vmem:[%s597_s0 + $0x20] sm:$0xff]  ;;  %v28_v6 = vld [vmem:[%s597_s0 + $0x38] sm:$0xff]  ;;  %339 = vrcp.f32 %v357_v16 }
   0x2   :  { %v21_v2 = vld [vmem:[%s597_s0] sm:$0xff]  ;;  %v55_v3 = vsel %vm36_vm0, %v27_v0, 0.0  ;;  %v49_v4 = vsel %vm36_vm0, %v25_v1, 0.0  ;;  %v26_v7 = vld [vmem:[%s597_s0 + $0x28] sm:$0xff]  ;;  %v58_v9 = vsel %vm36_vm0, %v28_v6, 0.0  ;;  %v23_v12 = vld [vmem:[%s597_s0 + $0x10] sm:$0xff] }
   0x3   :  { %v37_v5 = vsel %vm36_vm0, %v21_v2, 0.0  ;;  %56 = vadd.xlane.f32.xlu1 %v55_v3  ;;  %50 = vadd.xlane.f32.xlu0 %v49_v4  ;;  %v22_v8 = vld [vmem:[%s597_s0 + $0x8] sm:$0xff]  ;;  %v52_v10 = vsel %vm36_vm0, %v26_v7, 0.0  ;;  %v24_v13 = vld [vmem:[%s597_s0 + $0x18] sm:$0xff]  ;;  %v43_v14 = vsel %vm36_vm0, %v23_v12, 0.0 }
   0x4   :  { %38 = vadd.xlane.f32.xlu2 %v37_v5  ;;  %v40_v11 = vsel %vm36_vm0, %v22_v8, 0.0  ;;  %v46_v15 = vsel %vm36_vm0, %v24_v13, 0.0  ;;  %v328_v3 = vld [vmem:[%s601_s3 + $0x8] sm:$0xff] }
   0x5   :  { %330 = vmatpush.bf16.msra.mxu2 %v328_v3  ;;  %331 = vmatpush.bf16.msra.mxu3 %v328_v3 }
   0x6   :  { %279 = vmatpush.bf16.msra.mxu0 %v328_v3  ;;  %329 = vmatpush.bf16.msra.mxu1 %v328_v3 }
   0x7   :  { %v340_v17 = vpop.eup %339 }
   0x8   :  { %v62_v18 = vmul.f32 32.0, %v340_v17  ;;  %vm66_vm1 = vweird.f32 %v340_v17 }
   0xa   :  { %v63_v19 = vsub.f32 1.0, %v62_v18 }
   0xb   :  { %59 = vadd.xlane.f32.xlu1 %v58_v9  ;;  %53 = vadd.xlane.f32.xlu0 %v52_v10 }
   0xc   :  { %41 = vadd.xlane.f32.xlu2 %v40_v11  ;;  %v64_v20 = vmul.f32 %v340_v17, %v63_v19 }
   0xe   :  { %v65_v21 = vadd.f32 %v340_v17, %v64_v20 }
  0x10   :  { %v420_v22 = vsel %vm66_vm1, %v340_v17, %v65_v21 }
  0x13   :  { %44 = vadd.xlane.f32.xlu0 %v43_v14  ;;  %47 = vadd.xlane.f32.xlu1 %v46_v15 }
  0x76   :  { %v57_v23 = vpop.xlane.xlu1 %56  ;;  %v51_v24 = vpop.xlane.xlu0 %50 }
  0x77   :  { %v74_v25 = vmul.f32 %v420_v22, %v57_v23  ;;  %v72_v26 = vmul.f32 %v420_v22, %v51_v24  ;;  %v39_v27 = vpop.xlane.xlu2 %38 }
  0x78   :  { %v68_v36 = vmul.f32 %v420_v22, %v39_v27 }
  0x79   :  { %v424_v28 = vsub.f32 %v27_v0, %v74_v25  ;;  %v426_v29 = vsub.f32 %v25_v1, %v72_v26 }
  0x7a   :  { %v444_v44 = vsub.f32 %v21_v2, %v68_v36 }
  0x7b   :  { %v90_v30 = vmul.f32 %v424_v28, %v424_v28  ;;  %v88_v31 = vmul.f32 %v426_v29, %v426_v29 }
  0x7c   :  { %v84_v55 = vmul.f32 %v444_v44, %v444_v44 }
  0x7d   :  { %v110_v32 = vsel %vm36_vm0, %v90_v30, 0.0  ;;  %v104_v33 = vsel %vm36_vm0, %v88_v31, 0.0 }
  0x7e   :  { %v60_v34 = vpop.xlane.xlu1 %59  ;;  %v54_v35 = vpop.xlane.xlu0 %53  ;;  %111 = vadd.xlane.f32.xlu1 %v110_v32  ;;  %105 = vadd.xlane.f32.xlu2 %v104_v33  ;;  %v92_v59 = vsel %vm36_vm0, %v84_v55, 0.0 }
  0x7f   :  { %v75_v37 = vmul.f32 %v420_v22, %v60_v34  ;;  %v73_v38 = vmul.f32 %v420_v22, %v54_v35  ;;  %v42_v39 = vpop.xlane.xlu2 %41 }
  0x80   :  { %v69_v40 = vmul.f32 %v420_v22, %v42_v39 }
  0x81   :  { %v438_v41 = vsub.f32 %v28_v6, %v75_v37  ;;  %v440_v42 = vsub.f32 %v26_v7, %v73_v38  ;;  %v327_v6 = vld [vmem:[%s601_s3] sm:$0xff] }
  0x82   :  { %v442_v43 = vsub.f32 %v22_v8, %v69_v40  ;;  %333 = vmatpush.bf16.msra.mxu2 %v327_v6  ;;  %334 = vmatpush.bf16.msra.mxu3 %v327_v6 }
  0x83   :  { %v89_v45 = vmul.f32 %v440_v42, %v440_v42  ;;  %v91_v46 = vmul.f32 %v438_v41, %v438_v41  ;;  %280 = vmatpush.bf16.msra.mxu0 %v327_v6  ;;  %332 = vmatpush.bf16.msra.mxu1 %v327_v6 }
  0x84   :  { %v85_v47 = vmul.f32 %v442_v43, %v442_v43 }
  0x85   :  { %v107_v48 = vsel %vm36_vm0, %v89_v45, 0.0  ;;  %v113_v49 = vsel %vm36_vm0, %v91_v46, 0.0 }
  0x86   :  { %108 = vadd.xlane.f32.xlu0 %v107_v48  ;;  %v45_v50 = vpop.xlane.xlu0 %44  ;;  %114 = vadd.xlane.f32.xlu2 %v113_v49  ;;  %v95_v51 = vsel %vm36_vm0, %v85_v47, 0.0  ;;  %v48_v52 = vpop.xlane.xlu1 %47 }
  0x87   :  { %v70_v53 = vmul.f32 %v420_v22, %v45_v50  ;;  %96 = vadd.xlane.f32.xlu1 %v95_v51  ;;  %v71_v54 = vmul.f32 %v420_v22, %v48_v52 }
  0x89   :  { %v459_v56 = vsub.f32 %v23_v12, %v70_v53  ;;  %v461_v57 = vsub.f32 %v24_v13, %v71_v54 }
  0x8b   :  { %v86_v58 = vmul.f32 %v459_v56, %v459_v56  ;;  %v87_v61 = vmul.f32 %v461_v57, %v461_v57 }
  0x8d   :  { %v98_v60 = vsel %vm36_vm0, %v86_v58, 0.0  ;;  %v101_v62 = vsel %vm36_vm0, %v87_v61, 0.0 }
  0x8e   :  { %99 = vadd.xlane.f32.xlu2 %v98_v60  ;;  %93 = vadd.xlane.f32.xlu0 %v92_v59 }
  0x96   :  { %102 = vadd.xlane.f32.xlu0 %v101_v62 }
  0xf1   :  { %v112_v63 = vpop.xlane.xlu1 %111  ;;  %v106_v0 = vpop.xlane.xlu2 %105 }
  0xf2   :  { %v122_v1 = vmul.f32 %v112_v63, %v420_v22  ;;  %v120_v2 = vmul.f32 %v106_v0, %v420_v22  ;;  %v517_v63 = vld [vmem:[%s598_s1] ss:$0 sm:$0xff] }
  0xf4   :  { %v130_v4 = vadd.f32 1e-05, %v122_v1  ;;  %v128_v5 = vadd.f32 1e-05, %v120_v2 }
  0xf6   :  { %341 = vrsqrt.f32 %v130_v4  ;;  %vm198_vm2 = vweird.f32 %v130_v4  ;;  %vm178_vm5 = vweird.f32 %v128_v5 }
  0xf7   :  { %343 = vrsqrt.f32 %v128_v5 }
  0xf9   :  { %v109_v7 = vpop.xlane.xlu0 %108  ;;  %v115_v8 = vpop.xlane.xlu2 %114 }
  0xfa   :  { %v121_v9 = vmul.f32 %v109_v7, %v420_v22  ;;  %v97_v10 = vpop.xlane.xlu1 %96  ;;  %v123_v11 = vmul.f32 %v115_v8, %v420_v22 }
  0xfb   :  { %v117_v12 = vmul.f32 %v97_v10, %v420_v22 }
  0xfc   :  { %v342_v13 = vpop.eup %341  ;;  %v129_v14 = vadd.f32 1e-05, %v121_v9  ;;  %v481_v15 = vadd.f32 1e-05, %v123_v11  ;;  %v337_v11 = vld [vmem:[%s599_s2] ss:$0 sm:$0xff] }
  0xfd   :  { %v344_v16 = vpop.eup %343  ;;  %v193_v17 = vmul.f32 %v342_v13, %v130_v4  ;;  %v125_v18 = vadd.f32 1e-05, %v117_v12  ;;  %vm199_vm4 = vweird.f32 %v342_v13 }
  0xfe   :  { %v173_v19 = vmul.f32 %v344_v16, %v128_v5  ;;  %345 = vrsqrt.f32 %v129_v14  ;;  %vm179_vm3 = vweird.f32 %v344_v16  ;;  %vm188_vm7 = vweird.f32 %v129_v14  ;;  %vm504_vm8 = vmor %vm198_vm2, %vm199_vm4 }
  0xff   :  { %v194_v20 = vmul.f32 %v342_v13, %v193_v17  ;;  %347 = vrsqrt.f32 %v125_v18  ;;  %vm494_vm6 = vmor %vm178_vm5, %vm179_vm3  ;;  %vm148_vm9 = vweird.f32 %v125_v18  ;;  %vm208_vm12 = vweird.f32 %v481_v15 }
 0x100   :  { %v174_v21 = vmul.f32 %v344_v16, %v173_v19  ;;  %349 = vrsqrt.f32 %v481_v15 }
 0x101   :  { %v195_v23 = vmul.f32 0.5, %v194_v20  ;;  %v94_v24 = vpop.xlane.xlu0 %93  ;;  %v100_v25 = vpop.xlane.xlu2 %99 }
 0x102   :  { %v175_v26 = vmul.f32 0.5, %v174_v21  ;;  %v116_v27 = vmul.f32 %v94_v24, %v420_v22  ;;  %v118_v30 = vmul.f32 %v100_v25, %v420_v22 }
 0x103   :  { %v196_v31 = vsub.f32 1.5, %v195_v23 }
 0x104   :  { %v346_v32 = vpop.eup %345  ;;  %v176_v33 = vsub.f32 1.5, %v175_v26  ;;  %v486_v34 = vadd.f32 1e-05, %v116_v27  ;;  %v490_v37 = vadd.f32 1e-05, %v118_v30 }
 0x105   :  { %v488_v35 = vpop.eup %347  ;;  %v183_v36 = vmul.f32 %v346_v32, %v129_v14  ;;  %v197_v39 = vmul.f32 %v342_v13, %v196_v31  ;;  %vm189_vm10 = vweird.f32 %v346_v32 }
 0x106   :  { %v350_v38 = vpop.eup %349  ;;  %v177_v40 = vmul.f32 %v344_v16, %v176_v33  ;;  %v143_v45 = vmul.f32 %v488_v35, %v125_v18  ;;  %351 = vrsqrt.f32 %v486_v34  ;;  %vm149_vm11 = vweird.f32 %v488_v35  ;;  %vm190_vm14 = vmor %vm188_vm7, %vm189_vm10 }
 0x107   :  { %v184_v47 = vmul.f32 %v346_v32, %v183_v36  ;;  %v203_v48 = vmul.f32 %v350_v38, %v481_v15  ;;  %353 = vrsqrt.f32 %v490_v37  ;;  %v201_v55 = vsel %vm504_vm8, %v342_v13, %v197_v39  ;;  %vm526_vm15 = vmor %vm148_vm9, %vm149_vm11 }
 0x108   :  { %v181_v49 = vsel %vm494_vm6, %v344_v16, %v177_v40  ;;  %v144_v50 = vmul.f32 %v488_v35, %v143_v45  ;;  %vm209_vm13 = vweird.f32 %v350_v38  ;;  %v218_v3 = vmul.f32 %v201_v55, %v424_v28 }
 0x109   :  { %v185_v52 = vmul.f32 0.5, %v184_v47  ;;  %v204_v53 = vmul.f32 %v350_v38, %v203_v48  ;;  %v103_v54 = vpop.xlane.xlu0 %102  ;;  %v216_v60 = vmul.f32 %v181_v49, %v426_v29  ;;  %vm210_vm1 = vmor %vm208_vm12, %vm209_vm13  ;;  %vm138_vm2 = vweird.f32 %v486_v34 }
 0x10a   :  { %v145_v58 = vmul.f32 0.5, %v144_v50  ;;  %v119_v59 = vmul.f32 %v103_v54, %v420_v22  ;;  %v229_v18 = vmul.f32 %v517_v63, %v218_v3  ;;  %vm158_vm4 = vweird.f32 %v490_v37 }
 0x10b   :  { %v186_v61 = vsub.f32 1.5, %v185_v52  ;;  %v205_v62 = vmul.f32 0.5, %v204_v53  ;;  %v227_v28 = vmul.f32 %v517_v63, %v216_v60  ;;  %vm302_vm11 = vcmask 785408  }
 0x10c   :  { %v352_v0 = vpop.eup %351  ;;  %v146_v1 = vsub.f32 1.5, %v145_v58  ;;  %v127_v2 = vadd.f32 1e-05, %v119_v59 }
 0x10d   :  { %v187_v22 = vmul.f32 %v346_v32, %v186_v61  ;;  %v206_v29 = vsub.f32 1.5, %v205_v62  ;;  %v133_v4 = vmul.f32 %v352_v0, %v486_v34  ;;  %v354_v7 = vpop.eup %353  ;;  %vm139_vm3 = vweird.f32 %v352_v0 }
 0x10e   :  { %v147_v5 = vmul.f32 %v488_v35, %v146_v1  ;;  %355 = vrsqrt.f32 %v127_v2  ;;  %v153_v13 = vmul.f32 %v354_v7, %v490_v37  ;;  %v238_v15 = vadd.f32 %v337_v11, %v227_v28  ;;  %vm140_vm5 = vmor %vm138_vm2, %vm139_vm3 }
 0x10f   :  { %v191_v8 = vsel %vm190_vm14, %v346_v32, %v187_v22  ;;  %v207_v9 = vmul.f32 %v350_v38, %v206_v29  ;;  %v134_v10 = vmul.f32 %v352_v0, %v133_v4  ;;  %vm159_vm6 = vweird.f32 %v354_v7 }
 0x110   :  { %v217_v12 = vmul.f32 %v191_v8, %v440_v42  ;;  %v151_v14 = vsel %vm526_vm15, %v488_v35, %v147_v5  ;;  %v154_v20 = vmul.f32 %v354_v7, %v153_v13  ;;  %vm160_vm7 = vmor %vm158_vm4, %vm159_vm6  ;;  %vm168_vm9 = vweird.f32 %v127_v2 }
 0x111   :  { %v211_v16 = vsel %vm210_vm1, %v350_v38, %v207_v9  ;;  %v135_v17 = vmul.f32 0.5, %v134_v10  ;;  %v213_v24 = vmul.f32 %v151_v14, %v442_v43 }
 0x112   :  { %v219_v19 = vmul.f32 %v211_v16, %v438_v41  ;;  %v228_v21 = vmul.f32 %v517_v63, %v217_v12  ;;  %v155_v25 = vmul.f32 0.5, %v154_v20  ;;  %v240_v41 = vadd.f32 %v337_v11, %v229_v18 }
 0x113   :  { %v136_v42 = vsub.f32 1.5, %v135_v17  ;;  %v224_v40 = vmul.f32 %v517_v63, %v213_v24 }
 0x114   :  { %v356_v23 = vpop.eup %355  ;;  %v239_v26 = vadd.f32 %v337_v11, %v228_v21  ;;  %v230_v27 = vmul.f32 %v517_v63, %v219_v19  ;;  %v156_v32 = vsub.f32 1.5, %v155_v25 }
 0x115   :  { %v137_v30 = vmul.f32 %v352_v0, %v136_v42  ;;  %v163_v31 = vmul.f32 %v356_v23, %v127_v2  ;;  %vm169_vm8 = vweird.f32 %v356_v23  ;;  %v235_v50 = vadd.f32 %v337_v11, %v224_v40 }
 0x116   :  { %v244_v33 = vpack.c.bf16 %v239_v26, %v238_v15  ;;  %v241_v35 = vadd.f32 %v337_v11, %v230_v27  ;;  %v157_v39 = vmul.f32 %v354_v7, %v156_v32  ;;  %vm170_vm10 = vmor %vm168_vm9, %vm169_vm8 }
 0x117   :  { %v141_v34 = vsel %vm140_vm5, %v352_v0, %v137_v30  ;;  %v164_v36 = vmul.f32 %v356_v23, %v163_v31 }
 0x118   :  { %v212_v38 = vmul.f32 %v141_v34, %v444_v44  ;;  %325 = vmatmul.msk.bf16.vlgmr.msra.gmra.mxu2 %vm36_vm0, %v244_v33  ;;  %v245_v43 = vpack.c.bf16 %v241_v35, %v240_v41  ;;  %v161_v46 = vsel %vm160_vm7, %v354_v7, %v157_v39 }
 0x119   :  { %v165_v45 = vmul.f32 0.5, %v164_v36  ;;  %v214_v49 = vmul.f32 %v161_v46, %v459_v56  ;;  %v338_v56 = vld [vmem:[%s600_s4] ss:$0 sm:$0xff] }
 0x11a   :  { %326 = vmatmul.msk.bf16.vlgmr.msra.gmra.mxu3 %vm36_vm0, %v245_v43  ;;  %v223_v47 = vmul.f32 %v517_v63, %v212_v38 }
 0x11b   :  { %v166_v48 = vsub.f32 1.5, %v165_v45  ;;  %v225_v54 = vmul.f32 %v517_v63, %v214_v49 }
 0x11c   :  { %v234_v44 = vadd.f32 %v337_v11, %v223_v47 }
 0x11d   :  { %v167_v51 = vmul.f32 %v356_v23, %v166_v48  ;;  %v236_v58 = vadd.f32 %v337_v11, %v225_v54 }
 0x11e   :  { %v242_v52 = vpack.c.bf16 %v235_v50, %v234_v44 }
 0x11f   :  { %v171_v53 = vsel %vm170_vm10, %v356_v23, %v167_v51 }
 0x120   :  { %v215_v37 = vmul.f32 %v171_v53, %v461_v57  ;;  %323 = vmatmul.msk.bf16.vlgmr.msra.gmra.mxu0 %vm36_vm0, %v242_v52 }
 0x122   :  { %v226_v55 = vmul.f32 %v517_v63, %v215_v37 }
 0x124   :  { %v237_v59 = vadd.f32 %v337_v11, %v226_v55 }
 0x126   :  { %v243_v60 = vpack.c.bf16 %v237_v59, %v236_v58 }
 0x128   :  { %324 = vmatmul.msk.bf16.vlgmr.msra.gmra.mxu1 %vm36_vm0, %v243_v60 }
 0x19b   :  { %v292_v61 = vpop.f32.mrf.mxu2 }
 0x19c   :  { %v293_v62 = vadd.f32 %v338_v56, %v292_v61 }
 0x19d   :  { %v297_v0 = vpop.f32.mrf.mxu3  ;;  %v282_v57 = vpop.f32.mrf.mxu0 }
 0x19e   :  { %307 = vst.msk [vmem:[%s602_s5 + $0x20] sm:$0xff] %vm302_vm11, %v293_v62  ;;  %v298_v63 = vadd.f32 %v338_v56, %v297_v0  ;;  %v283_v1 = vadd.f32 %v338_v56, %v282_v57 }
 0x1a0   :  { %309 = vst.msk [vmem:[%s602_s5 + $0x30] sm:$0xff] %vm302_vm11, %v298_v63 }
 0x1a1   :  { %303 = vst.msk [vmem:[%s602_s5] sm:$0xff] %vm302_vm11, %v283_v1 }
 0x1a3   :  { %v294_v2 = vpop.f32.mrf.mxu2 }
 0x1a4   :  { %v295_v3 = vadd.f32 %v338_v56, %v294_v2 }
 0x1a5   :  { %v299_v22 = vpop.f32.mrf.mxu3  ;;  %v284_v29 = vpop.f32.mrf.mxu0 }
 0x1a6   :  { %308 = vst.msk [vmem:[%s602_s5 + $0x28] sm:$0xff] %vm302_vm11, %v295_v3  ;;  %v300_v4 = vadd.f32 %v338_v56, %v299_v22  ;;  %v285_v5 = vadd.f32 %v338_v56, %v284_v29  ;;  %v287_v6 = vpop.f32.mrf.mxu1 }
 0x1a7   :  { %v288_v7 = vadd.f32 %v338_v56, %v287_v6 }
 0x1a8   :  { %310 = vst.msk [vmem:[%s602_s5 + $0x38] sm:$0xff] %vm302_vm11, %v300_v4 }
 0x1a9   :  { %304 = vst.msk [vmem:[%s602_s5 + $0x8] sm:$0xff] %vm302_vm11, %v285_v5 }
 0x1aa   :  { %305 = vst.msk [vmem:[%s602_s5 + $0x10] sm:$0xff] %vm302_vm11, %v288_v7 }
 0x1ae   :  { %v289_v8 = vpop.f32.mrf.mxu1 }
 0x1af   :  { %v290_v9 = vadd.f32 %v338_v56, %v289_v8 }
 0x1b1   :  { %306 = vst.msk [vmem:[%s602_s5 + $0x18] sm:$0xff] %vm302_vm11, %v290_v9 }

// kernel: _lambda_.23
= control target key start
LH: loop header
LB: loop body
LE: loop exit
PB: predicated region body
PF: predicated region fallthrough
CT: control target
= control target key end

     0   :  { %vm42_vm0 = vcmask 130048   ;;  %v605_v32 = vmov 16.0   ;;  %s1267_s0 = inlined_call_operand.vmem [shape: f32[128,16], index: 0, kind: input, shape index: {}]   ;;  %s1268_s1 = inlined_call_operand.vmem [shape: f32[1,16], index: 1, kind: input, shape index: {}]   ;;  %s1269_s2 = inlined_call_operand.vmem [shape: f32[1,16], index: 2, kind: input, shape index: {}]   ;;  %s1270_s4 = inlined_call_operand.vmem [shape: f32[1,4], index: 4, kind: input, shape index: {}]   ;;  %s1271_s3 = inlined_call_operand.vmem [shape: bf16[16,4], index: 3, kind: input, shape index: {}]   ;;  %s1272_s5 = inlined_call_operand.vmem [shape: f32[128,4], index: 5, kind: output, shape index: {}]  }
   0x1   :  { %v33_v0 = vld [vmem:[%s1267_s0 + $0x60] sm:$0xff]  ;;  %v654_v6 = vld [vmem:[%s1267_s0 + $0x68] sm:$0xff]  ;;  %v685_v14 = vld [vmem:[%s1267_s0 + $0x50] sm:$0xff]  ;;  %571 = vrcp.f32 %v605_v32 }
   0x2   :  { %v29_v1 = vld [vmem:[%s1267_s0 + $0x40] sm:$0xff]  ;;  %v79_v3 = vsel %vm42_vm0, %v33_v0, 0.0  ;;  %v659_v7 = vld [vmem:[%s1267_s0 + $0x48] sm:$0xff]  ;;  %v82_v9 = vsel %vm42_vm0, %v654_v6, 0.0  ;;  %v73_v17 = vsel %vm42_vm0, %v685_v14, 0.0  ;;  %v696_v18 = vld [vmem:[%s1267_s0 + $0x58] sm:$0xff] }
   0x3   :  { %v645_v2 = vld [vmem:[%s1267_s0] sm:$0xff]  ;;  %v67_v4 = vsel %vm42_vm0, %v29_v1, 0.0  ;;  %80 = vadd.xlane.f32.xlu1 %v79_v3  ;;  %v664_v8 = vld [vmem:[%s1267_s0 + $0x8] sm:$0xff]  ;;  %v70_v10 = vsel %vm42_vm0, %v659_v7, 0.0  ;;  %v701_v19 = vld [vmem:[%s1267_s0 + $0x70] sm:$0xff]  ;;  %v76_v21 = vsel %vm42_vm0, %v696_v18, 0.0 }
   0x4   :  { %v43_v5 = vsel %vm42_vm0, %v645_v2, 0.0  ;;  %68 = vadd.xlane.f32.xlu0 %v67_v4  ;;  %v46_v11 = vsel %vm42_vm0, %v664_v8, 0.0  ;;  %v675_v12 = vld [vmem:[%s1267_s0 + $0x20] sm:$0xff]  ;;  %v680_v13 = vld [vmem:[%s1267_s0 + $0x28] sm:$0xff]  ;;  %v706_v20 = vld [vmem:[%s1267_s0 + $0x78] sm:$0xff]  ;;  %v85_v22 = vsel %vm42_vm0, %v701_v19, 0.0 }
   0x5   :  { %44 = vadd.xlane.f32.xlu2 %v43_v5  ;;  %v55_v15 = vsel %vm42_vm0, %v675_v12, 0.0  ;;  %v58_v16 = vsel %vm42_vm0, %v680_v13, 0.0  ;;  %v88_v23 = vsel %vm42_vm0, %v706_v20, 0.0  ;;  %v717_v24 = vld [vmem:[%s1267_s0 + $0x10] sm:$0xff]  ;;  %v722_v25 = vld [vmem:[%s1267_s0 + $0x18] sm:$0xff] }
   0x6   :  { %v727_v26 = vld [vmem:[%s1267_s0 + $0x30] sm:$0xff]  ;;  %v49_v27 = vsel %vm42_vm0, %v717_v24, 0.0  ;;  %v52_v28 = vsel %vm42_vm0, %v722_v25, 0.0  ;;  %v738_v30 = vld [vmem:[%s1267_s0 + $0x38] sm:$0xff] }
   0x7   :  { %v61_v29 = vsel %vm42_vm0, %v727_v26, 0.0  ;;  %v64_v31 = vsel %vm42_vm0, %v738_v30, 0.0  ;;  %v572_v33 = vpop.eup %571 }
   0x8   :  { %v92_v34 = vmul.f32 16.0, %v572_v33  ;;  %vm96_vm1 = vweird.f32 %v572_v33 }
   0xa   :  { %v93_v35 = vsub.f32 1.0, %v92_v34 }
   0xb   :  { %83 = vadd.xlane.f32.xlu1 %v82_v9 }
   0xc   :  { %71 = vadd.xlane.f32.xlu0 %v70_v10  ;;  %v94_v36 = vmul.f32 %v572_v33, %v93_v35 }
   0xd   :  { %47 = vadd.xlane.f32.xlu2 %v46_v11 }
   0xe   :  { %v95_v37 = vadd.f32 %v572_v33, %v94_v36 }
  0x10   :  { %v742_v38 = vsel %vm96_vm1, %v572_v33, %v95_v37 }
  0x13   :  { %59 = vadd.xlane.f32.xlu1 %v58_v16 }
  0x14   :  { %56 = vadd.xlane.f32.xlu0 %v55_v15 }
  0x15   :  { %74 = vadd.xlane.f32.xlu2 %v73_v17 }
  0x1b   :  { %86 = vadd.xlane.f32.xlu1 %v85_v22 }
  0x1c   :  { %77 = vadd.xlane.f32.xlu0 %v76_v21 }
  0x1d   :  { %89 = vadd.xlane.f32.xlu2 %v88_v23 }
  0x23   :  { %53 = vadd.xlane.f32.xlu1 %v52_v28 }
  0x24   :  { %50 = vadd.xlane.f32.xlu0 %v49_v27 }
  0x25   :  { %62 = vadd.xlane.f32.xlu2 %v61_v29 }
  0x2c   :  { %65 = vadd.xlane.f32.xlu0 %v64_v31 }
  0x76   :  { %v81_v39 = vpop.xlane.xlu1 %80 }
  0x77   :  { %v69_v40 = vpop.xlane.xlu0 %68  ;;  %v110_v41 = vmul.f32 %v742_v38, %v81_v39 }
  0x78   :  { %v106_v42 = vmul.f32 %v742_v38, %v69_v40  ;;  %v45_v43 = vpop.xlane.xlu2 %44 }
  0x79   :  { %v746_v44 = vsub.f32 %v33_v0, %v110_v41  ;;  %v98_v56 = vmul.f32 %v742_v38, %v45_v43 }
  0x7a   :  { %v748_v45 = vsub.f32 %v29_v1, %v106_v42 }
  0x7b   :  { %v142_v47 = vmul.f32 %v746_v44, %v746_v44  ;;  %v776_v63 = vsub.f32 %v645_v2, %v98_v56 }
  0x7c   :  { %v138_v46 = vmul.f32 %v748_v45, %v748_v45 }
  0x7d   :  { %v182_v49 = vsel %vm42_vm0, %v142_v47, 0.0  ;;  %v130_v10 = vmul.f32 %v776_v63, %v776_v63 }
  0x7e   :  { %v170_v48 = vsel %vm42_vm0, %v138_v46, 0.0  ;;  %v84_v50 = vpop.xlane.xlu1 %83  ;;  %183 = vadd.xlane.f32.xlu0 %v182_v49 }
  0x7f   :  { %v72_v51 = vpop.xlane.xlu0 %71  ;;  %171 = vadd.xlane.f32.xlu1 %v170_v48  ;;  %v111_v52 = vmul.f32 %v742_v38, %v84_v50 }
  0x80   :  { %v107_v53 = vmul.f32 %v742_v38, %v72_v51  ;;  %v48_v54 = vpop.xlane.xlu2 %47 }
  0x81   :  { %v99_v55 = vmul.f32 %v742_v38, %v48_v54  ;;  %v761_v57 = vsub.f32 %v654_v6, %v111_v52 }
  0x82   :  { %v764_v58 = vsub.f32 %v659_v7, %v107_v53 }
  0x83   :  { %v767_v59 = vsub.f32 %v664_v8, %v99_v55  ;;  %v143_v60 = vmul.f32 %v761_v57, %v761_v57 }
  0x84   :  { %v139_v61 = vmul.f32 %v764_v58, %v764_v58 }
  0x85   :  { %v131_v62 = vmul.f32 %v767_v59, %v767_v59  ;;  %v185_v0 = vsel %vm42_vm0, %v143_v60, 0.0 }
  0x86   :  { %v173_v1 = vsel %vm42_vm0, %v139_v61, 0.0  ;;  %v60_v5 = vpop.xlane.xlu1 %59 }
  0x87   :  { %v57_v3 = vpop.xlane.xlu0 %56  ;;  %186 = vadd.xlane.f32.xlu1 %v185_v0  ;;  %174 = vadd.xlane.f32.xlu2 %v173_v1  ;;  %v149_v4 = vsel %vm42_vm0, %v131_v62, 0.0  ;;  %v103_v8 = vmul.f32 %v742_v38, %v60_v5 }
  0x88   :  { %v102_v6 = vmul.f32 %v742_v38, %v57_v3  ;;  %150 = vadd.xlane.f32.xlu0 %v149_v4  ;;  %v75_v7 = vpop.xlane.xlu2 %74 }
  0x89   :  { %v108_v9 = vmul.f32 %v742_v38, %v75_v7  ;;  %v793_v15 = vsub.f32 %v680_v13, %v103_v8 }
  0x8a   :  { %v785_v2 = vsub.f32 %v675_v12, %v102_v6  ;;  %v146_v12 = vsel %vm42_vm0, %v130_v10, 0.0 }
  0x8b   :  { %v790_v11 = vsub.f32 %v685_v14, %v108_v9  ;;  %v135_v29 = vmul.f32 %v793_v15, %v793_v15 }
  0x8c   :  { %v134_v16 = vmul.f32 %v785_v2, %v785_v2 }
  0x8d   :  { %v140_v17 = vmul.f32 %v790_v11, %v790_v11  ;;  %v161_v36 = vsel %vm42_vm0, %v135_v29, 0.0 }
  0x8e   :  { %v158_v21 = vsel %vm42_vm0, %v134_v16, 0.0  ;;  %v87_v14 = vpop.xlane.xlu1 %86  ;;  %v563_v16 = vld [vmem:[%s1271_s3] sm:$0xff] }
  0x8f   :  { %v78_v22 = vpop.xlane.xlu0 %77  ;;  %159 = vadd.xlane.f32.xlu1 %v158_v21  ;;  %147 = vadd.xlane.f32.xlu2 %v146_v12  ;;  %v176_v23 = vsel %vm42_vm0, %v140_v17, 0.0  ;;  %v112_v28 = vmul.f32 %v742_v38, %v87_v14 }
  0x90   :  { %v109_v27 = vmul.f32 %v742_v38, %v78_v22  ;;  %177 = vadd.xlane.f32.xlu0 %v176_v23  ;;  %v90_v13 = vpop.xlane.xlu2 %89  ;;  %565 = vmatpush.bf16.msra.mxu2 %v563_v16 }
  0x91   :  { %v113_v31 = vmul.f32 %v742_v38, %v90_v13  ;;  %v814_v34 = vsub.f32 %v701_v19, %v112_v28  ;;  %566 = vmatpush.bf16.msra.mxu3 %v563_v16  ;;  %488 = vmatpush.bf16.msra.mxu0 %v563_v16 }
  0x92   :  { %v808_v32 = vsub.f32 %v696_v18, %v109_v27  ;;  %564 = vmatpush.bf16.msra.mxu1 %v563_v16 }
  0x93   :  { %v811_v33 = vsub.f32 %v706_v20, %v113_v31  ;;  %v144_v43 = vmul.f32 %v814_v34, %v814_v34 }
  0x94   :  { %v141_v35 = vmul.f32 %v808_v32, %v808_v32 }
  0x95   :  { %v145_v37 = vmul.f32 %v811_v33, %v811_v33  ;;  %v188_v51 = vsel %vm42_vm0, %v144_v43, 0.0 }
  0x96   :  { %v179_v39 = vsel %vm42_vm0, %v141_v35, 0.0  ;;  %v54_v20 = vpop.xlane.xlu1 %53 }
  0x97   :  { %180 = vadd.xlane.f32.xlu1 %v179_v39  ;;  %v51_v40 = vpop.xlane.xlu0 %50  ;;  %162 = vadd.xlane.f32.xlu2 %v161_v36  ;;  %v191_v18 = vsel %vm42_vm0, %v145_v37, 0.0  ;;  %v101_v42 = vmul.f32 %v742_v38, %v54_v20 }
  0x98   :  { %v100_v41 = vmul.f32 %v742_v38, %v51_v40  ;;  %192 = vadd.xlane.f32.xlu0 %v191_v18  ;;  %v63_v19 = vpop.xlane.xlu2 %62 }
  0x99   :  { %v104_v46 = vmul.f32 %v742_v38, %v63_v19  ;;  %v835_v49 = vsub.f32 %v722_v25, %v101_v42 }
  0x9a   :  { %v829_v47 = vsub.f32 %v717_v24, %v100_v41 }
  0x9b   :  { %v832_v48 = vsub.f32 %v727_v26, %v104_v46  ;;  %v133_v25 = vmul.f32 %v835_v49, %v835_v49 }
  0x9c   :  { %v132_v50 = vmul.f32 %v829_v47, %v829_v47 }
  0x9d   :  { %v136_v52 = vmul.f32 %v832_v48, %v832_v48  ;;  %v155_v60 = vsel %vm42_vm0, %v133_v25, 0.0 }
  0x9e   :  { %v152_v53 = vsel %vm42_vm0, %v132_v50, 0.0 }
  0x9f   :  { %153 = vadd.xlane.f32.xlu1 %v152_v53  ;;  %v66_v54 = vpop.xlane.xlu0 %65  ;;  %189 = vadd.xlane.f32.xlu2 %v188_v51  ;;  %v164_v24 = vsel %vm42_vm0, %v136_v52, 0.0 }
  0xa0   :  { %v105_v26 = vmul.f32 %v742_v38, %v66_v54  ;;  %165 = vadd.xlane.f32.xlu0 %v164_v24 }
  0xa2   :  { %v848_v55 = vsub.f32 %v738_v30, %v105_v26 }
  0xa4   :  { %v137_v56 = vmul.f32 %v848_v55, %v848_v55 }
  0xa6   :  { %v167_v61 = vsel %vm42_vm0, %v137_v56, 0.0 }
  0xa7   :  { %168 = vadd.xlane.f32.xlu1 %v167_v61  ;;  %156 = vadd.xlane.f32.xlu2 %v155_v60 }
  0xf1   :  { %v184_v0 = vpop.xlane.xlu0 %183 }
  0xf2   :  { %v172_v62 = vpop.xlane.xlu1 %171  ;;  %v206_v3 = vmul.f32 %v184_v0, %v742_v38 }
  0xf3   :  { %v202_v1 = vmul.f32 %v172_v62, %v742_v38 }
  0xf4   :  { %v222_v5 = vadd.f32 1e-05, %v206_v3 }
  0xf5   :  { %v218_v4 = vadd.f32 1e-05, %v202_v1 }
  0xf6   :  { %vm352_vm6 = vweird.f32 %v222_v5 }
  0xf7   :  { %573 = vrsqrt.f32 %v218_v4  ;;  %vm312_vm4 = vweird.f32 %v218_v4 }
  0xf8   :  { %575 = vrsqrt.f32 %v222_v5 }
  0xfa   :  { %v187_v30 = vpop.xlane.xlu1 %186  ;;  %v175_v6 = vpop.xlane.xlu2 %174 }
  0xfb   :  { %v207_v7 = vmul.f32 %v187_v30, %v742_v38  ;;  %v151_v8 = vpop.xlane.xlu0 %150  ;;  %v203_v9 = vmul.f32 %v175_v6, %v742_v38 }
  0xfc   :  { %v195_v10 = vmul.f32 %v151_v8, %v742_v38 }
  0xfd   :  { %v862_v17 = vpop.eup %573  ;;  %v864_v21 = vadd.f32 1e-05, %v207_v7  ;;  %v866_v12 = vadd.f32 1e-05, %v203_v9 }
  0xfe   :  { %v868_v22 = vpop.eup %575  ;;  %v307_v23 = vmul.f32 %v862_v17, %v218_v4  ;;  %v871_v14 = vadd.f32 1e-05, %v195_v10  ;;  %vm313_vm2 = vweird.f32 %v862_v17 }
  0xff   :  { %v347_v27 = vmul.f32 %v868_v22, %v222_v5  ;;  %577 = vrsqrt.f32 %v864_v21  ;;  %vm353_vm3 = vweird.f32 %v868_v22  ;;  %vm905_vm5 = vmor %vm312_vm4, %vm313_vm2  ;;  %vm362_vm8 = vweird.f32 %v864_v21 }
 0x100   :  { %v308_v13 = vmul.f32 %v862_v17, %v307_v23  ;;  %579 = vrsqrt.f32 %v871_v14  ;;  %vm912_vm7 = vmor %vm352_vm6, %vm353_vm3  ;;  %vm242_vm9 = vweird.f32 %v871_v14  ;;  %vm322_vm11 = vweird.f32 %v866_v12 }
 0x101   :  { %v348_v28 = vmul.f32 %v868_v22, %v347_v27  ;;  %581 = vrsqrt.f32 %v866_v12 }
 0x102   :  { %v309_v29 = vmul.f32 0.5, %v308_v13  ;;  %v160_v31 = vpop.xlane.xlu1 %159  ;;  %v148_v35 = vpop.xlane.xlu2 %147 }
 0x103   :  { %v349_v36 = vmul.f32 0.5, %v348_v28  ;;  %v198_v37 = vmul.f32 %v160_v31, %v742_v38  ;;  %v178_v39 = vpop.xlane.xlu0 %177  ;;  %v194_v40 = vmul.f32 %v148_v35, %v742_v38 }
 0x104   :  { %v310_v18 = vsub.f32 1.5, %v309_v29  ;;  %v204_v20 = vmul.f32 %v178_v39, %v742_v38  ;;  %v941_v29 = vld [vmem:[%s1268_s1] ss:$0 sm:$0xff] }
 0x105   :  { %v882_v41 = vpop.eup %577  ;;  %v350_v19 = vsub.f32 1.5, %v349_v36  ;;  %v885_v42 = vadd.f32 1e-05, %v198_v37  ;;  %v894_v51 = vadd.f32 1e-05, %v194_v40 }
 0x106   :  { %v887_v43 = vpop.eup %579  ;;  %v357_v46 = vmul.f32 %v882_v41, %v864_v21  ;;  %v892_v50 = vadd.f32 1e-05, %v204_v20  ;;  %v311_v53 = vmul.f32 %v862_v17, %v310_v18  ;;  %vm363_vm12 = vweird.f32 %v882_v41 }
 0x107   :  { %v582_v52 = vpop.eup %581  ;;  %v351_v54 = vmul.f32 %v868_v22, %v350_v19  ;;  %v237_v24 = vmul.f32 %v887_v43, %v871_v14  ;;  %583 = vrsqrt.f32 %v885_v42  ;;  %vm243_vm14 = vweird.f32 %v887_v43  ;;  %vm975_vm2 = vmor %vm362_vm8, %vm363_vm12 }
 0x108   :  { %v358_v26 = vmul.f32 %v882_v41, %v357_v46  ;;  %v317_v25 = vmul.f32 %v582_v52, %v866_v12  ;;  %585 = vrsqrt.f32 %v892_v50  ;;  %v315_v4 = vsel %vm905_vm5, %v862_v17, %v311_v53  ;;  %vm997_vm5 = vmor %vm242_vm9, %vm243_vm14 }
 0x109   :  { %v238_v60 = vmul.f32 %v887_v43, %v237_v24  ;;  %v355_v5 = vsel %vm912_vm7, %v868_v22, %v351_v54  ;;  %587 = vrsqrt.f32 %v894_v51  ;;  %vm323_vm10 = vweird.f32 %v582_v52 }
 0x10a   :  { %v359_v62 = vmul.f32 0.5, %v358_v26  ;;  %v318_v0 = vmul.f32 %v582_v52, %v317_v25  ;;  %v181_v1 = vpop.xlane.xlu1 %180  ;;  %v163_v3 = vpop.xlane.xlu2 %162  ;;  %v394_v27 = vmul.f32 %v315_v4, %v748_v45  ;;  %v398_v13 = vmul.f32 %v355_v5, %v746_v44  ;;  %vm324_vm13 = vmor %vm322_vm11, %vm323_vm10 }
 0x10b   :  { %v193_v30 = vpop.xlane.xlu0 %192  ;;  %v239_v6 = vmul.f32 0.5, %v238_v60  ;;  %v205_v8 = vmul.f32 %v181_v1, %v742_v38  ;;  %v199_v17 = vmul.f32 %v163_v3, %v742_v38  ;;  %vm272_vm15 = vweird.f32 %v885_v42 }
 0x10c   :  { %v319_v7 = vmul.f32 0.5, %v318_v0  ;;  %v209_v9 = vmul.f32 %v193_v30, %v742_v38  ;;  %v360_v16 = vsub.f32 1.5, %v359_v62  ;;  %vm332_vm1 = vweird.f32 %v892_v50 }
 0x10d   :  { %v926_v10 = vpop.eup %583  ;;  %v936_v28 = vadd.f32 1e-05, %v205_v8  ;;  %v240_v35 = vsub.f32 1.5, %v239_v6  ;;  %v955_v40 = vadd.f32 1e-05, %v199_v17  ;;  %v413_v26 = vmul.f32 %v941_v29, %v394_v27 }
 0x10e   :  { %v320_v23 = vsub.f32 1.5, %v319_v7  ;;  %v267_v22 = vmul.f32 %v926_v10, %v885_v42  ;;  %v943_v31 = vpop.eup %585  ;;  %v946_v39 = vadd.f32 1e-05, %v209_v9  ;;  %v361_v44 = vmul.f32 %v882_v41, %v360_v16 }
 0x10f   :  { %v948_v45 = vpop.eup %587  ;;  %v327_v12 = vmul.f32 %v943_v31, %v892_v50  ;;  %589 = vrsqrt.f32 %v936_v28  ;;  %v980_v25 = vmul.f32 %v887_v43, %v240_v35  ;;  %vm232_vm3 = vweird.f32 %v894_v51 }
 0x110   :  { %v321_v36 = vmul.f32 %v582_v52, %v320_v23  ;;  %v268_v37 = vmul.f32 %v926_v10, %v267_v22  ;;  %v227_v19 = vmul.f32 %v948_v45, %v894_v51  ;;  %591 = vrsqrt.f32 %v946_v39 }
 0x111   :  { %v328_v53 = vmul.f32 %v943_v31, %v327_v12  ;;  %v417_v61 = vmul.f32 %v941_v29, %v398_v13  ;;  %v365_v21 = vsel %vm975_vm2, %v882_v41, %v361_v44  ;;  %593 = vrsqrt.f32 %v955_v40 }
 0x112   :  { %v325_v18 = vsel %vm324_vm13, %v582_v52, %v321_v36  ;;  %v269_v20 = vmul.f32 0.5, %v268_v37  ;;  %v154_v54 = vpop.xlane.xlu1 %153  ;;  %v969_v52 = vld [vmem:[%s1269_s2] ss:$0 sm:$0xff]  ;;  %v228_v56 = vmul.f32 %v948_v45, %v227_v19  ;;  %v190_v60 = vpop.xlane.xlu2 %189  ;;  %vm273_vm4 = vweird.f32 %v926_v10 }
 0x113   :  { %v395_v46 = vmul.f32 %v325_v18, %v764_v58  ;;  %v166_v24 = vpop.xlane.xlu0 %165  ;;  %v329_v0 = vmul.f32 0.5, %v328_v53  ;;  %v196_v3 = vmul.f32 %v154_v54, %v742_v38  ;;  %v208_v30 = vmul.f32 %v190_v60, %v742_v38  ;;  %vm1039_vm9 = vmor %vm272_vm15, %vm273_vm4 }
 0x114   :  { %v270_v62 = vsub.f32 1.5, %v269_v20  ;;  %v229_v1 = vmul.f32 0.5, %v228_v56  ;;  %v200_v4 = vmul.f32 %v166_v24, %v742_v38  ;;  %v432_v7 = vadd.f32 %v969_v52, %v413_v26 }
 0x115   :  { %v330_v41 = vsub.f32 1.5, %v329_v0  ;;  %v414_v6 = vmul.f32 %v941_v29, %v395_v46  ;;  %v399_v8 = vmul.f32 %v365_v21, %v761_v57  ;;  %v245_v9 = vsel %vm997_vm5, %v887_v43, %v980_v25  ;;  %v1011_v17 = vpop.eup %589 }
 0x116   :  { %v230_v16 = vsub.f32 1.5, %v229_v1  ;;  %v1009_v14 = vadd.f32 1e-05, %v196_v3  ;;  %v1014_v23 = vmul.f32 %v926_v10, %v270_v62  ;;  %vm333_vm6 = vweird.f32 %v943_v31  ;;  %v1020_v57 = vpop.eup %591 }
 0x117   :  { %vm233_vm7 = vweird.f32 %v948_v45  ;;  %v1018_v22 = vadd.f32 1e-05, %v200_v4  ;;  %v337_v13 = vmul.f32 %v1011_v17, %v936_v28  ;;  %v1026_v35 = vadd.f32 1e-05, %v208_v30  ;;  %v1028_v36 = vpop.eup %593  ;;  %vm1068_vm14 = vmor %vm332_vm1, %vm333_vm6 }
 0x118   :  { %v231_v27 = vmul.f32 %v948_v45, %v230_v16  ;;  %595 = vrsqrt.f32 %v1009_v14  ;;  %v331_v37 = vmul.f32 %v943_v31, %v330_v41  ;;  %vm342_vm8 = vweird.f32 %v936_v28  ;;  %vm1057_vm12 = vmor %vm232_vm3, %vm233_vm7 }
 0x119   :  { %v377_v44 = vmul.f32 %v1020_v57, %v946_v39  ;;  %v433_v12 = vadd.f32 %v969_v52, %v414_v6  ;;  %v338_v20 = vmul.f32 %v1011_v17, %v337_v13  ;;  %vm382_vm10 = vweird.f32 %v946_v39 }
 0x11a   :  { %v277_v19 = vmul.f32 %v1028_v36, %v955_v40  ;;  %vm282_vm11 = vweird.f32 %v955_v40  ;;  %v418_v46 = vmul.f32 %v941_v29, %v399_v8  ;;  %v275_v42 = vsel %vm1039_vm9, %v926_v10, %v1014_v23  ;;  %v169_v24 = vpop.xlane.xlu1 %168  ;;  %v157_v56 = vpop.xlane.xlu2 %156 }
 0x11b   :  { %vm343_vm13 = vweird.f32 %v1011_v17  ;;  %v378_v54 = vmul.f32 %v1020_v57, %v377_v44  ;;  %597 = vrsqrt.f32 %v1018_v22  ;;  %v235_v51 = vsel %vm1057_vm12, %v948_v45, %v231_v27 }
 0x11c   :  { %v339_v26 = vmul.f32 0.5, %v338_v20  ;;  %v278_v58 = vmul.f32 %v1028_v36, %v277_v19  ;;  %599 = vrsqrt.f32 %v1026_v35  ;;  %v335_v60 = vsel %vm1068_vm14, %v943_v31, %v331_v37  ;;  %vm1098_vm1 = vmor %vm342_vm8, %vm343_vm13 }
 0x11d   :  { %v379_v21 = vmul.f32 0.5, %v378_v54  ;;  %v444_v50 = vpack.c.bf16 %v433_v12, %v432_v7  ;;  %v436_v62 = vadd.f32 %v969_v52, %v417_v61  ;;  %v437_v45 = vadd.f32 %v969_v52, %v418_v46 }
 0x11e   :  { %v1081_v0 = vpop.eup %595  ;;  %v340_v1 = vsub.f32 1.5, %v339_v26  ;;  %v279_v3 = vmul.f32 0.5, %v278_v58  ;;  %v201_v4 = vmul.f32 %v169_v24, %v742_v38  ;;  %v386_v41 = vmul.f32 %v235_v51, %v776_v63 }
 0x11f   :  { %v380_v30 = vsub.f32 1.5, %v379_v21  ;;  %v247_v6 = vmul.f32 %v1081_v0, %v1009_v14  ;;  %559 = vmatmul.msk.bf16.vlgmr.msra.gmra.mxu2 %vm42_vm0, %v444_v50  ;;  %v197_v31 = vmul.f32 %v157_v56, %v742_v38  ;;  %vm283_vm15 = vweird.f32 %v1028_v36 }
 0x120   :  { %v341_v61 = vmul.f32 %v1011_v17, %v340_v1  ;;  %v280_v7 = vsub.f32 1.5, %v279_v3  ;;  %v446_v8 = vpack.c.bf16 %v437_v45, %v436_v62  ;;  %vm383_vm2 = vweird.f32 %v1020_v57  ;;  %vm284_vm3 = vmor %vm282_vm11, %vm283_vm15 }
 0x121   :  { %v1092_v16 = vpop.eup %597  ;;  %v381_v23 = vmul.f32 %v1020_v57, %v380_v30  ;;  %v248_v38 = vmul.f32 %v1081_v0, %v247_v6  ;;  %v1105_v27 = vadd.f32 1e-05, %v201_v4  ;;  %v1114_v12 = vadd.f32 1e-05, %v197_v31  ;;  %vm1137_vm4 = vmor %vm382_vm10, %vm383_vm2 }
 0x122   :  { %v600_v13 = vpop.eup %599  ;;  %v345_v37 = vsel %vm1098_vm1, %v1011_v17, %v341_v61  ;;  %v281_v44 = vmul.f32 %v1028_v36, %v280_v7  ;;  %v287_v28 = vmul.f32 %v1092_v16, %v1018_v22  ;;  %561 = vmatmul.msk.bf16.vlgmr.msra.gmra.mxu3 %vm42_vm0, %v446_v8  ;;  %v387_v18 = vmul.f32 %v245_v9, %v767_v59 }
 0x123   :  { %v390_v20 = vmul.f32 %v275_v42, %v785_v2  ;;  %v367_v17 = vmul.f32 %v600_v13, %v1026_v35  ;;  %v405_v19 = vmul.f32 %v941_v29, %v386_v41  ;;  %v396_v46 = vmul.f32 %v335_v60, %v790_v11 }
 0x124   :  { %v397_v53 = vmul.f32 %v345_v37, %v808_v32  ;;  %v285_v5 = vsel %vm284_vm3, %v1028_v36, %v281_v44  ;;  %v288_v43 = vmul.f32 %v1092_v16, %v287_v28  ;;  %v249_v40 = vmul.f32 0.5, %v248_v38 }
 0x125   :  { %v391_v2 = vmul.f32 %v285_v5, %v793_v15  ;;  %v368_v25 = vmul.f32 %v600_v13, %v367_v17  ;;  %601 = vrsqrt.f32 %v1105_v27  ;;  %v385_v11 = vsel %vm1137_vm4, %v1020_v57, %v381_v23 }
 0x126   :  { %v289_v32 = vmul.f32 0.5, %v288_v43  ;;  %vm292_vm5 = vweird.f32 %v1018_v22  ;;  %603 = vrsqrt.f32 %v1114_v12  ;;  %vm373_vm6 = vweird.f32 %v600_v13 }
 0x127   :  { %v369_v39 = vmul.f32 0.5, %v368_v25  ;;  %v406_v9 = vmul.f32 %v941_v29, %v387_v18  ;;  %v424_v36 = vadd.f32 %v969_v52, %v405_v19  ;;  %v409_v42 = vmul.f32 %v941_v29, %v390_v20 }
 0x128   :  { %v290_v15 = vsub.f32 1.5, %v289_v32  ;;  %v410_v54 = vmul.f32 %v941_v29, %v391_v2  ;;  %v415_v24 = vmul.f32 %v941_v29, %v396_v46  ;;  %v250_v10 = vsub.f32 1.5, %v249_v40 }
 0x129   :  { %v370_v57 = vsub.f32 1.5, %v369_v39  ;;  %v425_v51 = vadd.f32 %v969_v52, %v406_v9  ;;  %v416_v26 = vmul.f32 %v941_v29, %v397_v53  ;;  %v401_v58 = vmul.f32 %v385_v11, %v811_v33 }
 0x12a   :  { %vm372_vm7 = vweird.f32 %v1026_v35  ;;  %v428_v56 = vadd.f32 %v969_v52, %v409_v42  ;;  %v429_v60 = vadd.f32 %v969_v52, %v410_v54  ;;  %vm293_vm8 = vweird.f32 %v1092_v16 }
 0x12b   :  { %v602_v21 = vpop.eup %601  ;;  %v371_v50 = vmul.f32 %v600_v13, %v370_v57  ;;  %v440_v62 = vpack.c.bf16 %v425_v51, %v424_v36  ;;  %v435_v1 = vadd.f32 %v969_v52, %v416_v26  ;;  %v291_v45 = vmul.f32 %v1092_v16, %v290_v15  ;;  %vm374_vm9 = vmor %vm372_vm7, %vm373_vm6 }
 0x12c   :  { %v604_v3 = vpop.eup %603  ;;  %v297_v33 = vmul.f32 %v602_v21, %v1105_v27  ;;  %v442_v4 = vpack.c.bf16 %v429_v60, %v428_v56  ;;  %v434_v35 = vadd.f32 %v969_v52, %v415_v24  ;;  %v251_v41 = vmul.f32 %v1081_v0, %v250_v10  ;;  %vm294_vm12 = vmor %vm292_vm5, %vm293_vm8 }
 0x12d   :  { %vm253_vm10 = vweird.f32 %v1081_v0  ;;  %v375_v30 = vsel %vm374_vm9, %v600_v13, %v371_v50  ;;  %v257_v6 = vmul.f32 %v604_v3, %v1114_v12  ;;  %555 = vmatmul.msk.bf16.vlgmr.msra.gmra.mxu0 %vm42_vm0, %v440_v62  ;;  %v420_v8 = vmul.f32 %v941_v29, %v401_v58 }
 0x12e   :  { %v400_v31 = vmul.f32 %v375_v30, %v814_v34  ;;  %v298_v61 = vmul.f32 %v602_v21, %v297_v33  ;;  %557 = vmatmul.msk.bf16.vlgmr.msra.gmra.mxu1 %vm42_vm0, %v442_v4  ;;  %v445_v7 = vpack.c.bf16 %v435_v1, %v434_v35  ;;  %vm252_vm11 = vweird.f32 %v1009_v14 }
 0x12f   :  { %v258_v63 = vmul.f32 %v604_v3, %v257_v6  ;;  %vm254_vm13 = vmor %vm252_vm11, %vm253_vm10  ;;  %v295_v23 = vsel %vm294_vm12, %v1092_v16, %v291_v45  ;;  %vm303_vm14 = vweird.f32 %v602_v21  ;;  %v439_v28 = vadd.f32 %v969_v52, %v420_v8 }
 0x130   :  { %v299_v38 = vmul.f32 0.5, %v298_v61  ;;  %560 = vmatmul.msk.bf16.gmra.mxu2 %vm42_vm0, %v445_v7  ;;  %v419_v34 = vmul.f32 %v941_v29, %v400_v31  ;;  %v255_v13 = vsel %vm254_vm13, %v1081_v0, %v251_v41  ;;  %v392_v22 = vmul.f32 %v295_v23, %v832_v48 }
 0x131   :  { %v259_v37 = vmul.f32 0.5, %v258_v63  ;;  %vm263_vm15 = vweird.f32 %v604_v3  ;;  %v388_v16 = vmul.f32 %v255_v13, %v829_v47  ;;  %vm302_vm1 = vweird.f32 %v1105_v27 }
 0x132   :  { %v300_v44 = vsub.f32 1.5, %v299_v38  ;;  %v438_v14 = vadd.f32 %v969_v52, %v419_v34  ;;  %vm304_vm2 = vmor %vm302_vm1, %vm303_vm14  ;;  %vm262_vm3 = vweird.f32 %v1114_v12  ;;  %v411_v48 = vmul.f32 %v941_v29, %v392_v22 }
 0x133   :  { %v260_v18 = vsub.f32 1.5, %v259_v37  ;;  %vm264_vm4 = vmor %vm262_vm3, %vm263_vm15  ;;  %v407_v47 = vmul.f32 %v941_v29, %v388_v16  ;;  %vm530_vm5 = vcmask 31744  }
 0x134   :  { %v301_v20 = vmul.f32 %v602_v21, %v300_v44  ;;  %v447_v17 = vpack.c.bf16 %v439_v28, %v438_v14  ;;  %v430_v59 = vadd.f32 %v969_v52, %v411_v48 }
 0x135   :  { %v261_v19 = vmul.f32 %v604_v3, %v260_v18  ;;  %v426_v2 = vadd.f32 %v969_v52, %v407_v47 }
 0x136   :  { %v305_v0 = vsel %vm304_vm2, %v602_v21, %v301_v20  ;;  %562 = vmatmul.msk.bf16.gmra.mxu3 %vm42_vm0, %v447_v17 }
 0x137   :  { %v393_v46 = vmul.f32 %v305_v0, %v848_v55  ;;  %v265_v53 = vsel %vm264_vm4, %v604_v3, %v261_v19 }
 0x138   :  { %v389_v5 = vmul.f32 %v265_v53, %v835_v49  ;;  %v570_v49 = vld [vmem:[%s1270_s4] ss:$0 sm:$0xff] }
 0x139   :  { %v412_v27 = vmul.f32 %v941_v29, %v393_v46 }
 0x13a   :  { %v408_v43 = vmul.f32 %v941_v29, %v389_v5 }
 0x13b   :  { %v431_v12 = vadd.f32 %v969_v52, %v412_v27 }
 0x13c   :  { %v427_v40 = vadd.f32 %v969_v52, %v408_v43 }
 0x13d   :  { %v443_v55 = vpack.c.bf16 %v431_v12, %v430_v59 }
 0x13e   :  { %v441_v25 = vpack.c.bf16 %v427_v40, %v426_v2 }
 0x13f   :  { %558 = vmatmul.msk.bf16.gmra.mxu1 %vm42_vm0, %v443_v55 }
 0x140   :  { %556 = vmatmul.msk.bf16.gmra.mxu0 %vm42_vm0, %v441_v25 }
 0x1a2   :  { %v510_v11 = vpop.f32.mrf.mxu2 }
 0x1a3   :  { %v511_v29 = vadd.f32 %v570_v49, %v510_v11 }
 0x1a5   :  { %539 = vst.msk [vmem:[%s1272_s5 + $0x40] sm:$0xff] %vm530_vm5, %v511_v29  ;;  %v520_v32 = vpop.f32.mrf.mxu3 }
 0x1a6   :  { %v521_v52 = vadd.f32 %v570_v49, %v520_v32 }
 0x1a8   :  { %543 = vst.msk [vmem:[%s1272_s5 + $0x60] sm:$0xff] %vm530_vm5, %v521_v52 }
 0x1aa   :  { %v490_v39 = vpop.f32.mrf.mxu0  ;;  %v512_v9 = vpop.f32.mrf.mxu2 }
 0x1ab   :  { %v491_v36 = vadd.f32 %v570_v49, %v490_v39  ;;  %v513_v15 = vadd.f32 %v570_v49, %v512_v9  ;;  %v500_v42 = vpop.f32.mrf.mxu1 }
 0x1ac   :  { %v501_v54 = vadd.f32 %v570_v49, %v500_v42 }
 0x1ad   :  { %531 = vst.msk [vmem:[%s1272_s5] sm:$0xff] %vm530_vm5, %v491_v36  ;;  %v522_v24 = vpop.f32.mrf.mxu3 }
 0x1ae   :  { %540 = vst.msk [vmem:[%s1272_s5 + $0x48] sm:$0xff] %vm530_vm5, %v513_v15  ;;  %v523_v10 = vadd.f32 %v570_v49, %v522_v24 }
 0x1af   :  { %535 = vst.msk [vmem:[%s1272_s5 + $0x20] sm:$0xff] %vm530_vm5, %v501_v54 }
 0x1b0   :  { %544 = vst.msk [vmem:[%s1272_s5 + $0x68] sm:$0xff] %vm530_vm5, %v523_v10 }
 0x1b2   :  { %v492_v57 = vpop.f32.mrf.mxu0 }
 0x1b3   :  { %v493_v51 = vadd.f32 %v570_v49, %v492_v57  ;;  %v515_v26 = vpop.f32.mrf.mxu2  ;;  %v502_v58 = vpop.f32.mrf.mxu1 }
 0x1b4   :  { %v516_v56 = vadd.f32 %v570_v49, %v515_v26  ;;  %v503_v60 = vadd.f32 %v570_v49, %v502_v58 }
 0x1b5   :  { %532 = vst.msk [vmem:[%s1272_s5 + $0x8] sm:$0xff] %vm530_vm5, %v493_v51 }
 0x1b6   :  { %541 = vst.msk [vmem:[%s1272_s5 + $0x50] sm:$0xff] %vm530_vm5, %v516_v56 }
 0x1b7   :  { %536 = vst.msk [vmem:[%s1272_s5 + $0x28] sm:$0xff] %vm530_vm5, %v503_v60 }
 0x1b9   :  { %v525_v21 = vpop.f32.mrf.mxu3 }
 0x1ba   :  { %v526_v50 = vadd.f32 %v570_v49, %v525_v21 }
 0x1bb   :  { %v517_v62 = vpop.f32.mrf.mxu2 }
 0x1bc   :  { %v518_v1 = vadd.f32 %v570_v49, %v517_v62  ;;  %545 = vst.msk [vmem:[%s1272_s5 + $0x70] sm:$0xff] %vm530_vm5, %v526_v50  ;;  %v505_v3 = vpop.f32.mrf.mxu1 }
 0x1bd   :  { %v495_v45 = vpop.f32.mrf.mxu0  ;;  %v506_v33 = vadd.f32 %v570_v49, %v505_v3 }
 0x1be   :  { %542 = vst.msk [vmem:[%s1272_s5 + $0x58] sm:$0xff] %vm530_vm5, %v518_v1  ;;  %v496_v4 = vadd.f32 %v570_v49, %v495_v45 }
 0x1bf   :  { %537 = vst.msk [vmem:[%s1272_s5 + $0x30] sm:$0xff] %vm530_vm5, %v506_v33 }
 0x1c0   :  { %533 = vst.msk [vmem:[%s1272_s5 + $0x10] sm:$0xff] %vm530_vm5, %v496_v4 }
 0x1c1   :  { %v527_v35 = vpop.f32.mrf.mxu3 }
 0x1c2   :  { %v528_v41 = vadd.f32 %v570_v49, %v527_v35 }
 0x1c4   :  { %546 = vst.msk [vmem:[%s1272_s5 + $0x78] sm:$0xff] %vm530_vm5, %v528_v41  ;;  %v507_v30 = vpop.f32.mrf.mxu1 }
 0x1c5   :  { %v497_v6 = vpop.f32.mrf.mxu0  ;;  %v508_v31 = vadd.f32 %v570_v49, %v507_v30 }
 0x1c6   :  { %v498_v61 = vadd.f32 %v570_v49, %v497_v6 }
 0x1c7   :  { %538 = vst.msk [vmem:[%s1272_s5 + $0x38] sm:$0xff] %vm530_vm5, %v508_v31 }
 0x1c8   :  { %534 = vst.msk [vmem:[%s1272_s5 + $0x18] sm:$0xff] %vm530_vm5, %v498_v61 }

// kernel: _lambda_.25
= control target key start
LH: loop header
LB: loop body
LE: loop exit
PB: predicated region body
PF: predicated region fallthrough
CT: control target
= control target key end

     0   :  { %vm58_vm0 = vcmask 261120   ;;  %s259_s1 = inlined_call_operand.vmem [shape: bf16[32,32], index: 1, kind: input, shape index: {}]   ;;  %s260_s0 = inlined_call_operand.vmem [shape: f32[64,32], index: 0, kind: input, shape index: {}]   ;;  %s261_s2 = inlined_call_operand.vmem [shape: f32[1,32], index: 2, kind: input, shape index: {}]   ;;  %s262_s3 = inlined_call_operand.vmem [shape: f32[64,32], index: 3, kind: input, shape index: {}]   ;;  %s263_s4 = inlined_call_operand.vmem [shape: f32[64,32], index: 4, kind: output, shape index: {}]  }
   0x1   :  { %v133_v0 = vld [vmem:[%s259_s1 + $0x8] sm:$0xff]  ;;  %v132_v1 = vld [vmem:[%s259_s1] sm:$0xff]  ;;  %v20_v4 = vld [vmem:[%s260_s0 + $0x10] sm:$0xff] }
   0x2   :  { %v18_v2 = vld [vmem:[%s260_s0] sm:$0xff]  ;;  %v19_v3 = vld [vmem:[%s260_s0 + $0x8] sm:$0xff]  ;;  %77 = vmatpush.bf16.msra.mxu0 %v133_v0  ;;  %134 = vmatpush.bf16.msra.mxu1 %v133_v0  ;;  %v21_v5 = vld [vmem:[%s260_s0 + $0x18] sm:$0xff] }
   0x3   :  { %v22_v6 = vld [vmem:[%s260_s0 + $0x20] sm:$0xff]  ;;  %v23_v7 = vld [vmem:[%s260_s0 + $0x28] sm:$0xff]  ;;  %135 = vmatpush.bf16.msra.mxu2 %v133_v0  ;;  %136 = vmatpush.bf16.msra.mxu3 %v133_v0  ;;  %v24_v8 = vld [vmem:[%s260_s0 + $0x30] sm:$0xff]  ;;  %v39_v10 = vpack.c.bf16 %v19_v3, %v18_v2  ;;  %v40_v11 = vpack.c.bf16 %v21_v5, %v20_v4 }
   0x4   :  { %v25_v9 = vld [vmem:[%s260_s0 + $0x38] sm:$0xff]  ;;  %v41_v12 = vpack.c.bf16 %v23_v7, %v22_v6  ;;  %v140_v14 = vld [vmem:[%s261_s2] ss:$0 sm:$0xff]  ;;  %v33_v17 = vld [vmem:[%s262_s3 + $0x10] sm:$0xff] }
   0x5   :  { %v42_v13 = vpack.c.bf16 %v25_v9, %v24_v8  ;;  %v31_v15 = vld [vmem:[%s262_s3] sm:$0xff]  ;;  %v37_v25 = vld [vmem:[%s262_s3 + $0x30] sm:$0xff]  ;;  %v32_v29 = vld [vmem:[%s262_s3 + $0x8] sm:$0xff] }
   0x6   :  { %78 = vmatpush.bf16.msra.mxu0 %v132_v1  ;;  %137 = vmatpush.bf16.msra.mxu1 %v132_v1  ;;  %v35_v23 = vld [vmem:[%s262_s3 + $0x20] sm:$0xff]  ;;  %v34_v31 = vld [vmem:[%s262_s3 + $0x18] sm:$0xff]  ;;  %v36_v39 = vld [vmem:[%s262_s3 + $0x28] sm:$0xff] }
   0x7   :  { %138 = vmatpush.bf16.msra.mxu2 %v132_v1  ;;  %139 = vmatpush.bf16.msra.mxu3 %v132_v1  ;;  %v38_v41 = vld [vmem:[%s262_s3 + $0x38] sm:$0xff] }
   0x9   :  { %128 = vmatmul.msk.bf16.vlgmr.msra.gmra.mxu0 %vm58_vm0, %v39_v10  ;;  %129 = vmatmul.msk.bf16.vlgmr.msra.gmra.mxu1 %vm58_vm0, %v40_v11 }
   0xa   :  { %130 = vmatmul.msk.bf16.vlgmr.msra.gmra.mxu2 %vm58_vm0, %v41_v12  ;;  %131 = vmatmul.msk.bf16.vlgmr.msra.gmra.mxu3 %vm58_vm0, %v42_v13 }
  0x86   :  { %v80_v16 = vpop.f32.mrf.mxu0  ;;  %v85_v18 = vpop.f32.mrf.mxu1 }
  0x87   :  { %v81_v19 = vadd.f32 %v140_v14, %v80_v16  ;;  %v86_v20 = vadd.f32 %v140_v14, %v85_v18 }
  0x89   :  { %v100_v21 = vadd.f32 %v81_v19, %v31_v15  ;;  %v102_v22 = vadd.f32 %v86_v20, %v33_v17 }
  0x8b   :  { %108 = vst.msk [vmem:[%s263_s4] sm:$0xff] %vm58_vm0, %v100_v21 }
  0x8c   :  { %110 = vst.msk [vmem:[%s263_s4 + $0x10] sm:$0xff] %vm58_vm0, %v102_v22 }
  0x8d   :  { %v90_v24 = vpop.f32.mrf.mxu2  ;;  %v95_v26 = vpop.f32.mrf.mxu3 }
  0x8e   :  { %v91_v27 = vadd.f32 %v140_v14, %v90_v24  ;;  %v96_v28 = vadd.f32 %v140_v14, %v95_v26  ;;  %v82_v30 = vpop.f32.mrf.mxu0  ;;  %v87_v32 = vpop.f32.mrf.mxu1 }
  0x8f   :  { %v83_v33 = vadd.f32 %v140_v14, %v82_v30  ;;  %v88_v34 = vadd.f32 %v140_v14, %v87_v32 }
  0x90   :  { %v104_v35 = vadd.f32 %v91_v27, %v35_v23  ;;  %v106_v36 = vadd.f32 %v96_v28, %v37_v25 }
  0x91   :  { %v101_v37 = vadd.f32 %v83_v33, %v32_v29  ;;  %v103_v38 = vadd.f32 %v88_v34, %v34_v31 }
  0x92   :  { %112 = vst.msk [vmem:[%s263_s4 + $0x20] sm:$0xff] %vm58_vm0, %v104_v35 }
  0x93   :  { %114 = vst.msk [vmem:[%s263_s4 + $0x30] sm:$0xff] %vm58_vm0, %v106_v36 }
  0x94   :  { %109 = vst.msk [vmem:[%s263_s4 + $0x8] sm:$0xff] %vm58_vm0, %v101_v37 }
  0x95   :  { %111 = vst.msk [vmem:[%s263_s4 + $0x18] sm:$0xff] %vm58_vm0, %v103_v38  ;;  %v92_v40 = vpop.f32.mrf.mxu2  ;;  %v97_v42 = vpop.f32.mrf.mxu3 }
  0x96   :  { %v93_v43 = vadd.f32 %v140_v14, %v92_v40  ;;  %v98_v44 = vadd.f32 %v140_v14, %v97_v42 }
  0x98   :  { %v105_v45 = vadd.f32 %v93_v43, %v36_v39  ;;  %v107_v46 = vadd.f32 %v98_v44, %v38_v41 }
  0x9a   :  { %113 = vst.msk [vmem:[%s263_s4 + $0x28] sm:$0xff] %vm58_vm0, %v105_v45 }
  0x9b   :  { %115 = vst.msk [vmem:[%s263_s4 + $0x38] sm:$0xff] %vm58_vm0, %v107_v46 }

// kernel: _lambda_.32
= control target key start
LH: loop header
LB: loop body
LE: loop exit
PB: predicated region body
PF: predicated region fallthrough
CT: control target
= control target key end

     0   :  { %vm30_vm0 = vcmask 261120   ;;  %v153_v4 = vmov 32.0   ;;  %vm125_vm8 = vcmask 785408   ;;  %s216_s0 = inlined_call_operand.vmem [shape: f32[16,32], index: 0, kind: input, shape index: {}]   ;;  %s217_s1 = inlined_call_operand.vmem [shape: f32[1,32], index: 1, kind: input, shape index: {}]   ;;  %s218_s2 = inlined_call_operand.vmem [shape: f32[1,32], index: 2, kind: input, shape index: {}]   ;;  %s219_s4 = inlined_call_operand.vmem [shape: f32[1,96], index: 4, kind: input, shape index: {}]   ;;  %s220_s3 = inlined_call_operand.vmem [shape: bf16[32,96], index: 3, kind: input, shape index: {}]   ;;  %s221_s5 = inlined_call_operand.vmem [shape: f32[16,96], index: 5, kind: output, shape index: {}]  }
   0x1   :  { %v21_v0 = vld [vmem:[%s216_s0] sm:$0xff]  ;;  %v22_v2 = vld [vmem:[%s216_s0 + $0x8] sm:$0xff]  ;;  %147 = vrcp.f32 %v153_v4 }
   0x2   :  { %v31_v1 = vsel %vm30_vm0, %v21_v0, 0.0  ;;  %v34_v3 = vsel %vm30_vm0, %v22_v2, 0.0  ;;  %v142_v21 = vld [vmem:[%s220_s3 + $0x8] sm:$0xff]  ;;  %v141_v23 = vld [vmem:[%s220_s3] sm:$0xff] }
   0x3   :  { %32 = vadd.xlane.f32.xlu0 %v31_v1  ;;  %117 = vmatpush.bf16.msra.mxu0 %v142_v21  ;;  %v144_v42 = vld [vmem:[%s217_s1] ss:$0 sm:$0xff] }
   0x4   :  { %v145_v47 = vld [vmem:[%s218_s2] ss:$0 sm:$0xff] }
   0x5   :  { %v146_v52 = vld [vmem:[%s219_s4] ss:$0 sm:$0xff] }
   0x7   :  { %v148_v5 = vpop.eup %147  ;;  %118 = vmatpush.bf16.msra.mxu0 %v141_v23 }
   0x8   :  { %v38_v6 = vmul.f32 32.0, %v148_v5  ;;  %vm42_vm1 = vweird.f32 %v148_v5 }
   0xa   :  { %v39_v7 = vsub.f32 1.0, %v38_v6 }
   0xb   :  { %35 = vadd.xlane.f32.xlu0 %v34_v3 }
   0xc   :  { %v40_v8 = vmul.f32 %v148_v5, %v39_v7 }
   0xe   :  { %v41_v9 = vadd.f32 %v148_v5, %v40_v8 }
  0x10   :  { %v43_v10 = vsel %vm42_vm1, %v148_v5, %v41_v9 }
  0x76   :  { %v33_v11 = vpop.xlane.xlu0 %32 }
  0x77   :  { %v44_v12 = vmul.f32 %v43_v10, %v33_v11 }
  0x79   :  { %v46_v13 = vsub.f32 %v21_v0, %v44_v12 }
  0x7b   :  { %v48_v14 = vmul.f32 %v46_v13, %v46_v13 }
  0x7d   :  { %v50_v15 = vsel %vm30_vm0, %v48_v14, 0.0 }
  0x7e   :  { %51 = vadd.xlane.f32.xlu1 %v50_v15  ;;  %v36_v16 = vpop.xlane.xlu0 %35 }
  0x7f   :  { %v45_v17 = vmul.f32 %v43_v10, %v36_v16 }
  0x81   :  { %v47_v18 = vsub.f32 %v22_v2, %v45_v17 }
  0x83   :  { %v49_v19 = vmul.f32 %v47_v18, %v47_v18 }
  0x85   :  { %v53_v20 = vsel %vm30_vm0, %v49_v19, 0.0 }
  0x86   :  { %54 = vadd.xlane.f32.xlu1 %v53_v20 }
  0xf1   :  { %v52_v22 = vpop.xlane.xlu1 %51 }
  0xf2   :  { %v56_v24 = vmul.f32 %v52_v22, %v43_v10 }
  0xf4   :  { %v58_v25 = vadd.f32 1e-05, %v56_v24 }
  0xf6   :  { %149 = vrsqrt.f32 %v58_v25  ;;  %vm66_vm3 = vweird.f32 %v58_v25 }
  0xf9   :  { %v55_v26 = vpop.xlane.xlu1 %54 }
  0xfa   :  { %v57_v27 = vmul.f32 %v55_v26, %v43_v10 }
  0xfc   :  { %v150_v28 = vpop.eup %149  ;;  %v59_v29 = vadd.f32 1e-05, %v57_v27 }
  0xfd   :  { %v61_v30 = vmul.f32 %v150_v28, %v58_v25  ;;  %vm67_vm2 = vweird.f32 %v150_v28 }
  0xfe   :  { %151 = vrsqrt.f32 %v59_v29  ;;  %vm68_vm4 = vmor %vm66_vm3, %vm67_vm2  ;;  %vm76_vm6 = vweird.f32 %v59_v29 }
  0xff   :  { %v62_v31 = vmul.f32 %v150_v28, %v61_v30 }
 0x101   :  { %v63_v32 = vmul.f32 0.5, %v62_v31 }
 0x103   :  { %v64_v33 = vsub.f32 1.5, %v63_v32 }
 0x104   :  { %v152_v34 = vpop.eup %151 }
 0x105   :  { %v65_v35 = vmul.f32 %v150_v28, %v64_v33  ;;  %v71_v36 = vmul.f32 %v152_v34, %v59_v29  ;;  %vm77_vm5 = vweird.f32 %v152_v34 }
 0x106   :  { %vm78_vm7 = vmor %vm76_vm6, %vm77_vm5 }
 0x107   :  { %v72_v37 = vmul.f32 %v152_v34, %v71_v36  ;;  %v69_v38 = vsel %vm68_vm4, %v150_v28, %v65_v35 }
 0x108   :  { %v80_v41 = vmul.f32 %v69_v38, %v46_v13 }
 0x109   :  { %v73_v39 = vmul.f32 0.5, %v72_v37 }
 0x10a   :  { %v85_v46 = vmul.f32 %v144_v42, %v80_v41 }
 0x10b   :  { %v74_v40 = vsub.f32 1.5, %v73_v39 }
 0x10c   :  { %v90_v49 = vadd.f32 %v145_v47, %v85_v46 }
 0x10d   :  { %v75_v43 = vmul.f32 %v152_v34, %v74_v40 }
 0x10f   :  { %v79_v44 = vsel %vm78_vm7, %v152_v34, %v75_v43 }
 0x110   :  { %v81_v45 = vmul.f32 %v79_v44, %v47_v18 }
 0x112   :  { %v86_v48 = vmul.f32 %v144_v42, %v81_v45 }
 0x114   :  { %v91_v50 = vadd.f32 %v145_v47, %v86_v48 }
 0x116   :  { %v92_v51 = vpack.c.bf16 %v91_v50, %v90_v49 }
 0x118   :  { %140 = vmatmul.msk.bf16.vlgmr.msra.gmra.mxu0 %vm30_vm0, %v92_v51 }
 0x195   :  { %v120_v53 = vpop.f32.mrf.mxu0 }
 0x196   :  { %v121_v54 = vadd.f32 %v146_v52, %v120_v53 }
 0x198   :  { %126 = vst.msk [vmem:[%s221_s5] sm:$0xff] %vm125_vm8, %v121_v54 }
 0x19d   :  { %v122_v55 = vpop.f32.mrf.mxu0 }
 0x19e   :  { %v123_v56 = vadd.f32 %v146_v52, %v122_v55 }
 0x1a0   :  { %127 = vst.msk [vmem:[%s221_s5 + $0x8] sm:$0xff] %vm125_vm8, %v123_v56 }

// kernel: _lambda_.26
= control target key start
LH: loop header
LB: loop body
LE: loop exit
PB: predicated region body
PF: predicated region fallthrough
CT: control target
= control target key end

     0   :  { %vm35_vm0 = vcmask 261120   ;;  %v485_v16 = vmov 32.0   ;;  %s821_s0 = inlined_call_operand.vmem [shape: f32[64,32], index: 0, kind: input, shape index: {}]   ;;  %s822_s1 = inlined_call_operand.vmem [shape: f32[1,32], index: 1, kind: input, shape index: {}]   ;;  %s823_s2 = inlined_call_operand.vmem [shape: f32[1,32], index: 2, kind: input, shape index: {}]   ;;  %s824_s4 = inlined_call_operand.vmem [shape: f32[1,64], index: 4, kind: input, shape index: {}]   ;;  %s825_s3 = inlined_call_operand.vmem [shape: bf16[32,64], index: 3, kind: input, shape index: {}]   ;;  %s826_s6 = inlined_call_operand.vmem [shape: f32[1,32], index: 6, kind: input, shape index: {}]   ;;  %s827_s5 = inlined_call_operand.vmem [shape: bf16[64,32], index: 5, kind: input, shape index: {}]   ;;  %s828_s7 = inlined_call_operand.vmem [shape: f32[64,32], index: 7, kind: output, shape index: {}]  }
   0x1   :  { %v529_v0 = vld [vmem:[%s821_s0 + $0x20] sm:$0xff]  ;;  %v534_v1 = vld [vmem:[%s821_s0 + $0x10] sm:$0xff]  ;;  %v550_v6 = vld [vmem:[%s821_s0 + $0x28] sm:$0xff]  ;;  %467 = vrcp.f32 %v485_v16 }
   0x2   :  { %v539_v2 = vld [vmem:[%s821_s0] sm:$0xff]  ;;  %v48_v3 = vsel %vm35_vm0, %v529_v0, 0.0  ;;  %v42_v4 = vsel %vm35_vm0, %v534_v1, 0.0  ;;  %v555_v7 = vld [vmem:[%s821_s0 + $0x18] sm:$0xff]  ;;  %v560_v8 = vld [vmem:[%s821_s0 + $0x8] sm:$0xff]  ;;  %v51_v9 = vsel %vm35_vm0, %v550_v6, 0.0 }
   0x3   :  { %v36_v5 = vsel %vm35_vm0, %v539_v2, 0.0  ;;  %49 = vadd.xlane.f32.xlu1 %v48_v3  ;;  %43 = vadd.xlane.f32.xlu0 %v42_v4  ;;  %v45_v10 = vsel %vm35_vm0, %v555_v7, 0.0  ;;  %v39_v11 = vsel %vm35_vm0, %v560_v8, 0.0  ;;  %v571_v12 = vld [vmem:[%s821_s0 + $0x30] sm:$0xff]  ;;  %v576_v13 = vld [vmem:[%s821_s0 + $0x38] sm:$0xff] }
   0x4   :  { %37 = vadd.xlane.f32.xlu2 %v36_v5  ;;  %v54_v14 = vsel %vm35_vm0, %v571_v12, 0.0  ;;  %v57_v15 = vsel %vm35_vm0, %v576_v13, 0.0  ;;  %v451_v5 = vld [vmem:[%s825_s3 + $0x8] sm:$0xff] }
   0x5   :  { %456 = vmatpush.bf16.msra.mxu3 %v451_v5  ;;  %285 = vmatpush.bf16.msra.mxu0 %v451_v5 }
   0x7   :  { %v468_v17 = vpop.eup %467 }
   0x8   :  { %v61_v18 = vmul.f32 32.0, %v468_v17  ;;  %vm65_vm1 = vweird.f32 %v468_v17 }
   0xa   :  { %v62_v19 = vsub.f32 1.0, %v61_v18 }
   0xb   :  { %52 = vadd.xlane.f32.xlu1 %v51_v9  ;;  %46 = vadd.xlane.f32.xlu0 %v45_v10 }
   0xc   :  { %40 = vadd.xlane.f32.xlu2 %v39_v11  ;;  %v63_v20 = vmul.f32 %v468_v17, %v62_v19  ;;  %v450_v11 = vld [vmem:[%s825_s3] sm:$0xff] }
   0xd   :  { %457 = vmatpush.bf16.msra.mxu3 %v450_v11  ;;  %286 = vmatpush.bf16.msra.mxu0 %v450_v11  ;;  %v688_v11 = vld [vmem:[%s822_s1] ss:$0 sm:$0xff] }
   0xe   :  { %v64_v21 = vadd.f32 %v468_v17, %v63_v20 }
  0x10   :  { %v582_v22 = vsel %vm65_vm1, %v468_v17, %v64_v21 }
  0x13   :  { %55 = vadd.xlane.f32.xlu0 %v54_v14  ;;  %58 = vadd.xlane.f32.xlu1 %v57_v15 }
  0x76   :  { %v50_v23 = vpop.xlane.xlu1 %49  ;;  %v44_v24 = vpop.xlane.xlu0 %43 }
  0x77   :  { %v71_v25 = vmul.f32 %v582_v22, %v50_v23  ;;  %v69_v26 = vmul.f32 %v582_v22, %v44_v24  ;;  %v38_v27 = vpop.xlane.xlu2 %37 }
  0x78   :  { %v67_v36 = vmul.f32 %v582_v22, %v38_v27 }
  0x79   :  { %v587_v28 = vsub.f32 %v529_v0, %v71_v25  ;;  %v590_v29 = vsub.f32 %v534_v1, %v69_v26 }
  0x7a   :  { %v612_v44 = vsub.f32 %v539_v2, %v67_v36 }
  0x7b   :  { %v87_v30 = vmul.f32 %v587_v28, %v587_v28  ;;  %v85_v31 = vmul.f32 %v590_v29, %v590_v29 }
  0x7c   :  { %v83_v55 = vmul.f32 %v612_v44, %v612_v44 }
  0x7d   :  { %v103_v32 = vsel %vm35_vm0, %v87_v30, 0.0  ;;  %v97_v33 = vsel %vm35_vm0, %v85_v31, 0.0 }
  0x7e   :  { %104 = vadd.xlane.f32.xlu1 %v103_v32  ;;  %v53_v34 = vpop.xlane.xlu1 %52  ;;  %v47_v35 = vpop.xlane.xlu0 %46  ;;  %98 = vadd.xlane.f32.xlu2 %v97_v33  ;;  %v91_v59 = vsel %vm35_vm0, %v83_v55, 0.0 }
  0x7f   :  { %v72_v37 = vmul.f32 %v582_v22, %v53_v34  ;;  %v70_v38 = vmul.f32 %v582_v22, %v47_v35  ;;  %v41_v39 = vpop.xlane.xlu2 %40 }
  0x80   :  { %v68_v40 = vmul.f32 %v582_v22, %v41_v39 }
  0x81   :  { %v603_v41 = vsub.f32 %v550_v6, %v72_v37  ;;  %v606_v42 = vsub.f32 %v555_v7, %v70_v38 }
  0x82   :  { %v609_v43 = vsub.f32 %v560_v8, %v68_v40 }
  0x83   :  { %v86_v45 = vmul.f32 %v606_v42, %v606_v42  ;;  %v88_v46 = vmul.f32 %v603_v41, %v603_v41 }
  0x84   :  { %v84_v47 = vmul.f32 %v609_v43, %v609_v43 }
  0x85   :  { %v100_v48 = vsel %vm35_vm0, %v86_v45, 0.0  ;;  %v106_v49 = vsel %vm35_vm0, %v88_v46, 0.0 }
  0x86   :  { %101 = vadd.xlane.f32.xlu0 %v100_v48  ;;  %v56_v50 = vpop.xlane.xlu0 %55  ;;  %107 = vadd.xlane.f32.xlu2 %v106_v49  ;;  %v94_v51 = vsel %vm35_vm0, %v84_v47, 0.0  ;;  %v59_v52 = vpop.xlane.xlu1 %58 }
  0x87   :  { %v73_v53 = vmul.f32 %v582_v22, %v56_v50  ;;  %95 = vadd.xlane.f32.xlu1 %v94_v51  ;;  %v74_v54 = vmul.f32 %v582_v22, %v59_v52 }
  0x89   :  { %v628_v56 = vsub.f32 %v571_v12, %v73_v53  ;;  %v631_v57 = vsub.f32 %v576_v13, %v74_v54 }
  0x8b   :  { %v89_v58 = vmul.f32 %v628_v56, %v628_v56  ;;  %v90_v61 = vmul.f32 %v631_v57, %v631_v57 }
  0x8d   :  { %v109_v60 = vsel %vm35_vm0, %v89_v58, 0.0  ;;  %v112_v62 = vsel %vm35_vm0, %v90_v61, 0.0 }
  0x8e   :  { %110 = vadd.xlane.f32.xlu2 %v109_v60  ;;  %92 = vadd.xlane.f32.xlu0 %v91_v59 }
  0x96   :  { %113 = vadd.xlane.f32.xlu0 %v112_v62 }
  0xf1   :  { %v105_v63 = vpop.xlane.xlu1 %104  ;;  %v99_v3 = vpop.xlane.xlu2 %98 }
  0xf2   :  { %v117_v4 = vmul.f32 %v99_v3, %v582_v22  ;;  %v119_v9 = vmul.f32 %v105_v63, %v582_v22 }
  0xf4   :  { %v125_v10 = vadd.f32 1e-05, %v117_v4  ;;  %v648_v14 = vadd.f32 1e-05, %v119_v9 }
  0xf6   :  { %469 = vrsqrt.f32 %v125_v10  ;;  %vm157_vm3 = vweird.f32 %v125_v10  ;;  %vm177_vm13 = vweird.f32 %v648_v14 }
  0xf7   :  { %471 = vrsqrt.f32 %v648_v14 }
  0xf9   :  { %v102_v15 = vpop.xlane.xlu0 %101  ;;  %v108_v16 = vpop.xlane.xlu2 %107 }
  0xfa   :  { %v118_v17 = vmul.f32 %v102_v15, %v582_v22  ;;  %v96_v18 = vpop.xlane.xlu1 %95  ;;  %v120_v19 = vmul.f32 %v108_v16, %v582_v22 }
  0xfb   :  { %v116_v20 = vmul.f32 %v96_v18, %v582_v22 }
  0xfc   :  { %v126_v21 = vadd.f32 1e-05, %v118_v17  ;;  %v654_v23 = vadd.f32 1e-05, %v120_v19  ;;  %v470_v24 = vpop.eup %469 }
  0xfd   :  { %v124_v25 = vadd.f32 1e-05, %v116_v20  ;;  %v152_v26 = vmul.f32 %v470_v24, %v125_v10  ;;  %v657_v32 = vpop.eup %471  ;;  %vm158_vm2 = vweird.f32 %v470_v24 }
  0xfe   :  { %473 = vrsqrt.f32 %v126_v21  ;;  %v172_v40 = vmul.f32 %v657_v32, %v648_v14  ;;  %vm670_vm4 = vmor %vm157_vm3, %vm158_vm2  ;;  %vm167_vm5 = vweird.f32 %v126_v21  ;;  %vm187_vm11 = vweird.f32 %v654_v23 }
  0xff   :  { %475 = vrsqrt.f32 %v124_v25  ;;  %v153_v27 = vmul.f32 %v470_v24, %v152_v26  ;;  %vm147_vm7 = vweird.f32 %v124_v25  ;;  %vm178_vm14 = vweird.f32 %v657_v32 }
 0x100   :  { %477 = vrsqrt.f32 %v654_v23  ;;  %v173_v54 = vmul.f32 %v657_v32, %v172_v40  ;;  %vm724_vm3 = vmor %vm177_vm13, %vm178_vm14 }
 0x101   :  { %v93_v30 = vpop.xlane.xlu0 %92  ;;  %v111_v31 = vpop.xlane.xlu2 %110  ;;  %v154_v33 = vmul.f32 0.5, %v153_v27 }
 0x102   :  { %v115_v34 = vmul.f32 %v93_v30, %v582_v22  ;;  %v121_v38 = vmul.f32 %v111_v31, %v582_v22  ;;  %v174_v15 = vmul.f32 0.5, %v173_v54 }
 0x103   :  { %v155_v36 = vsub.f32 1.5, %v154_v33 }
 0x104   :  { %v474_v35 = vpop.eup %473  ;;  %v660_v37 = vadd.f32 1e-05, %v115_v34  ;;  %v674_v53 = vadd.f32 1e-05, %v121_v38  ;;  %v175_v26 = vsub.f32 1.5, %v174_v15 }
 0x105   :  { %v476_v39 = vpop.eup %475  ;;  %v162_v45 = vmul.f32 %v474_v35, %v126_v21  ;;  %v156_v47 = vmul.f32 %v470_v24, %v155_v36  ;;  %vm168_vm6 = vweird.f32 %v474_v35  ;;  %v704_v21 = vld [vmem:[%s823_s2] ss:$0 sm:$0xff] }
 0x106   :  { %v665_v46 = vpop.eup %477  ;;  %v142_v48 = vmul.f32 %v476_v39, %v124_v25  ;;  %479 = vrsqrt.f32 %v660_v37  ;;  %vm148_vm8 = vweird.f32 %v476_v39  ;;  %vm169_vm9 = vmor %vm167_vm5, %vm168_vm6  ;;  %vm137_vm15 = vweird.f32 %v660_v37 }
 0x107   :  { %v163_v49 = vmul.f32 %v474_v35, %v162_v45  ;;  %v182_v50 = vmul.f32 %v665_v46, %v654_v23  ;;  %v160_v55 = vsel %vm670_vm4, %v470_v24, %v156_v47  ;;  %481 = vrsqrt.f32 %v674_v53  ;;  %vm693_vm10 = vmor %vm147_vm7, %vm148_vm8 }
 0x108   :  { %v143_v52 = vmul.f32 %v476_v39, %v142_v48  ;;  %v213_v5 = vmul.f32 %v160_v55, %v590_v29  ;;  %vm188_vm12 = vweird.f32 %v665_v46  ;;  %v176_v40 = vmul.f32 %v657_v32, %v175_v26 }
 0x109   :  { %v164_v58 = vmul.f32 0.5, %v163_v49  ;;  %v183_v59 = vmul.f32 %v665_v46, %v182_v50  ;;  %v114_v60 = vpop.xlane.xlu0 %113  ;;  %vm717_vm2 = vmor %vm187_vm11, %vm188_vm12  ;;  %vm197_vm7 = vweird.f32 %v674_v53  ;;  %vm356_vm11 = vcmask 523264  }
 0x10a   :  { %v144_v61 = vmul.f32 0.5, %v143_v52  ;;  %v122_v62 = vmul.f32 %v114_v60, %v582_v22  ;;  %v225_v25 = vmul.f32 %v688_v11, %v213_v5  ;;  %v180_v54 = vsel %vm724_vm3, %v657_v32, %v176_v40 }
 0x10b   :  { %v165_v63 = vsub.f32 1.5, %v164_v58  ;;  %v184_v3 = vmul.f32 0.5, %v183_v59 }
 0x10c   :  { %v480_v4 = vpop.eup %479  ;;  %v145_v9 = vsub.f32 1.5, %v144_v61  ;;  %v683_v10 = vadd.f32 1e-05, %v122_v62  ;;  %v237_v14 = vadd.f32 %v704_v21, %v225_v25  ;;  %v455_v25 = vld [vmem:[%s827_s5 + $0x18] sm:$0xff] }
 0x10d   :  { %v166_v16 = vmul.f32 %v474_v35, %v165_v63  ;;  %v132_v22 = vmul.f32 %v480_v4, %v660_v37  ;;  %v185_v19 = vsub.f32 1.5, %v184_v3  ;;  %v482_v31 = vpop.eup %481  ;;  %vm138_vm1 = vweird.f32 %v480_v4  ;;  %373 = vmatpush.bf16.msra.mxu1 %v455_v25  ;;  %458 = vmatpush.bf16.msra.mxu2 %v455_v25 }
 0x10e   :  { %v146_v17 = vmul.f32 %v476_v39, %v145_v9  ;;  %483 = vrsqrt.f32 %v683_v10  ;;  %v192_v47 = vmul.f32 %v482_v31, %v674_v53  ;;  %vm139_vm4 = vmor %vm137_vm15, %vm138_vm1  ;;  %vm207_vm5 = vweird.f32 %v683_v10 }
 0x10f   :  { %v170_v18 = vsel %vm169_vm9, %v474_v35, %v166_v16  ;;  %v133_v20 = vmul.f32 %v480_v4, %v132_v22  ;;  %v186_v33 = vmul.f32 %v665_v46, %v185_v19  ;;  %vm198_vm8 = vweird.f32 %v482_v31 }
 0x110   :  { %v214_v24 = vmul.f32 %v170_v18, %v606_v42  ;;  %v150_v27 = vsel %vm693_vm10, %v476_v39, %v146_v17  ;;  %v193_v55 = vmul.f32 %v482_v31, %v192_v47  ;;  %vm199_vm10 = vmor %vm197_vm7, %vm198_vm8 }
 0x111   :  { %v134_v30 = vmul.f32 0.5, %v133_v20  ;;  %v212_v36 = vmul.f32 %v150_v27, %v609_v43  ;;  %v190_v48 = vsel %vm717_vm2, %v665_v46, %v186_v33  ;;  %v215_v46 = vmul.f32 %v180_v54, %v587_v28  ;;  %v465_v27 = vld [vmem:[%s824_s4] ss:$0 sm:$0xff] }
 0x112   :  { %v226_v42 = vmul.f32 %v688_v11, %v214_v24  ;;  %v216_v58 = vmul.f32 %v190_v48, %v603_v41  ;;  %v194_v62 = vmul.f32 0.5, %v193_v55 }
 0x113   :  { %v135_v34 = vsub.f32 1.5, %v134_v30  ;;  %v224_v52 = vmul.f32 %v688_v11, %v212_v36  ;;  %v227_v32 = vmul.f32 %v688_v11, %v215_v46  ;;  %v466_v46 = vld [vmem:[%s826_s6] ss:$0 sm:$0xff] }
 0x114   :  { %v484_v35 = vpop.eup %483  ;;  %v238_v39 = vadd.f32 %v704_v21, %v226_v42  ;;  %v228_v3 = vmul.f32 %v688_v11, %v216_v58  ;;  %v195_v5 = vsub.f32 1.5, %v194_v62 }
 0x115   :  { %v136_v37 = vmul.f32 %v480_v4, %v135_v34  ;;  %v202_v43 = vmul.f32 %v484_v35, %v683_v10  ;;  %vm208_vm6 = vweird.f32 %v484_v35  ;;  %v239_v9 = vadd.f32 %v704_v21, %v227_v32 }
 0x116   :  { %v244_v23 = vpack.c.bf16 %v238_v39, %v237_v14  ;;  %v240_v41 = vadd.f32 %v704_v21, %v228_v3  ;;  %vm209_vm9 = vmor %vm207_vm5, %vm208_vm6  ;;  %v196_v15 = vmul.f32 %v482_v31, %v195_v5 }
 0x117   :  { %v140_v49 = vsel %vm139_vm4, %v480_v4, %v136_v37  ;;  %v203_v50 = vmul.f32 %v484_v35, %v202_v43 }
 0x118   :  { %v211_v51 = vmul.f32 %v140_v49, %v612_v44  ;;  %427 = vmatmul.msk.bf16.vlgmr.msra.gmra.mxu3 %vm35_vm0, %v244_v23  ;;  %v236_v44 = vadd.f32 %v704_v21, %v224_v52  ;;  %v245_v16 = vpack.c.bf16 %v240_v41, %v239_v9  ;;  %v200_v17 = vsel %vm199_vm10, %v482_v31, %v196_v15 }
 0x119   :  { %v204_v60 = vmul.f32 0.5, %v203_v50  ;;  %v217_v10 = vmul.f32 %v200_v17, %v628_v56  ;;  %v454_v56 = vld [vmem:[%s827_s5 + $0x10] sm:$0xff] }
 0x11a   :  { %v223_v59 = vmul.f32 %v688_v11, %v211_v51  ;;  %374 = vmatpush.bf16.msra.mxu1 %v454_v56  ;;  %459 = vmatpush.bf16.msra.mxu2 %v454_v56 }
 0x11b   :  { %v205_v4 = vsub.f32 1.5, %v204_v60  ;;  %v229_v53 = vmul.f32 %v688_v11, %v217_v10 }
 0x11c   :  { %v235_v61 = vadd.f32 %v704_v21, %v223_v59 }
 0x11d   :  { %v206_v28 = vmul.f32 %v484_v35, %v205_v4  ;;  %v241_v20 = vadd.f32 %v704_v21, %v229_v53 }
 0x11e   :  { %v243_v63 = vpack.c.bf16 %v236_v44, %v235_v61 }
 0x11f   :  { %v210_v22 = vsel %vm209_vm9, %v484_v35, %v206_v28 }
 0x120   :  { %426 = vmatmul.msk.bf16.vlgmr.msra.gmra.mxu0 %vm35_vm0, %v243_v63  ;;  %v218_v29 = vmul.f32 %v210_v22, %v631_v57  ;;  %v453_v57 = vld [vmem:[%s827_s5 + $0x8] sm:$0xff] }
 0x121   :  { %375 = vmatpush.bf16.msra.mxu1 %v453_v57  ;;  %460 = vmatpush.bf16.msra.mxu2 %v453_v57 }
 0x122   :  { %v230_v18 = vmul.f32 %v688_v11, %v218_v29  ;;  %v452_v11 = vld [vmem:[%s827_s5] sm:$0xff] }
 0x124   :  { %v242_v19 = vadd.f32 %v704_v21, %v230_v18 }
 0x125   :  { %376 = vmatpush.bf16.msra.mxu1 %v452_v11  ;;  %461 = vmatpush.bf16.msra.mxu2 %v452_v11 }
 0x126   :  { %v246_v24 = vpack.c.bf16 %v242_v19, %v241_v20 }
 0x128   :  { %428 = vmatmul.msk.bf16.gmra.mxu3 %vm35_vm0, %v245_v16 }
 0x138   :  { %429 = vmatmul.msk.bf16.gmra.mxu3 %vm35_vm0, %v246_v24 }
 0x19b   :  { %v293_v21 = vpop.f32.mrf.mxu3 }
 0x19c   :  { %v294_v45 = vadd.f32 %v465_v27, %v293_v21 }
 0x19d   :  { %v288_v26 = vpop.f32.mrf.mxu0 }
 0x19e   :  { %v289_v31 = vadd.f32 %v465_v27, %v288_v26  ;;  %v310_v48 = vmax.f32 %v294_v45, 0.0 }
 0x1a0   :  { %v308_v34 = vmax.f32 %v289_v31, 0.0 }
 0x1a3   :  { %v295_v30 = vpop.f32.mrf.mxu3 }
 0x1a4   :  { %v296_v14 = vadd.f32 %v465_v27, %v295_v30 }
 0x1a5   :  { %v290_v42 = vpop.f32.mrf.mxu0 }
 0x1a6   :  { %v291_v33 = vadd.f32 %v465_v27, %v290_v42  ;;  %v311_v47 = vmax.f32 %v296_v14, 0.0 }
 0x1a8   :  { %v309_v35 = vmax.f32 %v291_v33, 0.0  ;;  %v317_v50 = vpack.c.bf16 %v311_v47, %v310_v48 }
 0x1aa   :  { %v316_v36 = vpack.c.bf16 %v309_v35, %v308_v34 }
 0x1ab   :  { %v298_v38 = vpop.f32.mrf.mxu3 }
 0x1ac   :  { %446 = vmatmul.msk.bf16.vlgmr.msra.gmra.mxu1 %vm356_vm11, %v316_v36  ;;  %v299_v39 = vadd.f32 %v465_v27, %v298_v38 }
 0x1ae   :  { %v312_v43 = vmax.f32 %v299_v39, 0.0 }
 0x1b3   :  { %v300_v40 = vpop.f32.mrf.mxu3 }
 0x1b4   :  { %v301_v37 = vadd.f32 %v465_v27, %v300_v40 }
 0x1b6   :  { %v313_v23 = vmax.f32 %v301_v37, 0.0 }
 0x1b8   :  { %v318_v49 = vpack.c.bf16 %v313_v23, %v312_v43 }
 0x1ba   :  { %448 = vmatmul.msk.bf16.vlgmr.msra.gmra.mxu2 %vm356_vm11, %v318_v49 }
 0x1bb   :  { %v303_v51 = vpop.f32.mrf.mxu3 }
 0x1bc   :  { %447 = vmatmul.msk.bf16.gmra.mxu1 %vm356_vm11, %v317_v50  ;;  %v304_v52 = vadd.f32 %v465_v27, %v303_v51 }
 0x1be   :  { %v314_v58 = vmax.f32 %v304_v52, 0.0 }
 0x1c3   :  { %v305_v54 = vpop.f32.mrf.mxu3 }
 0x1c4   :  { %v306_v55 = vadd.f32 %v465_v27, %v305_v54 }
 0x1c6   :  { %v315_v59 = vmax.f32 %v306_v55, 0.0 }
 0x1c8   :  { %v319_v60 = vpack.c.bf16 %v315_v59, %v314_v58 }
 0x1ca   :  { %449 = vmatmul.msk.bf16.gmra.mxu2 %vm356_vm11, %v319_v60 }
 0x229   :  { %v378_v61 = vpop.f32.mrf.mxu1 }
 0x22a   :  { %v379_v44 = vadd.f32 %v466_v46, %v378_v61 }
 0x22c   :  { %v398_v62 = vadd.f32 %v379_v44, %v539_v2 }
 0x22e   :  { %406 = vst.msk [vmem:[%s828_s7] sm:$0xff] %vm35_vm0, %v398_v62 }
 0x231   :  { %v380_v63 = vpop.f32.mrf.mxu1 }
 0x232   :  { %v381_v3 = vadd.f32 %v466_v46, %v380_v63 }
 0x234   :  { %v399_v4 = vadd.f32 %v381_v3, %v560_v8 }
 0x236   :  { %407 = vst.msk [vmem:[%s828_s7 + $0x8] sm:$0xff] %vm35_vm0, %v399_v4 }
 0x239   :  { %v383_v32 = vpop.f32.mrf.mxu1 }
 0x23a   :  { %v384_v5 = vadd.f32 %v466_v46, %v383_v32 }
 0x23c   :  { %v400_v41 = vadd.f32 %v384_v5, %v534_v1 }
 0x23d   :  { %v388_v28 = vpop.f32.mrf.mxu2 }
 0x23e   :  { %408 = vst.msk [vmem:[%s828_s7 + $0x10] sm:$0xff] %vm35_vm0, %v400_v41  ;;  %v389_v2 = vadd.f32 %v466_v46, %v388_v28 }
 0x240   :  { %v402_v9 = vadd.f32 %v389_v2, %v529_v0 }
 0x241   :  { %v385_v15 = vpop.f32.mrf.mxu1 }
 0x242   :  { %410 = vst.msk [vmem:[%s828_s7 + $0x20] sm:$0xff] %vm35_vm0, %v402_v9  ;;  %v386_v8 = vadd.f32 %v466_v46, %v385_v15 }
 0x244   :  { %v401_v16 = vadd.f32 %v386_v8, %v555_v7 }
 0x245   :  { %v390_v22 = vpop.f32.mrf.mxu2 }
 0x246   :  { %409 = vst.msk [vmem:[%s828_s7 + $0x18] sm:$0xff] %vm35_vm0, %v401_v16  ;;  %v391_v1 = vadd.f32 %v466_v46, %v390_v22 }
 0x248   :  { %v403_v17 = vadd.f32 %v391_v1, %v550_v6 }
 0x24a   :  { %411 = vst.msk [vmem:[%s828_s7 + $0x28] sm:$0xff] %vm35_vm0, %v403_v17 }
 0x24d   :  { %v393_v0 = vpop.f32.mrf.mxu2 }
 0x24e   :  { %v394_v29 = vadd.f32 %v466_v46, %v393_v0 }
 0x250   :  { %v404_v10 = vadd.f32 %v394_v29, %v571_v12 }
 0x252   :  { %412 = vst.msk [vmem:[%s828_s7 + $0x30] sm:$0xff] %vm35_vm0, %v404_v10 }
 0x255   :  { %v395_v7 = vpop.f32.mrf.mxu2 }
 0x256   :  { %v396_v18 = vadd.f32 %v466_v46, %v395_v7 }
 0x258   :  { %v405_v53 = vadd.f32 %v396_v18, %v576_v13 }
 0x25a   :  { %413 = vst.msk [vmem:[%s828_s7 + $0x38] sm:$0xff] %vm35_vm0, %v405_v53 }

// kernel: _lambda_.24
= control target key start
LH: loop header
LB: loop body
LE: loop exit
PB: predicated region body
PF: predicated region fallthrough
CT: control target
= control target key end

     0   :  { %s2109_s15 = smov 0   ;;  %s2111_s16 = smov 0   ;;  %s2649_s0 = inlined_call_operand.vmem [shape: bf16[2,16,8,8], index: 0, kind: input, shape index: {}]   ;;  %s2650_s1 = inlined_call_operand.vmem [shape: bf16[2,16,8,8], index: 1, kind: input, shape index: {}]   ;;  %s2651_s2 = inlined_call_operand.vmem [shape: bf16[2,16,8,8], index: 2, kind: input, shape index: {}]   ;;  %s2652_s3 = inlined_call_operand.vmem [shape: f32[2,4,8,8], index: 3, kind: input, shape index: {}]   ;;  %s2653_s4 = inlined_call_operand.vmem [shape: f32[2,16,8,8], index: 4, kind: output, shape index: {}]  }
   0x1   :  { %s2113_s17 = smov 0  }
   0x2 LB: > { %s26_s18 = sadd.s32 1, %s2075_s16  ;;  %p1881_p0 = scmp.ge.s32.totalorder %s2079_s17, 1  ;;  %s2079_s17 = sphi %s2113_s17, %s14_s17   ;;  %s2075_s16 = sphi %s2111_s16, %s2655_s16   ;;  %s2071_s15 = sphi %s2109_s15, %s2654_s15  }
   0x3   : > { %p28_p1 = scmp.ge.s32.totalorder %s26_s18, 2  ;;  %p219_p2 = scmp.lt.s32.totalorder %s2079_s17, 3 }
   0x5   : > { %s2657_s18 = smov (%p28_p1, %s26_s18), 0  ;;  %p220_p3 = pnand %p1881_p0, %p219_p2 }
   0x6   : > { %p269_p4 = scmp.lt.s32.totalorder (!%p220_p3), %s2071_s15, 1 }
   0x7   : > { %223 = sbr.rel (%p220_p3) target bundleno = 718 (0x2ce), region = 36 }
   0xc   : > { %s2659_s15 = smov (!%p269_p4, %s2071_s15), 1  ;;  %vm341_vm0 = vcmask 64512   ;;  %vm308_vm1 = vcmask 7168   ;;  %vm1247_vm2 = vcmask 1043456  }
   0xd   : > { %s2130_s19 = sshll.u32 %s2659_s15, 6  ;;  %s1929_s26 = sshll.u32 %s2659_s15, 5 }
   0xe   : > { %s2136_s22 = scalar_lea.vmem %s2650_s1, %s2130_s19  ;;  %s2150_s25 = scalar_lea.vmem %s2649_s0, %s2130_s19 }
   0xf   : > { %v374_v0 = vld [vmem:[%s2136_s22] sm:$0xf]  ;;  %v376_v1 = vld [vmem:[%s2136_s22 + $0x8] sm:$0xf]  ;;  %v377_v2 = vld [vmem:[%s2136_s22 + $0xc] sm:$0xf]  ;;  %s297_s29 = scalar_lea.vmem %s2652_s3, %s1929_s26  ;;  %s2406_s6 = scalar_lea.vmem %s2651_s2, %s2130_s19 }
  0x10   : > { %v411_v3 = vsel %vm341_vm0, %v374_v0, 0  ;;  %v449_v4 = vsel %vm341_vm0, %v376_v1, 0  ;;  %v468_v5 = vsel %vm341_vm0, %v377_v2, 0  ;;  %v375_v6 = vld [vmem:[%s2136_s22 + $0x4] sm:$0xf]  ;;  %v2217_v54 = vld [vmem:[%s297_s29 + $0x8] sm:$0xff] }
  0x11   : > { %420 = vmatpush.bf16.xpose.msra.mxu0 %v411_v3  ;;  %458 = vmatpush.bf16.xpose.msra.mxu2 %v449_v4  ;;  %v430_v7 = vsel %vm341_vm0, %v375_v6, 0  ;;  %v378_v8 = vld [vmem:[%s2136_s22 + $0x10] sm:$0xf]  ;;  %v380_v10 = vld [vmem:[%s2136_s22 + $0x18] sm:$0xf]  ;;  %v2212_v49 = vld [vmem:[%s297_s29] sm:$0xff] }
  0x12   : > { %477 = vmatpush.bf16.xpose.msra.mxu3 %v468_v5  ;;  %439 = vmatpush.bf16.xpose.msra.mxu1 %v430_v7  ;;  %v487_v9 = vsel %vm341_vm0, %v378_v8, 0  ;;  %v381_v11 = vld [vmem:[%s2136_s22 + $0x1c] sm:$0xf]  ;;  %v358_v12 = vld [vmem:[%s2150_s25] sm:$0xf]  ;;  %v525_v13 = vsel %vm341_vm0, %v380_v10, 0 }
  0x13   : > { %v544_v14 = vsel %vm341_vm0, %v381_v11, 0  ;;  %v379_v15 = vld [vmem:[%s2136_s22 + $0x14] sm:$0xf]  ;;  %v360_v16 = vld [vmem:[%s2150_s25 + $0x8] sm:$0xf]  ;;  %v2229_v1 = vld [vmem:[%s297_s29 + $0x18] sm:$0xff] }
  0x14   : > { %v361_v17 = vld [vmem:[%s2150_s25 + $0xc] sm:$0xf]  ;;  %v506_v18 = vsel %vm341_vm0, %v379_v15, 0  ;;  %v359_v19 = vld [vmem:[%s2150_s25 + $0x4] sm:$0xf]  ;;  %v2221_v57 = vld [vmem:[%s297_s29 + $0x10] sm:$0xff] }
  0x15   : > { %v382_v20 = vld [vmem:[%s2136_s22 + $0x20] sm:$0xf]  ;;  %v385_v21 = vld [vmem:[%s2136_s22 + $0x2c] sm:$0xf]  ;;  %v383_v24 = vld [vmem:[%s2136_s22 + $0x24] sm:$0xf] }
  0x16   : > { %v563_v22 = vsel %vm341_vm0, %v382_v20, 0  ;;  %v620_v23 = vsel %vm341_vm0, %v385_v21, 0  ;;  %v384_v25 = vld [vmem:[%s2136_s22 + $0x28] sm:$0xf]  ;;  %v582_v26 = vsel %vm341_vm0, %v383_v24, 0  ;;  %s1930_s7 = sshll.u32 %s2659_s15, 7 }
  0x17   : > { %v601_v27 = vsel %vm341_vm0, %v384_v25, 0  ;;  %v386_v28 = vld [vmem:[%s2136_s22 + $0x30] sm:$0xf]  ;;  %v389_v29 = vld [vmem:[%s2136_s22 + $0x3c] sm:$0xf]  ;;  %s2606_s10 = scalar_lea.vmem %s2653_s4, %s1930_s7 }
  0x18   : > { %1892 = vmatmul.msk.bf16.vlgmr.msra.gmra.mxu0 %vm341_vm0, %v358_v12  ;;  %1894 = vmatmul.msk.bf16.vlgmr.msra.gmra.mxu2 %vm341_vm0, %v360_v16  ;;  %v362_v30 = vld [vmem:[%s2150_s25 + $0x10] sm:$0xf]  ;;  %v364_v31 = vld [vmem:[%s2150_s25 + $0x18] sm:$0xf]  ;;  %v365_v33 = vld [vmem:[%s2150_s25 + $0x1c] sm:$0xf] }
  0x19   : > { %496 = vmatpush.bf16.xpose.msrb.mxu0 %v487_v9  ;;  %534 = vmatpush.bf16.xpose.msrb.mxu2 %v525_v13  ;;  %v388_v32 = vld [vmem:[%s2136_s22 + $0x38] sm:$0xf]  ;;  %v363_v34 = vld [vmem:[%s2150_s25 + $0x14] sm:$0xf]  ;;  %v639_v35 = vsel %vm341_vm0, %v386_v28, 0  ;;  %v696_v36 = vsel %vm341_vm0, %v389_v29, 0 }
  0x1a   : > { %553 = vmatpush.bf16.xpose.msrb.mxu3 %v544_v14  ;;  %515 = vmatpush.bf16.xpose.msrb.mxu1 %v506_v18  ;;  %v677_v37 = vsel %vm341_vm0, %v388_v32, 0  ;;  %v387_v38 = vld [vmem:[%s2136_s22 + $0x34] sm:$0xf]  ;;  %v366_v40 = vld [vmem:[%s2150_s25 + $0x20] sm:$0xf]  ;;  %v2081_v29 = vmov -inf  }
  0x1b   : > { %1895 = vmatmul.msk.bf16.vlgmr.msra.gmra.mxu3 %vm341_vm0, %v361_v17  ;;  %1893 = vmatmul.msk.bf16.vlgmr.msra.gmra.mxu1 %vm341_vm0, %v359_v19  ;;  %v658_v39 = vsel %vm341_vm0, %v387_v38, 0  ;;  %v368_v41 = vld [vmem:[%s2150_s25 + $0x28] sm:$0xf]  ;;  %v369_v42 = vld [vmem:[%s2150_s25 + $0x2c] sm:$0xf]  ;;  %309 = vst.msk [vmem:[#allocation2] sm:$0xff] %vm308_vm1, %v2081_v29 }
  0x1c   : > { %v367_v43 = vld [vmem:[%s2150_s25 + $0x24] sm:$0xf]  ;;  %v370_v44 = vld [vmem:[%s2150_s25 + $0x30] sm:$0xf]  ;;  %v372_v45 = vld [vmem:[%s2150_s25 + $0x38] sm:$0xf] }
  0x1d   : > { %v373_v46 = vld [vmem:[%s2150_s25 + $0x3c] sm:$0xf]  ;;  %v371_v47 = vld [vmem:[%s2150_s25 + $0x34] sm:$0xf]  ;;  %310 = vst.msk [vmem:[#allocation2 + $0x8] sm:$0xff] %vm308_vm1, %v2081_v29 }
  0x1e   : > { %311 = vst.msk [vmem:[#allocation2 + $0x10] sm:$0xff] %vm308_vm1, %v2081_v29 }
  0x1f   : > { %312 = vst.msk [vmem:[#allocation2 + $0x18] sm:$0xff] %vm308_vm1, %v2081_v29 }
  0x20   : > { %313 = vst.msk [vmem:[#allocation2 + $0x20] sm:$0xff] %vm308_vm1, %v2081_v29 }
  0x21   : > { %572 = vmatpush.bf16.xpose.msra.mxu0 %v563_v22  ;;  %610 = vmatpush.bf16.xpose.msra.mxu2 %v601_v27  ;;  %314 = vst.msk [vmem:[#allocation2 + $0x28] sm:$0xff] %vm308_vm1, %v2081_v29 }
  0x22   : > { %629 = vmatpush.bf16.xpose.msra.mxu3 %v620_v23  ;;  %591 = vmatpush.bf16.xpose.msra.mxu1 %v582_v26  ;;  %315 = vst.msk [vmem:[#allocation2 + $0x30] sm:$0xff] %vm308_vm1, %v2081_v29 }
  0x23   : > { %316 = vst.msk [vmem:[#allocation2 + $0x38] sm:$0xff] %vm308_vm1, %v2081_v29 }
  0x24   : > { %317 = vst.msk [vmem:[#allocation2 + $0x40] sm:$0xff] %vm308_vm1, %v2081_v29 }
  0x25   : > { %318 = vst.msk [vmem:[#allocation2 + $0x48] sm:$0xff] %vm308_vm1, %v2081_v29 }
  0x26   : > { %319 = vst.msk [vmem:[#allocation2 + $0x50] sm:$0xff] %vm308_vm1, %v2081_v29 }
  0x27   : > { %320 = vst.msk [vmem:[#allocation2 + $0x58] sm:$0xff] %vm308_vm1, %v2081_v29 }
  0x28   : > { %1896 = vmatmul.msk.bf16.vlgmr.msrb.gmra.mxu0 %vm341_vm0, %v362_v30  ;;  %1898 = vmatmul.msk.bf16.vlgmr.msrb.gmra.mxu2 %vm341_vm0, %v364_v31  ;;  %321 = vst.msk [vmem:[#allocation2 + $0x60] sm:$0xff] %vm308_vm1, %v2081_v29 }
  0x29   : > { %648 = vmatpush.bf16.xpose.msrb.mxu0 %v639_v35  ;;  %686 = vmatpush.bf16.xpose.msrb.mxu2 %v677_v37  ;;  %322 = vst.msk [vmem:[#allocation2 + $0x68] sm:$0xff] %vm308_vm1, %v2081_v29 }
  0x2a   : > { %323 = vst.msk [vmem:[#allocation2 + $0x70] sm:$0xff] %vm308_vm1, %v2081_v29 }
  0x2b   : > { %1899 = vmatmul.msk.bf16.vlgmr.msrb.gmra.mxu3 %vm341_vm0, %v365_v33  ;;  %1897 = vmatmul.msk.bf16.vlgmr.msrb.gmra.mxu1 %vm341_vm0, %v363_v34  ;;  %324 = vst.msk [vmem:[#allocation2 + $0x78] sm:$0xff] %vm308_vm1, %v2081_v29 }
  0x2c   : > { %705 = vmatpush.bf16.xpose.msrb.mxu3 %v696_v36  ;;  %667 = vmatpush.bf16.xpose.msrb.mxu1 %v658_v39 }
  0x38   : > { %1900 = vmatmul.msk.bf16.vlgmr.msra.gmra.mxu0 %vm341_vm0, %v366_v40  ;;  %1902 = vmatmul.msk.bf16.vlgmr.msra.gmra.mxu2 %vm341_vm0, %v368_v41 }
  0x3b   : > { %1903 = vmatmul.msk.bf16.vlgmr.msra.gmra.mxu3 %vm341_vm0, %v369_v42  ;;  %1901 = vmatmul.msk.bf16.vlgmr.msra.gmra.mxu1 %vm341_vm0, %v367_v43 }
  0x48   : > { %1904 = vmatmul.msk.bf16.vlgmr.msrb.gmra.mxu0 %vm341_vm0, %v370_v44  ;;  %1906 = vmatmul.msk.bf16.vlgmr.msrb.gmra.mxu2 %vm341_vm0, %v372_v45 }
  0x4b   : > { %1907 = vmatmul.msk.bf16.vlgmr.msrb.gmra.mxu3 %vm341_vm0, %v373_v46  ;;  %1905 = vmatmul.msk.bf16.vlgmr.msrb.gmra.mxu1 %vm341_vm0, %v371_v47 }
  0x95   : > { %v422_v48 = vpop.f32.mrf.mxu0 }
  0x96   : > { %v711_v50 = vmul.f32 0.35355338, %v422_v48 }
  0x98   : > { %v441_v51 = vpop.f32.mrf.mxu1  ;;  %v2215_v53 = vadd.f32 %v2212_v49, %v711_v50 }
  0x99   : > { %v712_v52 = vmul.f32 0.35355338, %v441_v51 }
  0x9a   : > { %v763_v55 = vsel %vm341_vm0, %v2215_v53, -inf }
  0x9b   : > { %v460_v56 = vpop.f32.mrf.mxu2  ;;  %764 = vmax.xlane.f32.xlu0 %v763_v55  ;;  %v2224_v60 = vadd.f32 %v2217_v54, %v712_v52 }
  0x9c   : > { %v713_v58 = vmul.f32 0.35355338, %v460_v56 }
  0x9d   : > { %v424_v61 = vpop.f32.mrf.mxu0  ;;  %v766_v3 = vsel %vm341_vm0, %v2224_v60, -inf }
  0x9e   : > { %v479_v59 = vpop.f32.mrf.mxu3  ;;  %v2227_v0 = vadd.f32 %v2221_v57, %v713_v58 }
  0x9f   : > { %v714_v62 = vmul.f32 0.35355338, %v479_v59 }
  0xa0   : > { %v443_v63 = vpop.f32.mrf.mxu1  ;;  %v769_v2 = vsel %vm341_vm0, %v2227_v0, -inf }
  0xa1   : > { %770 = vmax.xlane.f32.xlu1 %v769_v2  ;;  %v2236_v4 = vadd.f32 %v2229_v1, %v714_v62 }
  0xa3   : > { %v462_v5 = vpop.f32.mrf.mxu2  ;;  %767 = vmax.xlane.f32.xlu0 %v766_v3  ;;  %v772_v10 = vsel %vm341_vm0, %v2236_v4, -inf }
  0xa5   : > { %v498_v7 = vpop.f32.mrf.mxu0 }
  0xa6   : > { %v481_v6 = vpop.f32.mrf.mxu3  ;;  %v715_v8 = vmul.f32 0.35355338, %v498_v7 }
  0xa8   : > { %v517_v9 = vpop.f32.mrf.mxu1  ;;  %v2241_v12 = vadd.f32 %v2212_v49, %v715_v8 }
  0xa9   : > { %v716_v11 = vmul.f32 0.35355338, %v517_v9  ;;  %773 = vmax.xlane.f32.xlu1 %v772_v10 }
  0xaa   : > { %v775_v13 = vsel %vm341_vm0, %v2241_v12, -inf }
  0xab   : > { %v536_v14 = vpop.f32.mrf.mxu2  ;;  %776 = vmax.xlane.f32.xlu2 %v775_v13  ;;  %v2246_v17 = vadd.f32 %v2217_v54, %v716_v11  ;;  %v2082_v11 = vmov 0  }
  0xac   : > { %v717_v15 = vmul.f32 0.35355338, %v536_v14  ;;  %1958 = vset.pattern.permute.xlu1 %v2082_v11  ;;  %1960 = vset.pattern.permute.xlu0 %v2082_v11 }
  0xad   : > { %v500_v18 = vpop.f32.mrf.mxu0  ;;  %v778_v23 = vsel %vm341_vm0, %v2246_v17, -inf  ;;  %1959 = vset.pattern.permute.xlu2 %v2082_v11  ;;  %v758_v11 = vld [vmem:[#allocation2 + $0x58] sm:$0xff] }
  0xae   : > { %v555_v16 = vpop.f32.mrf.mxu3  ;;  %v2249_v21 = vadd.f32 %v2221_v57, %v717_v15 }
  0xaf   : > { %v718_v19 = vmul.f32 0.35355338, %v555_v16  ;;  %v749_v16 = vld [vmem:[#allocation2 + $0x10] sm:$0xff] }
  0xb0   : > { %v519_v20 = vpop.f32.mrf.mxu1  ;;  %v781_v24 = vsel %vm341_vm0, %v2249_v21, -inf }
  0xb1   : > { %v2252_v22 = vadd.f32 %v2229_v1, %v718_v19  ;;  %782 = vmax.xlane.f32.xlu0 %v781_v24  ;;  %v748_v20 = vld [vmem:[#allocation2 + $0x8] sm:$0xff] }
  0xb3   : > { %v784_v25 = vsel %vm341_vm0, %v2252_v22, -inf  ;;  %v538_v26 = vpop.f32.mrf.mxu2  ;;  %779 = vmax.xlane.f32.xlu2 %v778_v23 }
  0xb4   : > { %785 = vmax.xlane.f32.xlu1 %v784_v25 }
  0xb5   : > { %v574_v28 = vpop.f32.mrf.mxu0 }
  0xb6   : > { %v557_v27 = vpop.f32.mrf.mxu3  ;;  %v719_v30 = vmul.f32 0.35355338, %v574_v28  ;;  %v750_v28 = vld [vmem:[#allocation2 + $0x18] sm:$0xff] }
  0xb8   : > { %v593_v31 = vpop.f32.mrf.mxu1  ;;  %v2264_v33 = vadd.f32 %v2212_v49, %v719_v30 }
  0xb9   : > { %v720_v32 = vmul.f32 0.35355338, %v593_v31  ;;  %v751_v31 = vld [vmem:[#allocation2 + $0x20] sm:$0xff] }
  0xba   : > { %v787_v35 = vsel %vm341_vm0, %v2264_v33, -inf }
  0xbb   : > { %v2268_v34 = vadd.f32 %v2217_v54, %v720_v32  ;;  %v612_v37 = vpop.f32.mrf.mxu2  ;;  %788 = vmax.xlane.f32.xlu2 %v787_v35 }
  0xbc   : > { %v721_v39 = vmul.f32 0.35355338, %v612_v37 }
  0xbd   : > { %v790_v36 = vsel %vm341_vm0, %v2268_v34, -inf  ;;  %v576_v40 = vpop.f32.mrf.mxu0 }
  0xbe   : > { %v631_v38 = vpop.f32.mrf.mxu3  ;;  %791 = vmax.xlane.f32.xlu0 %v790_v36  ;;  %v2280_v43 = vadd.f32 %v2221_v57, %v721_v39  ;;  %v753_v39 = vld [vmem:[#allocation2 + $0x30] sm:$0xff] }
  0xbf   : > { %v722_v41 = vmul.f32 0.35355338, %v631_v38 }
  0xc0   : > { %v595_v42 = vpop.f32.mrf.mxu1  ;;  %v793_v45 = vsel %vm341_vm0, %v2280_v43, -inf }
  0xc1   : > { %v2284_v44 = vadd.f32 %v2229_v1, %v722_v41  ;;  %794 = vmax.xlane.f32.xlu1 %v793_v45  ;;  %v2359_v41 = vld [vmem:[#allocation2 + $0x38] sm:$0xff]  ;;  %v752_v42 = vld [vmem:[#allocation2 + $0x28] sm:$0xff] }
  0xc3   : > { %v796_v46 = vsel %vm341_vm0, %v2284_v44, -inf  ;;  %v614_v47 = vpop.f32.mrf.mxu2 }
  0xc4   : > { %797 = vmax.xlane.f32.xlu2 %v796_v46 }
  0xc5   : > { %v650_v50 = vpop.f32.mrf.mxu0 }
  0xc6   : > { %v633_v48 = vpop.f32.mrf.mxu3  ;;  %v723_v51 = vmul.f32 0.35355338, %v650_v50 }
  0xc8   : > { %v669_v52 = vpop.f32.mrf.mxu1  ;;  %v2297_v56 = vadd.f32 %v2212_v49, %v723_v51 }
  0xc9   : > { %v724_v55 = vmul.f32 0.35355338, %v669_v52 }
  0xca   : > { %v799_v59 = vsel %vm341_vm0, %v2297_v56, -inf }
  0xcb   : > { %v2300_v58 = vadd.f32 %v2217_v54, %v724_v55  ;;  %800 = vmax.xlane.f32.xlu0 %v799_v59  ;;  %v688_v61 = vpop.f32.mrf.mxu2 }
  0xcc   : > { %v725_v2 = vmul.f32 0.35355338, %v688_v61 }
  0xcd   : > { %v802_v62 = vsel %vm341_vm0, %v2300_v58, -inf  ;;  %v652_v5 = vpop.f32.mrf.mxu0 }
  0xce   : > { %v707_v63 = vpop.f32.mrf.mxu3  ;;  %803 = vmax.xlane.f32.xlu1 %v802_v62  ;;  %v2307_v6 = vadd.f32 %v2221_v57, %v725_v2  ;;  %v2083_v57 = vmov 0.0   ;;  %v755_v62 = vld [vmem:[#allocation2 + $0x40] sm:$0xff] }
  0xcf   : > { %v726_v3 = vmul.f32 0.35355338, %v707_v63  ;;  %342 = vst.msk [vmem:[#allocation4] sm:$0xff] %vm341_vm0, %v2083_v57  ;;  %v2368_v63 = vld [vmem:[#allocation2 + $0x48] sm:$0xff] }
  0xd0   : > { %v671_v49 = vpop.f32.mrf.mxu1  ;;  %v805_v7 = vsel %vm341_vm0, %v2307_v6, -inf  ;;  %325 = vst.msk [vmem:[#allocation3] sm:$0xff] %vm308_vm1, %v2083_v57 }
  0xd1   : > { %v2310_v54 = vadd.f32 %v2229_v1, %v726_v3  ;;  %806 = vmax.xlane.f32.xlu2 %v805_v7  ;;  %326 = vst.msk [vmem:[#allocation3 + $0x8] sm:$0xff] %vm308_vm1, %v2083_v57  ;;  %v747_v1 = vld [vmem:[#allocation2] sm:$0xff] }
  0xd2   : > { %327 = vst.msk [vmem:[#allocation3 + $0x10] sm:$0xff] %vm308_vm1, %v2083_v57 }
  0xd3   : > { %v808_v8 = vsel %vm341_vm0, %v2310_v54, -inf  ;;  %v690_v9 = vpop.f32.mrf.mxu2  ;;  %328 = vst.msk [vmem:[#allocation3 + $0x18] sm:$0xff] %vm308_vm1, %v2083_v57 }
  0xd4   : > { %809 = vmax.xlane.f32.xlu0 %v808_v8  ;;  %329 = vst.msk [vmem:[#allocation3 + $0x20] sm:$0xff] %vm308_vm1, %v2083_v57  ;;  %v757_v8 = vld [vmem:[#allocation2 + $0x50] sm:$0xff] }
  0xd5   : > { %330 = vst.msk [vmem:[#allocation3 + $0x28] sm:$0xff] %vm308_vm1, %v2083_v57 }
  0xd6   : > { %v709_v10 = vpop.f32.mrf.mxu3  ;;  %331 = vst.msk [vmem:[#allocation3 + $0x30] sm:$0xff] %vm308_vm1, %v2083_v57 }
  0xd7   : > { %332 = vst.msk [vmem:[#allocation3 + $0x38] sm:$0xff] %vm308_vm1, %v2083_v57 }
  0xd8   : > { %333 = vst.msk [vmem:[#allocation3 + $0x40] sm:$0xff] %vm308_vm1, %v2083_v57 }
  0xd9   : > { %334 = vst.msk [vmem:[#allocation3 + $0x48] sm:$0xff] %vm308_vm1, %v2083_v57 }
  0xda   : > { %335 = vst.msk [vmem:[#allocation3 + $0x50] sm:$0xff] %vm308_vm1, %v2083_v57 }
  0xdb   : > { %336 = vst.msk [vmem:[#allocation3 + $0x58] sm:$0xff] %vm308_vm1, %v2083_v57 }
  0xdc   : > { %337 = vst.msk [vmem:[#allocation3 + $0x60] sm:$0xff] %vm308_vm1, %v2083_v57 }
  0xdd   : > { %338 = vst.msk [vmem:[#allocation3 + $0x68] sm:$0xff] %vm308_vm1, %v2083_v57 }
  0xde   : > { %339 = vst.msk [vmem:[#allocation3 + $0x70] sm:$0xff] %vm308_vm1, %v2083_v57 }
  0xdf   : > { %340 = vst.msk [vmem:[#allocation3 + $0x78] sm:$0xff] %vm308_vm1, %v2083_v57 }
  0xe0   : > { %343 = vst.msk [vmem:[#allocation4 + $0x8] sm:$0xff] %vm341_vm0, %v2083_v57 }
  0xe1   : > { %344 = vst.msk [vmem:[#allocation4 + $0x10] sm:$0xff] %vm341_vm0, %v2083_v57 }
  0xe2   : > { %345 = vst.msk [vmem:[#allocation4 + $0x18] sm:$0xff] %vm341_vm0, %v2083_v57 }
  0xe3   : > { %346 = vst.msk [vmem:[#allocation4 + $0x20] sm:$0xff] %vm341_vm0, %v2083_v57 }
  0xe4   : > { %347 = vst.msk [vmem:[#allocation4 + $0x28] sm:$0xff] %vm341_vm0, %v2083_v57 }
  0xe5   : > { %348 = vst.msk [vmem:[#allocation4 + $0x30] sm:$0xff] %vm341_vm0, %v2083_v57 }
  0xe6   : > { %349 = vst.msk [vmem:[#allocation4 + $0x38] sm:$0xff] %vm341_vm0, %v2083_v57 }
  0xe7   : > { %350 = vst.msk [vmem:[#allocation4 + $0x40] sm:$0xff] %vm341_vm0, %v2083_v57 }
  0xe8   : > { %351 = vst.msk [vmem:[#allocation4 + $0x48] sm:$0xff] %vm341_vm0, %v2083_v57 }
  0xe9   : > { %352 = vst.msk [vmem:[#allocation4 + $0x50] sm:$0xff] %vm341_vm0, %v2083_v57 }
  0xea   : > { %353 = vst.msk [vmem:[#allocation4 + $0x58] sm:$0xff] %vm341_vm0, %v2083_v57 }
  0xeb   : > { %354 = vst.msk [vmem:[#allocation4 + $0x60] sm:$0xff] %vm341_vm0, %v2083_v57 }
  0xec   : > { %355 = vst.msk [vmem:[#allocation4 + $0x68] sm:$0xff] %vm341_vm0, %v2083_v57 }
  0xed   : > { %356 = vst.msk [vmem:[#allocation4 + $0x70] sm:$0xff] %vm341_vm0, %v2083_v57 }
  0xee   : > { %357 = vst.msk [vmem:[#allocation4 + $0x78] sm:$0xff] %vm341_vm0, %v2083_v57 }
 0x10e   : > { %v765_v13 = vpop.xlane.xlu0 %764 }
 0x10f   : > { %v811_v14 = vmax.f32 %v747_v1, %v765_v13 }
 0x111   : > { %v827_v15 = vsub.f32 %v747_v1, %v811_v14  ;;  %1581 = vst.msk [vmem:[#allocation2] sm:$0xff] %vm308_vm1, %v811_v14  ;;  %877 = vperm.xlu1 %1958, %v811_v14  }
 0x113   : > { %v843_v18 = vmul.f32 1.442695, %v827_v15 }
 0x114   : > { %v771_v19 = vpop.xlane.xlu1 %770 }
 0x115   : > { %1961 = vpow2.f32 %v843_v18  ;;  %v813_v23 = vmax.f32 %v749_v16, %v771_v19  ;;  %v760_v19 = vld [vmem:[#allocation2 + $0x68] sm:$0xff] }
 0x116   : > { %v768_v24 = vpop.xlane.xlu0 %767 }
 0x117   : > { %v829_v25 = vsub.f32 %v749_v16, %v813_v23  ;;  %1583 = vst.msk [vmem:[#allocation2 + $0x10] sm:$0xff] %vm308_vm1, %v813_v23  ;;  %v812_v26 = vmax.f32 %v748_v20, %v768_v24  ;;  %887 = vperm.xlu0 %1960, %v813_v23   ;;  %v759_v16 = vld [vmem:[#allocation2 + $0x60] sm:$0xff] }
 0x119   : > { %v847_v27 = vmul.f32 1.442695, %v829_v25  ;;  %1582 = vst.msk [vmem:[#allocation2 + $0x8] sm:$0xff] %vm308_vm1, %v812_v26  ;;  %882 = vperm.xlu2 %1959, %v812_v26   ;;  %v828_v59 = vsub.f32 %v748_v20, %v812_v26 }
 0x11b   : > { %v2351_v29 = vpop.eup %1961  ;;  %1963 = vpow2.f32 %v847_v27  ;;  %v845_v2 = vmul.f32 1.442695, %v828_v59 }
 0x11c   : > { %1134 = vperm.xlu1 %1958, %v2351_v29   ;;  %v774_v30 = vpop.xlane.xlu1 %773 }
 0x11d   : > { %v814_v32 = vmax.f32 %v750_v28, %v774_v30  ;;  %v761_v30 = vld [vmem:[#allocation2 + $0x70] sm:$0xff] }
 0x11e   : > { %v777_v35 = vpop.xlane.xlu2 %776 }
 0x11f   : > { %1584 = vst.msk [vmem:[#allocation2 + $0x18] sm:$0xff] %vm308_vm1, %v814_v32  ;;  %v815_v36 = vmax.f32 %v751_v31, %v777_v35  ;;  %v830_v46 = vsub.f32 %v750_v28, %v814_v32 }
 0x121   : > { %v2355_v37 = vpop.eup %1963  ;;  %v831_v38 = vsub.f32 %v751_v31, %v815_v36  ;;  %1585 = vst.msk [vmem:[#allocation2 + $0x20] sm:$0xff] %vm308_vm1, %v815_v36  ;;  %892 = vperm.xlu2 %1959, %v814_v32   ;;  %v849_v55 = vmul.f32 1.442695, %v830_v46  ;;  %v762_v31 = vld [vmem:[#allocation2 + $0x78] sm:$0xff] }
 0x122   : > { %1144 = vperm.xlu0 %1960, %v2355_v37  }
 0x123   : > { %v851_v40 = vmul.f32 1.442695, %v831_v38 }
 0x124   : > { %897 = vperm.xlu1 %1958, %v815_v36   ;;  %v783_v45 = vpop.xlane.xlu0 %782 }
 0x125   : > { %1965 = vpow2.f32 %v851_v40  ;;  %v817_v47 = vmax.f32 %v753_v39, %v783_v45 }
 0x126   : > { %v780_v50 = vpop.xlane.xlu2 %779  ;;  %1967 = vpow2.f32 %v849_v55 }
 0x127   : > { %v786_v48 = vpop.xlane.xlu1 %785  ;;  %v816_v52 = vmax.f32 %v752_v42, %v780_v50  ;;  %1587 = vst.msk [vmem:[#allocation2 + $0x30] sm:$0xff] %vm308_vm1, %v817_v47  ;;  %1969 = vpow2.f32 %v845_v2  ;;  %v833_v18 = vsub.f32 %v753_v39, %v817_v47 }
 0x128   : > { %v818_v51 = vmax.f32 %v2359_v41, %v786_v48 }
 0x129   : > { %1586 = vst.msk [vmem:[#allocation2 + $0x28] sm:$0xff] %vm308_vm1, %v816_v52  ;;  %902 = vperm.xlu2 %1959, %v816_v52   ;;  %v832_v15 = vsub.f32 %v752_v42, %v816_v52  ;;  %v855_v27 = vmul.f32 1.442695, %v833_v18  ;;  %v393_v18 = vld [vmem:[%s2406_s6 + $0xc] sm:$0xf] }
 0x12a   : > { %1588 = vst.msk [vmem:[#allocation2 + $0x38] sm:$0xff] %vm308_vm1, %v818_v51  ;;  %v834_v28 = vsub.f32 %v2359_v41, %v818_v51 }
 0x12b   : > { %v2365_v61 = vpop.eup %1965  ;;  %v853_v20 = vmul.f32 1.442695, %v832_v15 }
 0x12c   : > { %907 = vperm.xlu1 %1958, %v817_v47   ;;  %1154 = vperm.xlu0 %1960, %v2365_v61   ;;  %v2373_v9 = vpop.eup %1967  ;;  %v857_v36 = vmul.f32 1.442695, %v834_v28 }
 0x12d   : > { %v2377_v14 = vpop.eup %1969  ;;  %1971 = vpow2.f32 %v853_v20 }
 0x12e   : > { %v789_v3 = vpop.xlane.xlu2 %788  ;;  %1973 = vpow2.f32 %v855_v27 }
 0x12f   : > { %v819_v49 = vmax.f32 %v755_v62, %v789_v3  ;;  %1975 = vpow2.f32 %v857_v36 }
 0x131   : > { %v792_v5 = vpop.xlane.xlu0 %791  ;;  %912 = vperm.xlu2 %1959, %v818_v51   ;;  %1589 = vst.msk [vmem:[#allocation2 + $0x40] sm:$0xff] %vm308_vm1, %v819_v49  ;;  %v835_v42 = vsub.f32 %v755_v62, %v819_v49 }
 0x132   : > { %v820_v7 = vmax.f32 %v2368_v63, %v792_v5 }
 0x133   : > { %v2385_v40 = vpop.eup %1971  ;;  %v859_v47 = vmul.f32 1.442695, %v835_v42 }
 0x134   : > { %1590 = vst.msk [vmem:[#allocation2 + $0x48] sm:$0xff] %vm308_vm1, %v820_v7  ;;  %1149 = vperm.xlu1 %1958, %v2373_v9   ;;  %922 = vperm.xlu0 %1960, %v820_v7   ;;  %v795_v10 = vpop.xlane.xlu1 %794  ;;  %v2389_v45 = vpop.eup %1973  ;;  %v836_v46 = vsub.f32 %v2368_v63, %v820_v7 }
 0x135   : > { %v821_v57 = vmax.f32 %v757_v8, %v795_v10  ;;  %v2393_v50 = vpop.eup %1975  ;;  %1977 = vpow2.f32 %v859_v47 }
 0x136   : > { %v861_v52 = vmul.f32 1.442695, %v836_v46 }
 0x137   : > { %v798_v1 = vpop.xlane.xlu2 %797  ;;  %1591 = vst.msk [vmem:[#allocation2 + $0x50] sm:$0xff] %vm308_vm1, %v821_v57  ;;  %v837_v41 = vsub.f32 %v757_v8, %v821_v57  ;;  %v391_v8 = vld [vmem:[%s2406_s6 + $0x4] sm:$0xf] }
 0x138   : > { %v822_v13 = vmax.f32 %v758_v11, %v798_v1 }
 0x139   : > { %1139 = vperm.xlu2 %1959, %v2377_v14   ;;  %v863_v48 = vmul.f32 1.442695, %v837_v41 }
 0x13a   : > { %1592 = vst.msk [vmem:[#allocation2 + $0x58] sm:$0xff] %vm308_vm1, %v822_v13  ;;  %v838_v55 = vsub.f32 %v758_v11, %v822_v13  ;;  %v1268_v11 = vsel %vm1247_vm2, %v391_v8, 0 }
 0x13b   : > { %1979 = vpow2.f32 %v863_v48  ;;  %v2396_v3 = vpop.eup %1977  ;;  %1277 = vmatpush.bf16.msra.mxu1 %v1268_v11  ;;  %v394_v48 = vld [vmem:[%s2406_s6 + $0x10] sm:$0xf] }
 0x13c   : > { %917 = vperm.xlu1 %1958, %v819_v49   ;;  %1981 = vpow2.f32 %v861_v52  ;;  %v865_v2 = vmul.f32 1.442695, %v838_v55 }
 0x13e   : > { %v801_v23 = vpop.xlane.xlu0 %800 }
 0x13f   : > { %v823_v24 = vmax.f32 %v759_v16, %v801_v23 }
 0x141   : > { %v804_v25 = vpop.xlane.xlu1 %803  ;;  %1593 = vst.msk [vmem:[#allocation2 + $0x60] sm:$0xff] %vm308_vm1, %v823_v24  ;;  %927 = vperm.xlu2 %1959, %v821_v57   ;;  %937 = vperm.xlu0 %1960, %v823_v24   ;;  %v839_v62 = vsub.f32 %v759_v16, %v823_v24  ;;  %v2398_v63 = vpop.eup %1979  ;;  %v390_v24 = vld [vmem:[%s2406_s6] sm:$0xf] }
 0x142   : > { %v824_v26 = vmax.f32 %v760_v19, %v804_v25  ;;  %v2408_v7 = vpop.eup %1981  ;;  %v395_v25 = vld [vmem:[%s2406_s6 + $0x14] sm:$0xf] }
 0x143   : > { %v867_v5 = vmul.f32 1.442695, %v839_v62  ;;  %v1344_v27 = vsel %vm1247_vm2, %v395_v25, 0 }
 0x144   : > { %1594 = vst.msk [vmem:[#allocation2 + $0x68] sm:$0xff] %vm308_vm1, %v824_v26  ;;  %932 = vperm.xlu1 %1958, %v822_v13   ;;  %v807_v32 = vpop.xlane.xlu2 %806  ;;  %v840_v51 = vsub.f32 %v760_v19, %v824_v26  ;;  %v1306_v19 = vsel %vm1247_vm2, %v393_v18, 0  ;;  %1353 = vmatpush.bf16.msrb.mxu1 %v1344_v27  ;;  %v399_v27 = vld [vmem:[%s2406_s6 + $0x24] sm:$0xf] }
 0x145   : > { %v825_v35 = vmax.f32 %v761_v30, %v807_v32  ;;  %1315 = vmatpush.bf16.msra.mxu3 %v1306_v19 }
 0x146   : > { %v869_v59 = vmul.f32 1.442695, %v840_v51 }
 0x147   : > { %v810_v38 = vpop.xlane.xlu0 %809  ;;  %1595 = vst.msk [vmem:[#allocation2 + $0x70] sm:$0xff] %vm308_vm1, %v825_v35  ;;  %v841_v49 = vsub.f32 %v761_v30, %v825_v35  ;;  %v392_v30 = vld [vmem:[%s2406_s6 + $0x8] sm:$0xf] }
 0x148   : > { %v826_v39 = vmax.f32 %v762_v31, %v810_v38  ;;  %1983 = vpow2.f32 %v869_v59  ;;  %v1287_v32 = vsel %vm1247_vm2, %v392_v30, 0 }
 0x149   : > { %1159 = vperm.xlu2 %1959, %v2385_v40   ;;  %1985 = vpow2.f32 %v865_v2  ;;  %v871_v1 = vmul.f32 1.442695, %v841_v49  ;;  %1296 = vmatpush.bf16.msra.mxu2 %v1287_v32  ;;  %v396_v49 = vld [vmem:[%s2406_s6 + $0x18] sm:$0xf] }
 0x14a   : > { %1596 = vst.msk [vmem:[#allocation2 + $0x78] sm:$0xff] %vm308_vm1, %v826_v39  ;;  %952 = vperm.xlu0 %1960, %v826_v39   ;;  %1987 = vpow2.f32 %v867_v5  ;;  %v842_v10 = vsub.f32 %v762_v31, %v826_v39 }
 0x14b   : > { %1989 = vpow2.f32 %v871_v1 }
 0x14c   : > { %1164 = vperm.xlu1 %1958, %v2389_v45   ;;  %v873_v15 = vmul.f32 1.442695, %v842_v10  ;;  %v1363_v10 = vsel %vm1247_vm2, %v396_v49, 0  ;;  %v403_v49 = vld [vmem:[%s2406_s6 + $0x34] sm:$0xf] }
 0x14d   : > { %1372 = vmatpush.bf16.msrb.mxu2 %v1363_v10 }
 0x14e   : > { %v2413_v57 = vpop.eup %1983  ;;  %1991 = vpow2.f32 %v873_v15 }
 0x14f   : > { %v2415_v13 = vpop.eup %1985 }
 0x150   : > { %v2419_v16 = vpop.eup %1987 }
 0x151   : > { %942 = vperm.xlu2 %1959, %v824_v26   ;;  %v2424_v20 = vpop.eup %1989  ;;  %v1249_v26 = vsel %vm1247_vm2, %v390_v24, 0 }
 0x152   : > { %1169 = vperm.xlu0 %1960, %v2393_v50   ;;  %1258 = vmatpush.bf16.msra.mxu0 %v1249_v26 }
 0x154   : > { %947 = vperm.xlu1 %1958, %v825_v35   ;;  %v2427_v23 = vpop.eup %1991  ;;  %v397_v35 = vld [vmem:[%s2406_s6 + $0x1c] sm:$0xf] }
 0x155   : > { %v1382_v38 = vsel %vm1247_vm2, %v397_v35, 0 }
 0x156   : > { %1391 = vmatpush.bf16.msrb.mxu3 %v1382_v38 }
 0x159   : > { %1174 = vperm.xlu2 %1959, %v2396_v3  }
 0x15a   : > { %1184 = vperm.xlu0 %1960, %v2398_v63  }
 0x15c   : > { %1179 = vperm.xlu1 %1958, %v2408_v7  }
 0x161   : > { %1189 = vperm.xlu2 %1959, %v2415_v13  }
 0x162   : > { %1199 = vperm.xlu0 %1960, %v2413_v57  }
 0x164   : > { %1194 = vperm.xlu1 %1958, %v2419_v16  }
 0x169   : > { %1204 = vperm.xlu2 %1959, %v2424_v20  }
 0x16c   : > { %1209 = vperm.xlu1 %1958, %v2427_v23  }
 0x173   : > { %v883_v28 = vpop.permute.xlu2 %882 }
 0x174   : > { %v956_v31 = vsub.f32 %v2224_v60, %v883_v28  ;;  %v1325_v60 = vsel %vm1247_vm2, %v394_v48, 0  ;;  %v400_v48 = vld [vmem:[%s2406_s6 + $0x28] sm:$0xf] }
 0x175   : > { %1334 = vmatpush.bf16.msrb.mxu0 %v1325_v60 }
 0x176   : > { %v973_v36 = vmul.f32 1.442695, %v956_v31 }
 0x178   : > { %1993 = vpow2.f32 %v973_v36 }
 0x17b   : > { %v893_v39 = vpop.permute.xlu2 %892 }
 0x17c   : > { %v958_v42 = vsub.f32 %v2236_v4, %v893_v39 }
 0x17e   : > { %v1994_v41 = vpop.eup %1993  ;;  %v977_v46 = vmul.f32 1.442695, %v958_v42 }
 0x17f   : > { %v1229_v47 = vpack.c.bf16 %v1994_v41, %v1994_v41  ;;  %v1038_v35 = vsel %vm341_vm0, %v1994_v41, 0.0 }
 0x180   : > { %1995 = vpow2.f32 %v977_v46 }
 0x181   : > { %1909 = vmatmul.msk.bf16.vlgmr.msra.gmra.mxu1 %vm341_vm0, %v1229_v47  ;;  %v398_v47 = vld [vmem:[%s2406_s6 + $0x20] sm:$0xf] }
 0x183   : > { %v878_v51 = vpop.permute.xlu1 %877  ;;  %v903_v52 = vpop.permute.xlu2 %902 }
 0x184   : > { %v955_v55 = vsub.f32 %v2215_v53, %v878_v51  ;;  %v960_v59 = vsub.f32 %v2246_v17, %v903_v52  ;;  %v1401_v51 = vsel %vm1247_vm2, %v398_v47, 0  ;;  %v1439_v52 = vsel %vm1247_vm2, %v400_v48, 0  ;;  %v404_v47 = vld [vmem:[%s2406_s6 + $0x38] sm:$0xf]  ;;  %v405_v48 = vld [vmem:[%s2406_s6 + $0x3c] sm:$0xf] }
 0x186   : > { %v1996_v62 = vpop.eup %1995  ;;  %v971_v2 = vmul.f32 1.442695, %v955_v55  ;;  %v981_v4 = vmul.f32 1.442695, %v960_v59 }
 0x187   : > { %v1231_v5 = vpack.c.bf16 %v1996_v62, %v1996_v62  ;;  %v1044_v41 = vsel %vm341_vm0, %v1996_v62, 0.0 }
 0x188   : > { %1997 = vpow2.f32 %v971_v2 }
 0x189   : > { %1999 = vpow2.f32 %v981_v4  ;;  %1911 = vmatmul.msk.bf16.vlgmr.msra.gmra.mxu3 %vm341_vm0, %v1231_v5  ;;  %v888_v8 = vpop.permute.xlu0 %887  ;;  %v401_v5 = vld [vmem:[%s2406_s6 + $0x2c] sm:$0xf] }
 0x18a   : > { %v957_v11 = vsub.f32 %v2227_v0, %v888_v8  ;;  %v1420_v0 = vsel %vm1247_vm2, %v399_v27, 0 }
 0x18b   : > { %v913_v1 = vpop.permute.xlu2 %912  ;;  %1429 = vmatpush.bf16.msra.mxu1 %v1420_v0 }
 0x18c   : > { %v975_v53 = vmul.f32 1.442695, %v957_v11  ;;  %v962_v17 = vsub.f32 %v2252_v22, %v913_v1  ;;  %v1458_v11 = vsel %vm1247_vm2, %v401_v5, 0  ;;  %v1496_v1 = vsel %vm1247_vm2, %v403_v49, 0 }
 0x18d   : > { %1467 = vmatpush.bf16.msra.mxu3 %v1458_v11 }
 0x18e   : > { %v1998_v15 = vpop.eup %1997  ;;  %2001 = vpow2.f32 %v975_v53  ;;  %v985_v18 = vmul.f32 1.442695, %v962_v17  ;;  %v2450_v19 = vpop.permute.xlu1 %1134 }
 0x18f   : > { %v2000_v24 = vpop.eup %1999  ;;  %v1228_v25 = vpack.c.bf16 %v1998_v15, %v1998_v15  ;;  %v1035_v28 = vsel %vm341_vm0, %v1998_v15, 0.0 }
 0x190   : > { %v1233_v26 = vpack.c.bf16 %v2000_v24, %v2000_v24  ;;  %2003 = vpow2.f32 %v985_v18  ;;  %v1050_v4 = vsel %vm341_vm0, %v2000_v24, 0.0 }
 0x191   : > { %1908 = vmatmul.msk.bf16.vlgmr.msra.gmra.mxu0 %vm341_vm0, %v1228_v25  ;;  %v402_v25 = vld [vmem:[%s2406_s6 + $0x30] sm:$0xf] }
 0x192   : > { %1913 = vmatmul.msk.bf16.vlgmr.msrb.gmra.mxu1 %vm341_vm0, %v1233_v26  ;;  %1036 = vadd.xlane.f32.xlu2 %v1035_v28  ;;  %v1477_v28 = vsel %vm1247_vm2, %v402_v25, 0 }
 0x193   : > { %v2457_v22 = vpop.permute.xlu2 %1139  ;;  %1410 = vmatpush.bf16.msra.mxu0 %v1401_v51  ;;  %1505 = vmatpush.bf16.msrb.mxu1 %v1496_v1  ;;  %v1534_v51 = vsel %vm1247_vm2, %v405_v48, 0 }
 0x194   : > { %v2002_v30 = vpop.eup %2001  ;;  %v2459_v31 = vpop.permute.xlu0 %1144 }
 0x195   : > { %v1230_v32 = vpack.c.bf16 %v2002_v30, %v2002_v30  ;;  %v1041_v36 = vsel %vm341_vm0, %v2002_v30, 0.0 }
 0x196   : > { %v2004_v38 = vpop.eup %2003  ;;  %v898_v39 = vpop.permute.xlu1 %897  ;;  %1039 = vadd.xlane.f32.xlu1 %v1038_v35  ;;  %1042 = vadd.xlane.f32.xlu0 %v1041_v36 }
 0x197   : > { %v1235_v42 = vpack.c.bf16 %v2004_v38, %v2004_v38  ;;  %v959_v46 = vsub.f32 %v2241_v12, %v898_v39  ;;  %1910 = vmatmul.msk.bf16.vlgmr.msra.gmra.mxu2 %vm341_vm0, %v1230_v32  ;;  %v1056_v30 = vsel %vm341_vm0, %v2004_v38, 0.0 }
 0x198   : > { %1448 = vmatpush.bf16.msra.mxu2 %v1439_v52 }
 0x199   : > { %v979_v60 = vmul.f32 1.442695, %v959_v46  ;;  %1915 = vmatmul.msk.bf16.vlgmr.msrb.gmra.mxu3 %vm341_vm0, %v1235_v42 }
 0x19a   : > { %1045 = vadd.xlane.f32.xlu2 %v1044_v41  ;;  %v1515_v41 = vsel %vm1247_vm2, %v404_v47, 0  ;;  %1543 = vmatpush.bf16.msrb.mxu3 %v1534_v51  ;;  %v1117_v51 = vld [vmem:[#allocation4 + $0x8] sm:$0xff] }
 0x19b   : > { %2005 = vpow2.f32 %v979_v60  ;;  %v928_v55 = vpop.permute.xlu2 %927 }
 0x19c   : > { %v965_v62 = vsub.f32 %v2280_v43, %v928_v55 }
 0x19e   : > { %v908_v12 = vpop.permute.xlu1 %907  ;;  %v2471_v59 = vpop.permute.xlu0 %1154  ;;  %v991_v15 = vmul.f32 1.442695, %v965_v62 }
 0x19f   : > { %v961_v2 = vsub.f32 %v2249_v21, %v908_v12 }
 0x1a1   : > { %v2006_v8 = vpop.eup %2005  ;;  %v983_v10 = vmul.f32 1.442695, %v961_v2 }
 0x1a2   : > { %v1232_v53 = vpack.c.bf16 %v2006_v8, %v2006_v8  ;;  %1051 = vadd.xlane.f32.xlu2 %v1050_v4  ;;  %v1047_v17 = vsel %vm341_vm0, %v2006_v8, 0.0 }
 0x1a3   : > { %2007 = vpow2.f32 %v983_v10  ;;  %v2481_v21 = vpop.permute.xlu2 %1159  ;;  %1048 = vadd.xlane.f32.xlu1 %v1047_v17 }
 0x1a4   : > { %1912 = vmatmul.msk.bf16.vlgmr.msrb.gmra.mxu0 %vm341_vm0, %v1232_v53  ;;  %2009 = vpow2.f32 %v991_v15 }
 0x1a5   : > { %1486 = vmatpush.bf16.msrb.mxu0 %v1477_v28 }
 0x1a6   : > { %v2484_v43 = vpop.permute.xlu1 %1149  ;;  %v923_v18 = vpop.permute.xlu0 %922 }
 0x1a7   : > { %v964_v24 = vsub.f32 %v2268_v34, %v923_v18 }
 0x1a9   : > { %v2008_v26 = vpop.eup %2007  ;;  %v989_v27 = vmul.f32 1.442695, %v964_v24 }
 0x1aa   : > { %v1234_v0 = vpack.c.bf16 %v2008_v26, %v2008_v26  ;;  %v1053_v32 = vsel %vm341_vm0, %v2008_v26, 0.0  ;;  %v2010_v42 = vpop.eup %2009 }
 0x1ab   : > { %2011 = vpow2.f32 %v989_v27  ;;  %v943_v35 = vpop.permute.xlu2 %942  ;;  %1057 = vadd.xlane.f32.xlu1 %v1056_v30  ;;  %1054 = vadd.xlane.f32.xlu0 %v1053_v32  ;;  %v1065_v55 = vsel %vm341_vm0, %v2010_v42, 0.0  ;;  %v1238_v10 = vpack.c.bf16 %v2010_v42, %v2010_v42 }
 0x1ac   : > { %v968_v34 = vsub.f32 %v2300_v58, %v943_v35  ;;  %1914 = vmatmul.msk.bf16.vlgmr.msrb.gmra.mxu2 %vm341_vm0, %v1234_v0 }
 0x1ad   : > { %1524 = vmatpush.bf16.msrb.mxu2 %v1515_v41 }
 0x1ae   : > { %v997_v36 = vmul.f32 1.442695, %v968_v34  ;;  %v918_v39 = vpop.permute.xlu1 %917 }
 0x1af   : > { %v963_v46 = vsub.f32 %v2264_v33, %v918_v39 }
 0x1b0   : > { %2013 = vpow2.f32 %v997_v36 }
 0x1b1   : > { %v2012_v60 = vpop.eup %2011  ;;  %v987_v38 = vmul.f32 1.442695, %v963_v46 }
 0x1b2   : > { %v1237_v52 = vpack.c.bf16 %v2012_v60, %v2012_v60  ;;  %v1062_v58 = vsel %vm341_vm0, %v2012_v60, 0.0 }
 0x1b3   : > { %2015 = vpow2.f32 %v987_v38  ;;  %1066 = vadd.xlane.f32.xlu1 %v1065_v55  ;;  %1063 = vadd.xlane.f32.xlu0 %v1062_v58  ;;  %v938_v33 = vpop.permute.xlu0 %937  ;;  %v2520_v47 = vpop.permute.xlu2 %1174 }
 0x1b4   : > { %v967_v12 = vsub.f32 %v2297_v56, %v938_v33  ;;  %1917 = vmatmul.msk.bf16.vlgmr.msra.gmra.mxu1 %vm341_vm0, %v1237_v52  ;;  %v1213_v52 = vmul.f32 %v2457_v22, %v1117_v51 }
 0x1b6   : > { %v995_v2 = vmul.f32 1.442695, %v967_v12  ;;  %v933_v4 = vpop.permute.xlu1 %932  ;;  %v2014_v5 = vpop.eup %2013 }
 0x1b7   : > { %v966_v49 = vsub.f32 %v2284_v44, %v933_v4  ;;  %v1074_v53 = vsel %vm341_vm0, %v2014_v5, 0.0  ;;  %v1241_v26 = vpack.c.bf16 %v2014_v5, %v2014_v5  ;;  %v1003_v4 = vld [vmem:[#allocation3] sm:$0xff] }
 0x1b8   : > { %2017 = vpow2.f32 %v995_v2  ;;  %v1019_v5 = vmul.f32 %v2351_v29, %v1003_v4 }
 0x1b9   : > { %v2016_v8 = vpop.eup %2015  ;;  %v993_v62 = vmul.f32 1.442695, %v966_v49 }
 0x1ba   : > { %v1236_v11 = vpack.c.bf16 %v2016_v8, %v2016_v8  ;;  %v1059_v1 = vsel %vm341_vm0, %v2016_v8, 0.0  ;;  %v1004_v8 = vld [vmem:[#allocation3 + $0x8] sm:$0xff] }
 0x1bb   : > { %2019 = vpow2.f32 %v993_v62  ;;  %1060 = vadd.xlane.f32.xlu2 %v1059_v1  ;;  %1075 = vadd.xlane.f32.xlu1 %v1074_v53  ;;  %v2526_v60 = vpop.permute.xlu2 %1189  ;;  %v1005_v62 = vld [vmem:[#allocation3 + $0x10] sm:$0xff]  ;;  %v1119_v1 = vld [vmem:[#allocation4 + $0x18] sm:$0xff]  ;;  %v1020_v22 = vmul.f32 %v2377_v14, %v1004_v8 }
 0x1bc   : > { %v953_v56 = vpop.permute.xlu0 %952  ;;  %1916 = vmatmul.msk.bf16.vlgmr.msra.gmra.mxu0 %vm341_vm0, %v1236_v11  ;;  %1918 = vmatmul.msk.bf16.vlgmr.msra.gmra.mxu2 %vm341_vm0, %v1238_v10  ;;  %v1021_v53 = vmul.f32 %v2355_v37, %v1005_v62  ;;  %v1215_v29 = vmul.f32 %v2484_v43, %v1119_v1 }
 0x1bd   : > { %v970_v17 = vsub.f32 %v2310_v54, %v953_v56 }
 0x1be   : > { %v2018_v44 = vpop.eup %2017  ;;  %v2508_v18 = vpop.permute.xlu1 %1164 }
 0x1bf   : > { %v1001_v15 = vmul.f32 1.442695, %v970_v17  ;;  %v1071_v24 = vsel %vm341_vm0, %v2018_v44, 0.0  ;;  %v1240_v34 = vpack.c.bf16 %v2018_v44, %v2018_v44  ;;  %v1006_v44 = vld [vmem:[#allocation3 + $0x18] sm:$0xff] }
 0x1c0   : > { %1072 = vadd.xlane.f32.xlu0 %v1071_v24 }
 0x1c1   : > { %2021 = vpow2.f32 %v1001_v15  ;;  %v2020_v25 = vpop.eup %2019  ;;  %v1116_v15 = vld [vmem:[#allocation4] sm:$0xff] }
 0x1c2   : > { %v1239_v27 = vpack.c.bf16 %v2020_v25, %v2020_v25  ;;  %v1068_v28 = vsel %vm341_vm0, %v2020_v25, 0.0 }
 0x1c3   : > { %1069 = vadd.xlane.f32.xlu2 %v1068_v28  ;;  %v2533_v55 = vpop.permute.xlu2 %1204  ;;  %v1022_v28 = vmul.f32 %v2373_v9, %v1006_v44  ;;  %v1008_v9 = vld [vmem:[#allocation3 + $0x28] sm:$0xff] }
 0x1c4   : > { %1919 = vmatmul.msk.bf16.vlgmr.msra.gmra.mxu3 %vm341_vm0, %v1239_v27  ;;  %1921 = vmatmul.msk.bf16.vlgmr.msrb.gmra.mxu1 %vm341_vm0, %v1241_v26  ;;  %v1121_v26 = vld [vmem:[#allocation4 + $0x28] sm:$0xff] }
 0x1c6   : > { %v948_v0 = vpop.permute.xlu1 %947 }
 0x1c7   : > { %v2022_v54 = vpop.eup %2021  ;;  %v969_v30 = vsub.f32 %v2307_v6, %v948_v0  ;;  %v2522_v6 = vpop.permute.xlu0 %1169  ;;  %v1217_v0 = vmul.f32 %v2481_v21, %v1121_v26  ;;  %v1024_v21 = vmul.f32 %v2385_v40, %v1008_v9 }
 0x1c8   : > { %v1080_v32 = vsel %vm341_vm0, %v2022_v54, 0.0  ;;  %v1243_v39 = vpack.c.bf16 %v2022_v54, %v2022_v54  ;;  %v1212_v54 = vmul.f32 %v2450_v19, %v1116_v15  ;;  %v1007_v19 = vld [vmem:[#allocation3 + $0x20] sm:$0xff] }
 0x1c9   : > { %1081 = vadd.xlane.f32.xlu0 %v1080_v32  ;;  %v999_v35 = vmul.f32 1.442695, %v969_v30 }
 0x1cb   : > { %2023 = vpow2.f32 %v999_v35 }
 0x1cc   : > { %1920 = vmatmul.msk.bf16.vlgmr.msrb.gmra.mxu0 %vm341_vm0, %v1240_v34 }
 0x1ce   : > { %v2524_v48 = vpop.permute.xlu1 %1179 }
 0x1cf   : > { %v2528_v38 = vpop.permute.xlu0 %1184 }
 0x1d1   : > { %v2024_v36 = vpop.eup %2023 }
 0x1d2   : > { %v1242_v42 = vpack.c.bf16 %v2024_v36, %v2024_v36  ;;  %v1077_v46 = vsel %vm341_vm0, %v2024_v36, 0.0 }
 0x1d3   : > { %1078 = vadd.xlane.f32.xlu2 %v1077_v46 }
 0x1d4   : > { %1922 = vmatmul.msk.bf16.vlgmr.msrb.gmra.mxu2 %vm341_vm0, %v1242_v42  ;;  %1923 = vmatmul.msk.bf16.vlgmr.msrb.gmra.mxu3 %vm341_vm0, %v1243_v39 }
 0x1d6   : > { %v2530_v41 = vpop.permute.xlu1 %1194 }
 0x1d7   : > { %v2535_v12 = vpop.permute.xlu0 %1199 }
 0x1de   : > { %v2537_v2 = vpop.permute.xlu1 %1209 }
 0x1fe   : > { %v1279_v58 = vpop.f32.mrf.mxu1 }
 0x1ff   : > { %v1550_v33 = vadd.f32 %v1279_v58, %v1213_v52  ;;  %v1023_v52 = vmul.f32 %v2365_v61, %v1007_v19 }
 0x201   : > { %1566 = vst.msk [vmem:[#allocation4 + $0x8] sm:$0xff] %vm341_vm0, %v1550_v33  ;;  %v1118_v33 = vld [vmem:[#allocation4 + $0x10] sm:$0xff] }
 0x202   : > { %v1214_v40 = vmul.f32 %v2459_v31, %v1118_v33  ;;  %v1125_v33 = vld [vmem:[#allocation4 + $0x48] sm:$0xff] }
 0x205   : > { %v1037_v49 = vpop.xlane.xlu2 %1036 }
 0x206   : > { %v1083_v10 = vadd.f32 %v1037_v49, %v1019_v5  ;;  %v1281_v11 = vpop.f32.mrf.mxu1 }
 0x207   : > { %v1123_v11 = vld [vmem:[#allocation4 + $0x38] sm:$0xff] }
 0x208   : > { %1100 = vst.msk [vmem:[#allocation3] sm:$0xff] %vm308_vm1, %v1083_v10 }
 0x209   : > { %v1040_v56 = vpop.xlane.xlu1 %1039  ;;  %v1043_v17 = vpop.xlane.xlu0 %1042 }
 0x20a   : > { %v1084_v24 = vadd.f32 %v1040_v56, %v1020_v22  ;;  %v1085_v25 = vadd.f32 %v1043_v17, %v1021_v53  ;;  %v1010_v22 = vld [vmem:[#allocation3 + $0x38] sm:$0xff]  ;;  %v1009_v53 = vld [vmem:[#allocation3 + $0x30] sm:$0xff]  ;;  %v1219_v17 = vmul.f32 %v2522_v6, %v1123_v11 }
 0x20b   : > { %v1026_v26 = vmul.f32 %v2393_v50, %v1010_v22  ;;  %v1025_v31 = vmul.f32 %v2389_v45, %v1009_v53  ;;  %v1221_v53 = vmul.f32 %v2524_v48, %v1125_v33 }
 0x20c   : > { %1101 = vst.msk [vmem:[#allocation3 + $0x8] sm:$0xff] %vm308_vm1, %v1084_v24  ;;  %v1317_v27 = vpop.f32.mrf.mxu3  ;;  %v1120_v24 = vld [vmem:[#allocation4 + $0x20] sm:$0xff] }
 0x20d   : > { %1102 = vst.msk [vmem:[#allocation3 + $0x10] sm:$0xff] %vm308_vm1, %v1085_v25  ;;  %v1552_v14 = vadd.f32 %v1317_v27, %v1215_v29  ;;  %v1046_v37 = vpop.xlane.xlu2 %1045 }
 0x20e   : > { %v1086_v30 = vadd.f32 %v1046_v37, %v1022_v28  ;;  %v1260_v32 = vpop.f32.mrf.mxu0  ;;  %v1216_v37 = vmul.f32 %v2471_v59, %v1120_v24 }
 0x20f   : > { %1568 = vst.msk [vmem:[#allocation4 + $0x18] sm:$0xff] %vm341_vm0, %v1552_v14  ;;  %v1549_v35 = vadd.f32 %v1260_v32, %v1212_v54  ;;  %v1355_v34 = vpop.f32.mrf.mxu1  ;;  %v1616_v43 = vld [vmem:[#allocation3] sm:$0xff]  ;;  %v1013_v32 = vld [vmem:[#allocation3 + $0x50] sm:$0xff] }
 0x210   : > { %1103 = vst.msk [vmem:[#allocation3 + $0x18] sm:$0xff] %vm308_vm1, %v1086_v30  ;;  %v1554_v36 = vadd.f32 %v1355_v34, %v1217_v0  ;;  %2025 = vrcp.f32 %v1616_v43  ;;  %v1029_v43 = vmul.f32 %v2398_v63, %v1013_v32  ;;  %v1016_v63 = vld [vmem:[#allocation3 + $0x68] sm:$0xff] }
 0x211   : > { %1565 = vst.msk [vmem:[#allocation4] sm:$0xff] %vm341_vm0, %v1549_v35  ;;  %v1012_v35 = vld [vmem:[#allocation3 + $0x48] sm:$0xff] }
 0x212   : > { %1570 = vst.msk [vmem:[#allocation4 + $0x28] sm:$0xff] %vm341_vm0, %v1554_v36  ;;  %v1028_v36 = vmul.f32 %v2408_v7, %v1012_v35  ;;  %v1122_v7 = vld [vmem:[#allocation4 + $0x30] sm:$0xff] }
 0x213   : > { %v1617_v39 = vld [vmem:[#allocation3 + $0x8] sm:$0xff] }
 0x214   : > { %v1319_v42 = vpop.f32.mrf.mxu3  ;;  %2027 = vrcp.f32 %v1617_v39  ;;  %v1618_v46 = vld [vmem:[#allocation3 + $0x10] sm:$0xff] }
 0x215   : > { %v1052_v51 = vpop.xlane.xlu2 %1051  ;;  %2029 = vrcp.f32 %v1618_v46 }
 0x216   : > { %v2026_v58 = vpop.eup %2025  ;;  %v1088_v4 = vadd.f32 %v1052_v51, %v1024_v21  ;;  %v1049_v5 = vpop.xlane.xlu1 %1048 }
 0x217   : > { %v1262_v49 = vpop.f32.mrf.mxu0  ;;  %v1357_v8 = vpop.f32.mrf.mxu1  ;;  %v1087_v62 = vadd.f32 %v1049_v5, %v1023_v52  ;;  %1650 = vperm.xlu0 %1960, %v2026_v58   ;;  %v1619_v10 = vld [vmem:[#allocation3 + $0x18] sm:$0xff]  ;;  %v1011_v58 = vld [vmem:[#allocation3 + $0x40] sm:$0xff]  ;;  %v1032_v5 = vmul.f32 %v2413_v57, %v1016_v63 }
 0x218   : > { %1105 = vst.msk [vmem:[#allocation3 + $0x28] sm:$0xff] %vm308_vm1, %v1088_v4  ;;  %2031 = vrcp.f32 %v1619_v10  ;;  %v1027_v4 = vmul.f32 %v2396_v3, %v1011_v58  ;;  %v1218_v49 = vmul.f32 %v2508_v18, %v1122_v7  ;;  %v1128_v58 = vld [vmem:[#allocation4 + $0x60] sm:$0xff] }
 0x219   : > { %1104 = vst.msk [vmem:[#allocation3 + $0x20] sm:$0xff] %vm308_vm1, %v1087_v62 }
 0x21a   : > { %v2028_v1 = vpop.eup %2027  ;;  %v1298_v61 = vpop.f32.mrf.mxu2 }
 0x21b   : > { %v2030_v56 = vpop.eup %2029  ;;  %v1551_v44 = vadd.f32 %v1298_v61, %v1214_v40  ;;  %1655 = vperm.xlu2 %1959, %v2028_v1   ;;  %v1015_v61 = vld [vmem:[#allocation3 + $0x60] sm:$0xff] }
 0x21c   : > { %1660 = vperm.xlu1 %1958, %v2030_v56   ;;  %v1393_v15 = vpop.f32.mrf.mxu3 }
 0x21d   : > { %1567 = vst.msk [vmem:[#allocation4 + $0x10] sm:$0xff] %vm341_vm0, %v1551_v44  ;;  %v1556_v25 = vadd.f32 %v1393_v15, %v1219_v17  ;;  %v1031_v44 = vmul.f32 %v2419_v16, %v1015_v61  ;;  %v1014_v15 = vld [vmem:[#allocation3 + $0x58] sm:$0xff] }
 0x21e   : > { %v2032_v29 = vpop.eup %2031  ;;  %v1058_v27 = vpop.xlane.xlu1 %1057 }
 0x21f   : > { %v1055_v28 = vpop.xlane.xlu0 %1054  ;;  %1572 = vst.msk [vmem:[#allocation4 + $0x38] sm:$0xff] %vm341_vm0, %v1556_v25  ;;  %v1090_v54 = vadd.f32 %v1058_v27, %v1026_v26  ;;  %1665 = vperm.xlu0 %1960, %v2032_v29   ;;  %v1621_v6 = vld [vmem:[#allocation3 + $0x28] sm:$0xff]  ;;  %v1124_v25 = vld [vmem:[#allocation4 + $0x40] sm:$0xff]  ;;  %v1030_v26 = vmul.f32 %v2415_v13, %v1014_v15 }
 0x220   : > { %v1089_v14 = vadd.f32 %v1055_v28, %v1025_v31  ;;  %2033 = vrcp.f32 %v1621_v6  ;;  %v1620_v0 = vld [vmem:[#allocation3 + $0x20] sm:$0xff]  ;;  %v1220_v16 = vmul.f32 %v2520_v47, %v1124_v25 }
 0x221   : > { %1107 = vst.msk [vmem:[#allocation3 + $0x38] sm:$0xff] %vm308_vm1, %v1090_v54  ;;  %v1336_v30 = vpop.f32.mrf.mxu0  ;;  %2035 = vrcp.f32 %v1620_v0  ;;  %v1018_v54 = vld [vmem:[#allocation3 + $0x78] sm:$0xff] }
 0x222   : > { %1106 = vst.msk [vmem:[#allocation3 + $0x30] sm:$0xff] %vm308_vm1, %v1089_v14  ;;  %v1553_v45 = vadd.f32 %v1336_v30, %v1216_v37  ;;  %v1300_v50 = vpop.f32.mrf.mxu2 }
 0x223   : > { %v1126_v50 = vld [vmem:[#allocation4 + $0x50] sm:$0xff] }
 0x224   : > { %1569 = vst.msk [vmem:[#allocation4 + $0x20] sm:$0xff] %vm341_vm0, %v1553_v45  ;;  %v1395_v34 = vpop.f32.mrf.mxu3  ;;  %v1034_v45 = vmul.f32 %v2427_v23, %v1018_v54 }
 0x225   : > { %v1129_v34 = vld [vmem:[#allocation4 + $0x68] sm:$0xff] }
 0x226   : > { %v2034_v59 = vpop.eup %2033  ;;  %v1067_v9 = vpop.xlane.xlu1 %1066 }
 0x227   : > { %v1064_v19 = vpop.xlane.xlu0 %1063  ;;  %v2036_v39 = vpop.eup %2035  ;;  %v1093_v42 = vadd.f32 %v1067_v9, %v1029_v43  ;;  %1675 = vperm.xlu1 %1958, %v2034_v59   ;;  %v1222_v43 = vmul.f32 %v2528_v38, %v1126_v50  ;;  %v1127_v38 = vld [vmem:[#allocation4 + $0x58] sm:$0xff] }
 0x228   : > { %v1092_v21 = vadd.f32 %v1064_v19, %v1028_v36  ;;  %1670 = vperm.xlu2 %1959, %v2036_v39   ;;  %v1623_v46 = vld [vmem:[#allocation3 + $0x38] sm:$0xff]  ;;  %v1225_v19 = vmul.f32 %v2535_v12, %v1129_v34  ;;  %v1223_v7 = vmul.f32 %v2526_v60, %v1127_v38 }
 0x229   : > { %1110 = vst.msk [vmem:[#allocation3 + $0x50] sm:$0xff] %vm308_vm1, %v1093_v42  ;;  %v1338_v51 = vpop.f32.mrf.mxu0  ;;  %2037 = vrcp.f32 %v1623_v46  ;;  %v1622_v52 = vld [vmem:[#allocation3 + $0x30] sm:$0xff] }
 0x22a   : > { %1109 = vst.msk [vmem:[#allocation3 + $0x48] sm:$0xff] %vm308_vm1, %v1092_v21  ;;  %2039 = vrcp.f32 %v1622_v52  ;;  %v1017_v51 = vld [vmem:[#allocation3 + $0x70] sm:$0xff] }
 0x22b   : > { %v1033_v63 = vmul.f32 %v2424_v20, %v1017_v51 }
 0x22e   : > { %v1061_v8 = vpop.xlane.xlu2 %1060  ;;  %v1076_v62 = vpop.xlane.xlu1 %1075 }
 0x22f   : > { %v2038_v10 = vpop.eup %2037  ;;  %v1091_v11 = vadd.f32 %v1061_v8, %v1027_v4  ;;  %v1096_v40 = vadd.f32 %v1076_v62, %v1032_v5  ;;  %v1374_v1 = vpop.f32.mrf.mxu2  ;;  %v1224_v62 = vmul.f32 %v2530_v41, %v1128_v58  ;;  %v1131_v41 = vld [vmem:[#allocation4 + $0x78] sm:$0xff] }
 0x230   : > { %v2040_v22 = vpop.eup %2039  ;;  %v1555_v56 = vadd.f32 %v1374_v1, %v1218_v49  ;;  %1685 = vperm.xlu2 %1959, %v2038_v10   ;;  %v1626_v17 = vld [vmem:[#allocation3 + $0x50] sm:$0xff] }
 0x231   : > { %1108 = vst.msk [vmem:[#allocation3 + $0x40] sm:$0xff] %vm308_vm1, %v1091_v11  ;;  %1680 = vperm.xlu0 %1960, %v2040_v22   ;;  %v1431_v3 = vpop.f32.mrf.mxu1  ;;  %2041 = vrcp.f32 %v1626_v17  ;;  %v1625_v57 = vld [vmem:[#allocation3 + $0x48] sm:$0xff]  ;;  %v1227_v17 = vmul.f32 %v2537_v2, %v1131_v41 }
 0x232   : > { %1113 = vst.msk [vmem:[#allocation3 + $0x68] sm:$0xff] %vm308_vm1, %v1096_v40  ;;  %v1558_v18 = vadd.f32 %v1431_v3, %v1221_v53  ;;  %2043 = vrcp.f32 %v1625_v57  ;;  %v1130_v53 = vld [vmem:[#allocation4 + $0x70] sm:$0xff] }
 0x233   : > { %1571 = vst.msk [vmem:[#allocation4 + $0x30] sm:$0xff] %vm341_vm0, %v1555_v56  ;;  %v1073_v24 = vpop.xlane.xlu0 %1072  ;;  %v1226_v56 = vmul.f32 %v2533_v55, %v1130_v53  ;;  %v1601_v55 = vld [vmem:[#allocation4 + $0x8] sm:$0xff] }
 0x234   : > { %1574 = vst.msk [vmem:[#allocation4 + $0x48] sm:$0xff] %vm341_vm0, %v1558_v18  ;;  %v1095_v48 = vadd.f32 %v1073_v24, %v1031_v44 }
 0x236   : > { %1112 = vst.msk [vmem:[#allocation3 + $0x60] sm:$0xff] %vm308_vm1, %v1095_v48  ;;  %v1070_v31 = vpop.xlane.xlu2 %1069 }
 0x237   : > { %v2042_v29 = vpop.eup %2041  ;;  %v1094_v27 = vadd.f32 %v1070_v31, %v1030_v26  ;;  %v1376_v28 = vpop.f32.mrf.mxu2  ;;  %v1604_v31 = vld [vmem:[#allocation4 + $0x20] sm:$0xff] }
 0x238   : > { %v2044_v14 = vpop.eup %2043  ;;  %1700 = vperm.xlu2 %1959, %v2042_v29   ;;  %v1624_v6 = vld [vmem:[#allocation3 + $0x40] sm:$0xff] }
 0x239   : > { %1111 = vst.msk [vmem:[#allocation3 + $0x58] sm:$0xff] %vm308_vm1, %v1094_v27  ;;  %1695 = vperm.xlu0 %1960, %v2044_v14   ;;  %v1412_v37 = vpop.f32.mrf.mxu0  ;;  %v1433_v0 = vpop.f32.mrf.mxu1  ;;  %v1629_v30 = vld [vmem:[#allocation3 + $0x68] sm:$0xff]  ;;  %2045 = vrcp.f32 %v1624_v6  ;;  %v1600_v28 = vld [vmem:[#allocation4] sm:$0xff] }
 0x23a   : > { %v1557_v13 = vadd.f32 %v1412_v37, %v1220_v16  ;;  %2047 = vrcp.f32 %v1629_v30  ;;  %v1607_v16 = vld [vmem:[#allocation4 + $0x38] sm:$0xff]  ;;  %v1602_v37 = vld [vmem:[#allocation4 + $0x10] sm:$0xff] }
 0x23c   : > { %v1082_v32 = vpop.xlane.xlu0 %1081  ;;  %1573 = vst.msk [vmem:[#allocation4 + $0x40] sm:$0xff] %vm341_vm0, %v1557_v13  ;;  %v1603_v13 = vld [vmem:[#allocation4 + $0x18] sm:$0xff] }
 0x23d   : > { %v1098_v35 = vadd.f32 %v1082_v32, %v1034_v45  ;;  %v1628_v47 = vld [vmem:[#allocation3 + $0x60] sm:$0xff] }
 0x23e   : > { %2049 = vrcp.f32 %v1628_v47  ;;  %v1605_v47 = vld [vmem:[#allocation4 + $0x28] sm:$0xff] }
 0x23f   : > { %1115 = vst.msk [vmem:[#allocation3 + $0x78] sm:$0xff] %vm308_vm1, %v1098_v35  ;;  %v2046_v36 = vpop.eup %2045  ;;  %v1450_v59 = vpop.f32.mrf.mxu2 }
 0x240   : > { %v2048_v9 = vpop.eup %2047  ;;  %v1559_v39 = vadd.f32 %v1450_v59, %v1222_v43  ;;  %1690 = vperm.xlu1 %1958, %v2046_v36   ;;  %v1627_v23 = vld [vmem:[#allocation3 + $0x58] sm:$0xff] }
 0x241   : > { %1715 = vperm.xlu2 %1959, %v2048_v9   ;;  %v1414_v42 = vpop.f32.mrf.mxu0  ;;  %v1507_v21 = vpop.f32.mrf.mxu1  ;;  %2051 = vrcp.f32 %v1627_v23 }
 0x242   : > { %1575 = vst.msk [vmem:[#allocation4 + $0x50] sm:$0xff] %vm341_vm0, %v1559_v39  ;;  %v1562_v46 = vadd.f32 %v1507_v21, %v1225_v19  ;;  %v1606_v39 = vld [vmem:[#allocation4 + $0x30] sm:$0xff]  ;;  %v1609_v21 = vld [vmem:[#allocation4 + $0x48] sm:$0xff] }
 0x244   : > { %v2050_v52 = vpop.eup %2049  ;;  %1578 = vst.msk [vmem:[#allocation4 + $0x68] sm:$0xff] %vm341_vm0, %v1562_v46 }
 0x245   : > { %1710 = vperm.xlu0 %1960, %v2050_v52   ;;  %v1608_v52 = vld [vmem:[#allocation4 + $0x40] sm:$0xff] }
 0x246   : > { %v1631_v12 = vld [vmem:[#allocation3 + $0x78] sm:$0xff]  ;;  %v1079_v33 = vpop.xlane.xlu2 %1078 }
 0x247   : > { %2053 = vrcp.f32 %v1631_v12  ;;  %v2052_v4 = vpop.eup %2051  ;;  %v1097_v5 = vadd.f32 %v1079_v33, %v1033_v63  ;;  %v1452_v49 = vpop.f32.mrf.mxu2 }
 0x248   : > { %v1469_v8 = vpop.f32.mrf.mxu3  ;;  %1705 = vperm.xlu1 %1958, %v2052_v4  }
 0x249   : > { %v1560_v10 = vadd.f32 %v1469_v8, %v1223_v7  ;;  %1114 = vst.msk [vmem:[#allocation3 + $0x70] sm:$0xff] %vm308_vm1, %v1097_v5  ;;  %v1488_v11 = vpop.f32.mrf.mxu0  ;;  %v1509_v40 = vpop.f32.mrf.mxu1  ;;  %v1610_v35 = vld [vmem:[#allocation4 + $0x50] sm:$0xff] }
 0x24a   : > { %v1561_v20 = vadd.f32 %v1488_v11, %v1224_v62 }
 0x24b   : > { %1576 = vst.msk [vmem:[#allocation4 + $0x58] sm:$0xff] %vm341_vm0, %v1560_v10  ;;  %v1613_v9 = vld [vmem:[#allocation4 + $0x68] sm:$0xff] }
 0x24c   : > { %1577 = vst.msk [vmem:[#allocation4 + $0x60] sm:$0xff] %vm341_vm0, %v1561_v20 }
 0x24d   : > { %v2054_v1 = vpop.eup %2053 }
 0x24e   : > { %1725 = vperm.xlu0 %1960, %v2054_v1  }
 0x250   : > { %v1471_v60 = vpop.f32.mrf.mxu3  ;;  %v1630_v61 = vld [vmem:[#allocation3 + $0x70] sm:$0xff] }
 0x251   : > { %v1490_v22 = vpop.f32.mrf.mxu0  ;;  %2055 = vrcp.f32 %v1630_v61 }
 0x252   : > { %v1611_v33 = vld [vmem:[#allocation4 + $0x58] sm:$0xff] }
 0x253   : > { %v1612_v12 = vld [vmem:[#allocation4 + $0x60] sm:$0xff] }
 0x257   : > { %v2056_v3 = vpop.eup %2055  ;;  %v1526_v57 = vpop.f32.mrf.mxu2 }
 0x258   : > { %v1545_v18 = vpop.f32.mrf.mxu3  ;;  %v1563_v44 = vadd.f32 %v1526_v57, %v1226_v56  ;;  %1720 = vperm.xlu1 %1958, %v2056_v3  }
 0x259   : > { %v1564_v15 = vadd.f32 %v1545_v18, %v1227_v17 }
 0x25a   : > { %1579 = vst.msk [vmem:[#allocation4 + $0x70] sm:$0xff] %vm341_vm0, %v1563_v44 }
 0x25b   : > { %1580 = vst.msk [vmem:[#allocation4 + $0x78] sm:$0xff] %vm341_vm0, %v1564_v15 }
 0x25f   : > { %v1528_v24 = vpop.f32.mrf.mxu2 }
 0x260   : > { %v1547_v48 = vpop.f32.mrf.mxu3 }
 0x261   : > { %v1614_v10 = vld [vmem:[#allocation4 + $0x70] sm:$0xff] }
 0x262   : > { %v1615_v49 = vld [vmem:[#allocation4 + $0x78] sm:$0xff] }
 0x275   : > { %v1656_v2 = vpop.permute.xlu2 %1655 }
 0x276   : > { %v1729_v25 = vmul.f32 %v1656_v2, %v1601_v55 }
 0x278   : > { %1745 = vst.msk [vmem:[%s2606_s10 + $0x8] sm:$0xff] %vm341_vm0, %v1729_v25 }
 0x282   : > { %v1671_v26 = vpop.permute.xlu2 %1670 }
 0x283   : > { %v1732_v29 = vmul.f32 %v1671_v26, %v1604_v31 }
 0x285   : > { %1748 = vst.msk [vmem:[%s2606_s10 + $0x20] sm:$0xff] %vm341_vm0, %v1732_v29 }
 0x289   : > { %v1651_v27 = vpop.permute.xlu0 %1650 }
 0x28a   : > { %v1728_v54 = vmul.f32 %v1651_v27, %v1600_v28  ;;  %v1686_v14 = vpop.permute.xlu2 %1685 }
 0x28b   : > { %v1735_v6 = vmul.f32 %v1686_v14, %v1607_v16 }
 0x28c   : > { %1744 = vst.msk [vmem:[%s2606_s10] sm:$0xff] %vm341_vm0, %v1728_v54 }
 0x28d   : > { %1751 = vst.msk [vmem:[%s2606_s10 + $0x38] sm:$0xff] %vm341_vm0, %v1735_v6 }
 0x28e   : > { %v1661_v0 = vpop.permute.xlu1 %1660 }
 0x28f   : > { %v1730_v30 = vmul.f32 %v1661_v0, %v1602_v37 }
 0x291   : > { %1746 = vst.msk [vmem:[%s2606_s10 + $0x10] sm:$0xff] %vm341_vm0, %v1730_v30  ;;  %v1666_v45 = vpop.permute.xlu0 %1665 }
 0x292   : > { %v1731_v50 = vmul.f32 %v1666_v45, %v1603_v13  ;;  %v1701_v32 = vpop.permute.xlu2 %1700 }
 0x293   : > { %v1738_v34 = vmul.f32 %v1701_v32, %v1610_v35 }
 0x294   : > { %1747 = vst.msk [vmem:[%s2606_s10 + $0x18] sm:$0xff] %vm341_vm0, %v1731_v50 }
 0x295   : > { %1754 = vst.msk [vmem:[%s2606_s10 + $0x50] sm:$0xff] %vm341_vm0, %v1738_v34 }
 0x299   : > { %v1676_v43 = vpop.permute.xlu1 %1675 }
 0x29a   : > { %v1733_v36 = vmul.f32 %v1676_v43, %v1605_v47 }
 0x29b   : > { %v1716_v59 = vpop.permute.xlu2 %1715 }
 0x29c   : > { %1749 = vst.msk [vmem:[%s2606_s10 + $0x28] sm:$0xff] %vm341_vm0, %v1733_v36  ;;  %v1741_v19 = vmul.f32 %v1716_v59, %v1613_v9 }
 0x29e   : > { %1757 = vst.msk [vmem:[%s2606_s10 + $0x68] sm:$0xff] %vm341_vm0, %v1741_v19 }
 0x2a3   : > { %v1681_v23 = vpop.permute.xlu0 %1680 }
 0x2a4   : > { %v1734_v42 = vmul.f32 %v1681_v23, %v1606_v39 }
 0x2a6   : > { %1750 = vst.msk [vmem:[%s2606_s10 + $0x30] sm:$0xff] %vm341_vm0, %v1734_v42 }
 0x2ab   : > { %v1696_v46 = vpop.permute.xlu0 %1695 }
 0x2ac   : > { %v1737_v51 = vmul.f32 %v1696_v46, %v1609_v21 }
 0x2ae   : > { %1753 = vst.msk [vmem:[%s2606_s10 + $0x48] sm:$0xff] %vm341_vm0, %v1737_v51 }
 0x2b2   : > { %v1691_v38 = vpop.permute.xlu1 %1690 }
 0x2b3   : > { %v1736_v58 = vmul.f32 %v1691_v38, %v1608_v52 }
 0x2b5   : > { %1752 = vst.msk [vmem:[%s2606_s10 + $0x40] sm:$0xff] %vm341_vm0, %v1736_v58 }
 0x2b7   : > { %v1711_v63 = vpop.permute.xlu0 %1710 }
 0x2b8   : > { %v1740_v7 = vmul.f32 %v1711_v63, %v1612_v12 }
 0x2ba   : > { %1756 = vst.msk [vmem:[%s2606_s10 + $0x60] sm:$0xff] %vm341_vm0, %v1740_v7  ;;  %v1706_v4 = vpop.permute.xlu1 %1705 }
 0x2bb   : > { %v1739_v5 = vmul.f32 %v1706_v4, %v1611_v33 }
 0x2bd   : > { %1755 = vst.msk [vmem:[%s2606_s10 + $0x58] sm:$0xff] %vm341_vm0, %v1739_v5 }
 0x2c0   : > { %v1726_v8 = vpop.permute.xlu0 %1725 }
 0x2c1   : > { %v1743_v62 = vmul.f32 %v1726_v8, %v1615_v49 }
 0x2c3   : > { %1759 = vst.msk [vmem:[%s2606_s10 + $0x78] sm:$0xff] %vm341_vm0, %v1743_v62 }
 0x2ca   : > { %v1721_v11 = vpop.permute.xlu1 %1720 }
 0x2cb   : > { %v1742_v40 = vmul.f32 %v1721_v11, %v1614_v10 }
 0x2cd   : > { %1758 = vst.msk [vmem:[%s2606_s10 + $0x70] sm:$0xff] %vm341_vm0, %v1742_v40 }
 0x2ce PF: > { %s14_s17 = sadd.s32 1, %s2079_s17   ;;  %s2654_s15 = smov %s2075_s16 }
 0x2cf   : > { %p11_p5 = scmp.ge.s32.totalorder %s14_s17, 4   ;;  %s2655_s16 = smov %s2657_s18 }
 0x2d1   :  { %13 = sbr.rel (!%p11_p5) target bundleno = 2 (0x2), region = 83 }

// kernel: _lambda_.34
= control target key start
LH: loop header
LB: loop body
LE: loop exit
PB: predicated region body
PF: predicated region fallthrough
CT: control target
= control target key end

     0   :  { %vm43_vm0 = vcmask 261120   ;;  %s133_s1 = inlined_call_operand.vmem [shape: bf16[32,32], index: 1, kind: input, shape index: {}]   ;;  %s134_s0 = inlined_call_operand.vmem [shape: f32[16,32], index: 0, kind: input, shape index: {}]   ;;  %s135_s2 = inlined_call_operand.vmem [shape: f32[1,32], index: 2, kind: input, shape index: {}]   ;;  %s136_s3 = inlined_call_operand.vmem [shape: f32[16,32], index: 3, kind: input, shape index: {}]   ;;  %s137_s4 = inlined_call_operand.vmem [shape: f32[16,32], index: 4, kind: output, shape index: {}]  }
   0x1   :  { %v79_v0 = vld [vmem:[%s133_s1 + $0x8] sm:$0xff]  ;;  %v78_v1 = vld [vmem:[%s133_s1] sm:$0xff] }
   0x2   :  { %53 = vmatpush.bf16.msra.mxu0 %v79_v0  ;;  %v18_v2 = vld [vmem:[%s134_s0] sm:$0xff]  ;;  %v19_v3 = vld [vmem:[%s134_s0 + $0x8] sm:$0xff] }
   0x3   :  { %v27_v4 = vpack.c.bf16 %v19_v3, %v18_v2  ;;  %v80_v5 = vld [vmem:[%s135_s2] ss:$0 sm:$0xff]  ;;  %v26_v10 = vld [vmem:[%s136_s3 + $0x8] sm:$0xff] }
   0x4   :  { %v25_v6 = vld [vmem:[%s136_s3] sm:$0xff] }
   0x6   :  { %54 = vmatpush.bf16.msra.mxu0 %v78_v1 }
   0x9   :  { %77 = vmatmul.msk.bf16.vlgmr.msra.gmra.mxu0 %vm43_vm0, %v27_v4 }
  0x86   :  { %v56_v7 = vpop.f32.mrf.mxu0 }
  0x87   :  { %v57_v8 = vadd.f32 %v80_v5, %v56_v7 }
  0x89   :  { %v61_v9 = vadd.f32 %v57_v8, %v25_v6 }
  0x8b   :  { %63 = vst.msk [vmem:[%s137_s4] sm:$0xff] %vm43_vm0, %v61_v9 }
  0x8e   :  { %v58_v11 = vpop.f32.mrf.mxu0 }
  0x8f   :  { %v59_v12 = vadd.f32 %v80_v5, %v58_v11 }
  0x91   :  { %v62_v13 = vadd.f32 %v59_v12, %v26_v10 }
  0x93   :  { %64 = vst.msk [vmem:[%s137_s4 + $0x8] sm:$0xff] %vm43_vm0, %v62_v13 }

// kernel: _lambda_.35
= control target key start
LH: loop header
LB: loop body
LE: loop exit
PB: predicated region body
PF: predicated region fallthrough
CT: control target
= control target key end

     0   :  { %vm29_vm0 = vcmask 261120   ;;  %v239_v4 = vmov 32.0   ;;  %vm170_vm8 = vcmask 523264   ;;  %s339_s0 = inlined_call_operand.vmem [shape: f32[16,32], index: 0, kind: input, shape index: {}]   ;;  %s340_s1 = inlined_call_operand.vmem [shape: f32[1,32], index: 1, kind: input, shape index: {}]   ;;  %s341_s2 = inlined_call_operand.vmem [shape: f32[1,32], index: 2, kind: input, shape index: {}]   ;;  %s342_s4 = inlined_call_operand.vmem [shape: f32[1,64], index: 4, kind: input, shape index: {}]   ;;  %s343_s3 = inlined_call_operand.vmem [shape: bf16[32,64], index: 3, kind: input, shape index: {}]   ;;  %s344_s6 = inlined_call_operand.vmem [shape: f32[1,32], index: 6, kind: input, shape index: {}]   ;;  %s345_s5 = inlined_call_operand.vmem [shape: bf16[64,32], index: 5, kind: input, shape index: {}]   ;;  %s346_s7 = inlined_call_operand.vmem [shape: f32[16,32], index: 7, kind: output, shape index: {}]  }
   0x1   :  { %v283_v0 = vld [vmem:[%s339_s0] sm:$0xff]  ;;  %v290_v2 = vld [vmem:[%s339_s0 + $0x8] sm:$0xff]  ;;  %233 = vrcp.f32 %v239_v4  ;;  %v227_v52 = vld [vmem:[%s345_s5 + $0x18] sm:$0xff] }
   0x2   :  { %v30_v1 = vsel %vm29_vm0, %v283_v0, 0.0  ;;  %v33_v3 = vsel %vm29_vm0, %v290_v2, 0.0  ;;  %v223_v21 = vld [vmem:[%s343_s3 + $0x8] sm:$0xff]  ;;  %v222_v23 = vld [vmem:[%s343_s3] sm:$0xff]  ;;  %178 = vmatpush.bf16.msra.mxu1 %v227_v52  ;;  %v226_v53 = vld [vmem:[%s345_s5 + $0x10] sm:$0xff] }
   0x3   :  { %31 = vadd.xlane.f32.xlu0 %v30_v1  ;;  %123 = vmatpush.bf16.msra.mxu0 %v223_v21  ;;  %v229_v42 = vld [vmem:[%s340_s1] ss:$0 sm:$0xff]  ;;  %v225_v54 = vld [vmem:[%s345_s5 + $0x8] sm:$0xff] }
   0x4   :  { %v230_v47 = vld [vmem:[%s341_s2] ss:$0 sm:$0xff] }
   0x5   :  { %v224_v55 = vld [vmem:[%s345_s5] sm:$0xff] }
   0x6   :  { %179 = vmatpush.bf16.msra.mxu1 %v226_v53  ;;  %v231_v57 = vld [vmem:[%s342_s4] ss:$0 sm:$0xff] }
   0x7   :  { %v234_v5 = vpop.eup %233  ;;  %124 = vmatpush.bf16.msra.mxu0 %v222_v23  ;;  %v232_v1 = vld [vmem:[%s344_s6] ss:$0 sm:$0xff] }
   0x8   :  { %v37_v6 = vmul.f32 32.0, %v234_v5  ;;  %vm41_vm1 = vweird.f32 %v234_v5 }
   0xa   :  { %v38_v7 = vsub.f32 1.0, %v37_v6  ;;  %180 = vmatpush.bf16.msra.mxu1 %v225_v54 }
   0xb   :  { %34 = vadd.xlane.f32.xlu0 %v33_v3 }
   0xc   :  { %v39_v8 = vmul.f32 %v234_v5, %v38_v7 }
   0xe   :  { %v40_v9 = vadd.f32 %v234_v5, %v39_v8  ;;  %181 = vmatpush.bf16.msra.mxu1 %v224_v55 }
  0x10   :  { %v42_v10 = vsel %vm41_vm1, %v234_v5, %v40_v9 }
  0x76   :  { %v32_v11 = vpop.xlane.xlu0 %31 }
  0x77   :  { %v43_v12 = vmul.f32 %v42_v10, %v32_v11 }
  0x79   :  { %v45_v13 = vsub.f32 %v283_v0, %v43_v12 }
  0x7b   :  { %v47_v14 = vmul.f32 %v45_v13, %v45_v13 }
  0x7d   :  { %v49_v15 = vsel %vm29_vm0, %v47_v14, 0.0 }
  0x7e   :  { %50 = vadd.xlane.f32.xlu1 %v49_v15  ;;  %v35_v16 = vpop.xlane.xlu0 %34 }
  0x7f   :  { %v44_v17 = vmul.f32 %v42_v10, %v35_v16 }
  0x81   :  { %v46_v18 = vsub.f32 %v290_v2, %v44_v17 }
  0x83   :  { %v48_v19 = vmul.f32 %v46_v18, %v46_v18 }
  0x85   :  { %v52_v20 = vsel %vm29_vm0, %v48_v19, 0.0 }
  0x86   :  { %53 = vadd.xlane.f32.xlu1 %v52_v20 }
  0xf1   :  { %v51_v22 = vpop.xlane.xlu1 %50 }
  0xf2   :  { %v55_v24 = vmul.f32 %v51_v22, %v42_v10 }
  0xf4   :  { %v57_v25 = vadd.f32 1e-05, %v55_v24 }
  0xf6   :  { %235 = vrsqrt.f32 %v57_v25  ;;  %vm65_vm3 = vweird.f32 %v57_v25 }
  0xf9   :  { %v54_v26 = vpop.xlane.xlu1 %53 }
  0xfa   :  { %v56_v27 = vmul.f32 %v54_v26, %v42_v10 }
  0xfc   :  { %v236_v28 = vpop.eup %235  ;;  %v58_v29 = vadd.f32 1e-05, %v56_v27 }
  0xfd   :  { %v60_v30 = vmul.f32 %v236_v28, %v57_v25  ;;  %vm66_vm2 = vweird.f32 %v236_v28 }
  0xfe   :  { %237 = vrsqrt.f32 %v58_v29  ;;  %vm67_vm4 = vmor %vm65_vm3, %vm66_vm2  ;;  %vm75_vm6 = vweird.f32 %v58_v29 }
  0xff   :  { %v61_v31 = vmul.f32 %v236_v28, %v60_v30 }
 0x101   :  { %v62_v32 = vmul.f32 0.5, %v61_v31 }
 0x103   :  { %v63_v33 = vsub.f32 1.5, %v62_v32 }
 0x104   :  { %v238_v34 = vpop.eup %237 }
 0x105   :  { %v64_v35 = vmul.f32 %v236_v28, %v63_v33  ;;  %v70_v36 = vmul.f32 %v238_v34, %v58_v29  ;;  %vm76_vm5 = vweird.f32 %v238_v34 }
 0x106   :  { %vm77_vm7 = vmor %vm75_vm6, %vm76_vm5 }
 0x107   :  { %v71_v37 = vmul.f32 %v238_v34, %v70_v36  ;;  %v68_v38 = vsel %vm67_vm4, %v236_v28, %v64_v35 }
 0x108   :  { %v79_v41 = vmul.f32 %v68_v38, %v45_v13 }
 0x109   :  { %v72_v39 = vmul.f32 0.5, %v71_v37 }
 0x10a   :  { %v85_v46 = vmul.f32 %v229_v42, %v79_v41 }
 0x10b   :  { %v73_v40 = vsub.f32 1.5, %v72_v39 }
 0x10c   :  { %v91_v49 = vadd.f32 %v230_v47, %v85_v46 }
 0x10d   :  { %v74_v43 = vmul.f32 %v238_v34, %v73_v40 }
 0x10f   :  { %v78_v44 = vsel %vm77_vm7, %v238_v34, %v74_v43 }
 0x110   :  { %v80_v45 = vmul.f32 %v78_v44, %v46_v18 }
 0x112   :  { %v86_v48 = vmul.f32 %v229_v42, %v80_v45 }
 0x114   :  { %v92_v50 = vadd.f32 %v230_v47, %v86_v48 }
 0x116   :  { %v93_v51 = vpack.c.bf16 %v92_v50, %v91_v49 }
 0x118   :  { %204 = vmatmul.msk.bf16.vlgmr.msra.gmra.mxu0 %vm29_vm0, %v93_v51 }
 0x195   :  { %v126_v56 = vpop.f32.mrf.mxu0 }
 0x196   :  { %v127_v58 = vadd.f32 %v231_v57, %v126_v56 }
 0x198   :  { %v131_v61 = vmax.f32 %v127_v58, 0.0 }
 0x19d   :  { %v128_v59 = vpop.f32.mrf.mxu0 }
 0x19e   :  { %v129_v60 = vadd.f32 %v231_v57, %v128_v59 }
 0x1a0   :  { %v132_v62 = vmax.f32 %v129_v60, 0.0 }
 0x1a2   :  { %v133_v63 = vpack.c.bf16 %v132_v62, %v131_v61 }
 0x1a4   :  { %221 = vmatmul.msk.bf16.vlgmr.msra.gmra.mxu1 %vm170_vm8, %v133_v63 }
 0x221   :  { %v183_v3 = vpop.f32.mrf.mxu1 }
 0x222   :  { %v184_v4 = vadd.f32 %v232_v1, %v183_v3 }
 0x224   :  { %v188_v5 = vadd.f32 %v184_v4, %v283_v0 }
 0x226   :  { %190 = vst.msk [vmem:[%s346_s7] sm:$0xff] %vm29_vm0, %v188_v5 }
 0x229   :  { %v185_v6 = vpop.f32.mrf.mxu1 }
 0x22a   :  { %v186_v7 = vadd.f32 %v232_v1, %v185_v6 }
 0x22c   :  { %v189_v8 = vadd.f32 %v186_v7, %v290_v2 }
 0x22e   :  { %191 = vst.msk [vmem:[%s346_s7 + $0x8] sm:$0xff] %vm29_vm0, %v189_v8 }

// kernel: _lambda_.33
= control target key start
LH: loop header
LB: loop body
LE: loop exit
PB: predicated region body
PF: predicated region fallthrough
CT: control target
= control target key end

     0   :  { %s841_s12 = smov 0   ;;  %s843_s13 = smov 0   ;;  %s990_s0 = inlined_call_operand.vmem [shape: bf16[2,4,8,8], index: 0, kind: input, shape index: {}]   ;;  %s991_s1 = inlined_call_operand.vmem [shape: bf16[2,4,8,8], index: 1, kind: input, shape index: {}]   ;;  %s992_s2 = inlined_call_operand.vmem [shape: bf16[2,4,8,8], index: 2, kind: input, shape index: {}]   ;;  %s993_s3 = inlined_call_operand.vmem [shape: f32[2,4,8,8], index: 3, kind: output, shape index: {}]  }
   0x1   :  { %s845_s14 = smov 0  }
   0x2 LB: > { %s25_s15 = sadd.s32 1, %s812_s13  ;;  %p717_p0 = scmp.ge.s32.totalorder %s816_s14, 1  ;;  %s816_s14 = sphi %s845_s14, %s13_s14   ;;  %s812_s13 = sphi %s843_s13, %s995_s13   ;;  %s808_s12 = sphi %s841_s12, %s994_s12  }
   0x3   : > { %p27_p1 = scmp.ge.s32.totalorder %s25_s15, 2  ;;  %p179_p2 = scmp.lt.s32.totalorder %s816_s14, 3 }
   0x5   : > { %s997_s15 = smov (%p27_p1, %s25_s15), 0  ;;  %p180_p3 = pnand %p717_p0, %p179_p2 }
   0x6   : > { %p219_p4 = scmp.lt.s32.totalorder (!%p180_p3), %s808_s12, 1 }
   0x7   : > { %183 = sbr.rel (%p180_p3) target bundleno = 698 (0x2ba), region = 32 }
   0xc   : > { %s999_s12 = smov (!%p219_p4, %s808_s12), 1  ;;  %vm259_vm0 = vcmask 64512   ;;  %vm250_vm1 = vcmask 7168   ;;  %v818_v12 = vmov -inf   ;;  %v819_v29 = vmov 0  }
   0xd   : > { %s862_s16 = sshll.u32 %s999_s12, 4  ;;  %251 = vst.msk [vmem:[#allocation2] sm:$0xff] %vm250_vm1, %v818_v12  ;;  %768 = vset.pattern.permute.xlu0 %v819_v29  ;;  %767 = vset.pattern.permute.xlu2 %v819_v29  ;;  %v820_v30 = vmov 0.0   ;;  %vm485_vm2 = vcmask 1043456   ;;  %s739_s26 = sshll.u32 %s999_s12, 5 }
   0xe   : > { %s231_s19 = scalar_lea.vmem %s991_s1, %s862_s16  ;;  %s223_s22 = scalar_lea.vmem %s990_s0, %s862_s16  ;;  %252 = vst.msk [vmem:[#allocation2 + $0x8] sm:$0xff] %vm250_vm1, %v818_v12  ;;  %769 = vset.pattern.permute.xlu1 %v819_v29 }
   0xf   : > { %v268_v0 = vld [vmem:[%s231_s19] sm:$0xf]  ;;  %v270_v1 = vld [vmem:[%s231_s19 + $0x8] sm:$0xf]  ;;  %v269_v4 = vld [vmem:[%s231_s19 + $0x4] sm:$0xf]  ;;  %s239_s25 = scalar_lea.vmem %s992_s2, %s862_s16  ;;  %s244_s29 = scalar_lea.vmem %s993_s3, %s739_s26 }
  0x10   : > { %v281_v2 = vsel %vm259_vm0, %v268_v0, 0  ;;  %v319_v3 = vsel %vm259_vm0, %v270_v1, 0  ;;  %v300_v5 = vsel %vm259_vm0, %v269_v4, 0  ;;  %v271_v6 = vld [vmem:[%s231_s19 + $0xc] sm:$0xf]  ;;  %253 = vst.msk [vmem:[#allocation2 + $0x10] sm:$0xff] %vm250_vm1, %v818_v12 }
  0x11   : > { %290 = vmatpush.bf16.xpose.msra.mxu0 %v281_v2  ;;  %328 = vmatpush.bf16.xpose.msra.mxu2 %v319_v3  ;;  %v338_v7 = vsel %vm259_vm0, %v271_v6, 0  ;;  %v264_v8 = vld [vmem:[%s223_s22] sm:$0xf]  ;;  %v266_v9 = vld [vmem:[%s223_s22 + $0x8] sm:$0xf]  ;;  %254 = vst.msk [vmem:[#allocation2 + $0x18] sm:$0xff] %vm250_vm1, %v818_v12 }
  0x12   : > { %309 = vmatpush.bf16.xpose.msra.mxu1 %v300_v5  ;;  %347 = vmatpush.bf16.xpose.msra.mxu3 %v338_v7  ;;  %v265_v10 = vld [vmem:[%s223_s22 + $0x4] sm:$0xf]  ;;  %v267_v11 = vld [vmem:[%s223_s22 + $0xc] sm:$0xf]  ;;  %257 = vst.msk [vmem:[#allocation3 + $0x10] sm:$0xff] %vm250_vm1, %v820_v30 }
  0x13   : > { %255 = vst.msk [vmem:[#allocation3] sm:$0xff] %vm250_vm1, %v820_v30  ;;  %v274_v47 = vld [vmem:[%s239_s25 + $0x8] sm:$0xf]  ;;  %v275_v49 = vld [vmem:[%s239_s25 + $0xc] sm:$0xf] }
  0x14   : > { %256 = vst.msk [vmem:[#allocation3 + $0x8] sm:$0xff] %vm250_vm1, %v820_v30  ;;  %v908_v31 = vld [vmem:[#allocation2] sm:$0xff]  ;;  %v525_v48 = vsel %vm485_vm2, %v274_v47, 0  ;;  %v544_v50 = vsel %vm485_vm2, %v275_v49, 0 }
  0x15   : > { %258 = vst.msk [vmem:[#allocation3 + $0x18] sm:$0xff] %vm250_vm1, %v820_v30  ;;  %v920_v37 = vld [vmem:[#allocation2 + $0x8] sm:$0xff]  ;;  %v272_v51 = vld [vmem:[%s239_s25] sm:$0xf]  ;;  %v273_v54 = vld [vmem:[%s239_s25 + $0x4] sm:$0xf] }
  0x16   : > { %260 = vst.msk [vmem:[#allocation4] sm:$0xff] %vm259_vm0, %v820_v30  ;;  %v487_v52 = vsel %vm485_vm2, %v272_v51, 0  ;;  %v506_v56 = vsel %vm485_vm2, %v273_v54, 0 }
  0x17   : > { %261 = vst.msk [vmem:[#allocation4 + $0x8] sm:$0xff] %vm259_vm0, %v820_v30  ;;  %v918_v35 = vld [vmem:[#allocation2 + $0x10] sm:$0xff] }
  0x18   : > { %726 = vmatmul.msk.bf16.vlgmr.msra.gmra.mxu0 %vm259_vm0, %v264_v8  ;;  %728 = vmatmul.msk.bf16.vlgmr.msra.gmra.mxu2 %vm259_vm0, %v266_v9  ;;  %262 = vst.msk [vmem:[#allocation4 + $0x10] sm:$0xff] %vm259_vm0, %v820_v30  ;;  %v933_v43 = vld [vmem:[#allocation2 + $0x18] sm:$0xff] }
  0x19   : > { %727 = vmatmul.msk.bf16.vlgmr.msra.gmra.mxu1 %vm259_vm0, %v265_v10  ;;  %729 = vmatmul.msk.bf16.vlgmr.msra.gmra.mxu3 %vm259_vm0, %v267_v11  ;;  %263 = vst.msk [vmem:[#allocation4 + $0x18] sm:$0xff] %vm259_vm0, %v820_v30 }
  0x1a   : > { %534 = vmatpush.bf16.msrb.mxu2 %v525_v48  ;;  %553 = vmatpush.bf16.msrb.mxu3 %v544_v50 }
  0x1b   : > { %496 = vmatpush.bf16.msrb.mxu0 %v487_v52  ;;  %515 = vmatpush.bf16.msrb.mxu1 %v506_v56 }
  0x95   : > { %v292_v13 = vpop.f32.mrf.mxu0 }
  0x96   : > { %v884_v14 = vmul.f32 0.35355338, %v292_v13  ;;  %v311_v15 = vpop.f32.mrf.mxu1 }
  0x97   : > { %v888_v17 = vmul.f32 0.35355338, %v311_v15 }
  0x98   : > { %v361_v16 = vsel %vm259_vm0, %v884_v14, -inf }
  0x99   : > { %362 = vmax.xlane.f32.xlu1 %v361_v16  ;;  %v364_v23 = vsel %vm259_vm0, %v888_v17, -inf }
  0x9b   : > { %v330_v18 = vpop.f32.mrf.mxu2 }
  0x9c   : > { %v890_v19 = vmul.f32 0.35355338, %v330_v18  ;;  %v349_v21 = vpop.f32.mrf.mxu3 }
  0x9d   : > { %v294_v20 = vpop.f32.mrf.mxu0  ;;  %v896_v25 = vmul.f32 0.35355338, %v349_v21 }
  0x9e   : > { %v367_v22 = vsel %vm259_vm0, %v890_v19, -inf  ;;  %v313_v24 = vpop.f32.mrf.mxu1 }
  0x9f   : > { %368 = vmax.xlane.f32.xlu0 %v367_v22  ;;  %v370_v27 = vsel %vm259_vm0, %v896_v25, -inf  ;;  %v423_v22 = vld [vmem:[#allocation3 + $0x10] sm:$0xff] }
  0xa1   : > { %365 = vmax.xlane.f32.xlu1 %v364_v23 }
  0xa3   : > { %v332_v26 = vpop.f32.mrf.mxu2 }
  0xa4   : > { %v351_v28 = vpop.f32.mrf.mxu3 }
  0xa5   : > { %v421_v28 = vld [vmem:[#allocation3] sm:$0xff] }
  0xa7   : > { %371 = vmax.xlane.f32.xlu0 %v370_v27 }
 0x10c   : > { %v363_v32 = vpop.xlane.xlu1 %362 }
 0x10d   : > { %v911_v33 = vmax.f32 %v908_v31, %v363_v32 }
 0x10f   : > { %v377_v34 = vsub.f32 %v908_v31, %v911_v33  ;;  %567 = vst.msk [vmem:[#allocation2] sm:$0xff] %vm250_vm1, %v911_v33  ;;  %391 = vperm.xlu0 %768, %v911_v33  }
 0x112   : > { %v369_v36 = vpop.xlane.xlu0 %368 }
 0x113   : > { %v923_v38 = vmax.f32 %v918_v35, %v369_v36 }
 0x114   : > { %v366_v39 = vpop.xlane.xlu1 %365 }
 0x115   : > { %v379_v40 = vsub.f32 %v918_v35, %v923_v38  ;;  %569 = vst.msk [vmem:[#allocation2 + $0x10] sm:$0xff] %vm250_vm1, %v923_v38  ;;  %v374_v41 = vmax.f32 %v920_v37, %v366_v39  ;;  %401 = vperm.xlu2 %767, %v923_v38   ;;  %v450_v35 = vld [vmem:[#allocation4] sm:$0xff] }
 0x117   : > { %v378_v42 = vsub.f32 %v920_v37, %v374_v41  ;;  %568 = vst.msk [vmem:[#allocation2 + $0x8] sm:$0xff] %vm250_vm1, %v374_v41  ;;  %396 = vperm.xlu1 %769, %v374_v41   ;;  %v385_v15 = vmul.f32 1.442695, %v379_v40 }
 0x119   : > { %v383_v16 = vmul.f32 1.442695, %v378_v42 }
 0x11a   : > { %v372_v44 = vpop.xlane.xlu0 %371 }
 0x11b   : > { %v936_v45 = vmax.f32 %v933_v43, %v372_v44 }
 0x11d   : > { %v380_v46 = vsub.f32 %v933_v43, %v936_v45  ;;  %570 = vst.msk [vmem:[#allocation2 + $0x18] sm:$0xff] %vm250_vm1, %v936_v45  ;;  %406 = vperm.xlu2 %767, %v936_v45  }
 0x11f   : > { %v387_v21 = vmul.f32 1.442695, %v380_v46  ;;  %v452_v46 = vld [vmem:[#allocation4 + $0x10] sm:$0xff] }
 0x16f   : > { %v402_v53 = vpop.permute.xlu2 %401 }
 0x170   : > { %v411_v55 = vsub.f32 %v890_v19, %v402_v53 }
 0x172   : > { %v417_v57 = vmul.f32 1.442695, %v411_v55 }
 0x174   : > { %770 = vpow2.f32 %v417_v57  ;;  %v451_v57 = vld [vmem:[#allocation4 + $0x8] sm:$0xff] }
 0x177   : > { %v407_v58 = vpop.permute.xlu2 %406 }
 0x178   : > { %v412_v59 = vsub.f32 %v896_v25, %v407_v58 }
 0x17a   : > { %v771_v60 = vpop.eup %770  ;;  %v419_v61 = vmul.f32 1.442695, %v412_v59 }
 0x17b   : > { %v435_v62 = vsel %vm259_vm0, %v771_v60, 0.0  ;;  %v480_v63 = vpack.c.bf16 %v771_v60, %v771_v60 }
 0x17c   : > { %772 = vpow2.f32 %v419_v61  ;;  %436 = vadd.xlane.f32.xlu0 %v435_v62  ;;  %v424_v61 = vld [vmem:[#allocation3 + $0x18] sm:$0xff] }
 0x17d   : > { %732 = vmatmul.msk.bf16.vlgmr.msrb.gmra.mxu2 %vm259_vm0, %v480_v63 }
 0x181   : > { %v392_v0 = vpop.permute.xlu0 %391 }
 0x182   : > { %v773_v1 = vpop.eup %772  ;;  %v409_v2 = vsub.f32 %v884_v14, %v392_v0  ;;  %v381_v14 = vmul.f32 1.442695, %v377_v34  ;;  %v422_v34 = vld [vmem:[#allocation3 + $0x8] sm:$0xff] }
 0x183   : > { %v481_v3 = vpack.c.bf16 %v773_v1, %v773_v1  ;;  %v438_v20 = vsel %vm259_vm0, %v773_v1, 0.0  ;;  %v453_v1 = vld [vmem:[#allocation4 + $0x18] sm:$0xff] }
 0x184   : > { %v413_v4 = vmul.f32 1.442695, %v409_v2 }
 0x185   : > { %733 = vmatmul.msk.bf16.vlgmr.msrb.gmra.mxu3 %vm259_vm0, %v481_v3 }
 0x186   : > { %774 = vpow2.f32 %v413_v4 }
 0x189   : > { %v397_v5 = vpop.permute.xlu1 %396 }
 0x18a   : > { %v410_v6 = vsub.f32 %v888_v17, %v397_v5 }
 0x18c   : > { %v775_v7 = vpop.eup %774  ;;  %v415_v8 = vmul.f32 1.442695, %v410_v6 }
 0x18d   : > { %v429_v9 = vsel %vm259_vm0, %v775_v7, 0.0  ;;  %v478_v10 = vpack.c.bf16 %v775_v7, %v775_v7 }
 0x18e   : > { %776 = vpow2.f32 %v415_v8  ;;  %430 = vadd.xlane.f32.xlu2 %v429_v9 }
 0x18f   : > { %730 = vmatmul.msk.bf16.vlgmr.msrb.gmra.mxu0 %vm259_vm0, %v478_v10  ;;  %778 = vpow2.f32 %v381_v14 }
 0x190   : > { %780 = vpow2.f32 %v385_v15 }
 0x191   : > { %782 = vpow2.f32 %v383_v16 }
 0x192   : > { %784 = vpow2.f32 %v387_v21 }
 0x194   : > { %v777_v11 = vpop.eup %776 }
 0x195   : > { %v432_v12 = vsel %vm259_vm0, %v777_v11, 0.0  ;;  %v479_v13 = vpack.c.bf16 %v777_v11, %v777_v11  ;;  %v779_v17 = vpop.eup %778 }
 0x196   : > { %433 = vadd.xlane.f32.xlu1 %v432_v12  ;;  %v781_v18 = vpop.eup %780  ;;  %v425_v31 = vmul.f32 %v779_v17, %v421_v28 }
 0x197   : > { %731 = vmatmul.msk.bf16.vlgmr.msrb.gmra.mxu1 %vm259_vm0, %v479_v13  ;;  %v783_v19 = vpop.eup %782  ;;  %v427_v24 = vmul.f32 %v781_v18, %v423_v22 }
 0x198   : > { %v785_v23 = vpop.eup %784  ;;  %v426_v38 = vmul.f32 %v783_v19, %v422_v34 }
 0x199   : > { %v428_v62 = vmul.f32 %v785_v23, %v424_v61 }
 0x1a6   : > { %456 = vperm.xlu2 %767, %v779_v17  }
 0x1ae   : > { %466 = vperm.xlu2 %767, %v781_v18  }
 0x1af   : > { %461 = vperm.xlu1 %769, %v783_v19  }
 0x1d7   : > { %439 = vadd.xlane.f32.xlu2 %v438_v20 }
 0x1ef   : > { %v437_v25 = vpop.xlane.xlu0 %436  ;;  %471 = vperm.xlu2 %767, %v785_v23  }
 0x1f0   : > { %v443_v26 = vadd.f32 %v437_v25, %v427_v24 }
 0x1f2   : > { %448 = vst.msk [vmem:[#allocation3 + $0x10] sm:$0xff] %vm250_vm1, %v443_v26 }
 0x1f9   : > { %v580_v27 = vld [vmem:[#allocation3 + $0x10] sm:$0xff] }
 0x1fa   : > { %786 = vrcp.f32 %v580_v27 }
 0x200   : > { %v787_v29 = vpop.eup %786  ;;  %v536_v30 = vpop.f32.mrf.mxu2 }
 0x201   : > { %v431_v32 = vpop.xlane.xlu2 %430  ;;  %598 = vperm.xlu1 %769, %v787_v29  }
 0x202   : > { %v441_v33 = vadd.f32 %v431_v32, %v425_v31 }
 0x204   : > { %446 = vst.msk [vmem:[#allocation3] sm:$0xff] %vm250_vm1, %v441_v33 }
 0x208   : > { %v538_v36 = vpop.f32.mrf.mxu2  ;;  %v555_v37 = vpop.f32.mrf.mxu3 }
 0x209   : > { %v457_v39 = vpop.permute.xlu2 %456  ;;  %v434_v40 = vpop.xlane.xlu1 %433 }
 0x20a   : > { %v474_v41 = vmul.f32 %v457_v39, %v450_v35  ;;  %v442_v42 = vadd.f32 %v434_v40, %v426_v38 }
 0x20b   : > { %v578_v43 = vld [vmem:[#allocation3] sm:$0xff] }
 0x20c   : > { %447 = vst.msk [vmem:[#allocation3 + $0x8] sm:$0xff] %vm250_vm1, %v442_v42  ;;  %v498_v44 = vpop.f32.mrf.mxu0  ;;  %788 = vrcp.f32 %v578_v43 }
 0x20d   : > { %v559_v45 = vadd.f32 %v498_v44, %v474_v41 }
 0x20f   : > { %563 = vst.msk [vmem:[#allocation4] sm:$0xff] %vm259_vm0, %v559_v45 }
 0x210   : > { %v557_v47 = vpop.f32.mrf.mxu3 }
 0x211   : > { %v467_v48 = vpop.permute.xlu2 %466 }
 0x212   : > { %v789_v49 = vpop.eup %788  ;;  %v476_v50 = vmul.f32 %v467_v48, %v452_v46 }
 0x213   : > { %588 = vperm.xlu0 %768, %v789_v49   ;;  %v579_v51 = vld [vmem:[#allocation3 + $0x8] sm:$0xff] }
 0x214   : > { %v561_v52 = vadd.f32 %v536_v30, %v476_v50  ;;  %v500_v53 = vpop.f32.mrf.mxu0  ;;  %v517_v54 = vpop.f32.mrf.mxu1  ;;  %790 = vrcp.f32 %v579_v51 }
 0x216   : > { %565 = vst.msk [vmem:[#allocation4 + $0x10] sm:$0xff] %vm259_vm0, %v561_v52  ;;  %v574_v14 = vld [vmem:[#allocation4] sm:$0xff] }
 0x21a   : > { %v791_v55 = vpop.eup %790 }
 0x21b   : > { %593 = vperm.xlu2 %767, %v791_v55  }
 0x21c   : > { %v519_v56 = vpop.f32.mrf.mxu1 }
 0x21d   : > { %v576_v7 = vld [vmem:[#allocation4 + $0x10] sm:$0xff] }
 0x221   : > { %v462_v58 = vpop.permute.xlu1 %461 }
 0x222   : > { %v475_v59 = vmul.f32 %v462_v58, %v451_v57 }
 0x224   : > { %v560_v60 = vadd.f32 %v517_v54, %v475_v59 }
 0x226   : > { %564 = vst.msk [vmem:[#allocation4 + $0x8] sm:$0xff] %vm259_vm0, %v560_v60 }
 0x22d   : > { %v575_v10 = vld [vmem:[#allocation4 + $0x8] sm:$0xff] }
 0x24a   : > { %v440_v63 = vpop.xlane.xlu2 %439 }
 0x24b   : > { %v444_v0 = vadd.f32 %v440_v63, %v428_v62 }
 0x24d   : > { %449 = vst.msk [vmem:[#allocation3 + $0x18] sm:$0xff] %vm250_vm1, %v444_v0 }
 0x252   : > { %v472_v2 = vpop.permute.xlu2 %471 }
 0x253   : > { %v477_v3 = vmul.f32 %v472_v2, %v453_v1 }
 0x254   : > { %v581_v4 = vld [vmem:[#allocation3 + $0x18] sm:$0xff] }
 0x255   : > { %v562_v5 = vadd.f32 %v555_v37, %v477_v3  ;;  %792 = vrcp.f32 %v581_v4 }
 0x257   : > { %566 = vst.msk [vmem:[#allocation4 + $0x18] sm:$0xff] %vm259_vm0, %v562_v5 }
 0x25b   : > { %v793_v6 = vpop.eup %792 }
 0x25c   : > { %603 = vperm.xlu2 %767, %v793_v6  }
 0x25e   : > { %v577_v16 = vld [vmem:[#allocation4 + $0x18] sm:$0xff] }
 0x273   : > { %v599_v8 = vpop.permute.xlu1 %598 }
 0x274   : > { %v608_v9 = vmul.f32 %v599_v8, %v576_v7 }
 0x275   : > { %v594_v11 = vpop.permute.xlu2 %593 }
 0x276   : > { %612 = vst.msk [vmem:[%s244_s29 + $0x10] sm:$0xff] %vm259_vm0, %v608_v9  ;;  %v607_v12 = vmul.f32 %v594_v11, %v575_v10 }
 0x278   : > { %611 = vst.msk [vmem:[%s244_s29 + $0x8] sm:$0xff] %vm259_vm0, %v607_v12 }
 0x285   : > { %v589_v13 = vpop.permute.xlu0 %588 }
 0x286   : > { %v606_v15 = vmul.f32 %v589_v13, %v574_v14 }
 0x288   : > { %610 = vst.msk [vmem:[%s244_s29] sm:$0xff] %vm259_vm0, %v606_v15 }
 0x2b6   : > { %v604_v17 = vpop.permute.xlu2 %603 }
 0x2b7   : > { %v609_v18 = vmul.f32 %v604_v17, %v577_v16 }
 0x2b9   : > { %613 = vst.msk [vmem:[%s244_s29 + $0x18] sm:$0xff] %vm259_vm0, %v609_v18 }
 0x2ba PF: > { %s13_s14 = sadd.s32 1, %s816_s14   ;;  %s994_s12 = smov %s812_s13 }
 0x2bb   : > { %p10_p5 = scmp.ge.s32.totalorder %s13_s14, 4   ;;  %s995_s13 = smov %s997_s15 }
 0x2bd   :  { %12 = sbr.rel (!%p10_p5) target bundleno = 2 (0x2), region = 76 }

// kernel: _lambda_.40
= control target key start
LH: loop header
LB: loop body
LE: loop exit
PB: predicated region body
PF: predicated region fallthrough
CT: control target
= control target key end

     0   :  { %vm29_vm0 = vcmask 261120   ;;  %v211_v4 = vmov 32.0   ;;  %vm171_vm8 = vcmask 48128   ;;  %s294_s0 = inlined_call_operand.vmem [shape: f32[16,32], index: 0, kind: input, shape index: {}]   ;;  %s295_s1 = inlined_call_operand.vmem [shape: f32[1,32], index: 1, kind: input, shape index: {}]   ;;  %s296_s2 = inlined_call_operand.vmem [shape: f32[1,32], index: 2, kind: input, shape index: {}]   ;;  %s297_s4 = inlined_call_operand.vmem [shape: f32[1,32], index: 4, kind: input, shape index: {}]   ;;  %s298_s3 = inlined_call_operand.vmem [shape: bf16[32,32], index: 3, kind: input, shape index: {}]   ;;  %s299_s6 = inlined_call_operand.vmem [shape: f32[1,6], index: 6, kind: input, shape index: {}]   ;;  %s300_s5 = inlined_call_operand.vmem [shape: bf16[32,6], index: 5, kind: input, shape index: {}]   ;;  %s301_s7 = inlined_call_operand.vmem [shape: f32[16,6], index: 7, kind: output, shape index: {}]  }
   0x1   :  { %v27_v0 = vld [vmem:[%s294_s0] sm:$0xff]  ;;  %v28_v2 = vld [vmem:[%s294_s0 + $0x8] sm:$0xff]  ;;  %205 = vrcp.f32 %v211_v4 }
   0x2   :  { %v30_v1 = vsel %vm29_vm0, %v27_v0, 0.0  ;;  %v33_v3 = vsel %vm29_vm0, %v28_v2, 0.0  ;;  %v197_v21 = vld [vmem:[%s298_s3 + $0x8] sm:$0xff]  ;;  %v196_v23 = vld [vmem:[%s298_s3] sm:$0xff] }
   0x3   :  { %31 = vadd.xlane.f32.xlu0 %v30_v1  ;;  %123 = vmatpush.bf16.msra.mxu0 %v197_v21  ;;  %v201_v42 = vld [vmem:[%s295_s1] ss:$0 sm:$0xff]  ;;  %v199_v52 = vld [vmem:[%s300_s5 + $0x8] sm:$0xff] }
   0x4   :  { %v202_v47 = vld [vmem:[%s296_s2] ss:$0 sm:$0xff]  ;;  %163 = vmatpush.bf16.msra.mxu1 %v199_v52 }
   0x5   :  { %v198_v53 = vld [vmem:[%s300_s5] sm:$0xff] }
   0x6   :  { %v203_v55 = vld [vmem:[%s297_s4] ss:$0 sm:$0xff] }
   0x7   :  { %v206_v5 = vpop.eup %205  ;;  %124 = vmatpush.bf16.msra.mxu0 %v196_v23  ;;  %v204_v62 = vld [vmem:[%s299_s6] ss:$0 sm:$0xff] }
   0x8   :  { %v37_v6 = vmul.f32 32.0, %v206_v5  ;;  %vm41_vm1 = vweird.f32 %v206_v5  ;;  %164 = vmatpush.bf16.msra.mxu1 %v198_v53 }
   0xa   :  { %v38_v7 = vsub.f32 1.0, %v37_v6 }
   0xb   :  { %34 = vadd.xlane.f32.xlu0 %v33_v3 }
   0xc   :  { %v39_v8 = vmul.f32 %v206_v5, %v38_v7 }
   0xe   :  { %v40_v9 = vadd.f32 %v206_v5, %v39_v8 }
  0x10   :  { %v42_v10 = vsel %vm41_vm1, %v206_v5, %v40_v9 }
  0x76   :  { %v32_v11 = vpop.xlane.xlu0 %31 }
  0x77   :  { %v43_v12 = vmul.f32 %v42_v10, %v32_v11 }
  0x79   :  { %v45_v13 = vsub.f32 %v27_v0, %v43_v12 }
  0x7b   :  { %v47_v14 = vmul.f32 %v45_v13, %v45_v13 }
  0x7d   :  { %v49_v15 = vsel %vm29_vm0, %v47_v14, 0.0 }
  0x7e   :  { %50 = vadd.xlane.f32.xlu1 %v49_v15  ;;  %v35_v16 = vpop.xlane.xlu0 %34 }
  0x7f   :  { %v44_v17 = vmul.f32 %v42_v10, %v35_v16 }
  0x81   :  { %v46_v18 = vsub.f32 %v28_v2, %v44_v17 }
  0x83   :  { %v48_v19 = vmul.f32 %v46_v18, %v46_v18 }
  0x85   :  { %v52_v20 = vsel %vm29_vm0, %v48_v19, 0.0 }
  0x86   :  { %53 = vadd.xlane.f32.xlu1 %v52_v20 }
  0xf1   :  { %v51_v22 = vpop.xlane.xlu1 %50 }
  0xf2   :  { %v55_v24 = vmul.f32 %v51_v22, %v42_v10 }
  0xf4   :  { %v57_v25 = vadd.f32 1e-05, %v55_v24 }
  0xf6   :  { %207 = vrsqrt.f32 %v57_v25  ;;  %vm65_vm3 = vweird.f32 %v57_v25 }
  0xf9   :  { %v54_v26 = vpop.xlane.xlu1 %53 }
  0xfa   :  { %v56_v27 = vmul.f32 %v54_v26, %v42_v10 }
  0xfc   :  { %v208_v28 = vpop.eup %207  ;;  %v58_v29 = vadd.f32 1e-05, %v56_v27 }
  0xfd   :  { %v60_v30 = vmul.f32 %v208_v28, %v57_v25  ;;  %vm66_vm2 = vweird.f32 %v208_v28 }
  0xfe   :  { %209 = vrsqrt.f32 %v58_v29  ;;  %vm67_vm4 = vmor %vm65_vm3, %vm66_vm2  ;;  %vm75_vm6 = vweird.f32 %v58_v29 }
  0xff   :  { %v61_v31 = vmul.f32 %v208_v28, %v60_v30 }
 0x101   :  { %v62_v32 = vmul.f32 0.5, %v61_v31 }
 0x103   :  { %v63_v33 = vsub.f32 1.5, %v62_v32 }
 0x104   :  { %v210_v34 = vpop.eup %209 }
 0x105   :  { %v64_v35 = vmul.f32 %v208_v28, %v63_v33  ;;  %v70_v36 = vmul.f32 %v210_v34, %v58_v29  ;;  %vm76_vm5 = vweird.f32 %v210_v34 }
 0x106   :  { %vm77_vm7 = vmor %vm75_vm6, %vm76_vm5 }
 0x107   :  { %v71_v37 = vmul.f32 %v210_v34, %v70_v36  ;;  %v68_v38 = vsel %vm67_vm4, %v208_v28, %v64_v35 }
 0x108   :  { %v79_v41 = vmul.f32 %v68_v38, %v45_v13 }
 0x109   :  { %v72_v39 = vmul.f32 0.5, %v71_v37 }
 0x10a   :  { %v85_v46 = vmul.f32 %v201_v42, %v79_v41 }
 0x10b   :  { %v73_v40 = vsub.f32 1.5, %v72_v39 }
 0x10c   :  { %v91_v49 = vadd.f32 %v202_v47, %v85_v46 }
 0x10d   :  { %v74_v43 = vmul.f32 %v210_v34, %v73_v40 }
 0x10f   :  { %v78_v44 = vsel %vm77_vm7, %v210_v34, %v74_v43 }
 0x110   :  { %v80_v45 = vmul.f32 %v78_v44, %v46_v18 }
 0x112   :  { %v86_v48 = vmul.f32 %v201_v42, %v80_v45 }
 0x114   :  { %v92_v50 = vadd.f32 %v202_v47, %v86_v48 }
 0x116   :  { %v93_v51 = vpack.c.bf16 %v92_v50, %v91_v49 }
 0x118   :  { %186 = vmatmul.msk.bf16.vlgmr.msra.gmra.mxu0 %vm29_vm0, %v93_v51 }
 0x195   :  { %v126_v54 = vpop.f32.mrf.mxu0 }
 0x196   :  { %v127_v56 = vadd.f32 %v203_v55, %v126_v54 }
 0x198   :  { %v131_v59 = vmax.f32 %v127_v56, 0.0 }
 0x19d   :  { %v128_v57 = vpop.f32.mrf.mxu0 }
 0x19e   :  { %v129_v58 = vadd.f32 %v203_v55, %v128_v57 }
 0x1a0   :  { %v132_v60 = vmax.f32 %v129_v58, 0.0 }
 0x1a2   :  { %v133_v61 = vpack.c.bf16 %v132_v60, %v131_v59 }
 0x1a4   :  { %195 = vmatmul.msk.bf16.vlgmr.msra.gmra.mxu1 %vm29_vm0, %v133_v61 }
 0x221   :  { %v166_v63 = vpop.f32.mrf.mxu1 }
 0x222   :  { %v167_v0 = vadd.f32 %v204_v62, %v166_v63 }
 0x224   :  { %172 = vst.msk [vmem:[%s301_s7] sm:$0xff] %vm171_vm8, %v167_v0 }
 0x229   :  { %v168_v1 = vpop.f32.mrf.mxu1 }
 0x22a   :  { %v169_v2 = vadd.f32 %v204_v62, %v168_v1 }
 0x22c   :  { %173 = vst.msk [vmem:[%s301_s7 + $0x8] sm:$0xff] %vm171_vm8, %v169_v2 }

// kernel: _lambda_.41
= control target key start
LH: loop header
LB: loop body
LE: loop exit
PB: predicated region body
PF: predicated region fallthrough
CT: control target
= control target key end

     0   :  { %vm42_vm0 = vcmask 130048   ;;  %v686_v28 = vmov 16.0   ;;  %s1385_s0 = inlined_call_operand.vmem [shape: f32[128,16], index: 0, kind: input, shape index: {}]   ;;  %s1386_s1 = inlined_call_operand.vmem [shape: f32[1,16], index: 1, kind: input, shape index: {}]   ;;  %s1387_s2 = inlined_call_operand.vmem [shape: f32[1,16], index: 2, kind: input, shape index: {}]   ;;  %s1388_s3 = inlined_call_operand.vmem [shape: bf16[16,256], index: 3, kind: input, shape index: {}]   ;;  %s1389_s4 = inlined_call_operand.vmem [shape: f32[1,256], index: 4, kind: input, shape index: {}]   ;;  %s1390_s5 = inlined_call_operand.vmem [shape: f32[128,256], index: 5, kind: output, shape index: {}]  }
   0x1   :  { %v29_v0 = vld [vmem:[%s1385_s0 + $0x40] sm:$0xff]  ;;  %v728_v2 = vld [vmem:[%s1385_s0 + $0x50] sm:$0xff]  ;;  %v30_v6 = vld [vmem:[%s1385_s0 + $0x48] sm:$0xff]  ;;  %652 = vrcp.f32 %v686_v28 }
   0x2   :  { %v723_v1 = vld [vmem:[%s1385_s0] sm:$0xff]  ;;  %v67_v3 = vsel %vm42_vm0, %v29_v0, 0.0  ;;  %v73_v5 = vsel %vm42_vm0, %v728_v2, 0.0  ;;  %v22_v7 = vld [vmem:[%s1385_s0 + $0x8] sm:$0xff]  ;;  %v32_v8 = vld [vmem:[%s1385_s0 + $0x58] sm:$0xff]  ;;  %v70_v9 = vsel %vm42_vm0, %v30_v6, 0.0 }
   0x3   :  { %v43_v4 = vsel %vm42_vm0, %v723_v1, 0.0  ;;  %68 = vadd.xlane.f32.xlu0 %v67_v3  ;;  %74 = vadd.xlane.f32.xlu2 %v73_v5  ;;  %v46_v10 = vsel %vm42_vm0, %v22_v7, 0.0  ;;  %v76_v11 = vsel %vm42_vm0, %v32_v8, 0.0  ;;  %v750_v12 = vld [vmem:[%s1385_s0 + $0x10] sm:$0xff]  ;;  %v755_v13 = vld [vmem:[%s1385_s0 + $0x18] sm:$0xff]  ;;  %v760_v14 = vld [vmem:[%s1385_s0 + $0x60] sm:$0xff] }
   0x4   :  { %44 = vadd.xlane.f32.xlu1 %v43_v4  ;;  %v49_v15 = vsel %vm42_vm0, %v750_v12, 0.0  ;;  %v52_v16 = vsel %vm42_vm0, %v755_v13, 0.0  ;;  %v79_v17 = vsel %vm42_vm0, %v760_v14, 0.0  ;;  %v771_v18 = vld [vmem:[%s1385_s0 + $0x68] sm:$0xff]  ;;  %v776_v19 = vld [vmem:[%s1385_s0 + $0x20] sm:$0xff]  ;;  %v792_v24 = vld [vmem:[%s1385_s0 + $0x78] sm:$0xff] }
   0x5   :  { %v781_v20 = vld [vmem:[%s1385_s0 + $0x28] sm:$0xff]  ;;  %v82_v21 = vsel %vm42_vm0, %v771_v18, 0.0  ;;  %v55_v22 = vsel %vm42_vm0, %v776_v19, 0.0  ;;  %v797_v25 = vld [vmem:[%s1385_s0 + $0x70] sm:$0xff]  ;;  %v88_v26 = vsel %vm42_vm0, %v792_v24, 0.0 }
   0x6   :  { %v58_v23 = vsel %vm42_vm0, %v781_v20, 0.0  ;;  %v85_v27 = vsel %vm42_vm0, %v797_v25, 0.0  ;;  %v817_v48 = vld [vmem:[%s1385_s0 + $0x30] sm:$0xff] }
   0x7   :  { %v653_v29 = vpop.eup %652  ;;  %v61_v53 = vsel %vm42_vm0, %v817_v48, 0.0 }
   0x8   :  { %v92_v30 = vmul.f32 16.0, %v653_v29  ;;  %vm96_vm1 = vweird.f32 %v653_v29 }
   0xa   :  { %v93_v31 = vsub.f32 1.0, %v92_v30 }
   0xb   :  { %71 = vadd.xlane.f32.xlu0 %v70_v9  ;;  %77 = vadd.xlane.f32.xlu2 %v76_v11 }
   0xc   :  { %47 = vadd.xlane.f32.xlu1 %v46_v10  ;;  %v94_v32 = vmul.f32 %v653_v29, %v93_v31 }
   0xe   :  { %v95_v33 = vadd.f32 %v653_v29, %v94_v32 }
  0x10   :  { %v803_v34 = vsel %vm96_vm1, %v653_v29, %v95_v33 }
  0x13   :  { %50 = vadd.xlane.f32.xlu0 %v49_v15  ;;  %80 = vadd.xlane.f32.xlu2 %v79_v17 }
  0x14   :  { %53 = vadd.xlane.f32.xlu1 %v52_v16 }
  0x1b   :  { %83 = vadd.xlane.f32.xlu0 %v82_v21  ;;  %59 = vadd.xlane.f32.xlu2 %v58_v23  ;;  %v865_v21 = vld [vmem:[%s1385_s0 + $0x38] sm:$0xff] }
  0x1c   :  { %56 = vadd.xlane.f32.xlu1 %v55_v22  ;;  %v64_v28 = vsel %vm42_vm0, %v865_v21, 0.0 }
  0x23   :  { %89 = vadd.xlane.f32.xlu0 %v88_v26  ;;  %86 = vadd.xlane.f32.xlu2 %v85_v27 }
  0x76   :  { %v69_v35 = vpop.xlane.xlu0 %68  ;;  %v75_v38 = vpop.xlane.xlu2 %74 }
  0x77   :  { %v45_v36 = vpop.xlane.xlu1 %44  ;;  %v106_v37 = vmul.f32 %v803_v34, %v69_v35  ;;  %v108_v49 = vmul.f32 %v803_v34, %v75_v38 }
  0x78   :  { %v98_v44 = vmul.f32 %v803_v34, %v45_v36 }
  0x79   :  { %v806_v39 = vsub.f32 %v29_v0, %v106_v37  ;;  %v837_v58 = vsub.f32 %v728_v2, %v108_v49 }
  0x7a   :  { %v828_v54 = vsub.f32 %v723_v1, %v98_v44 }
  0x7b   :  { %v138_v40 = vmul.f32 %v806_v39, %v806_v39  ;;  %v140_v2 = vmul.f32 %v837_v58, %v837_v58 }
  0x7c   :  { %v130_v1 = vmul.f32 %v828_v54, %v828_v54 }
  0x7d   :  { %v170_v41 = vsel %vm42_vm0, %v138_v40, 0.0 }
  0x7e   :  { %v72_v42 = vpop.xlane.xlu0 %71  ;;  %171 = vadd.xlane.f32.xlu0 %v170_v41  ;;  %v78_v47 = vpop.xlane.xlu2 %77 }
  0x7f   :  { %v48_v43 = vpop.xlane.xlu1 %47  ;;  %v107_v45 = vmul.f32 %v803_v34, %v72_v42  ;;  %v109_v50 = vmul.f32 %v803_v34, %v78_v47 }
  0x80   :  { %v99_v46 = vmul.f32 %v803_v34, %v48_v43 }
  0x81   :  { %v821_v51 = vsub.f32 %v30_v6, %v107_v45  ;;  %v830_v55 = vsub.f32 %v32_v8, %v109_v50  ;;  %v176_v8 = vsel %vm42_vm0, %v140_v2, 0.0 }
  0x82   :  { %v823_v52 = vsub.f32 %v22_v7, %v99_v46  ;;  %v146_v7 = vsel %vm42_vm0, %v130_v1, 0.0 }
  0x83   :  { %v139_v56 = vmul.f32 %v821_v51, %v821_v51  ;;  %v141_v0 = vmul.f32 %v830_v55, %v830_v55 }
  0x84   :  { %v131_v57 = vmul.f32 %v823_v52, %v823_v52 }
  0x85   :  { %v173_v59 = vsel %vm42_vm0, %v139_v56, 0.0  ;;  %v179_v6 = vsel %vm42_vm0, %v141_v0, 0.0  ;;  %v646_v56 = vld [vmem:[%s1388_s3 + $0x4] sm:$0xf0] }
  0x86   :  { %v149_v60 = vsel %vm42_vm0, %v131_v57, 0.0  ;;  %62 = vadd.xlane.f32.xlu0 %v61_v53  ;;  %174 = vadd.xlane.f32.xlu1 %v173_v59  ;;  %v51_v61 = vpop.xlane.xlu0 %50  ;;  %v81_v63 = vpop.xlane.xlu2 %80  ;;  %v645_v57 = vld [vmem:[%s1388_s3 + $0x4] sm:$0xf] }
  0x87   :  { %v54_v62 = vpop.xlane.xlu1 %53  ;;  %150 = vadd.xlane.f32.xlu2 %v149_v60  ;;  %v110_v3 = vmul.f32 %v803_v34, %v81_v63  ;;  %v100_v15 = vmul.f32 %v803_v34, %v51_v61  ;;  %v625_v60 = vld [vmem:[%s1388_s3 + $0x8] sm:$0xf0] }
  0x88   :  { %v101_v4 = vmul.f32 %v803_v34, %v54_v62  ;;  %v628_v61 = vor.u32 %v645_v57, %v625_v60 }
  0x89   :  { %v850_v5 = vsub.f32 %v760_v14, %v110_v3  ;;  %v871_v23 = vsub.f32 %v750_v12, %v100_v15 }
  0x8a   :  { %v856_v9 = vsub.f32 %v755_v13, %v101_v4  ;;  %648 = vmatpush.bf16.msra.mxu3 %v628_v61  ;;  %543 = vmatpush.bf16.msra.mxu1 %v628_v61 }
  0x8b   :  { %v142_v14 = vmul.f32 %v850_v5, %v850_v5 }
  0x8c   :  { %v133_v13 = vmul.f32 %v856_v9, %v856_v9 }
  0x8d   :  { %v182_v27 = vsel %vm42_vm0, %v142_v14, 0.0 }
  0x8e   :  { %180 = vadd.xlane.f32.xlu0 %v179_v6  ;;  %147 = vadd.xlane.f32.xlu1 %v146_v7  ;;  %v84_v10 = vpop.xlane.xlu0 %83  ;;  %v60_v16 = vpop.xlane.xlu2 %59  ;;  %v155_v29 = vsel %vm42_vm0, %v133_v13, 0.0 }
  0x8f   :  { %v57_v11 = vpop.xlane.xlu1 %56  ;;  %177 = vadd.xlane.f32.xlu2 %v176_v8  ;;  %v103_v17 = vmul.f32 %v803_v34, %v60_v16  ;;  %v111_v32 = vmul.f32 %v803_v34, %v84_v10 }
  0x90   :  { %v102_v22 = vmul.f32 %v803_v34, %v57_v11 }
  0x91   :  { %v874_v26 = vsub.f32 %v781_v20, %v103_v17  ;;  %v132_v20 = vmul.f32 %v871_v23, %v871_v23 }
  0x92   :  { %v881_v30 = vsub.f32 %v776_v19, %v102_v22  ;;  %v892_v19 = vsub.f32 %v771_v18, %v111_v32 }
  0x93   :  { %v135_v12 = vmul.f32 %v874_v26, %v874_v26  ;;  %v152_v37 = vsel %vm42_vm0, %v132_v20, 0.0 }
  0x94   :  { %v134_v35 = vmul.f32 %v881_v30, %v881_v30  ;;  %v143_v43 = vmul.f32 %v892_v19, %v892_v19 }
  0x95   :  { %v161_v36 = vsel %vm42_vm0, %v135_v12, 0.0 }
  0x96   :  { %183 = vadd.xlane.f32.xlu0 %v182_v27  ;;  %65 = vadd.xlane.f32.xlu1 %v64_v28  ;;  %v90_v31 = vpop.xlane.xlu0 %89  ;;  %v158_v40 = vsel %vm42_vm0, %v134_v35, 0.0  ;;  %v87_v41 = vpop.xlane.xlu2 %86 }
  0x97   :  { %156 = vadd.xlane.f32.xlu2 %v155_v29  ;;  %v113_v33 = vmul.f32 %v803_v34, %v90_v31  ;;  %v112_v42 = vmul.f32 %v803_v34, %v87_v41 }
  0x99   :  { %v897_v38 = vsub.f32 %v792_v24, %v113_v33  ;;  %v906_v44 = vsub.f32 %v797_v25, %v112_v42  ;;  %v185_v24 = vsel %vm42_vm0, %v143_v43, 0.0  ;;  %v623_v25 = vld [vmem:[%s1388_s3] sm:$0xf] }
  0x9a   :  { %v624_v59 = vor.u32 %v646_v56, %v623_v25 }
  0x9b   :  { %v145_v18 = vmul.f32 %v897_v38, %v897_v38  ;;  %v144_v46 = vmul.f32 %v906_v44, %v906_v44 }
  0x9c   :  { %647 = vmatpush.bf16.msra.mxu2 %v624_v59  ;;  %494 = vmatpush.bf16.msra.mxu0 %v624_v59 }
  0x9d   :  { %v191_v45 = vsel %vm42_vm0, %v145_v18, 0.0  ;;  %v188_v47 = vsel %vm42_vm0, %v144_v46, 0.0 }
  0x9e   :  { %162 = vadd.xlane.f32.xlu0 %v161_v36  ;;  %153 = vadd.xlane.f32.xlu1 %v152_v37 }
  0x9f   :  { %159 = vadd.xlane.f32.xlu2 %v158_v40 }
  0xa6   :  { %186 = vadd.xlane.f32.xlu1 %v185_v24 }
  0xa7   :  { %192 = vadd.xlane.f32.xlu2 %v191_v45 }
  0xae   :  { %189 = vadd.xlane.f32.xlu1 %v188_v47 }
  0xf1   :  { %v172_v49 = vpop.xlane.xlu0 %171 }
  0xf2   :  { %v202_v50 = vmul.f32 %v172_v49, %v803_v34 }
  0xf4   :  { %v914_v53 = vadd.f32 1e-05, %v202_v50 }
  0xf6   :  { %654 = vrsqrt.f32 %v914_v53  ;;  %vm312_vm3 = vweird.f32 %v914_v53 }
  0xf9   :  { %v63_v62 = vpop.xlane.xlu0 %62  ;;  %v175_v63 = vpop.xlane.xlu1 %174 }
  0xfa   :  { %v104_v0 = vmul.f32 %v803_v34, %v63_v62  ;;  %v151_v1 = vpop.xlane.xlu2 %150  ;;  %v203_v3 = vmul.f32 %v175_v63, %v803_v34 }
  0xfb   :  { %v195_v2 = vmul.f32 %v151_v1, %v803_v34 }
  0xfc   :  { %v932_v4 = vpop.eup %654  ;;  %v935_v6 = vsub.f32 %v817_v48, %v104_v0  ;;  %v219_v7 = vadd.f32 1e-05, %v203_v3 }
  0xfd   :  { %v307_v8 = vmul.f32 %v932_v4, %v914_v53  ;;  %v939_v10 = vadd.f32 1e-05, %v195_v2  ;;  %vm313_vm2 = vweird.f32 %v932_v4 }
  0xfe   :  { %656 = vrsqrt.f32 %v219_v7  ;;  %v136_v11 = vmul.f32 %v935_v6, %v935_v6  ;;  %vm322_vm4 = vweird.f32 %v219_v7  ;;  %vm987_vm6 = vmor %vm312_vm3, %vm313_vm2 }
  0xff   :  { %v308_v15 = vmul.f32 %v932_v4, %v307_v8  ;;  %658 = vrsqrt.f32 %v939_v10  ;;  %vm242_vm7 = vweird.f32 %v939_v10 }
 0x100   :  { %v164_v16 = vsel %vm42_vm0, %v136_v11, 0.0 }
 0x101   :  { %165 = vadd.xlane.f32.xlu0 %v164_v16  ;;  %v181_v14 = vpop.xlane.xlu0 %180  ;;  %v148_v48 = vpop.xlane.xlu1 %147  ;;  %v309_v27 = vmul.f32 0.5, %v308_v15 }
 0x102   :  { %v205_v17 = vmul.f32 %v181_v14, %v803_v34  ;;  %v178_v13 = vpop.xlane.xlu2 %177  ;;  %v194_v22 = vmul.f32 %v148_v48, %v803_v34 }
 0x103   :  { %v204_v28 = vmul.f32 %v178_v13, %v803_v34  ;;  %v310_v36 = vsub.f32 1.5, %v309_v27 }
 0x104   :  { %v949_v29 = vpop.eup %656  ;;  %v951_v31 = vadd.f32 1e-05, %v205_v17  ;;  %v953_v32 = vadd.f32 1e-05, %v194_v22 }
 0x105   :  { %v955_v12 = vpop.eup %658  ;;  %v317_v20 = vmul.f32 %v949_v29, %v219_v7  ;;  %v958_v33 = vadd.f32 1e-05, %v204_v28  ;;  %v311_v47 = vmul.f32 %v932_v4, %v310_v36  ;;  %vm323_vm5 = vweird.f32 %v949_v29 }
 0x106   :  { %v237_v35 = vmul.f32 %v955_v12, %v939_v10  ;;  %660 = vrsqrt.f32 %v951_v31  ;;  %vm243_vm8 = vweird.f32 %v955_v12  ;;  %vm1002_vm9 = vmor %vm322_vm4, %vm323_vm5  ;;  %vm342_vm10 = vweird.f32 %v951_v31 }
 0x107   :  { %v318_v37 = vmul.f32 %v949_v29, %v317_v20  ;;  %662 = vrsqrt.f32 %v958_v33  ;;  %v315_v3 = vsel %vm987_vm6, %v932_v4, %v311_v47  ;;  %vm332_vm11 = vweird.f32 %v958_v33  ;;  %vm1024_vm12 = vmor %vm242_vm7, %vm243_vm8  ;;  %v1034_v20 = vld [vmem:[%s1386_s1] ss:$0 sm:$0xff] }
 0x108   :  { %v238_v40 = vmul.f32 %v955_v12, %v237_v35  ;;  %664 = vrsqrt.f32 %v953_v32  ;;  %v394_v17 = vmul.f32 %v315_v3, %v806_v39  ;;  %vm232_vm13 = vweird.f32 %v953_v32 }
 0x109   :  { %v319_v41 = vmul.f32 0.5, %v318_v37  ;;  %v184_v42 = vpop.xlane.xlu0 %183  ;;  %v66_v43 = vpop.xlane.xlu1 %65 }
 0x10a   :  { %v239_v18 = vmul.f32 0.5, %v238_v40  ;;  %v206_v24 = vmul.f32 %v184_v42, %v803_v34  ;;  %v157_v45 = vpop.xlane.xlu2 %156  ;;  %v105_v46 = vmul.f32 %v803_v34, %v66_v43 }
 0x10b   :  { %v320_v49 = vsub.f32 1.5, %v319_v41  ;;  %v197_v50 = vmul.f32 %v157_v45, %v803_v34  ;;  %v413_v45 = vmul.f32 %v1034_v20, %v394_v17 }
 0x10c   :  { %v972_v25 = vpop.eup %660  ;;  %v976_v56 = vadd.f32 1e-05, %v206_v24  ;;  %v240_v59 = vsub.f32 1.5, %v239_v18  ;;  %v996_v1 = vsub.f32 %v865_v21, %v105_v46 }
 0x10d   :  { %v978_v57 = vpop.eup %662  ;;  %v321_v60 = vmul.f32 %v949_v29, %v320_v49  ;;  %v337_v61 = vmul.f32 %v972_v25, %v951_v31  ;;  %v983_v62 = vadd.f32 1e-05, %v197_v50  ;;  %vm343_vm15 = vweird.f32 %v972_v25  ;;  %v1064_v50 = vld [vmem:[%s1387_s2] ss:$0 sm:$0xff] }
 0x10e   :  { %v985_v63 = vpop.eup %664  ;;  %v327_v53 = vmul.f32 %v978_v57, %v958_v33  ;;  %666 = vrsqrt.f32 %v976_v56  ;;  %v241_v4 = vmul.f32 %v955_v12, %v240_v59  ;;  %vm333_vm1 = vweird.f32 %v978_v57  ;;  %vm1076_vm3 = vmor %vm342_vm10, %vm343_vm15 }
 0x10f   :  { %v338_v8 = vmul.f32 %v972_v25, %v337_v61  ;;  %v227_v11 = vmul.f32 %v985_v63, %v953_v32  ;;  %v325_v21 = vsel %vm1002_vm9, %v949_v29, %v321_v60  ;;  %668 = vrsqrt.f32 %v983_v62  ;;  %vm1085_vm4 = vmor %vm332_vm11, %vm333_vm1 }
 0x110   :  { %v328_v15 = vmul.f32 %v978_v57, %v327_v53  ;;  %v137_v29 = vmul.f32 %v996_v1, %v996_v1  ;;  %v395_v39 = vmul.f32 %v325_v21, %v821_v51  ;;  %vm233_vm14 = vweird.f32 %v985_v63 }
 0x111   :  { %v339_v7 = vmul.f32 0.5, %v338_v8  ;;  %v228_v16 = vmul.f32 %v985_v63, %v227_v11  ;;  %v163_v14 = vpop.xlane.xlu0 %162  ;;  %v154_v48 = vpop.xlane.xlu1 %153  ;;  %v245_v41 = vsel %vm1024_vm12, %v955_v12, %v241_v4  ;;  %vm234_vm2 = vmor %vm232_vm13, %vm233_vm14  ;;  %vm262_vm5 = vweird.f32 %v983_v62 }
 0x112   :  { %v329_v22 = vmul.f32 0.5, %v328_v15  ;;  %v199_v27 = vmul.f32 %v163_v14, %v803_v34  ;;  %v160_v28 = vpop.xlane.xlu2 %159  ;;  %v196_v36 = vmul.f32 %v154_v48, %v803_v34  ;;  %v167_v40 = vsel %vm42_vm0, %v137_v29, 0.0 }
 0x113   :  { %v229_v35 = vmul.f32 0.5, %v228_v16  ;;  %v198_v10 = vmul.f32 %v160_v28, %v803_v34  ;;  %v340_v42 = vsub.f32 1.5, %v339_v7  ;;  %168 = vadd.xlane.f32.xlu1 %v167_v40  ;;  %v414_v49 = vmul.f32 %v1034_v20, %v395_v39 }
 0x114   :  { %v1041_v37 = vadd.f32 1e-05, %v199_v27  ;;  %v330_v43 = vsub.f32 1.5, %v329_v22  ;;  %v1047_v18 = vpop.eup %666  ;;  %v1058_v47 = vadd.f32 1e-05, %v196_v36  ;;  %v387_v59 = vmul.f32 %v245_v41, %v823_v52 }
 0x115   :  { %v230_v51 = vsub.f32 1.5, %v229_v35  ;;  %v1051_v24 = vadd.f32 1e-05, %v198_v10  ;;  %v1054_v46 = vpop.eup %668  ;;  %v341_v61 = vmul.f32 %v972_v25, %v340_v42  ;;  %v347_v31 = vmul.f32 %v1047_v18, %v976_v56 }
 0x116   :  { %670 = vrsqrt.f32 %v1041_v37  ;;  %v257_v60 = vmul.f32 %v1054_v46, %v983_v62  ;;  %v331_v53 = vmul.f32 %v978_v57, %v330_v43  ;;  %v433_v21 = vadd.f32 %v1064_v50, %v414_v49 }
 0x117   :  { %v231_v12 = vmul.f32 %v985_v63, %v230_v51  ;;  %672 = vrsqrt.f32 %v1051_v24  ;;  %v345_v16 = vsel %vm1076_vm3, %v972_v25, %v341_v61  ;;  %v348_v17 = vmul.f32 %v1047_v18, %v347_v31 }
 0x118   :  { %v258_v8 = vmul.f32 %v1054_v46, %v257_v60  ;;  %674 = vrsqrt.f32 %v1058_v47  ;;  %v335_v14 = vsel %vm1085_vm4, %v978_v57, %v331_v53  ;;  %v406_v27 = vmul.f32 %v1034_v20, %v387_v59 }
 0x119   :  { %v235_v52 = vsel %vm234_vm2, %v985_v63, %v231_v12  ;;  %v187_v3 = vpop.xlane.xlu1 %186  ;;  %v432_v63 = vadd.f32 %v1064_v50, %v413_v45  ;;  %vm263_vm6 = vweird.f32 %v1054_v46  ;;  %v396_v39 = vmul.f32 %v335_v14, %v837_v58 }
 0x11a   :  { %v386_v2 = vmul.f32 %v235_v52, %v828_v54  ;;  %v193_v11 = vpop.xlane.xlu2 %192  ;;  %v259_v4 = vmul.f32 0.5, %v258_v8  ;;  %v207_v7 = vmul.f32 %v187_v3, %v803_v34  ;;  %v397_v36 = vmul.f32 %v345_v16, %v830_v55  ;;  %vm1130_vm7 = vmor %vm262_vm5, %vm263_vm6 }
 0x11b   :  { %v209_v33 = vmul.f32 %v193_v11, %v803_v34  ;;  %v444_v48 = vpack.c.bf16 %v433_v21, %v432_v63  ;;  %v349_v43 = vmul.f32 0.5, %v348_v17  ;;  %v425_v58 = vadd.f32 %v1064_v50, %v406_v27 }
 0x11c   :  { %v1097_v15 = vpop.eup %670  ;;  %v405_v54 = vmul.f32 %v1034_v20, %v386_v2  ;;  %v260_v13 = vsub.f32 1.5, %v259_v4  ;;  %v1108_v22 = vadd.f32 1e-05, %v207_v7  ;;  %vm252_vm8 = vweird.f32 %v1058_v47 }
 0x11d   :  { %v1111_v28 = vpop.eup %672  ;;  %v277_v25 = vmul.f32 %v1097_v15, %v1041_v37  ;;  %633 = vmatmul.msk.bf16.vlgmr.msra.gmra.mxu2 %vm42_vm0, %v444_v48  ;;  %641 = vmatmul.msk.bf16.vlgmr.msra.gmra.mxu3 %vm42_vm0, %v444_v48  ;;  %v1119_v57 = vadd.f32 1e-05, %v209_v33  ;;  %v415_v59 = vmul.f32 %v1034_v20, %v396_v39  ;;  %v416_v0 = vmul.f32 %v1034_v20, %v397_v36 }
 0x11e   :  { %v675_v29 = vpop.eup %674  ;;  %v267_v35 = vmul.f32 %v1111_v28, %v1051_v24  ;;  %v424_v10 = vadd.f32 %v1064_v50, %v405_v54  ;;  %v261_v40 = vmul.f32 %v1054_v46, %v260_v13  ;;  %676 = vrsqrt.f32 %v1108_v22 }
 0x11f   :  { %v247_v41 = vmul.f32 %v675_v29, %v1058_v47  ;;  %v278_v45 = vmul.f32 %v1097_v15, %v277_v25  ;;  %678 = vrsqrt.f32 %v1119_v57  ;;  %vm253_vm9 = vweird.f32 %v675_v29 }
 0x120   :  { %v268_v55 = vmul.f32 %v1111_v28, %v267_v35  ;;  %v440_v49 = vpack.c.bf16 %v425_v58, %v424_v10  ;;  %v265_v60 = vsel %vm1130_vm7, %v1054_v46, %v261_v40  ;;  %v350_v53 = vsub.f32 1.5, %v349_v43  ;;  %vm254_vm12 = vmor %vm252_vm8, %vm253_vm9 }
 0x121   :  { %v190_v42 = vpop.xlane.xlu1 %189  ;;  %v248_v12 = vmul.f32 %v675_v29, %v247_v41  ;;  %vm352_vm10 = vweird.f32 %v976_v56  ;;  %v279_v3 = vmul.f32 0.5, %v278_v45  ;;  %vm353_vm11 = vweird.f32 %v1047_v18 }
 0x122   :  { %v208_v62 = vmul.f32 %v190_v42, %v803_v34  ;;  %629 = vmatmul.msk.bf16.vlgmr.msra.gmra.mxu0 %vm42_vm0, %v440_v49  ;;  %637 = vmatmul.msk.bf16.vlgmr.msra.gmra.mxu1 %vm42_vm0, %v440_v49  ;;  %v389_v46 = vmul.f32 %v265_v60, %v856_v9  ;;  %v269_v31 = vmul.f32 0.5, %v268_v55  ;;  %v434_v8 = vadd.f32 %v1064_v50, %v415_v59  ;;  %vm1164_vm13 = vmor %vm352_vm10, %vm353_vm11 }
 0x123   :  { %v249_v61 = vmul.f32 0.5, %v248_v12  ;;  %v435_v33 = vadd.f32 %v1064_v50, %v416_v0  ;;  %v351_v4 = vmul.f32 %v1047_v18, %v350_v53  ;;  %v280_v47 = vsub.f32 1.5, %v279_v3 }
 0x124   :  { %v1148_v52 = vadd.f32 1e-05, %v208_v62  ;;  %v677_v2 = vpop.eup %676  ;;  %vm362_vm14 = vweird.f32 %v1108_v22  ;;  %v408_v48 = vmul.f32 %v1034_v20, %v389_v46  ;;  %v270_v17 = vsub.f32 1.5, %v269_v31 }
 0x125   :  { %v250_v32 = vsub.f32 1.5, %v249_v61  ;;  %v1156_v11 = vpop.eup %678  ;;  %v357_v21 = vmul.f32 %v677_v2, %v1108_v22  ;;  %vm363_vm15 = vweird.f32 %v677_v2  ;;  %v445_v56 = vpack.c.bf16 %v435_v33, %v434_v8 }
 0x126   :  { %680 = vrsqrt.f32 %v1148_v52  ;;  %v377_v14 = vmul.f32 %v1156_v11, %v1119_v57  ;;  %v355_v27 = vsel %vm1164_vm13, %v1047_v18, %v351_v4  ;;  %vm282_vm1 = vweird.f32 %v1041_v37  ;;  %vm364_vm5 = vmor %vm362_vm14, %vm363_vm15 }
 0x127   :  { %v251_v63 = vmul.f32 %v675_v29, %v250_v32  ;;  %v358_v54 = vmul.f32 %v677_v2, %v357_v21  ;;  %vm283_vm2 = vweird.f32 %v1097_v15  ;;  %vm272_vm3 = vweird.f32 %v1051_v24 }
 0x128   :  { %vm273_vm4 = vweird.f32 %v1111_v28  ;;  %v378_v18 = vmul.f32 %v1156_v11, %v377_v14  ;;  %v427_v36 = vadd.f32 %v1064_v50, %v408_v48  ;;  %v398_v24 = vmul.f32 %v355_v27, %v850_v5  ;;  %vm1195_vm6 = vmor %vm282_vm1, %vm283_vm2 }
 0x129   :  { %v255_v7 = vsel %vm254_vm12, %v675_v29, %v251_v63  ;;  %v359_v13 = vmul.f32 0.5, %v358_v54  ;;  %v281_v29 = vmul.f32 %v1097_v15, %v280_v47  ;;  %v271_v41 = vmul.f32 %v1111_v28, %v270_v17  ;;  %vm1200_vm7 = vmor %vm272_vm3, %vm273_vm4 }
 0x12a   :  { %v388_v16 = vmul.f32 %v255_v7, %v871_v23  ;;  %v379_v45 = vmul.f32 0.5, %v378_v18  ;;  %v417_v49 = vmul.f32 %v1034_v20, %v398_v24  ;;  %vm372_vm8 = vweird.f32 %v1148_v52 }
 0x12b   :  { %v360_v39 = vsub.f32 1.5, %v359_v13  ;;  %v285_v5 = vsel %vm1195_vm6, %v1097_v15, %v281_v29  ;;  %v275_v55 = vsel %vm1200_vm7, %v1111_v28, %v271_v41  ;;  %vm382_vm10 = vweird.f32 %v1119_v57 }
 0x12c   :  { %v407_v23 = vmul.f32 %v1034_v20, %v388_v16  ;;  %v681_v25 = vpop.eup %680  ;;  %v391_v60 = vmul.f32 %v285_v5, %v874_v26  ;;  %v380_v15 = vsub.f32 1.5, %v379_v45  ;;  %v436_v28 = vadd.f32 %v1064_v50, %v417_v49 }
 0x12d   :  { %634 = vmatmul.msk.bf16.gmra.mxu2 %vm42_vm0, %v445_v56  ;;  %642 = vmatmul.msk.bf16.gmra.mxu3 %vm42_vm0, %v445_v56  ;;  %v367_v35 = vmul.f32 %v681_v25, %v1148_v52  ;;  %v361_v22 = vmul.f32 %v677_v2, %v360_v39  ;;  %vm373_vm9 = vweird.f32 %v681_v25  ;;  %vm383_vm11 = vweird.f32 %v1156_v11 }
 0x12e   :  { %v426_v10 = vadd.f32 %v1064_v50, %v407_v23  ;;  %vm374_vm12 = vmor %vm372_vm8, %vm373_vm9  ;;  %v381_v3 = vmul.f32 %v1156_v11, %v380_v15  ;;  %v410_v52 = vmul.f32 %v1034_v20, %v391_v60 }
 0x12f   :  { %v368_v43 = vmul.f32 %v681_v25, %v367_v35  ;;  %v365_v58 = vsel %vm364_vm5, %v677_v2, %v361_v22  ;;  %vm384_vm13 = vmor %vm382_vm10, %vm383_vm11 }
 0x130   :  { %v441_v51 = vpack.c.bf16 %v427_v36, %v426_v10  ;;  %v399_v37 = vmul.f32 %v365_v58, %v892_v19  ;;  %v390_v19 = vmul.f32 %v275_v55, %v881_v30  ;;  %v385_v32 = vsel %vm384_vm13, %v1156_v11, %v381_v3 }
 0x131   :  { %v369_v12 = vmul.f32 0.5, %v368_v43  ;;  %v429_v2 = vadd.f32 %v1064_v50, %v410_v52  ;;  %v401_v31 = vmul.f32 %v385_v32, %v897_v38 }
 0x132   :  { %630 = vmatmul.msk.bf16.gmra.mxu0 %vm42_vm0, %v441_v51  ;;  %638 = vmatmul.msk.bf16.gmra.mxu1 %vm42_vm0, %v441_v51  ;;  %v418_v59 = vmul.f32 %v1034_v20, %v399_v37  ;;  %v409_v26 = vmul.f32 %v1034_v20, %v390_v19 }
 0x133   :  { %v370_v62 = vsub.f32 1.5, %v369_v12  ;;  %v420_v21 = vmul.f32 %v1034_v20, %v401_v31 }
 0x134   :  { %v437_v61 = vadd.f32 %v1064_v50, %v418_v59  ;;  %v428_v57 = vadd.f32 %v1064_v50, %v409_v26 }
 0x135   :  { %v371_v0 = vmul.f32 %v681_v25, %v370_v62  ;;  %v439_v11 = vadd.f32 %v1064_v50, %v420_v21 }
 0x136   :  { %v446_v53 = vpack.c.bf16 %v437_v61, %v436_v28  ;;  %v442_v8 = vpack.c.bf16 %v429_v2, %v428_v57 }
 0x137   :  { %v375_v30 = vsel %vm374_vm12, %v681_v25, %v371_v0 }
 0x138   :  { %v400_v46 = vmul.f32 %v375_v30, %v906_v44 }
 0x13a   :  { %v419_v63 = vmul.f32 %v1034_v20, %v400_v46 }
 0x13c   :  { %v438_v33 = vadd.f32 %v1064_v50, %v419_v63 }
 0x13d   :  { %635 = vmatmul.msk.bf16.gmra.mxu2 %vm42_vm0, %v446_v53  ;;  %643 = vmatmul.msk.bf16.gmra.mxu3 %vm42_vm0, %v446_v53 }
 0x13e   :  { %v447_v4 = vpack.c.bf16 %v439_v11, %v438_v33 }
 0x142   :  { %631 = vmatmul.msk.bf16.gmra.mxu0 %vm42_vm0, %v442_v8  ;;  %639 = vmatmul.msk.bf16.gmra.mxu1 %vm42_vm0, %v442_v8 }
 0x14d   :  { %636 = vmatmul.msk.bf16.gmra.mxu2 %vm42_vm0, %v447_v4  ;;  %644 = vmatmul.msk.bf16.gmra.mxu3 %vm42_vm0, %v447_v4 }
 0x174   :  { %v166_v44 = vpop.xlane.xlu0 %165 }
 0x175   :  { %v200_v38 = vmul.f32 %v166_v44, %v803_v34 }
 0x177   :  { %v216_v9 = vadd.f32 1e-05, %v200_v38 }
 0x179   :  { %682 = vrsqrt.f32 %v216_v9  ;;  %vm292_vm14 = vweird.f32 %v216_v9 }
 0x17f   :  { %v683_v47 = vpop.eup %682 }
 0x180   :  { %v287_v7 = vmul.f32 %v683_v47, %v216_v9  ;;  %vm293_vm15 = vweird.f32 %v683_v47 }
 0x181   :  { %vm294_vm1 = vmor %vm292_vm14, %vm293_vm15 }
 0x182   :  { %v288_v54 = vmul.f32 %v683_v47, %v287_v7 }
 0x184   :  { %v289_v17 = vmul.f32 0.5, %v288_v54 }
 0x186   :  { %v169_v16 = vpop.xlane.xlu1 %168  ;;  %v290_v13 = vsub.f32 1.5, %v289_v17 }
 0x187   :  { %v201_v14 = vmul.f32 %v169_v16, %v803_v34  ;;  %v41_v34 = vld [vmem:[%s1389_s4] sm:$0x3] }
 0x188   :  { %v291_v27 = vmul.f32 %v683_v47, %v290_v13  ;;  %v1247_v40 = vperm.slane %v41_v34, 0  ;;  %v1249_v41 = vperm.slane %v41_v34, 1 }
 0x189   :  { %v217_v48 = vadd.f32 1e-05, %v201_v14 }
 0x18a   :  { %v295_v29 = vsel %vm294_vm1, %v683_v47, %v291_v27 }
 0x18b   :  { %684 = vrsqrt.f32 %v217_v48  ;;  %v392_v35 = vmul.f32 %v295_v29, %v935_v6  ;;  %vm302_vm3 = vweird.f32 %v217_v48 }
 0x18d   :  { %v411_v22 = vmul.f32 %v1034_v20, %v392_v35 }
 0x18f   :  { %v430_v37 = vadd.f32 %v1064_v50, %v411_v22 }
 0x191   :  { %v685_v56 = vpop.eup %684 }
 0x192   :  { %v297_v23 = vmul.f32 %v685_v56, %v217_v48  ;;  %vm303_vm2 = vweird.f32 %v685_v56 }
 0x193   :  { %vm304_vm4 = vmor %vm302_vm3, %vm303_vm2 }
 0x194   :  { %v298_v25 = vmul.f32 %v685_v56, %v297_v23 }
 0x196   :  { %v299_v39 = vmul.f32 0.5, %v298_v25 }
 0x198   :  { %v300_v18 = vsub.f32 1.5, %v299_v39 }
 0x19a   :  { %v301_v10 = vmul.f32 %v685_v56, %v300_v18 }
 0x19c   :  { %v305_v36 = vsel %vm304_vm4, %v685_v56, %v301_v10 }
 0x19d   :  { %v393_v24 = vmul.f32 %v305_v36, %v996_v1 }
 0x19f   :  { %v412_v42 = vmul.f32 %v1034_v20, %v393_v24  ;;  %v496_v5 = vpop.f32.mrf.mxu0  ;;  %v545_v45 = vpop.f32.mrf.mxu1 }
 0x1a0   :  { %v516_v43 = vpop.f32.mrf.mxu2  ;;  %v565_v6 = vpop.f32.mrf.mxu3  ;;  %v497_v12 = vadd.f32 %v496_v5, %v1247_v40  ;;  %v546_v55 = vadd.f32 %v545_v45, %v1249_v41 }
 0x1a1   :  { %v517_v51 = vadd.f32 %v516_v43, %v1247_v40  ;;  %v566_v58 = vadd.f32 %v565_v6, %v1249_v41  ;;  %v431_v1 = vadd.f32 %v1064_v50, %v412_v42 }
 0x1a2   :  { %585 = vst [vmem:[%s1390_s5] sm:$0xff] %v497_v12 }
 0x1a3   :  { %601 = vst [vmem:[%s1390_s5 + $0x80] sm:$0xff] %v517_v51  ;;  %v443_v20 = vpack.c.bf16 %v431_v1, %v430_v37 }
 0x1a4   :  { %602 = vst [vmem:[%s1390_s5 + $0x88] sm:$0xff] %v566_v58 }
 0x1a5   :  { %632 = vmatmul.msk.bf16.gmra.mxu0 %vm42_vm0, %v443_v20  ;;  %640 = vmatmul.msk.bf16.gmra.mxu1 %vm42_vm0, %v443_v20  ;;  %586 = vst [vmem:[%s1390_s5 + $0x8] sm:$0xff] %v546_v55 }
 0x1a7   :  { %v498_v60 = vpop.f32.mrf.mxu0  ;;  %v547_v19 = vpop.f32.mrf.mxu1 }
 0x1a8   :  { %v518_v50 = vpop.f32.mrf.mxu2  ;;  %v567_v49 = vpop.f32.mrf.mxu3  ;;  %v499_v15 = vadd.f32 %v498_v60, %v1247_v40  ;;  %v548_v61 = vadd.f32 %v547_v19, %v1249_v41 }
 0x1a9   :  { %v519_v62 = vadd.f32 %v518_v50, %v1247_v40  ;;  %v568_v59 = vadd.f32 %v567_v49, %v1249_v41 }
 0x1aa   :  { %587 = vst [vmem:[%s1390_s5 + $0x10] sm:$0xff] %v499_v15 }
 0x1ab   :  { %603 = vst [vmem:[%s1390_s5 + $0x90] sm:$0xff] %v519_v62 }
 0x1ac   :  { %604 = vst [vmem:[%s1390_s5 + $0x98] sm:$0xff] %v568_v59 }
 0x1ad   :  { %588 = vst [vmem:[%s1390_s5 + $0x18] sm:$0xff] %v548_v61 }
 0x1af   :  { %v501_v26 = vpop.f32.mrf.mxu0  ;;  %v550_v52 = vpop.f32.mrf.mxu1 }
 0x1b0   :  { %v521_v28 = vpop.f32.mrf.mxu2  ;;  %v570_v0 = vpop.f32.mrf.mxu3  ;;  %v502_v30 = vadd.f32 %v501_v26, %v1247_v40  ;;  %v551_v32 = vadd.f32 %v550_v52, %v1249_v41 }
 0x1b1   :  { %v522_v53 = vadd.f32 %v521_v28, %v1247_v40  ;;  %v571_v3 = vadd.f32 %v570_v0, %v1249_v41 }
 0x1b2   :  { %589 = vst [vmem:[%s1390_s5 + $0x20] sm:$0xff] %v502_v30 }
 0x1b3   :  { %605 = vst [vmem:[%s1390_s5 + $0xa0] sm:$0xff] %v522_v53 }
 0x1b4   :  { %606 = vst [vmem:[%s1390_s5 + $0xa8] sm:$0xff] %v571_v3 }
 0x1b5   :  { %590 = vst [vmem:[%s1390_s5 + $0x28] sm:$0xff] %v551_v32 }
 0x1b7   :  { %v503_v8 = vpop.f32.mrf.mxu0  ;;  %v552_v63 = vpop.f32.mrf.mxu1 }
 0x1b8   :  { %v523_v57 = vpop.f32.mrf.mxu2  ;;  %v572_v2 = vpop.f32.mrf.mxu3  ;;  %v504_v21 = vadd.f32 %v503_v8, %v1247_v40  ;;  %v553_v33 = vadd.f32 %v552_v63, %v1249_v41 }
 0x1b9   :  { %v524_v46 = vadd.f32 %v523_v57, %v1247_v40  ;;  %v573_v31 = vadd.f32 %v572_v2, %v1249_v41 }
 0x1ba   :  { %591 = vst [vmem:[%s1390_s5 + $0x30] sm:$0xff] %v504_v21 }
 0x1bb   :  { %607 = vst [vmem:[%s1390_s5 + $0xb0] sm:$0xff] %v524_v46 }
 0x1bc   :  { %608 = vst [vmem:[%s1390_s5 + $0xb8] sm:$0xff] %v573_v31 }
 0x1bd   :  { %592 = vst [vmem:[%s1390_s5 + $0x38] sm:$0xff] %v553_v33 }
 0x1bf   :  { %v506_v9 = vpop.f32.mrf.mxu0  ;;  %v555_v47 = vpop.f32.mrf.mxu1 }
 0x1c0   :  { %v526_v11 = vpop.f32.mrf.mxu2  ;;  %v575_v4 = vpop.f32.mrf.mxu3  ;;  %v507_v7 = vadd.f32 %v506_v9, %v1247_v40  ;;  %v556_v54 = vadd.f32 %v555_v47, %v1249_v41 }
 0x1c1   :  { %v527_v44 = vadd.f32 %v526_v11, %v1247_v40  ;;  %v576_v38 = vadd.f32 %v575_v4, %v1249_v41 }
 0x1c2   :  { %593 = vst [vmem:[%s1390_s5 + $0x40] sm:$0xff] %v507_v7 }
 0x1c3   :  { %609 = vst [vmem:[%s1390_s5 + $0xc0] sm:$0xff] %v527_v44 }
 0x1c4   :  { %610 = vst [vmem:[%s1390_s5 + $0xc8] sm:$0xff] %v576_v38 }
 0x1c5   :  { %594 = vst [vmem:[%s1390_s5 + $0x48] sm:$0xff] %v556_v54 }
 0x1c7   :  { %v508_v13 = vpop.f32.mrf.mxu0  ;;  %v557_v56 = vpop.f32.mrf.mxu1 }
 0x1c8   :  { %v528_v16 = vpop.f32.mrf.mxu2  ;;  %v577_v14 = vpop.f32.mrf.mxu3  ;;  %v509_v27 = vadd.f32 %v508_v13, %v1247_v40  ;;  %v558_v23 = vadd.f32 %v557_v56, %v1249_v41 }
 0x1c9   :  { %v529_v48 = vadd.f32 %v528_v16, %v1247_v40  ;;  %v578_v17 = vadd.f32 %v577_v14, %v1249_v41 }
 0x1ca   :  { %595 = vst [vmem:[%s1390_s5 + $0x50] sm:$0xff] %v509_v27 }
 0x1cb   :  { %611 = vst [vmem:[%s1390_s5 + $0xd0] sm:$0xff] %v529_v48 }
 0x1cc   :  { %612 = vst [vmem:[%s1390_s5 + $0xd8] sm:$0xff] %v578_v17 }
 0x1cd   :  { %596 = vst [vmem:[%s1390_s5 + $0x58] sm:$0xff] %v558_v23 }
 0x1d0   :  { %v531_v25 = vpop.f32.mrf.mxu2  ;;  %v580_v29 = vpop.f32.mrf.mxu3 }
 0x1d1   :  { %v532_v39 = vadd.f32 %v531_v25, %v1247_v40  ;;  %v581_v18 = vadd.f32 %v580_v29, %v1249_v41 }
 0x1d3   :  { %613 = vst [vmem:[%s1390_s5 + $0xe0] sm:$0xff] %v532_v39 }
 0x1d4   :  { %614 = vst [vmem:[%s1390_s5 + $0xe8] sm:$0xff] %v581_v18 }
 0x1d8   :  { %v533_v35 = vpop.f32.mrf.mxu2  ;;  %v582_v10 = vpop.f32.mrf.mxu3 }
 0x1d9   :  { %v534_v34 = vadd.f32 %v533_v35, %v1247_v40  ;;  %v583_v36 = vadd.f32 %v582_v10, %v1249_v41 }
 0x1db   :  { %615 = vst [vmem:[%s1390_s5 + $0xf0] sm:$0xff] %v534_v34 }
 0x1dc   :  { %616 = vst [vmem:[%s1390_s5 + $0xf8] sm:$0xff] %v583_v36 }
 0x222   :  { %v511_v24 = vpop.f32.mrf.mxu0  ;;  %v560_v22 = vpop.f32.mrf.mxu1 }
 0x223   :  { %v512_v42 = vadd.f32 %v511_v24, %v1247_v40  ;;  %v561_v43 = vadd.f32 %v560_v22, %v1249_v41 }
 0x225   :  { %597 = vst [vmem:[%s1390_s5 + $0x60] sm:$0xff] %v512_v42 }
 0x226   :  { %598 = vst [vmem:[%s1390_s5 + $0x68] sm:$0xff] %v561_v43 }
 0x22a   :  { %v513_v6 = vpop.f32.mrf.mxu0  ;;  %v562_v51 = vpop.f32.mrf.mxu1 }
 0x22b   :  { %v514_v58 = vadd.f32 %v513_v6, %v1247_v40  ;;  %v563_v5 = vadd.f32 %v562_v51, %v1249_v41 }
 0x22d   :  { %599 = vst [vmem:[%s1390_s5 + $0x70] sm:$0xff] %v514_v58 }
 0x22e   :  { %600 = vst [vmem:[%s1390_s5 + $0x78] sm:$0xff] %v563_v5 }

</bundles_post_ra>
